<compile_context>
chip_gen: v6e
topology: v6e:2x2x1
jax: 0.10.0
libtpu: 0.0.40
codegen_flags: <defaults>
</compile_context>

<pallas_src>
import jax
import jax.numpy as jnp
from jax.experimental import pallas as pl
from jax.experimental.pallas import tpu as pltpu

LANE = 128
SUBLANE = 8


def _round_up(n, m):
    return ((n + m - 1) // m) * m


# ---------------------------------------------------------------------------
# Pallas kernel: one batch element per grid step, everything fused in VMEM.
# ---------------------------------------------------------------------------
def residual_block_kernel(x_ref, w1_ref, b1_ref, w3a_ref, t1_ref,
                          w3b_ref, t2_ref, o_ref,
                          xp_ref, x0_ref):
    _, H, W, Cin = x_ref.shape
    C = w1_ref.shape[1]
    HW = H * W
    cp8 = o_ref.shape[1]                 # compact output channel rows

    # Zero only the 1-pixel halo border (4 thin strips).  Interior is fully
    # overwritten by every conv3x3 below.  Re-done each step for megacore
    # safety (scratch is per-core; see header note).
    zrow = jnp.zeros((1, W + 2, C), jnp.bfloat16)
    zcol = jnp.zeros((H + 2, 1, C), jnp.bfloat16)
    xp_ref[pl.ds(0, 1), :, :] = zrow
    xp_ref[pl.ds(H + 1, 1), :, :] = zrow
    xp_ref[:, pl.ds(0, 1), :] = zcol
    xp_ref[:, pl.ds(W + 1, 1), :] = zcol

    # ---- align: 1x1 conv == channel matmul (bf16 in, f32 accumulate) ------
    x = x_ref[0].reshape(HW, Cin)                                   # bf16
    x0 = jnp.dot(x, w1_ref[...], preferred_element_type=jnp.float32)
    x0 = x0 + b1_ref[...]                                           # (HW, C) f32
    x0_ref[...] = x0            # park residual branch in VMEM (bounds vregs)

    def conv3x3(act_f32, w_ref, t_ref):
        """3x3 conv, pad=1, BN scale pre-folded into w: 9 shifted-slice matmuls.

        No im2col materialization: each tap's (HW, C) slice feeds the MXU
        directly; the centre tap comes straight from registers.  Accumulation
        happens in registers (MRB on v7x, VPU adds on v5e/v6e).
        """
        act = act_f32.astype(jnp.bfloat16)                          # (HW, C)
        xp_ref[pl.ds(1, H), pl.ds(1, W), :] = act.reshape(H, W, C)
        acc = jnp.dot(act, w_ref[4], preferred_element_type=jnp.float32)
        for dy in range(3):
            for dx in range(3):
                if dy == 1 and dx == 1:
                    continue                      # centre tap already done
                k = dy * 3 + dx
                # W % 8 == 0 keeps this (H, W, C) -> (HW, C) merge layout-trivial.
                lhs = xp_ref[pl.ds(dy, H), pl.ds(dx, W), :].reshape(HW, C)
                acc = acc + jnp.dot(lhs, w_ref[k],
                                    preferred_element_type=jnp.float32)
        return acc + t_ref[...]                                     # (HW, C) f32

    # conv1 (+ folded BN1 scale) + BN1 shift + ELU (overflow-safe form)
    y = conv3x3(x0, w3a_ref, t1_ref)
    y = jnp.where(y > 0.0, y, jnp.exp(jnp.minimum(y, 0.0)) - 1.0)

    # conv2 (+ folded BN2 scale) + BN2 shift
    y = conv3x3(y, w3b_ref, t2_ref)

    # residual add + ReLU, then emit a compact lane-dense (cp8, HW) bf16 slab.
    out = jnp.maximum(x0_ref[...] + y, 0.0)                         # (HW, C) f32
    o_ref[0] = jnp.transpose(out)[:cp8, :].astype(o_ref.dtype)      # (cp8, HW)


# ---------------------------------------------------------------------------
# Wrapper: layout change (NCHW->NHWC), channel padding, BN folding, pallas_call
# ---------------------------------------------------------------------------
def residual_block_pallas(x_nchw, p, eps=1e-5):
    N, Cin, H, W = x_nchw.shape
    Cout = p["w_align"].shape[0]
    Cin_p = _round_up(Cin, LANE)
    C = _round_up(Cout, LANE)
    Cp8 = _round_up(Cout, SUBLANE)      # channel rows actually written back
    HW = H * W

    # NCHW -> NHWC, bf16, zero-pad input channels to a lane-dense width.
    x = jnp.transpose(x_nchw, (0, 2, 3, 1)).astype(jnp.bfloat16)
    x = jnp.pad(x, ((0, 0), (0, 0), (0, 0), (0, Cin_p - Cin)))

    # align 1x1 conv: (Cout, Cin, 1, 1) -> (Cin_p, C), zero-padded, bf16.
    w1 = jnp.transpose(p["w_align"][:, :, 0, 0], (1, 0))
    w1 = jnp.pad(w1, ((0, Cin_p - Cin), (0, C - Cout))).astype(jnp.bfloat16)
    b1 = jnp.pad(p["b_align"], (0, C - Cout)).reshape(1, C).astype(jnp.float32)

    # Fold BatchNorm (inference) into each 3x3 conv:
    #   BN(conv_raw(x) + b) = conv[s*w](x) + (s*(b - mean) + beta),
    #   s = gamma / sqrt(var + eps).
    s1 = p["bn1_gamma"] / jnp.sqrt(p["bn1_var"] + eps)
    t1 = s1 * (p["b_conv1"] - p["bn1_mean"]) + p["bn1_beta"]
    s2 = p["bn2_gamma"] / jnp.sqrt(p["bn2_var"] + eps)
    t2 = s2 * (p["b_conv2"] - p["bn2_mean"]) + p["bn2_beta"]

    def prep_w3(w_oihw, s):
        w = w_oihw * s[:, None, None, None]                # fold BN scale
        w = jnp.transpose(w, (2, 3, 1, 0))                 # OIHW -> HWIO
        w = jnp.pad(w, ((0, 0), (0, 0), (0, C - Cout), (0, C - Cout)))
        return w.reshape(9, C, C).astype(jnp.bfloat16)     # (tap, Cin, Cout)

    w3a = prep_w3(p["w_conv1"], s1)
    w3b = prep_w3(p["w_conv2"], s2)
    t1p = jnp.pad(t1, (0, C - Cout)).reshape(1, C).astype(jnp.float32)
    t2p = jnp.pad(t2, (0, C - Cout)).reshape(1, C).astype(jnp.float32)

    def full(shape):
        return pl.BlockSpec(shape, lambda n, _nd=len(shape): (0,) * _nd)

    # Explicit VMEM budget: true sum (double-buffered I/O blocks + weights +
    # scratch) + 20% headroom, clamped to this chip generation's capacity.
    f_in = 2 * H * W * Cin_p * 2                                  # input blocks, bf16
    f_out = 2 * Cp8 * HW * 2                                      # output blocks, bf16
    f_w = 2 * ((Cin_p * C + 2 * 9 * C * C) * 2 + 3 * C * 4)       # weights + shifts
    f_scr = (H + 2) * (W + 2) * C * 2 + HW * C * 4                # halo act + residual
    need = f_in + f_out + f_w + f_scr
    try:
        cap = int(pltpu.get_tpu_info().vmem_capacity_bytes)
    except Exception:  # pragma: no cover - conservative fallback
        cap = 64 * 2 ** 20
    vmem_limit = int(min(int(cap * 0.9), max(16 * 2 ** 20, int(need * 1.2))))

    out_flat = pl.pallas_call(
        residual_block_kernel,
        out_shape=jax.ShapeDtypeStruct((N, Cp8, HW), jnp.bfloat16),
        grid_spec=pltpu.PrefetchScalarGridSpec(
            num_scalar_prefetch=0,
            grid=(N,),
            in_specs=[
                pl.BlockSpec((1, H, W, Cin_p), lambda n: (n, 0, 0, 0)),
                full((Cin_p, C)), full((1, C)),
                full((9, C, C)), full((1, C)),
                full((9, C, C)), full((1, C)),
            ],
            out_specs=pl.BlockSpec((1, Cp8, HW), lambda n: (n, 0, 0)),
            scratch_shapes=[
                pltpu.VMEM((H + 2, W + 2, C), jnp.bfloat16),   # halo-padded act
                pltpu.VMEM((HW, C), jnp.float32),              # residual branch
            ],
        ),
        compiler_params=pltpu.CompilerParams(
            dimension_semantics=("parallel",),
            vmem_limit_bytes=vmem_limit,
        ),
    )(x, w1, b1, w3a, t1p, w3b, t2p)

    # (N, Cp8, H*W) bf16 -> NCHW, drop channel padding.  Kept in bf16 so the
    # kernel writeback and downstream traffic stay halved; cast in the caller
    # if f32 is required.
    return out_flat.reshape(N, Cp8, H, W)[:, :Cout]


# ---------------------------------------------------------------------------
# Pure-JAX f32 reference (lax.conv) for correctness check
# ---------------------------------------------------------------------------
def residual_block_ref(x, p, eps=1e-5):
    dn = ("NCHW", "OIHW", "NCHW")

    def conv(y, w, b, pad):
        o = jax.lax.conv_general_dilated(y, w, (1, 1), pad, dimension_numbers=dn)
        return o + b[None, :, None, None]

    def bn(y, g, be, m, v):
        return (g[None, :, None, None] * (y - m[None, :, None, None])
                / jnp.sqrt(v[None, :, None, None] + eps) + be[None, :, None, None])

    x0 = conv(x, p["w_align"], p["b_align"], "VALID")
    y = conv(x0, p["w_conv1"], p["b_conv1"], ((1, 1), (1, 1)))
    y = bn(y, p["bn1_gamma"], p["bn1_beta"], p["bn1_mean"], p["bn1_var"])
    y = jnp.where(y > 0, y, jnp.exp(jnp.minimum(y, 0.0)) - 1.0)
    y = conv(y, p["w_conv2"], p["b_conv2"], ((1, 1), (1, 1)))
    y = bn(y, p["bn2_gamma"], p["bn2_beta"], p["bn2_mean"], p["bn2_var"])
    return jnp.maximum(x0 + y, 0.0)


def make_params(key, nch_in, nch_out):
    ks = jax.random.split(key, 14)
    n, u = jax.random.normal, jax.random.uniform
    return {
        "w_align": 0.3 * n(ks[0], (nch_out, nch_in, 1, 1), jnp.float32),
        "b_align": 0.1 * n(ks[1], (nch_out,), jnp.float32),
        "w_conv1": 0.15 * n(ks[2], (nch_out, nch_out, 3, 3), jnp.float32),
        "b_conv1": 0.1 * n(ks[3], (nch_out,), jnp.float32),
        "w_conv2": 0.15 * n(ks[4], (nch_out, nch_out, 3, 3), jnp.float32),
        "b_conv2": 0.1 * n(ks[5], (nch_out,), jnp.float32),
        "bn1_gamma": 1.0 + 0.1 * n(ks[6], (nch_out,), jnp.float32),
        "bn1_beta": 0.05 * n(ks[7], (nch_out,), jnp.float32),
        "bn1_mean": 0.02 * n(ks[8], (nch_out,), jnp.float32),
        "bn1_var": 1.0 + u(ks[9], (nch_out,), jnp.float32, 0.0, 0.2),
        "bn2_gamma": 1.0 + 0.1 * n(ks[10], (nch_out,), jnp.float32),
        "bn2_beta": 0.05 * n(ks[11], (nch_out,), jnp.float32),
        "bn2_mean": 0.02 * n(ks[12], (nch_out,), jnp.float32),
        "bn2_var": 1.0 + u(ks[13], (nch_out,), jnp.float32, 0.0, 0.2),
    }


if __name__ == "__main__":
    N, Cin, Cout, H, W = 2, 4, 8, 16, 16
    key = jax.random.PRNGKey(0)
    kx, kp = jax.random.split(key)

    x = jax.random.normal(kx, (N, Cin, H, W), jnp.float32)
    params = make_params(kp, Cin, Cout)

    out = residual_block_pallas(x, params)
    out = jax.block_until_ready(out)

    ref = residual_block_ref(x, params)
    assert out.shape == (N, Cout, H, W), out.shape
    out_f32 = out.astype(jnp.float32)
    max_err = float(jnp.max(jnp.abs(out_f32 - ref)))
    # bf16 matmul inputs / intermediates / output with f32 accumulation ->
    # tolerance loosened vs pure f32.
    assert jnp.allclose(out_f32, ref, atol=5e-2, rtol=5e-2), f"max_err={max_err}"
    print("KERNEL_OK")
</pallas_src>

<mosaic_0001>
module attributes {stable_mosaic.version = 11 : i64} {
  func.func @residual_block_kernel(%arg0: i32, %arg1: memref<1x16x16x128xbf16, #tpu.memory_space<vmem>>, %arg2: memref<128x128xbf16, #tpu.memory_space<vmem>>, %arg3: memref<1x128xf32, #tpu.memory_space<vmem>>, %arg4: memref<9x128x128xbf16, #tpu.memory_space<vmem>>, %arg5: memref<1x128xf32, #tpu.memory_space<vmem>>, %arg6: memref<9x128x128xbf16, #tpu.memory_space<vmem>>, %arg7: memref<1x128xf32, #tpu.memory_space<vmem>>, %arg8: memref<1x8x256xbf16, #tpu.memory_space<vmem>>, %arg9: memref<18x18x128xbf16, #tpu.memory_space<vmem>>, %arg10: memref<256x128xf32, #tpu.memory_space<vmem>>) attributes {dimension_semantics = [#tpu.dimension_semantics<parallel>], iteration_bounds = array<i64: 2>, scalar_prefetch = 0 : i64, scratch_operands = 2 : i64, tpu.core_type = #tpu.core_type<tc>, window_params = [{transform_indices = @transform_0, window_bounds = array<i64: 1, 16, 16, 128>}, {pipeline_mode = #tpu.pipeline_mode<synchronous>, transform_indices = @transform_1, window_bounds = array<i64: 128, 128>}, {pipeline_mode = #tpu.pipeline_mode<synchronous>, transform_indices = @transform_2, window_bounds = array<i64: 1, 128>}, {pipeline_mode = #tpu.pipeline_mode<synchronous>, transform_indices = @transform_3, window_bounds = array<i64: 9, 128, 128>}, {pipeline_mode = #tpu.pipeline_mode<synchronous>, transform_indices = @transform_4, window_bounds = array<i64: 1, 128>}, {pipeline_mode = #tpu.pipeline_mode<synchronous>, transform_indices = @transform_5, window_bounds = array<i64: 9, 128, 128>}, {pipeline_mode = #tpu.pipeline_mode<synchronous>, transform_indices = @transform_6, window_bounds = array<i64: 1, 128>}, {transform_indices = @transform_7, window_bounds = array<i64: 1, 8, 256>}]} {
    %cst = arith.constant 0.000000e+00 : bf16
    %0 = vector.broadcast %cst : bf16 to vector<1x18x128xbf16>
    %cst_0 = arith.constant 0.000000e+00 : bf16
    %1 = vector.broadcast %cst_0 : bf16 to vector<18x1x128xbf16>
    %c0 = arith.constant 0 : index
    %c0_1 = arith.constant 0 : index
    %c0_2 = arith.constant 0 : index
    %2 = vector.load %arg9[%c0, %c0_1, %c0_2] : memref<18x18x128xbf16, #tpu.memory_space<vmem>>, vector<1x18x128xbf16>
    tpu.vector_store %arg9[%c0, %c0_1, %c0_2], %0 {strides = array<i32>} : memref<18x18x128xbf16, #tpu.memory_space<vmem>>, vector<1x18x128xbf16>,
    %c17 = arith.constant 17 : index
    %c0_3 = arith.constant 0 : index
    %c0_4 = arith.constant 0 : index
    %3 = vector.load %arg9[%c17, %c0_3, %c0_4] : memref<18x18x128xbf16, #tpu.memory_space<vmem>>, vector<1x18x128xbf16>
    tpu.vector_store %arg9[%c17, %c0_3, %c0_4], %0 {strides = array<i32>} : memref<18x18x128xbf16, #tpu.memory_space<vmem>>, vector<1x18x128xbf16>,
    %c0_5 = arith.constant 0 : index
    %c0_6 = arith.constant 0 : index
    %c0_7 = arith.constant 0 : index
    %4 = vector.load %arg9[%c0_5, %c0_6, %c0_7] : memref<18x18x128xbf16, #tpu.memory_space<vmem>>, vector<18x1x128xbf16>
    tpu.vector_store %arg9[%c0_5, %c0_6, %c0_7], %1 {strides = array<i32>} : memref<18x18x128xbf16, #tpu.memory_space<vmem>>, vector<18x1x128xbf16>,
    %c0_8 = arith.constant 0 : index
    %c17_9 = arith.constant 17 : index
    %c0_10 = arith.constant 0 : index
    %5 = vector.load %arg9[%c0_8, %c17_9, %c0_10] : memref<18x18x128xbf16, #tpu.memory_space<vmem>>, vector<18x1x128xbf16>
    tpu.vector_store %arg9[%c0_8, %c17_9, %c0_10], %1 {strides = array<i32>} : memref<18x18x128xbf16, #tpu.memory_space<vmem>>, vector<18x1x128xbf16>,
    %c0_11 = arith.constant 0 : index
    %c0_12 = arith.constant 0 : index
    %c0_13 = arith.constant 0 : index
    %c0_14 = arith.constant 0 : index
    %6 = vector.load %arg1[%c0_11, %c0_12, %c0_13, %c0_14] : memref<1x16x16x128xbf16, #tpu.memory_space<vmem>>, vector<1x16x16x128xbf16>
    %7 = vector.shape_cast %6 : vector<1x16x16x128xbf16> to vector<16x16x128xbf16>
    %8 = vector.shape_cast %7 : vector<16x16x128xbf16> to vector<256x128xbf16>
    %c0_15 = arith.constant 0 : index
    %c0_16 = arith.constant 0 : index
    %9 = vector.load %arg2[%c0_15, %c0_16] : memref<128x128xbf16, #tpu.memory_space<vmem>>, vector<128x128xbf16>
    %cst_17 = arith.constant dense<0.000000e+00> : vector<256x128xf32>
    %10 = tpu.matmul %8, %9, %cst_17 {dimension_numbers = #tpu.dot_dimension_numbers<[1], [0], [0], [1], [0, 0, 1, 1], [], []>} : vector<256x128xbf16>, vector<128x128xbf16>, vector<256x128xf32> -> vector<256x128xf32>
    %c0_18 = arith.constant 0 : index
    %c0_19 = arith.constant 0 : index
    %11 = vector.load %arg3[%c0_18, %c0_19] : memref<1x128xf32, #tpu.memory_space<vmem>>, vector<1x128xf32>
    %12 = vector.broadcast %11 : vector<1x128xf32> to vector<256x128xf32>
    %13 = arith.addf %10, %12 : vector<256x128xf32>
    %c0_20 = arith.constant 0 : index
    %c0_21 = arith.constant 0 : index
    %14 = vector.load %arg10[%c0_20, %c0_21] : memref<256x128xf32, #tpu.memory_space<vmem>>, vector<256x128xf32>
    tpu.vector_store %arg10[%c0_20, %c0_21], %13 {strides = array<i32>} : memref<256x128xf32, #tpu.memory_space<vmem>>, vector<256x128xf32>,
    %15 = arith.truncf %13 : vector<256x128xf32> to vector<256x128xbf16>
    %16 = vector.shape_cast %15 : vector<256x128xbf16> to vector<16x16x128xbf16>
    %c1 = arith.constant 1 : index
    %c1_22 = arith.constant 1 : index
    %c0_23 = arith.constant 0 : index
    %17 = vector.load %arg9[%c1, %c1_22, %c0_23] : memref<18x18x128xbf16, #tpu.memory_space<vmem>>, vector<16x16x128xbf16>
    tpu.vector_store %arg9[%c1, %c1_22, %c0_23], %16 {strides = array<i32>} : memref<18x18x128xbf16, #tpu.memory_space<vmem>>, vector<16x16x128xbf16>,
    %c4 = arith.constant 4 : index
    %c0_24 = arith.constant 0 : index
    %c0_25 = arith.constant 0 : index
    %18 = vector.load %arg4[%c4, %c0_24, %c0_25] : memref<9x128x128xbf16, #tpu.memory_space<vmem>>, vector<1x128x128xbf16>
    %19 = vector.shape_cast %18 : vector<1x128x128xbf16> to vector<128x128xbf16>
    %cst_26 = arith.constant dense<0.000000e+00> : vector<256x128xf32>
    %20 = tpu.matmul %15, %19, %cst_26 {dimension_numbers = #tpu.dot_dimension_numbers<[1], [0], [0], [1], [0, 0, 1, 1], [], []>} : vector<256x128xbf16>, vector<128x128xbf16>, vector<256x128xf32> -> vector<256x128xf32>
    %c0_27 = arith.constant 0 : index
    %c0_28 = arith.constant 0 : index
    %c0_29 = arith.constant 0 : index
    %21 = vector.load %arg9[%c0_27, %c0_28, %c0_29] : memref<18x18x128xbf16, #tpu.memory_space<vmem>>, vector<16x16x128xbf16>
    %22 = vector.shape_cast %21 : vector<16x16x128xbf16> to vector<256x128xbf16>
    %c0_30 = arith.constant 0 : index
    %c0_31 = arith.constant 0 : index
    %c0_32 = arith.constant 0 : index
    %23 = vector.load %arg4[%c0_30, %c0_31, %c0_32] : memref<9x128x128xbf16, #tpu.memory_space<vmem>>, vector<1x128x128xbf16>
    %24 = vector.shape_cast %23 : vector<1x128x128xbf16> to vector<128x128xbf16>
    %cst_33 = arith.constant dense<0.000000e+00> : vector<256x128xf32>
    %25 = tpu.matmul %22, %24, %cst_33 {dimension_numbers = #tpu.dot_dimension_numbers<[1], [0], [0], [1], [0, 0, 1, 1], [], []>} : vector<256x128xbf16>, vector<128x128xbf16>, vector<256x128xf32> -> vector<256x128xf32>
    %26 = arith.addf %20, %25 : vector<256x128xf32>
    %c0_34 = arith.constant 0 : index
    %c1_35 = arith.constant 1 : index
    %c0_36 = arith.constant 0 : index
    %27 = vector.load %arg9[%c0_34, %c1_35, %c0_36] : memref<18x18x128xbf16, #tpu.memory_space<vmem>>, vector<16x16x128xbf16>
    %28 = vector.shape_cast %27 : vector<16x16x128xbf16> to vector<256x128xbf16>
    %c1_37 = arith.constant 1 : index
    %c0_38 = arith.constant 0 : index
    %c0_39 = arith.constant 0 : index
    %29 = vector.load %arg4[%c1_37, %c0_38, %c0_39] : memref<9x128x128xbf16, #tpu.memory_space<vmem>>, vector<1x128x128xbf16>
    %30 = vector.shape_cast %29 : vector<1x128x128xbf16> to vector<128x128xbf16>
    %cst_40 = arith.constant dense<0.000000e+00> : vector<256x128xf32>
    %31 = tpu.matmul %28, %30, %cst_40 {dimension_numbers = #tpu.dot_dimension_numbers<[1], [0], [0], [1], [0, 0, 1, 1], [], []>} : vector<256x128xbf16>, vector<128x128xbf16>, vector<256x128xf32> -> vector<256x128xf32>
    %32 = arith.addf %26, %31 : vector<256x128xf32>
    %c0_41 = arith.constant 0 : index
    %c2 = arith.constant 2 : index
    %c0_42 = arith.constant 0 : index
    %33 = vector.load %arg9[%c0_41, %c2, %c0_42] : memref<18x18x128xbf16, #tpu.memory_space<vmem>>, vector<16x16x128xbf16>
    %34 = vector.shape_cast %33 : vector<16x16x128xbf16> to vector<256x128xbf16>
    %c2_43 = arith.constant 2 : index
    %c0_44 = arith.constant 0 : index
    %c0_45 = arith.constant 0 : index
    %35 = vector.load %arg4[%c2_43, %c0_44, %c0_45] : memref<9x128x128xbf16, #tpu.memory_space<vmem>>, vector<1x128x128xbf16>
    %36 = vector.shape_cast %35 : vector<1x128x128xbf16> to vector<128x128xbf16>
    %cst_46 = arith.constant dense<0.000000e+00> : vector<256x128xf32>
    %37 = tpu.matmul %34, %36, %cst_46 {dimension_numbers = #tpu.dot_dimension_numbers<[1], [0], [0], [1], [0, 0, 1, 1], [], []>} : vector<256x128xbf16>, vector<128x128xbf16>, vector<256x128xf32> -> vector<256x128xf32>
    %38 = arith.addf %32, %37 : vector<256x128xf32>
    %c1_47 = arith.constant 1 : index
    %c0_48 = arith.constant 0 : index
    %c0_49 = arith.constant 0 : index
    %39 = vector.load %arg9[%c1_47, %c0_48, %c0_49] : memref<18x18x128xbf16, #tpu.memory_space<vmem>>, vector<16x16x128xbf16>
    %40 = vector.shape_cast %39 : vector<16x16x128xbf16> to vector<256x128xbf16>
    %c3 = arith.constant 3 : index
    %c0_50 = arith.constant 0 : index
    %c0_51 = arith.constant 0 : index
    %41 = vector.load %arg4[%c3, %c0_50, %c0_51] : memref<9x128x128xbf16, #tpu.memory_space<vmem>>, vector<1x128x128xbf16>
    %42 = vector.shape_cast %41 : vector<1x128x128xbf16> to vector<128x128xbf16>
    %cst_52 = arith.constant dense<0.000000e+00> : vector<256x128xf32>
    %43 = tpu.matmul %40, %42, %cst_52 {dimension_numbers = #tpu.dot_dimension_numbers<[1], [0], [0], [1], [0, 0, 1, 1], [], []>} : vector<256x128xbf16>, vector<128x128xbf16>, vector<256x128xf32> -> vector<256x128xf32>
    %44 = arith.addf %38, %43 : vector<256x128xf32>
    %c1_53 = arith.constant 1 : index
    %c2_54 = arith.constant 2 : index
    %c0_55 = arith.constant 0 : index
    %45 = vector.load %arg9[%c1_53, %c2_54, %c0_55] : memref<18x18x128xbf16, #tpu.memory_space<vmem>>, vector<16x16x128xbf16>
    %46 = vector.shape_cast %45 : vector<16x16x128xbf16> to vector<256x128xbf16>
    %c5 = arith.constant 5 : index
    %c0_56 = arith.constant 0 : index
    %c0_57 = arith.constant 0 : index
    %47 = vector.load %arg4[%c5, %c0_56, %c0_57] : memref<9x128x128xbf16, #tpu.memory_space<vmem>>, vector<1x128x128xbf16>
    %48 = vector.shape_cast %47 : vector<1x128x128xbf16> to vector<128x128xbf16>
    %cst_58 = arith.constant dense<0.000000e+00> : vector<256x128xf32>
    %49 = tpu.matmul %46, %48, %cst_58 {dimension_numbers = #tpu.dot_dimension_numbers<[1], [0], [0], [1], [0, 0, 1, 1], [], []>} : vector<256x128xbf16>, vector<128x128xbf16>, vector<256x128xf32> -> vector<256x128xf32>
    %50 = arith.addf %44, %49 : vector<256x128xf32>
    %c2_59 = arith.constant 2 : index
    %c0_60 = arith.constant 0 : index
    %c0_61 = arith.constant 0 : index
    %51 = vector.load %arg9[%c2_59, %c0_60, %c0_61] : memref<18x18x128xbf16, #tpu.memory_space<vmem>>, vector<16x16x128xbf16>
    %52 = vector.shape_cast %51 : vector<16x16x128xbf16> to vector<256x128xbf16>
    %c6 = arith.constant 6 : index
    %c0_62 = arith.constant 0 : index
    %c0_63 = arith.constant 0 : index
    %53 = vector.load %arg4[%c6, %c0_62, %c0_63] : memref<9x128x128xbf16, #tpu.memory_space<vmem>>, vector<1x128x128xbf16>
    %54 = vector.shape_cast %53 : vector<1x128x128xbf16> to vector<128x128xbf16>
    %cst_64 = arith.constant dense<0.000000e+00> : vector<256x128xf32>
    %55 = tpu.matmul %52, %54, %cst_64 {dimension_numbers = #tpu.dot_dimension_numbers<[1], [0], [0], [1], [0, 0, 1, 1], [], []>} : vector<256x128xbf16>, vector<128x128xbf16>, vector<256x128xf32> -> vector<256x128xf32>
    %56 = arith.addf %50, %55 : vector<256x128xf32>
    %c2_65 = arith.constant 2 : index
    %c1_66 = arith.constant 1 : index
    %c0_67 = arith.constant 0 : index
    %57 = vector.load %arg9[%c2_65, %c1_66, %c0_67] : memref<18x18x128xbf16, #tpu.memory_space<vmem>>, vector<16x16x128xbf16>
    %58 = vector.shape_cast %57 : vector<16x16x128xbf16> to vector<256x128xbf16>
    %c7 = arith.constant 7 : index
    %c0_68 = arith.constant 0 : index
    %c0_69 = arith.constant 0 : index
    %59 = vector.load %arg4[%c7, %c0_68, %c0_69] : memref<9x128x128xbf16, #tpu.memory_space<vmem>>, vector<1x128x128xbf16>
    %60 = vector.shape_cast %59 : vector<1x128x128xbf16> to vector<128x128xbf16>
    %cst_70 = arith.constant dense<0.000000e+00> : vector<256x128xf32>
    %61 = tpu.matmul %58, %60, %cst_70 {dimension_numbers = #tpu.dot_dimension_numbers<[1], [0], [0], [1], [0, 0, 1, 1], [], []>} : vector<256x128xbf16>, vector<128x128xbf16>, vector<256x128xf32> -> vector<256x128xf32>
    %62 = arith.addf %56, %61 : vector<256x128xf32>
    %c2_71 = arith.constant 2 : index
    %c2_72 = arith.constant 2 : index
    %c0_73 = arith.constant 0 : index
    %63 = vector.load %arg9[%c2_71, %c2_72, %c0_73] : memref<18x18x128xbf16, #tpu.memory_space<vmem>>, vector<16x16x128xbf16>
    %64 = vector.shape_cast %63 : vector<16x16x128xbf16> to vector<256x128xbf16>
    %c8 = arith.constant 8 : index
    %c0_74 = arith.constant 0 : index
    %c0_75 = arith.constant 0 : index
    %65 = vector.load %arg4[%c8, %c0_74, %c0_75] : memref<9x128x128xbf16, #tpu.memory_space<vmem>>, vector<1x128x128xbf16>
    %66 = vector.shape_cast %65 : vector<1x128x128xbf16> to vector<128x128xbf16>
    %cst_76 = arith.constant dense<0.000000e+00> : vector<256x128xf32>
    %67 = tpu.matmul %64, %66, %cst_76 {dimension_numbers = #tpu.dot_dimension_numbers<[1], [0], [0], [1], [0, 0, 1, 1], [], []>} : vector<256x128xbf16>, vector<128x128xbf16>, vector<256x128xf32> -> vector<256x128xf32>
    %68 = arith.addf %62, %67 : vector<256x128xf32>
    %c0_77 = arith.constant 0 : index
    %c0_78 = arith.constant 0 : index
    %69 = vector.load %arg5[%c0_77, %c0_78] : memref<1x128xf32, #tpu.memory_space<vmem>>, vector<1x128xf32>
    %70 = vector.broadcast %69 : vector<1x128xf32> to vector<256x128xf32>
    %71 = arith.addf %68, %70 : vector<256x128xf32>
    %cst_79 = arith.constant 0.000000e+00 : f32
    %72 = vector.broadcast %cst_79 : f32 to vector<256x128xf32>
    %73 = arith.cmpf ogt, %71, %72 : vector<256x128xf32>
    %cst_80 = arith.constant 0.000000e+00 : f32
    %74 = vector.broadcast %cst_80 : f32 to vector<256x128xf32>
    %75 = arith.minimumf %71, %74 : vector<256x128xf32>
    %76 = math.exp %75 : vector<256x128xf32>
    %cst_81 = arith.constant 1.000000e+00 : f32
    %77 = vector.broadcast %cst_81 : f32 to vector<256x128xf32>
    %78 = arith.subf %76, %77 : vector<256x128xf32>
    %79 = arith.select %73, %71, %78 : vector<256x128xi1>, vector<256x128xf32>
    %80 = arith.truncf %79 : vector<256x128xf32> to vector<256x128xbf16>
    %81 = vector.shape_cast %80 : vector<256x128xbf16> to vector<16x16x128xbf16>
    %c1_82 = arith.constant 1 : index
    %c1_83 = arith.constant 1 : index
    %c0_84 = arith.constant 0 : index
    %82 = vector.load %arg9[%c1_82, %c1_83, %c0_84] : memref<18x18x128xbf16, #tpu.memory_space<vmem>>, vector<16x16x128xbf16>
    tpu.vector_store %arg9[%c1_82, %c1_83, %c0_84], %81 {strides = array<i32>} : memref<18x18x128xbf16, #tpu.memory_space<vmem>>, vector<16x16x128xbf16>,
    %c4_85 = arith.constant 4 : index
    %c0_86 = arith.constant 0 : index
    %c0_87 = arith.constant 0 : index
    %83 = vector.load %arg6[%c4_85, %c0_86, %c0_87] : memref<9x128x128xbf16, #tpu.memory_space<vmem>>, vector<1x128x128xbf16>
    %84 = vector.shape_cast %83 : vector<1x128x128xbf16> to vector<128x128xbf16>
    %cst_88 = arith.constant dense<0.000000e+00> : vector<256x128xf32>
    %85 = tpu.matmul %80, %84, %cst_88 {dimension_numbers = #tpu.dot_dimension_numbers<[1], [0], [0], [1], [0, 0, 1, 1], [], []>} : vector<256x128xbf16>, vector<128x128xbf16>, vector<256x128xf32> -> vector<256x128xf32>
    %c0_89 = arith.constant 0 : index
    %c0_90 = arith.constant 0 : index
    %c0_91 = arith.constant 0 : index
    %86 = vector.load %arg9[%c0_89, %c0_90, %c0_91] : memref<18x18x128xbf16, #tpu.memory_space<vmem>>, vector<16x16x128xbf16>
    %87 = vector.shape_cast %86 : vector<16x16x128xbf16> to vector<256x128xbf16>
    %c0_92 = arith.constant 0 : index
    %c0_93 = arith.constant 0 : index
    %c0_94 = arith.constant 0 : index
    %88 = vector.load %arg6[%c0_92, %c0_93, %c0_94] : memref<9x128x128xbf16, #tpu.memory_space<vmem>>, vector<1x128x128xbf16>
    %89 = vector.shape_cast %88 : vector<1x128x128xbf16> to vector<128x128xbf16>
    %cst_95 = arith.constant dense<0.000000e+00> : vector<256x128xf32>
    %90 = tpu.matmul %87, %89, %cst_95 {dimension_numbers = #tpu.dot_dimension_numbers<[1], [0], [0], [1], [0, 0, 1, 1], [], []>} : vector<256x128xbf16>, vector<128x128xbf16>, vector<256x128xf32> -> vector<256x128xf32>
    %91 = arith.addf %85, %90 : vector<256x128xf32>
    %c0_96 = arith.constant 0 : index
    %c1_97 = arith.constant 1 : index
    %c0_98 = arith.constant 0 : index
    %92 = vector.load %arg9[%c0_96, %c1_97, %c0_98] : memref<18x18x128xbf16, #tpu.memory_space<vmem>>, vector<16x16x128xbf16>
    %93 = vector.shape_cast %92 : vector<16x16x128xbf16> to vector<256x128xbf16>
    %c1_99 = arith.constant 1 : index
    %c0_100 = arith.constant 0 : index
    %c0_101 = arith.constant 0 : index
    %94 = vector.load %arg6[%c1_99, %c0_100, %c0_101] : memref<9x128x128xbf16, #tpu.memory_space<vmem>>, vector<1x128x128xbf16>
    %95 = vector.shape_cast %94 : vector<1x128x128xbf16> to vector<128x128xbf16>
    %cst_102 = arith.constant dense<0.000000e+00> : vector<256x128xf32>
    %96 = tpu.matmul %93, %95, %cst_102 {dimension_numbers = #tpu.dot_dimension_numbers<[1], [0], [0], [1], [0, 0, 1, 1], [], []>} : vector<256x128xbf16>, vector<128x128xbf16>, vector<256x128xf32> -> vector<256x128xf32>
    %97 = arith.addf %91, %96 : vector<256x128xf32>
    %c0_103 = arith.constant 0 : index
    %c2_104 = arith.constant 2 : index
    %c0_105 = arith.constant 0 : index
    %98 = vector.load %arg9[%c0_103, %c2_104, %c0_105] : memref<18x18x128xbf16, #tpu.memory_space<vmem>>, vector<16x16x128xbf16>
    %99 = vector.shape_cast %98 : vector<16x16x128xbf16> to vector<256x128xbf16>
    %c2_106 = arith.constant 2 : index
    %c0_107 = arith.constant 0 : index
    %c0_108 = arith.constant 0 : index
    %100 = vector.load %arg6[%c2_106, %c0_107, %c0_108] : memref<9x128x128xbf16, #tpu.memory_space<vmem>>, vector<1x128x128xbf16>
    %101 = vector.shape_cast %100 : vector<1x128x128xbf16> to vector<128x128xbf16>
    %cst_109 = arith.constant dense<0.000000e+00> : vector<256x128xf32>
    %102 = tpu.matmul %99, %101, %cst_109 {dimension_numbers = #tpu.dot_dimension_numbers<[1], [0], [0], [1], [0, 0, 1, 1], [], []>} : vector<256x128xbf16>, vector<128x128xbf16>, vector<256x128xf32> -> vector<256x128xf32>
    %103 = arith.addf %97, %102 : vector<256x128xf32>
    %c1_110 = arith.constant 1 : index
    %c0_111 = arith.constant 0 : index
    %c0_112 = arith.constant 0 : index
    %104 = vector.load %arg9[%c1_110, %c0_111, %c0_112] : memref<18x18x128xbf16, #tpu.memory_space<vmem>>, vector<16x16x128xbf16>
    %105 = vector.shape_cast %104 : vector<16x16x128xbf16> to vector<256x128xbf16>
    %c3_113 = arith.constant 3 : index
    %c0_114 = arith.constant 0 : index
    %c0_115 = arith.constant 0 : index
    %106 = vector.load %arg6[%c3_113, %c0_114, %c0_115] : memref<9x128x128xbf16, #tpu.memory_space<vmem>>, vector<1x128x128xbf16>
    %107 = vector.shape_cast %106 : vector<1x128x128xbf16> to vector<128x128xbf16>
    %cst_116 = arith.constant dense<0.000000e+00> : vector<256x128xf32>
    %108 = tpu.matmul %105, %107, %cst_116 {dimension_numbers = #tpu.dot_dimension_numbers<[1], [0], [0], [1], [0, 0, 1, 1], [], []>} : vector<256x128xbf16>, vector<128x128xbf16>, vector<256x128xf32> -> vector<256x128xf32>
    %109 = arith.addf %103, %108 : vector<256x128xf32>
    %c1_117 = arith.constant 1 : index
    %c2_118 = arith.constant 2 : index
    %c0_119 = arith.constant 0 : index
    %110 = vector.load %arg9[%c1_117, %c2_118, %c0_119] : memref<18x18x128xbf16, #tpu.memory_space<vmem>>, vector<16x16x128xbf16>
    %111 = vector.shape_cast %110 : vector<16x16x128xbf16> to vector<256x128xbf16>
    %c5_120 = arith.constant 5 : index
    %c0_121 = arith.constant 0 : index
    %c0_122 = arith.constant 0 : index
    %112 = vector.load %arg6[%c5_120, %c0_121, %c0_122] : memref<9x128x128xbf16, #tpu.memory_space<vmem>>, vector<1x128x128xbf16>
    %113 = vector.shape_cast %112 : vector<1x128x128xbf16> to vector<128x128xbf16>
    %cst_123 = arith.constant dense<0.000000e+00> : vector<256x128xf32>
    %114 = tpu.matmul %111, %113, %cst_123 {dimension_numbers = #tpu.dot_dimension_numbers<[1], [0], [0], [1], [0, 0, 1, 1], [], []>} : vector<256x128xbf16>, vector<128x128xbf16>, vector<256x128xf32> -> vector<256x128xf32>
    %115 = arith.addf %109, %114 : vector<256x128xf32>
    %c2_124 = arith.constant 2 : index
    %c0_125 = arith.constant 0 : index
    %c0_126 = arith.constant 0 : index
    %116 = vector.load %arg9[%c2_124, %c0_125, %c0_126] : memref<18x18x128xbf16, #tpu.memory_space<vmem>>, vector<16x16x128xbf16>
    %117 = vector.shape_cast %116 : vector<16x16x128xbf16> to vector<256x128xbf16>
    %c6_127 = arith.constant 6 : index
    %c0_128 = arith.constant 0 : index
    %c0_129 = arith.constant 0 : index
    %118 = vector.load %arg6[%c6_127, %c0_128, %c0_129] : memref<9x128x128xbf16, #tpu.memory_space<vmem>>, vector<1x128x128xbf16>
    %119 = vector.shape_cast %118 : vector<1x128x128xbf16> to vector<128x128xbf16>
    %cst_130 = arith.constant dense<0.000000e+00> : vector<256x128xf32>
    %120 = tpu.matmul %117, %119, %cst_130 {dimension_numbers = #tpu.dot_dimension_numbers<[1], [0], [0], [1], [0, 0, 1, 1], [], []>} : vector<256x128xbf16>, vector<128x128xbf16>, vector<256x128xf32> -> vector<256x128xf32>
    %121 = arith.addf %115, %120 : vector<256x128xf32>
    %c2_131 = arith.constant 2 : index
    %c1_132 = arith.constant 1 : index
    %c0_133 = arith.constant 0 : index
    %122 = vector.load %arg9[%c2_131, %c1_132, %c0_133] : memref<18x18x128xbf16, #tpu.memory_space<vmem>>, vector<16x16x128xbf16>
    %123 = vector.shape_cast %122 : vector<16x16x128xbf16> to vector<256x128xbf16>
    %c7_134 = arith.constant 7 : index
    %c0_135 = arith.constant 0 : index
    %c0_136 = arith.constant 0 : index
    %124 = vector.load %arg6[%c7_134, %c0_135, %c0_136] : memref<9x128x128xbf16, #tpu.memory_space<vmem>>, vector<1x128x128xbf16>
    %125 = vector.shape_cast %124 : vector<1x128x128xbf16> to vector<128x128xbf16>
    %cst_137 = arith.constant dense<0.000000e+00> : vector<256x128xf32>
    %126 = tpu.matmul %123, %125, %cst_137 {dimension_numbers = #tpu.dot_dimension_numbers<[1], [0], [0], [1], [0, 0, 1, 1], [], []>} : vector<256x128xbf16>, vector<128x128xbf16>, vector<256x128xf32> -> vector<256x128xf32>
    %127 = arith.addf %121, %126 : vector<256x128xf32>
    %c2_138 = arith.constant 2 : index
    %c2_139 = arith.constant 2 : index
    %c0_140 = arith.constant 0 : index
    %128 = vector.load %arg9[%c2_138, %c2_139, %c0_140] : memref<18x18x128xbf16, #tpu.memory_space<vmem>>, vector<16x16x128xbf16>
    %129 = vector.shape_cast %128 : vector<16x16x128xbf16> to vector<256x128xbf16>
    %c8_141 = arith.constant 8 : index
    %c0_142 = arith.constant 0 : index
    %c0_143 = arith.constant 0 : index
    %130 = vector.load %arg6[%c8_141, %c0_142, %c0_143] : memref<9x128x128xbf16, #tpu.memory_space<vmem>>, vector<1x128x128xbf16>
    %131 = vector.shape_cast %130 : vector<1x128x128xbf16> to vector<128x128xbf16>
    %cst_144 = arith.constant dense<0.000000e+00> : vector<256x128xf32>
    %132 = tpu.matmul %129, %131, %cst_144 {dimension_numbers = #tpu.dot_dimension_numbers<[1], [0], [0], [1], [0, 0, 1, 1], [], []>} : vector<256x128xbf16>, vector<128x128xbf16>, vector<256x128xf32> -> vector<256x128xf32>
    %133 = arith.addf %127, %132 : vector<256x128xf32>
    %c0_145 = arith.constant 0 : index
    %c0_146 = arith.constant 0 : index
    %134 = vector.load %arg7[%c0_145, %c0_146] : memref<1x128xf32, #tpu.memory_space<vmem>>, vector<1x128xf32>
    %135 = vector.broadcast %134 : vector<1x128xf32> to vector<256x128xf32>
    %136 = arith.addf %133, %135 : vector<256x128xf32>
    %c0_147 = arith.constant 0 : index
    %c0_148 = arith.constant 0 : index
    %137 = vector.load %arg10[%c0_147, %c0_148] : memref<256x128xf32, #tpu.memory_space<vmem>>, vector<256x128xf32>
    %138 = arith.addf %137, %136 : vector<256x128xf32>
    %cst_149 = arith.constant 0.000000e+00 : f32
    %139 = vector.broadcast %cst_149 : f32 to vector<256x128xf32>
    %140 = arith.maximumf %138, %139 : vector<256x128xf32>
    %141 = tpu.transpose %140, [1, 0] : vector<256x128xf32> -> vector<128x256xf32>
    %142 = vector.extract_strided_slice %141 {offsets = [0, 0], sizes = [8, 256], strides = [1, 1]} : vector<128x256xf32> to vector<8x256xf32>
    %143 = arith.truncf %142 : vector<8x256xf32> to vector<8x256xbf16>
    %c0_150 = arith.constant 0 : index
    %c0_151 = arith.constant 0 : index
    %c0_152 = arith.constant 0 : index
    %144 = vector.load %arg8[%c0_150, %c0_151, %c0_152] : memref<1x8x256xbf16, #tpu.memory_space<vmem>>, vector<1x8x256xbf16>
    %145 = vector.shape_cast %144 : vector<1x8x256xbf16> to vector<8x256xbf16>
    %146 = vector.shape_cast %143 : vector<8x256xbf16> to vector<1x8x256xbf16>
    tpu.vector_store %arg8[%c0_150, %c0_151, %c0_152], %146 {strides = array<i32>} : memref<1x8x256xbf16, #tpu.memory_space<vmem>>, vector<1x8x256xbf16>,
    return
  }
  func.func @transform_0(%arg0: i32) -> (i32, i32, i32, i32) {
    %c0_i32 = arith.constant 0 : i32
    %c0_i32_0 = arith.constant 0 : i32
    %c0_i32_1 = arith.constant 0 : i32
    %c0_i32_2 = arith.constant 0 : i32
    return %arg0, %c0_i32, %c0_i32_0, %c0_i32_1 : i32, i32, i32, i32
  }
  func.func @transform_1(%arg0: i32) -> (i32, i32) {
    %c0_i32 = arith.constant 0 : i32
    %c0_i32_0 = arith.constant 0 : i32
    %c0_i32_1 = arith.constant 0 : i32
    return %c0_i32, %c0_i32_0 : i32, i32
  }
  func.func @transform_2(%arg0: i32) -> (i32, i32) {
    %c0_i32 = arith.constant 0 : i32
    %c0_i32_0 = arith.constant 0 : i32
    %c0_i32_1 = arith.constant 0 : i32
    return %c0_i32, %c0_i32_0 : i32, i32
  }
  func.func @transform_3(%arg0: i32) -> (i32, i32, i32) {
    %c0_i32 = arith.constant 0 : i32
    %c0_i32_0 = arith.constant 0 : i32
    %c0_i32_1 = arith.constant 0 : i32
    %c0_i32_2 = arith.constant 0 : i32
    return %c0_i32, %c0_i32_0, %c0_i32_1 : i32, i32, i32
  }
  func.func @transform_4(%arg0: i32) -> (i32, i32) {
    %c0_i32 = arith.constant 0 : i32
    %c0_i32_0 = arith.constant 0 : i32
    %c0_i32_1 = arith.constant 0 : i32
    return %c0_i32, %c0_i32_0 : i32, i32
  }
  func.func @transform_5(%arg0: i32) -> (i32, i32, i32) {
    %c0_i32 = arith.constant 0 : i32
    %c0_i32_0 = arith.constant 0 : i32
    %c0_i32_1 = arith.constant 0 : i32
    %c0_i32_2 = arith.constant 0 : i32
    return %c0_i32, %c0_i32_0, %c0_i32_1 : i32, i32, i32
  }
  func.func @transform_6(%arg0: i32) -> (i32, i32) {
    %c0_i32 = arith.constant 0 : i32
    %c0_i32_0 = arith.constant 0 : i32
    %c0_i32_1 = arith.constant 0 : i32
    return %c0_i32, %c0_i32_0 : i32, i32
  }
  func.func @transform_7(%arg0: i32) -> (i32, i32, i32) {
    %c0_i32 = arith.constant 0 : i32
    %c0_i32_0 = arith.constant 0 : i32
    %c0_i32_1 = arith.constant 0 : i32
    return %arg0, %c0_i32, %c0_i32_0 : i32, i32, i32
  }
}

</mosaic_0001>

<bundles_post_ra>
// kernel: tpu_custom_call.1
= control target key start
LH: loop header
LB: loop body
LE: loop exit
PB: predicated region body
PF: predicated region fallthrough
CT: control target
= control target key end

     0   :  { %s18541_s0 = inlined_call_operand.hbm [shape: bf16[2,16,16,128], index: 0, kind: input, shape index: {}]   ;;  %s18542_s1 = inlined_call_operand.hbm [shape: bf16[128,128], index: 1, kind: input, shape index: {}]   ;;  %s18543_s2 = inlined_call_operand.vmem [shape: f32[1,128], index: 2, kind: input, shape index: {}]   ;;  %s18544_s3 = inlined_call_operand.hbm [shape: bf16[9,128,128], index: 3, kind: input, shape index: {}]   ;;  %s18545_s4 = inlined_call_operand.vmem [shape: f32[1,128], index: 4, kind: input, shape index: {}]   ;;  %s18546_s5 = inlined_call_operand.hbm [shape: bf16[9,128,128], index: 5, kind: input, shape index: {}]   ;;  %s18547_s6 = inlined_call_operand.vmem [shape: f32[1,128], index: 6, kind: input, shape index: {}]   ;;  %s18548_s7 = inlined_call_operand.hbm [shape: bf16[2,8,256], index: 7, kind: output, shape index: {}]  }
   0x1   :  { %18625 = sst [smem:[#allocation115_spill]] %s18542_s1 }
   0x2   :  { %12 = vsyncpa [#allocation5], 0 }
   0x3   :  { %14 = vsyncpa [#allocation5 + $0x1], 0 }
   0x4   :  { %15 = vsyncpa [#allocation8], 0 }
   0x5   :  { %16 = vsyncpa [#allocation11], 0 }
   0x6   :  { %17 = vsyncpa [#allocation6], 0 }
   0x7   :  { %19 = vsyncpa [#allocation6 + $0x1], 0  ;;  %s14031_s24 = smov 0   ;;  %s14033_s25 = smov 0  }
   0x8   :  { %s14035_s26 = smov 0   ;;  %s14037_s27 = smov 0  }
   0x9 LB: > { %s14052_s28 = sadd.s32 4294967295, %s13981_s27   ;;  %s11245_s29 = sadd.s32 4294967294, %s13981_s27   ;;  %s13981_s27 = sphi %s14037_s27, %s19040_s27   ;;  %s13977_s26 = sphi %s14035_s26, %s19039_s26   ;;  %s13973_s25 = sphi %s14033_s25, %s19038_s25   ;;  %s13969_s24 = sphi %s14031_s24, %s19037_s24  }
   0xa   : > { %p45_p0 = scmp.ne.s32.totalorder %s13973_s25, %s13969_s24  ;;  %p18549_p1 = scmp.eq.s32.totalorder %s14052_s28, 0 }
   0xb   : > { %p195_p2 = scmp.eq.s32.totalorder %s14052_s28, 1  ;;  %p201_p3 = scmp.eq.s32.totalorder %s11245_s29, 1 }
   0xc   : > { %p14061_p4 = por %p18549_p1, %p45_p0  ;;  %p11246_p5 = scmp.ge.s32.totalorder %s13981_s27, 1 }
   0xd   : > { %p14066_p6 = por %p201_p3, %p45_p0  ;;  %p208_p7 = scmp.lt.s32.totalorder %s13981_s27, 3 }
   0xe   : > { %s18626_s30 = scalar_select %p14061_p4, 1, 0 }
   0xf   : > { %s18627_s8 = scalar_select %p14066_p6, 1, 0 }
  0x10   : > { %p14071_p8 = pnand %p11246_p5, %p208_p7  ;;  %s13983_s10 = smov [#allocation7]  }
  0x11   : > { %s220_s11 = sshll.u32 %s13983_s10, 4  ;;  %s13984_s13 = smov [#allocation9]   ;;  %s221_s11 = int_to_ptr.vmem [resolvable:$true] %s220_s11 }
  0x12   : > { %s18628_s9 = scalar_select %p14071_p8, 1, 0 }
  0x13   : > { %p13352_p9 = pneg %p14071_p8  ;;  %s236_s14 = sshll.u32 %s13984_s13, 4  ;;  %s237_s14 = int_to_ptr.vmem [resolvable:$true] %s236_s14 }
  0x14   : > { %s13985_s15 = smov [#allocation10]   ;;  %s13814_s17 = scalar_lea.vmem %s221_s11, 1024 }
  0x15   : > { %p14080_p11 = pnand %p13352_p9, %p18549_p1  ;;  %s252_s16 = sshll.u32 %s13985_s15, 4  ;;  %s253_s16 = int_to_ptr.vmem [resolvable:$true] %s252_s16 }
  0x16   : > { %p13815_p13 = scmp.ne.s32.totalorder %s221_s11, %s13814_s17  ;;  %p13822_p5 = scmp.lt.s32.totalorder %s221_s11, %s221_s11 }
  0x17   : > { %p13805_p12 = pneg %p14080_p11  ;;  %p13823_p7 = scmp.lt.s32.totalorder %s13814_s17, %s13814_s17 }
  0x19   : > { %p13817_p0 = pnand %p13815_p13, %p13805_p12  ;;  %p13824_p9 = por %p13823_p7, %p13822_p5 }
  0x1b   : > { %p13818_p3 = pneg %p13817_p0 }
  0x1d   : > { %p13825_p10 = pnand %p13824_p9, %p13818_p3 }
  0x1f   : > { %13828 = shalt.err (!%p13825_p10)
}
  0x20   : > { %s18550_s18 = smov 64   ;;  %s18551_s19 = smov 4  }
  0x21   : > { %s18630_s1 = sld [smem:[#allocation115_spill]]  ;;  %s13840_s22 = scalar_lea.vmem %s237_s14, 9216 }
  0x22   : > { %p13841_p13 = scmp.ne.s32.totalorder %s237_s14, %s13840_s22  ;;  %p13848_p3 = scmp.lt.s32.totalorder %s237_s14, %s237_s14 }
  0x23   : > { %p13849_p10 = scmp.lt.s32.totalorder %s13840_s22, %s13840_s22 }
  0x24   : > { %p13843_p0 = pnand %p13841_p13, %p13805_p12 }
  0x25   : > { %p13850_p7 = por %p13849_p10, %p13848_p3 }
  0x26   : > { %p13844_p5 = pneg %p13843_p0 }
  0x27   : > { %13355 = dma.hbm_to_vmem [thread:$0]  (!%p14080_p11), %s18630_s1, 1024, %s221_s11, [#allocation8], %s18550_s18, %s18550_s18, %s18551_s19  }
  0x28   : > { %p13851_p9 = pnand %p13850_p7, %p13844_p5 }
  0x2a   : > { %13854 = shalt.err (!%p13851_p9)
}
  0x2b   : > { %13358 = dma.hbm_to_vmem [thread:$0]  (!%p14080_p11), %s18544_s3, 9216, %s237_s14, [#allocation8], %s18550_s18, %s18550_s18, %s18551_s19  }
  0x2c   : > { %s13866_s10 = scalar_lea.vmem %s253_s16, 9216  ;;  %p13874_p3 = scmp.lt.s32.totalorder %s253_s16, %s253_s16 }
  0x2d   : > { %p13867_p1 = scmp.ne.s32.totalorder %s253_s16, %s13866_s10  ;;  %p13875_p5 = scmp.lt.s32.totalorder %s13866_s10, %s13866_s10 }
  0x2f   : > { %p13869_p13 = pnand %p13867_p1, %p13805_p12  ;;  %p13876_p10 = por %p13875_p5, %p13874_p3 }
  0x31   : > { %p13870_p0 = pneg %p13869_p13 }
  0x33   : > { %p13877_p7 = pnand %p13876_p10, %p13870_p0 }
  0x35   : > { %13880 = shalt.err (!%p13877_p7)
}
  0x36   : > { %13361 = dma.hbm_to_vmem [thread:$0]  (!%p14080_p11), %s18546_s5, 9216, %s253_s16, [#allocation11], %s18550_s18, %s18550_s18, %s18551_s19  }
  0x37   : > { %s14120_s14 = sadd.s32 1, %s13981_s27   ;;  %s32_s15 = sadd.s32 1, %s13977_s26 }
  0x38   : > { %s29_s12 = ssub.s32 %s13981_s27, %s14120_s14  ;;  %p39_p12 = scmp.ne.s32.totalorder %s13977_s26, %s13973_s25 }
  0x39   : > { %p30_p1 = scmp.eq.s32.totalorder %s29_s12, 0  ;;  %p40_p9 = scmp.eq.s32.totalorder %s13981_s27, 0 }
  0x3a   : > { %p13373_p13 = scmp.lt.s32.totalorder %s13981_s27, 2  ;;  %p14134_p3 = por %p195_p2, %p39_p12 }
  0x3b   : > { %s14130_s17 = scalar_select %p30_p1, %s13977_s26, %s32_s15  }
  0x3c   : > { %p41_p0 = por %p40_p9, %p39_p12  ;;  %s269_s21 = sand.u32 1, %s13977_s26  }
  0x3d   : > { %s18631_s20 = scalar_select %p14134_p3, 1, 0 }
  0x3e   : > { %s11885_s22 = sshll.u32 %s13981_s27, 11  ;;  %s11251_s16 = sshll.u32 %s269_s21, 7 }
  0x3f   : > { %s14143_s10 = scalar_lea.hbm %s18541_s0, %s11885_s22  ;;  %s273_s11 = scalar_lea.vmem [#allocation4], %s11251_s16 }
  0x40   : > { %s280_s13 = sshll.u32 %s273_s11, 4  ;;  %p14145_p11 = pnand %p13373_p13, %p41_p0  ;;  %s14149_s13 = int_to_ptr.vmem [resolvable:$true] %s280_s13 }
  0x41   : > { %s14151_s15 = scalar_lea.sflag [#allocation5], %s269_s21  ;;  %s13881_s18 = scalar_lea.hbm %s14143_s10, 2048 }
  0x42   : > { %p13882_p2 = scmp.ne.s32.totalorder %s14143_s10, %s13881_s18  ;;  %p13883_p5 = pneg %p14145_p11 }
  0x43   : > { %s13886_s16 = scalar_lea.hbm %s18541_s0, 4096  ;;  %p13887_p1 = scmp.lt.s32.totalorder %s14143_s10, %s18541_s0 }
  0x44   : > { %p13884_p10 = pnand %p13883_p5, %p13882_p2  ;;  %p13888_p12 = scmp.lt.s32.totalorder %s13886_s16, %s13881_s18 }
  0x46   : > { %p13885_p7 = pneg %p13884_p10  ;;  %p13889_p9 = por %p13888_p12, %p13887_p1 }
  0x48   : > { %p13890_p13 = pnand %p13889_p9, %p13885_p7 }
  0x4a   : > { %13893 = shalt.err (!%p13890_p13)
}
  0x4b   : > { %s13894_s21 = scalar_lea.vmem %s14149_s13, 2048  ;;  %s13988_s19 = smov [#allocation4]  }
  0x4c   : > { %p13895_p0 = scmp.ne.s32.totalorder %s14149_s13, %s13894_s21  ;;  %s13899_s1 = sshll.u32 %s13988_s19, 4  ;;  %s13900_s1 = int_to_ptr.vmem [resolvable:$false] %s13899_s1 }
  0x4d   : > { %s13901_s22 = scalar_lea.vmem %s13900_s1, 4096  ;;  %p13902_p10 = scmp.lt.s32.totalorder %s14149_s13, %s13900_s1 }
  0x4e   : > { %p13897_p6 = pnand %p13895_p0, %p13883_p5  ;;  %p13903_p3 = scmp.lt.s32.totalorder %s13901_s22, %s13894_s21 }
  0x50   : > { %p13898_p2 = pneg %p13897_p6  ;;  %p13904_p4 = por %p13903_p3, %p13902_p10 }
  0x52   : > { %p13905_p8 = pnand %p13904_p4, %p13898_p2 }
  0x54   : > { %13908 = shalt.err (!%p13905_p8)
}
  0x55   : > { %s18633_s18 = smov 4   ;;  %s18634_s23 = smov 64  }
  0x56   : > { %13365 = dma.hbm_to_vmem [thread:$0]  (!%p14145_p11), %s14143_s10, 2048, %s14149_s13, %s14151_s15, %s18634_s23, %s18634_s23, %s18633_s18  }
  0x57   : > { %p18635_p6 = scmp.ne.s32.totalorder %s18628_s9, 0 }
  0x59   : > { %292 = sbr.rel (%p18635_p6) target bundleno = 1599 (0x63f), region = 48 }
  0x5e   : > { %s14178_s19 = sand.u32 1, %s13973_s25   ;;  %p18636_p4 = scmp.ne.s32.totalorder %s18626_s30, 0 }
  0x5f   : > { %s11255_s1 = sshll.u32 %s14178_s19, 7  ;;  %s295_s16 = scalar_lea.sflag [#allocation5], %s14178_s19 }
  0x60   : > { %s14182_s29 = scalar_lea.vmem [#allocation4], %s11255_s1 }
  0x61   : > { %13952 = dma.done.wait (%p18636_p4), %s295_s16, 2048  }
  0x62   : > { %13954 = vsyncadd (%p18636_p4), %s295_s16, 4294965248  ;;  %p18637_p8 = scmp.eq.s32.totalorder %s14052_s28, 0 }
  0x64   : > { %13956 = dma.done.wait (%p18637_p8), [#allocation8], 10240   ;;  %p18638_p3 = pmov %p18637_p8 }
  0x66   : > { %13958 = vsyncadd (%p18638_p3), [#allocation8], 4294957056  ;;  %p18639_p11 = pmov %p18638_p3 }
  0x67   : > { %p18640_p5 = pmov %p18638_p3 }
  0x68   : > { %13960 = dma.done.wait (%p18639_p11), [#allocation11], 9216  }
  0x69   : > { %13962 = vsyncadd (%p18640_p5), [#allocation11], 4294958080  ;;  %v13453_v0 = vld [vmem:[#allocation7 + $0x38] sm:$0xff]   ;;  %v13454_v1 = vld [vmem:[#allocation7 + $0x30] sm:$0xff]   ;;  %vm349_vm0 = vcmask 1040384   ;;  %v18641_v10 = vmov 0 }
  0x6a   : > { %12408 = vmatprep.subr.bf16.mxu0 %v13453_v0  ;;  %13320 = vmatprep.subr.bf16.mxu1 %v13453_v0  ;;  %v13455_v2 = vld [vmem:[#allocation7 + $0x28] sm:$0xff]   ;;  %v13456_v3 = vld [vmem:[#allocation7 + $0x20] sm:$0xff]   ;;  %v13457_v5 = vld [vmem:[#allocation7 + $0x18] sm:$0xff]   ;;  %vm350_vm1 = vsmask.f32 256  ;;  %v13989_v57 = vmov 0  }
  0x6b   : > { %12409 = vmatpush3.bf16.msra.mxu0 %v13453_v0  ;;  %13328 = vmatpush3.bf16.msra.mxu1 %v13453_v0  ;;  %v13461_v4 = vld [vmem:[%s14182_s29] sm:$0xff]   ;;  %v13458_v7 = vld [vmem:[#allocation7 + $0x10] sm:$0xff]   ;;  %v13459_v8 = vld [vmem:[#allocation7 + $0x8] sm:$0xff]   ;;  %vm406_vm3 = vsmask.f32 7938  ;;  %vm2787_vm5 = vcmask 1042432  }
  0x6c   : > { %12410 = vmatprep.subr.bf16.mxu0 %v13454_v1  ;;  %13321 = vmatprep.subr.bf16.mxu1 %v13454_v1  ;;  %v13467_v6 = vld [vmem:[%s14182_s29 + $0x40] sm:$0xff]   ;;  %vm14200_vm2 = vmand %vm349_vm0, %vm350_vm1  ;;  %v13477_v11 = vld [vmem:[#allocation9 + $0x138] sm:$0xff]   ;;  %342 = vst [vmem:[#allocation2] sm:$0xf] %v13989_v57  ;;  %vm2788_vm6 = vcmask 1046532   ;;  %vm1273_vm10 = vcmask 1043456  }
  0x6d   : > { %12424 = vmatprep.mubr.bf16.mxu0 %v13461_v4  ;;  %12440 = vmatprep.mubr.bf16.mxu1 %v13467_v6  ;;  %v13460_v9 = vld [vmem:[#allocation7] sm:$0xff]   ;;  %v18642_v10 = vsel %vm14200_vm2, 4294967295, %v18641_v10  ;;  %v13462_v12 = vld [vmem:[%s14182_s29 + $0x8] sm:$0xff]   ;;  %v13481_v13 = vld [vmem:[#allocation9 + $0x38] sm:$0xff]   ;;  %343 = vst [vmem:[#allocation2 + $0x4] sm:$0xf] %v13989_v57 }
  0x6e   : > { %18643 = vst [vmem:[#allocation17_spill] sm:$0xff] %v18642_v10  ;;  %v13463_v14 = vld [vmem:[%s14182_s29 + $0x10] sm:$0xff]   ;;  %v13468_v15 = vld [vmem:[%s14182_s29 + $0x48] sm:$0xff]   ;;  %v358_v18 = vld [vmem:[#allocation2 + $0x18] sm:$0x1]  ;;  %s11259_s22 = sshll.u32 %s14178_s19, 3 }
  0x6f   : > { %12411 = vmatpush3.bf16.msra.mxu0 %v13454_v1  ;;  %13329 = vmatpush3.bf16.msra.mxu1 %v13454_v1  ;;  %v13471_v16 = vld [vmem:[%s14182_s29 + $0x50] sm:$0xff]   ;;  %v359_v20 = vsel %vm14200_vm2, 0, %v358_v18  ;;  %v13479_v21 = vld [vmem:[#allocation9 + $0x128] sm:$0xff]   ;;  %v13464_v22 = vld [vmem:[%s14182_s29 + $0x18] sm:$0xff]   ;;  %344 = vst [vmem:[#allocation2 + $0x8] sm:$0x1] %v13989_v57 }
  0x70   : > { %12412 = vmatprep.subr.bf16.mxu0 %v13455_v2  ;;  %13322 = vmatprep.subr.bf16.mxu1 %v13455_v2  ;;  %v13478_v17 = vld [vmem:[#allocation9 + $0x130] sm:$0xff]   ;;  %360 = vst [vmem:[#allocation2 + $0x18] sm:$0x1] %v359_v20  ;;  %v13472_v23 = vld [vmem:[%s14182_s29 + $0x58] sm:$0xff]   ;;  %v13465_v24 = vld [vmem:[%s14182_s29 + $0x20] sm:$0xff]   ;;  %s11951_s18 = sshll.u32 %s14052_s28, 7 }
  0x71   : > { %v13483_v19 = vld [vmem:[#allocation9 + $0x30] sm:$0xff]   ;;  %v13473_v25 = vld [vmem:[%s14182_s29 + $0x60] sm:$0xff]   ;;  %v13482_v27 = vld [vmem:[#allocation9 + $0x118] sm:$0xff]   ;;  %346 = vst [vmem:[#allocation2 + $0xcc] sm:$0xf] %v13989_v57  ;;  %s340_s23 = scalar_lea.vmem [#allocation12], %s11259_s22  ;;  %s11144_s30 = scalar_lea.hbm %s18548_s7, %s11951_s18 }
  0x72   : > { %v13480_v26 = vld [vmem:[#allocation9 + $0x120] sm:$0xff]   ;;  %v13466_v28 = vld [vmem:[%s14182_s29 + $0x28] sm:$0xff]   ;;  %v13469_v30 = vld [vmem:[%s14182_s29 + $0x30] sm:$0xff]   ;;  %347 = vst [vmem:[#allocation2 + $0xd0] sm:$0xf] %v13989_v57  ;;  %s11146_s1 = sshll.u32 %s340_s23, 4  ;;  %s11147_s1 = int_to_ptr.vmem [resolvable:$true] %s11146_s1 }
  0x73   : > { %12413 = vmatpush3.bf16.msra.mxu0 %v13455_v2  ;;  %13330 = vmatpush3.bf16.msra.mxu1 %v13455_v2  ;;  %v13474_v29 = vld [vmem:[%s14182_s29 + $0x68] sm:$0xff]   ;;  %v13475_v31 = vld [vmem:[%s14182_s29 + $0x70] sm:$0xff]   ;;  %v13470_v32 = vld [vmem:[%s14182_s29 + $0x38] sm:$0xff]   ;;  %348 = vst [vmem:[#allocation2 + $0xd4] sm:$0x1] %v13989_v57  ;;  %s11132_s9 = scalar_lea.sflag [#allocation6], %s14178_s19 }
  0x74   : > { %12414 = vmatprep.subr.bf16.mxu0 %v13456_v3  ;;  %13323 = vmatprep.subr.bf16.mxu1 %v13456_v3  ;;  %v13476_v33 = vld [vmem:[%s14182_s29 + $0x78] sm:$0xff]   ;;  %v13484_v34 = vld [vmem:[#allocation9 + $0x110] sm:$0xff]   ;;  %v13485_v35 = vld [vmem:[#allocation9 + $0x28] sm:$0xff]   ;;  %vm2014_vm7 = vsmask.f32 3328  ;;  %s13909_s10 = scalar_lea.vmem %s11147_s1, 128 }
  0x75   : > { %v355_v36 = vld [vmem:[#allocation2 + $0xc] sm:$0x1]  ;;  %v13486_v37 = vld [vmem:[#allocation9 + $0x108] sm:$0xff]   ;;  %vm14224_vm4 = vmand %vm349_vm0, %vm406_vm3  ;;  %vm2015_vm9 = vsmask.f32 7440  ;;  %p13910_p7 = scmp.ne.s32.totalorder %s11147_s1, %s13909_s10  ;;  %p19034_p1 = scmp.ne.s32.totalorder %s18631_s20, 0 }
  0x76   : > { %v356_v38 = vsel %vm14200_vm2, 0, %v355_v36  ;;  %v414_v40 = vld [vmem:[#allocation2 + $0x20] sm:$0x1]  ;;  %v13487_v42 = vld [vmem:[#allocation9 + $0x20] sm:$0xff]   ;;  %v411_v44 = vld [vmem:[#allocation2 + $0x14] sm:$0x1] }
  0x77   : > { %12415 = vmatpush3.bf16.msra.mxu0 %v13456_v3  ;;  %13331 = vmatpush3.bf16.msra.mxu1 %v13456_v3  ;;  %357 = vst [vmem:[#allocation2 + $0xc] sm:$0x1] %v356_v38  ;;  %v415_v41 = vsel %vm14224_vm4, 0, %v414_v40  ;;  %v13488_v43 = vld [vmem:[#allocation9 + $0x100] sm:$0xff]   ;;  %v412_v45 = vsel %vm14224_vm4, 0, %v411_v44  ;;  %v13489_v48 = vld [vmem:[#allocation9 + $0x18] sm:$0xff]   ;;  %vm14306_vm8 = vmor %vm2787_vm5, %vm2788_vm6  ;;  %p13911_p12 = pnand %p13910_p7, %p19034_p1 }
  0x78   : > { %12416 = vmatprep.subr.bf16.mxu0 %v13457_v5  ;;  %13324 = vmatprep.subr.bf16.mxu1 %v13457_v5  ;;  %416 = vst [vmem:[#allocation2 + $0x20] sm:$0x1] %v415_v41  ;;  %413 = vst [vmem:[#allocation2 + $0x14] sm:$0x1] %v412_v45  ;;  %v364_v46 = vld [vmem:[#allocation2 + $0x30] sm:$0x1] }
  0x79   : > { %v365_v47 = vsel %vm14200_vm2, 0, %v364_v46  ;;  %v361_v49 = vld [vmem:[#allocation2 + $0x24] sm:$0x1]  ;;  %v420_v51 = vld [vmem:[#allocation2 + $0x38] sm:$0x1]  ;;  %v13490_v53 = vld [vmem:[#allocation9 + $0x10] sm:$0xff]   ;;  %p13912_p9 = pneg %p13911_p12 }
  0x7a   : > { %366 = vst [vmem:[#allocation2 + $0x30] sm:$0x1] %v365_v47  ;;  %v362_v50 = vsel %vm14200_vm2, 0, %v361_v49  ;;  %v421_v52 = vsel %vm14224_vm4, 0, %v420_v51  ;;  %v417_v54 = vld [vmem:[#allocation2 + $0x2c] sm:$0x1]  ;;  %vm14344_vm11 = vmor %vm2014_vm7, %vm2015_vm9 }
  0x7b   : > { %12417 = vmatpush3.bf16.msra.mxu0 %v13457_v5  ;;  %13332 = vmatpush3.bf16.msra.mxu1 %v13457_v5  ;;  %363 = vst [vmem:[#allocation2 + $0x24] sm:$0x1] %v362_v50  ;;  %422 = vst [vmem:[#allocation2 + $0x38] sm:$0x1] %v421_v52  ;;  %v418_v55 = vsel %vm14224_vm4, 0, %v417_v54  ;;  %v13491_v59 = vld [vmem:[#allocation9 + $0x8] sm:$0xff]  }
  0x7c   : > { %12418 = vmatprep.subr.bf16.mxu0 %v13458_v7  ;;  %13325 = vmatprep.subr.bf16.mxu1 %v13458_v7  ;;  %419 = vst [vmem:[#allocation2 + $0x2c] sm:$0x1] %v418_v55  ;;  %v370_v56 = vld [vmem:[#allocation2 + $0x48] sm:$0x1]  ;;  %v367_v60 = vld [vmem:[#allocation2 + $0x3c] sm:$0x1]  ;;  %vm14376_vm13 = vmand %vm1273_vm10, %vm406_vm3 }
  0x7d   : > { %v371_v58 = vsel %vm14200_vm2, 0, %v370_v56  ;;  %v368_v61 = vsel %vm14200_vm2, 0, %v367_v60  ;;  %v426_v62 = vld [vmem:[#allocation2 + $0x50] sm:$0x1]  ;;  %v352_v0 = vld [vmem:[#allocation2] sm:$0x1] }
  0x7e   : > { %372 = vst [vmem:[#allocation2 + $0x48] sm:$0x1] %v371_v58  ;;  %369 = vst [vmem:[#allocation2 + $0x3c] sm:$0x1] %v368_v61  ;;  %v427_v63 = vsel %vm14224_vm4, 0, %v426_v62  ;;  %v353_v1 = vsel %vm14200_vm2, 0, %v352_v0 }
  0x7f   : > { %12419 = vmatpush3.bf16.msra.mxu0 %v13458_v7  ;;  %13333 = vmatpush3.bf16.msra.mxu1 %v13458_v7  ;;  %428 = vst [vmem:[#allocation2 + $0x50] sm:$0x1] %v427_v63  ;;  %354 = vst [vmem:[#allocation2] sm:$0x1] %v353_v1  ;;  %v382_v2 = vld [vmem:[#allocation2 + $0x78] sm:$0x1] }
  0x80   : > { %12420 = vmatprep.subr.bf16.mxu0 %v13459_v8  ;;  %13326 = vmatprep.subr.bf16.mxu1 %v13459_v8  ;;  %v383_v3 = vsel %vm14200_vm2, 0, %v382_v2  ;;  %v13492_v4 = vld [vmem:[#allocation9] sm:$0xff]   ;;  %v423_v5 = vld [vmem:[#allocation2 + $0x44] sm:$0x1]  ;;  %v14281_v36 = vld [vmem:[#allocation9 + $0xb8] sm:$0xff]   ;;  %s13990_s13 = smov [#allocation12]  }
  0x81   : > { %384 = vst [vmem:[#allocation2 + $0x78] sm:$0x1] %v383_v3  ;;  %v424_v6 = vsel %vm14224_vm4, 0, %v423_v5  ;;  %v447_v40 = vld [vmem:[#allocation2 + $0xa4] sm:$0x1]  ;;  %s13913_s12 = sshll.u32 %s13990_s13, 4  ;;  %s13914_s12 = int_to_ptr.vmem [resolvable:$false] %s13913_s12 }
  0x82   : > { %425 = vst [vmem:[#allocation2 + $0x44] sm:$0x1] %v424_v6  ;;  %v448_v41 = vsel %vm14224_vm4, 0, %v447_v40  ;;  %v456_v46 = vld [vmem:[#allocation2 + $0xc8] sm:$0x1]  ;;  %s13915_s28 = scalar_lea.vmem %s13914_s12, 256  ;;  %p13916_p13 = scmp.lt.s32.totalorder %s11147_s1, %s13914_s12 }
  0x83   : > { %12421 = vmatpush3.bf16.msra.mxu0 %v13459_v8  ;;  %13334 = vmatpush3.bf16.msra.mxu1 %v13459_v8  ;;  %v376_v8 = vld [vmem:[#allocation2 + $0x60] sm:$0x1]  ;;  %449 = vst [vmem:[#allocation2 + $0xa4] sm:$0x1] %v448_v41  ;;  %v457_v47 = vsel %vm14224_vm4, 0, %v456_v46  ;;  %p13917_p0 = scmp.lt.s32.totalorder %s13915_s28, %s13909_s10 }
  0x84   : > { %12422 = vmatprep.subr.bf16.mxu0 %v13460_v9  ;;  %13327 = vmatprep.subr.bf16.mxu1 %v13460_v9  ;;  %458 = vst [vmem:[#allocation2 + $0xc8] sm:$0x1] %v457_v47  ;;  %v408_v50 = vld [vmem:[#allocation2 + $0x8] sm:$0x1]  ;;  %v2723_v0 = vld [vmem:[#allocation2] sm:$0xe] }
  0x85   : > { %v409_v51 = vsel %vm14224_vm4, 0, %v408_v50  ;;  %vm950_vm12 = vsmask.f32 4368  ;;  %v18658_v47 = vmov 0  ;;  %p13918_p2 = por %p13917_p0, %p13916_p13 }
  0x86   : > { %v13493_v7 = vld [vmem:[#allocation2] sm:$0xff]   ;;  %410 = vst [vmem:[#allocation2 + $0x8] sm:$0x1] %v409_v51  ;;  %v18659_v47 = vsel %vm14376_vm13, 4294967295, %v18658_v47  ;;  %vm14406_vm14 = vmor %vm350_vm1, %vm950_vm12 }
  0x87   : > { %12423 = vmatpush3.bf16.msra.mxu0 %v13460_v9  ;;  %13335 = vmatpush3.bf16.msra.mxu1 %v13460_v9  ;;  %v377_v9 = vsel %vm14200_vm2, 0, %v376_v8  ;;  %v1966_v52 = vld [vmem:[#allocation2] sm:$0xf]  ;;  %18660 = vst [vmem:[#allocation26_spill] sm:$0xff] %v18659_v47  ;;  %p13919_p10 = pnand %p13918_p2, %p13912_p9 }
  0x88   : > { %12504 = vmatprep.subr.bf16.mxu0 %v13477_v11  ;;  %12456 = vmatprep.subr.bf16.mxu1 %v13481_v13  ;;  %378 = vst [vmem:[#allocation2 + $0x60] sm:$0x1] %v377_v9  ;;  %v2018_v54 = vshrl.u32 %v1966_v52, 16  ;;  %v2021_v55 = vshll.u32 %v1966_v52, 16 }
  0x8a   : > { %12425 = vmatmul.mubr.bf16.vlgmr.msra.gmra.mxu0 %v13462_v12  ;;  %12441 = vmatmul.mubr.bf16.vlgmr.msra.gmra.mxu1 %v13468_v15  ;;  %v373_v12 = vld [vmem:[#allocation2 + $0x54] sm:$0x1]  ;;  %v432_v15 = vld [vmem:[#allocation2 + $0x68] sm:$0x1]  ;;  %v2020_v58 = vrot.slane %v2018_v54, 4 }
  0x8b   : > { %12428 = vmatprep.mubr.bf16.mxu0 %v13463_v14  ;;  %12444 = vmatprep.mubr.bf16.mxu1 %v13471_v16  ;;  %v374_v14 = vsel %vm14200_vm2, 0, %v373_v12  ;;  %v438_v16 = vld [vmem:[#allocation2 + $0x80] sm:$0x1] }
  0x8c   : > { %12505 = vmatpush3.bf16.msra.mxu0 %v13477_v11  ;;  %12457 = vmatpush3.bf16.msra.mxu1 %v13481_v13  ;;  %v379_v11 = vld [vmem:[#allocation2 + $0x6c] sm:$0x1]  ;;  %375 = vst [vmem:[#allocation2 + $0x54] sm:$0x1] %v374_v14  ;;  %v439_v18 = vsel %vm14224_vm4, 0, %v438_v16 }
  0x8d   : > { %12506 = vmatprep.subr.bf16.mxu0 %v13478_v17  ;;  %12458 = vmatprep.subr.bf16.mxu1 %v13483_v19  ;;  %v380_v13 = vsel %vm14200_vm2, 0, %v379_v11  ;;  %440 = vst [vmem:[#allocation2 + $0x80] sm:$0x1] %v439_v18  ;;  %v1968_v63 = vld [vmem:[#allocation2 + $0x8] sm:$0x1]  ;;  %v18646_v11 = vmov 0 }
  0x8e   : > { %381 = vst [vmem:[#allocation2 + $0x6c] sm:$0x1] %v380_v13  ;;  %v2037_v3 = vshll.u32 %v1968_v63, 16  ;;  %v2795_v6 = vrot.slane %v1968_v63, 5  ;;  %v18647_v11 = vsel %vm14306_vm8, 4294967295, %v18646_v11 }
  0x8f   : > { %18648 = vst [vmem:[#allocation18_spill] sm:$0xff] %v18647_v11 }
  0x90   : > { %12507 = vmatpush3.bf16.msra.mxu0 %v13478_v17  ;;  %12459 = vmatpush3.bf16.msra.mxu1 %v13483_v19  ;;  %v433_v17 = vsel %vm14224_vm4, 0, %v432_v15  ;;  %v435_v19 = vld [vmem:[#allocation2 + $0x74] sm:$0x1]  ;;  %v14314_v14 = vrot.slane %v2037_v3, 5 }
  0x91   : > { %12508 = vmatprep.subr.bf16.mxu0 %v13479_v21  ;;  %12460 = vmatprep.subr.bf16.mxu1 %v13485_v35  ;;  %434 = vst [vmem:[#allocation2 + $0x68] sm:$0x1] %v433_v17  ;;  %v436_v20 = vsel %vm14224_vm4, 0, %v435_v19 }
  0x92   : > { %12429 = vmatmul.mubr.bf16.gmra.mxu0 %v13464_v22  ;;  %12445 = vmatmul.mubr.bf16.gmra.mxu1 %v13472_v23  ;;  %437 = vst [vmem:[#allocation2 + $0x74] sm:$0x1] %v436_v20  ;;  %v388_v22 = vld [vmem:[#allocation2 + $0x90] sm:$0x1] }
  0x93   : > { %12432 = vmatprep.mubr.bf16.mxu0 %v13465_v24  ;;  %12448 = vmatprep.mubr.bf16.mxu1 %v13473_v25  ;;  %v389_v23 = vsel %vm14200_vm2, 0, %v388_v22  ;;  %v429_v24 = vld [vmem:[#allocation2 + $0x5c] sm:$0x1] }
  0x94   : > { %12509 = vmatpush3.bf16.msra.mxu0 %v13479_v21  ;;  %12461 = vmatpush3.bf16.msra.mxu1 %v13485_v35  ;;  %v14264_v21 = vld [vmem:[#allocation9 + $0x78] sm:$0xff]   ;;  %390 = vst [vmem:[#allocation2 + $0x90] sm:$0x1] %v389_v23  ;;  %v430_v25 = vsel %vm14224_vm4, 0, %v429_v24 }
  0x95   : > { %12510 = vmatprep.subr.bf16.mxu0 %v13480_v26  ;;  %12462 = vmatprep.subr.bf16.mxu1 %v13487_v42  ;;  %431 = vst [vmem:[#allocation2 + $0x5c] sm:$0x1] %v430_v25 }
  0x98   : > { %12511 = vmatpush3.bf16.msra.mxu0 %v13480_v26  ;;  %12463 = vmatpush3.bf16.msra.mxu1 %v13487_v42  ;;  %v385_v26 = vld [vmem:[#allocation2 + $0x84] sm:$0x1]  ;;  %v400_v42 = vld [vmem:[#allocation2 + $0xc0] sm:$0x1] }
  0x99   : > { %12512 = vmatprep.subr.bf16.mxu0 %v13482_v27  ;;  %12464 = vmatprep.subr.bf16.mxu1 %v13489_v48  ;;  %v401_v44 = vsel %vm14200_vm2, 0, %v400_v42 }
  0x9a   : > { %12433 = vmatmul.mubr.bf16.gmra.mxu0 %v13466_v28  ;;  %12449 = vmatmul.mubr.bf16.gmra.mxu1 %v13474_v29  ;;  %v444_v28 = vld [vmem:[#allocation2 + $0x98] sm:$0x1]  ;;  %402 = vst [vmem:[#allocation2 + $0xc0] sm:$0x1] %v401_v44 }
  0x9b   : > { %12436 = vmatprep.mubr.bf16.mxu0 %v13469_v30  ;;  %12452 = vmatprep.mubr.bf16.mxu1 %v13475_v31  ;;  %v445_v29 = vsel %vm14224_vm4, 0, %v444_v28  ;;  %v441_v30 = vld [vmem:[#allocation2 + $0x8c] sm:$0x1] }
  0x9c   : > { %12513 = vmatpush3.bf16.msra.mxu0 %v13482_v27  ;;  %12465 = vmatpush3.bf16.msra.mxu1 %v13489_v48  ;;  %v386_v27 = vsel %vm14200_vm2, 0, %v385_v26  ;;  %446 = vst [vmem:[#allocation2 + $0x98] sm:$0x1] %v445_v29  ;;  %v442_v31 = vsel %vm14224_vm4, 0, %v441_v30  ;;  %v453_v48 = vld [vmem:[#allocation2 + $0xbc] sm:$0x1] }
  0x9d   : > { %12514 = vmatprep.subr.bf16.mxu0 %v13484_v34  ;;  %12466 = vmatprep.subr.bf16.mxu1 %v13490_v53  ;;  %387 = vst [vmem:[#allocation2 + $0x84] sm:$0x1] %v386_v27  ;;  %443 = vst [vmem:[#allocation2 + $0x8c] sm:$0x1] %v442_v31  ;;  %v454_v49 = vsel %vm14224_vm4, 0, %v453_v48  ;;  %v18653_v26 = vmov 0 }
  0x9e   : > { %455 = vst [vmem:[#allocation2 + $0xbc] sm:$0x1] %v454_v49  ;;  %v18654_v26 = vsel %vm14344_vm11, 4294967295, %v18653_v26  ;;  %v1282_v48 = vld [vmem:[#allocation2 + $0x18] sm:$0xf] }
  0x9f   : > { %18655 = vst [vmem:[#allocation23_spill] sm:$0xff] %v18654_v26 }
  0xa0   : > { %12515 = vmatpush3.bf16.msra.mxu0 %v13484_v34  ;;  %12467 = vmatpush3.bf16.msra.mxu1 %v13490_v53  ;;  %v391_v34 = vld [vmem:[#allocation2 + $0x9c] sm:$0x1]  ;;  %v1967_v53 = vld [vmem:[#allocation2 + $0x4] sm:$0xf] }
  0xa1   : > { %12516 = vmatprep.subr.bf16.mxu0 %v13486_v37  ;;  %12468 = vmatprep.subr.bf16.mxu1 %v13491_v59  ;;  %v392_v35 = vsel %vm14200_vm2, 0, %v391_v34  ;;  %v2027_v56 = vshll.u32 %v1967_v53, 16  ;;  %v2031_v57 = vshrl.u32 %v1967_v53, 16  ;;  %v2792_v62 = vrot.slane %v1967_v53, 5 }
  0xa2   : > { %12437 = vmatmul.mubr.bf16.gmra.mxu0 %v13470_v32  ;;  %12453 = vmatmul.mubr.bf16.gmra.mxu1 %v13476_v33  ;;  %v394_v32 = vld [vmem:[#allocation2 + $0xa8] sm:$0x1]  ;;  %393 = vst [vmem:[#allocation2 + $0x9c] sm:$0x1] %v392_v35 }
  0xa3   : > { %12472 = vmatprep.mubr.bf16.mxu1 %v13493_v7  ;;  %v395_v33 = vsel %vm14200_vm2, 0, %v394_v32  ;;  %v14298_v60 = vrot.slane %v2027_v56, 5  ;;  %v2033_v61 = vrot.slane %v2031_v57, 4  ;;  %v2794_v5 = vrot.slane %v2792_v62, 4  ;;  %v14304_v7 = vld [vmem:[%s18543_s2] ss:$0 sm:$0xff] }
  0xa4   : > { %12517 = vmatpush3.bf16.msra.mxu0 %v13486_v37  ;;  %12469 = vmatpush3.bf16.msra.mxu1 %v13491_v59  ;;  %396 = vst [vmem:[#allocation2 + $0xa8] sm:$0x1] %v395_v33  ;;  %v450_v37 = vld [vmem:[#allocation2 + $0xb0] sm:$0x1]  ;;  %v2023_v59 = vrot.slane %v2021_v55, 5 }
  0xa5   : > { %12518 = vmatprep.subr.bf16.mxu0 %v13488_v43  ;;  %12470 = vmatprep.subr.bf16.mxu1 %v13492_v4  ;;  %v451_v38 = vsel %vm14224_vm4, 0, %v450_v37  ;;  %v2034_v2 = vor.u32 %v2033_v61, %v14298_v60  ;;  %v14328_v18 = vsel %vm14306_vm8, %v2794_v5, %v2795_v6  ;;  %v13504_v5 = vld [vmem:[#allocation9 + $0xb0] sm:$0xff]  }
  0xa6   : > { %452 = vst [vmem:[#allocation2 + $0xb0] sm:$0x1] %v451_v38  ;;  %v2024_v1 = vor.u32 %v2023_v59, %v2020_v58  ;;  %v1275_v58 = vld [vmem:[#allocation2 + $0xc] sm:$0xf] }
  0xa7   : > { %v14312_v13 = vrot.slane %v2034_v2, 4 }
  0xa8   : > { %12519 = vmatpush3.bf16.msra.mxu0 %v13488_v43  ;;  %12471 = vmatpush3.bf16.msra.mxu1 %v13492_v4  ;;  %v397_v43 = vld [vmem:[#allocation2 + $0xb4] sm:$0x1]  ;;  %v11373_v4 = vrot.slane %v2723_v0, 9  ;;  %v14310_v12 = vrot.slane %v2024_v1, 4 }
  0xa9   : > { %12552 = vmatprep.subr.bf16.mxu1 %v14264_v21  ;;  %12600 = vmatprep.subr.bf16.mxu0 %v14281_v36  ;;  %v398_v45 = vsel %vm14200_vm2, 0, %v397_v43 }
  0xaa   : > { %399 = vst [vmem:[#allocation2 + $0xb4] sm:$0x1] %v398_v45  ;;  %v14324_v17 = vsel %vm14306_vm8, %v11373_v4, %v2792_v62 }
 0x14a   : > { %v12426_v8 = vpop.f32.mrf.mxu0  ;;  %v12442_v9 = vpop.f32.mrf.mxu1 }
 0x14b   : > { %v14317_v15 = vadd.f32 %v12426_v8, %v14304_v7  ;;  %v14320_v16 = vadd.f32 %v12442_v9, %v14304_v7 }
 0x14c   : > { %v695_v19 = vpop.f32.mrf.mxu0  ;;  %v759_v20 = vpop.f32.mrf.mxu1 }
 0x14d   : > { %18649 = vst [vmem:[#allocation19_spill] sm:$0xff] %v14317_v15  ;;  %18650 = vst [vmem:[#allocation20_spill] sm:$0xff] %v14320_v16  ;;  %v11888_v22 = vpack.c.bf16 %v14317_v15, %v14317_v15  ;;  %v14333_v23 = vadd.f32 %v14304_v7, %v695_v19  ;;  %v14337_v24 = vpack.c.bf16 %v14320_v16, %v14320_v16 }
 0x14e   : > { %v14340_v25 = vadd.f32 %v14304_v7, %v759_v20  ;;  %v12427_v27 = vpop.f32.mrf.mxu0  ;;  %v12443_v35 = vpop.f32.mrf.mxu1 }
 0x14f   : > { %18651 = vst [vmem:[#allocation21_spill] sm:$0xff] %v14333_v23  ;;  %v970_v31 = vshrl.u32 %v11888_v22, 16  ;;  %v973_v32 = vshll.u32 %v11888_v22, 16  ;;  %v11886_v33 = vpack.c.bf16 %v14333_v23, %v14333_v23  ;;  %v14361_v34 = vadd.f32 %v12427_v27, %v14304_v7  ;;  %v1286_v27 = vld [vmem:[#allocation2 + $0x20] sm:$0x1] }
 0x150   : > { %18652 = vst [vmem:[#allocation22_spill] sm:$0xff] %v14340_v25  ;;  %v698_v37 = vpop.f32.mrf.mxu0  ;;  %v1106_v38 = vshrl.u32 %v14337_v24, 16  ;;  %v1109_v40 = vshll.u32 %v14337_v24, 16  ;;  %v14367_v41 = vpack.c.bf16 %v14340_v25, %v14340_v25  ;;  %v14370_v42 = vadd.f32 %v12443_v35, %v14304_v7 }
 0x151   : > { %18656 = vst [vmem:[#allocation24_spill] sm:$0xff] %v14361_v34  ;;  %v972_v43 = vrot.slane %v970_v31, 7  ;;  %v953_v44 = vshrl.u32 %v11886_v33, 16  ;;  %v956_v45 = vshll.u32 %v11886_v33, 16  ;;  %v855_v46 = vpack.c.bf16 %v14361_v34, %v14317_v15 }
 0x152   : > { %18657 = vst [vmem:[#allocation25_spill] sm:$0xff] %v14370_v42  ;;  %v11889_v49 = vpack.c.bf16 %v14361_v34, %v14361_v34  ;;  %v14383_v50 = vadd.f32 %v14304_v7, %v698_v37  ;;  %v12430_v51 = vpop.f32.mrf.mxu0  ;;  %v14385_v52 = vrot.slane %v1106_v38, 7  ;;  %v1089_v53 = vshrl.u32 %v14367_v41, 16 }
 0x153   : > { %v975_v54 = vor.u32 %v973_v32, %v972_v43  ;;  %v976_v55 = vrot.slane %v972_v43, 4  ;;  %v955_v56 = vrot.slane %v953_v44, 7  ;;  %v14389_v57 = vadd.f32 %v12430_v51, %v14304_v7 }
 0x154   : > { %18661 = vst [vmem:[#allocation27_spill] sm:$0xff] %v14383_v50  ;;  %v978_v59 = vshrl.u32 %v11889_v49, 16  ;;  %v981_v61 = vshll.u32 %v11889_v49, 16  ;;  %v11887_v62 = vpack.c.bf16 %v14383_v50, %v14383_v50  ;;  %v711_v63 = vpop.f32.mrf.mxu0  ;;  %v854_v0 = vpack.c.bf16 %v14383_v50, %v14333_v23 }
 0x155   : > { %18662 = vst [vmem:[#allocation28_spill] sm:$0xff] %v14389_v57  ;;  %v1283_v1 = vsel %vm14376_vm13, %v975_v54, %v1282_v48  ;;  %v958_v2 = vor.u32 %v956_v45, %v955_v56  ;;  %v959_v3 = vrot.slane %v955_v56, 4  ;;  %v11892_v4 = vpack.c.bf16 %v14389_v57, %v14389_v57  ;;  %v1279_v45 = vld [vmem:[#allocation2 + $0x14] sm:$0x1]  ;;  %v13507_v54 = vld [vmem:[#allocation9 + $0xa8] sm:$0xff]  }
 0x156   : > { %1284 = vst [vmem:[#allocation2 + $0x18] sm:$0xf] %v1283_v1  ;;  %v980_v6 = vrot.slane %v978_v59, 7  ;;  %v961_v8 = vshrl.u32 %v11887_v62, 16  ;;  %v964_v9 = vshll.u32 %v11887_v62, 16  ;;  %v14400_v19 = vadd.f32 %v14304_v7, %v711_v63  ;;  %12520 = vmatprep.mubr.bf16.mxu0 %v854_v0  ;;  %v12431_v20 = vpop.f32.mrf.mxu0 }
 0x157   : > { %v1276_v22 = vsel %vm14376_vm13, %v958_v2, %v1275_v58  ;;  %v18664_v24 = vmov 0  ;;  %v1004_v31 = vshrl.u32 %v11892_v4, 16  ;;  %v1007_v32 = vshll.u32 %v11892_v4, 16  ;;  %12521 = vmatmul.mubr.bf16.vlgmr.msra.gmra.mxu0 %v855_v46 }
 0x158   : > { %18663 = vst [vmem:[#allocation29_spill] sm:$0xff] %v14400_v19  ;;  %v18665_v24 = vsel %vm14406_vm14, 4294967295, %v18664_v24  ;;  %v14411_v33 = vadd.f32 %v12431_v20, %v14304_v7  ;;  %1277 = vst [vmem:[#allocation2 + $0xc] sm:$0xf] %v1276_v22  ;;  %v983_v35 = vor.u32 %v981_v61, %v980_v6  ;;  %v985_v37 = vrot.slane %v980_v6, 4  ;;  %v714_v44 = vpop.f32.mrf.mxu0  ;;  %12601 = vmatpush3.bf16.msra.mxu0 %v14281_v36 }
 0x159   : > { %18666 = vst [vmem:[#allocation30_spill] sm:$0xff] %v18665_v24  ;;  %v963_v38 = vrot.slane %v961_v8, 7  ;;  %v11890_v43 = vpack.c.bf16 %v14400_v19, %v14400_v19  ;;  %v14416_v48 = vrot.slane %v1004_v31, 7  ;;  %v14421_v51 = vadd.f32 %v14304_v7, %v714_v44  ;;  %12602 = vmatprep.subr.bf16.mxu0 %v13504_v5  ;;  %v1296_v61 = vld [vmem:[#allocation2 + $0x30] sm:$0xf] }
 0x15a   : > { %18667 = vst [vmem:[#allocation31_spill] sm:$0xff] %v14411_v33  ;;  %v11893_v49 = vpack.c.bf16 %v14411_v33, %v14411_v33  ;;  %v14424_v46 = vor.u32 %v1109_v40, %v14385_v52  ;;  %v984_v56 = vsel %vm14406_vm14, %v976_v55, %v983_v35  ;;  %v1287_v36 = vsel %vm14200_vm2, %v985_v37, %v1286_v27  ;;  %v12434_v62 = vpop.f32.mrf.mxu0  ;;  %v1289_v22 = vld [vmem:[#allocation2 + $0x24] sm:$0xf] }
 0x15b   : > { %18668 = vst [vmem:[#allocation32_spill] sm:$0xff] %v14421_v51  ;;  %v966_v58 = vor.u32 %v964_v9, %v963_v38  ;;  %v968_v59 = vrot.slane %v963_v38, 4  ;;  %1285 = vst [vmem:[#allocation2 + $0x1c] sm:$0xf] %v984_v56  ;;  %v1009_v63 = vor.u32 %v1007_v32, %v14416_v48  ;;  %v1010_v0 = vrot.slane %v14416_v48, 4  ;;  %v13509_v32 = vld [vmem:[#allocation9 + $0xa0] sm:$0xff]  }
 0x15c   : > { %1288 = vst [vmem:[#allocation2 + $0x20] sm:$0x1] %v1287_v36  ;;  %v987_v40 = vshrl.u32 %v11890_v43, 16  ;;  %v990_v1 = vshll.u32 %v11890_v43, 16  ;;  %v1012_v4 = vshrl.u32 %v11893_v49, 16  ;;  %v1015_v6 = vshll.u32 %v11893_v49, 16  ;;  %v727_v8 = vpop.f32.mrf.mxu0  ;;  %12603 = vmatpush3.bf16.msra.mxu0 %v13504_v5 }
 0x15d   : > { %v967_v2 = vsel %vm14406_vm14, %v959_v3, %v966_v58  ;;  %v1280_v55 = vsel %vm14200_vm2, %v968_v59, %v1279_v45  ;;  %v1297_v9 = vsel %vm14376_vm13, %v1009_v63, %v1296_v61  ;;  %v11891_v27 = vpack.c.bf16 %v14421_v51, %v14421_v51  ;;  %v14443_v3 = vpop.f32.mrf.mxu1  ;;  %12604 = vmatprep.subr.bf16.mxu0 %v13507_v54  ;;  %v1300_v5 = vld [vmem:[#allocation2 + $0x38] sm:$0x1] }
 0x15e   : > { %1278 = vst [vmem:[#allocation2 + $0x10] sm:$0xf] %v967_v2  ;;  %1281 = vst [vmem:[#allocation2 + $0x14] sm:$0x1] %v1280_v55  ;;  %v989_v20 = vrot.slane %v987_v40, 7  ;;  %v14441_v31 = vadd.f32 %v12434_v62, %v14304_v7  ;;  %v1014_v35 = vrot.slane %v1012_v4, 7  ;;  %v14446_v37 = vadd.f32 %v14304_v7, %v727_v8  ;;  %v12435_v43 = vpop.f32.mrf.mxu0 }
 0x15f   : > { %1298 = vst [vmem:[#allocation2 + $0x30] sm:$0xf] %v1297_v9  ;;  %v856_v38 = vpack.c.bf16 %v14421_v51, %v14400_v19  ;;  %v1338_v45 = vld [vmem:[#allocation2 + $0x78] sm:$0xf]  ;;  %v995_v56 = vshrl.u32 %v11891_v27, 16  ;;  %v998_v36 = vshll.u32 %v11891_v27, 16  ;;  %v14463_v4 = vpop.f32.mrf.mxu1 }
 0x160   : > { %18669 = vst [vmem:[#allocation33_spill] sm:$0xff] %v14441_v31  ;;  %18670 = vst [vmem:[#allocation34_spill] sm:$0xff] %v14446_v37  ;;  %v992_v48 = vor.u32 %v990_v1, %v989_v20  ;;  %v993_v49 = vrot.slane %v989_v20, 4  ;;  %v1017_v58 = vor.u32 %v1015_v6, %v1014_v35  ;;  %v1019_v59 = vrot.slane %v1014_v35, 4  ;;  %v730_v63 = vpop.f32.mrf.mxu0  ;;  %12605 = vmatpush3.bf16.msra.mxu0 %v13507_v54  ;;  %v13512_v6 = vld [vmem:[#allocation9 + $0x98] sm:$0xff]  }
 0x161   : > { %v11896_v61 = vpack.c.bf16 %v14441_v31, %v14441_v31  ;;  %v11894_v62 = vpack.c.bf16 %v14446_v37, %v14446_v37  ;;  %12524 = vmatprep.mubr.bf16.mxu0 %v856_v38  ;;  %v997_v2 = vrot.slane %v995_v56, 7  ;;  %v14458_v1 = vadd.f32 %v12435_v43, %v14304_v7  ;;  %12606 = vmatprep.subr.bf16.mxu0 %v13509_v32  ;;  %v1293_v9 = vld [vmem:[#allocation2 + $0x2c] sm:$0x1] }
 0x162   : > { %v1290_v40 = vsel %vm14376_vm13, %v992_v48, %v1289_v22  ;;  %v1339_v55 = vsel %vm14376_vm13, %v14424_v46, %v1338_v45  ;;  %v1018_v8 = vsel %vm14406_vm14, %v1010_v0, %v1017_v58  ;;  %v1301_v54 = vsel %vm14200_vm2, %v1019_v59, %v1300_v5  ;;  %v1310_v46 = vld [vmem:[#allocation2 + $0x48] sm:$0xf]  ;;  %v12438_v56 = vpop.f32.mrf.mxu0  ;;  %v13573_v34 = vld [vmem:[#allocation2 + $0x18] sm:$0xff]  }
 0x163   : > { %18671 = vst [vmem:[#allocation35_spill] sm:$0xff] %v14458_v1  ;;  %1291 = vst [vmem:[#allocation2 + $0x24] sm:$0xf] %v1290_v40  ;;  %v1038_v20 = vshrl.u32 %v11896_v61, 16  ;;  %v1041_v22 = vshll.u32 %v11896_v61, 16  ;;  %v1000_v27 = vor.u32 %v998_v36, %v997_v2  ;;  %v1002_v35 = vrot.slane %v997_v2, 4 }
 0x164   : > { %1340 = vst [vmem:[#allocation2 + $0x78] sm:$0xf] %v1339_v55  ;;  %1299 = vst [vmem:[#allocation2 + $0x34] sm:$0xf] %v1018_v8  ;;  %v1021_v38 = vshrl.u32 %v11894_v62, 16  ;;  %v1024_v43 = vshll.u32 %v11894_v62, 16  ;;  %v11897_v48 = vpack.c.bf16 %v14458_v1, %v14458_v1  ;;  %v857_v0 = vpack.c.bf16 %v14411_v33, %v14389_v57  ;;  %12607 = vmatpush3.bf16.msra.mxu0 %v13509_v32  ;;  %v14486_v55 = vpop.f32.mrf.mxu1 }
 0x165   : > { %1302 = vst [vmem:[#allocation2 + $0x38] sm:$0x1] %v1301_v54  ;;  %v1040_v45 = vrot.slane %v1038_v20, 7  ;;  %v14474_v5 = vadd.f32 %v14304_v7, %v730_v63  ;;  %v13495_v58 = vld [vmem:[#allocation2 + $0xc] sm:$0xff]   ;;  %v1001_v36 = vsel %vm14406_vm14, %v993_v49, %v1000_v27  ;;  %v1294_v61 = vsel %vm14200_vm2, %v1002_v35, %v1293_v9  ;;  %v13496_v2 = vld [vmem:[#allocation2 + $0x18] sm:$0xff]   ;;  %12608 = vmatprep.subr.bf16.mxu0 %v13512_v6 }
 0x166   : > { %v13497_v59 = vld [vmem:[#allocation9 + $0x70] sm:$0xff]   ;;  %v14480_v62 = vrot.slane %v1021_v38, 7  ;;  %v14484_v40 = vrot.slane %v1089_v53, 7  ;;  %1292 = vst [vmem:[#allocation2 + $0x28] sm:$0xf] %v1001_v36  ;;  %v1046_v49 = vshrl.u32 %v11897_v48, 16  ;;  %12525 = vmatmul.mubr.bf16.gmra.mxu0 %v857_v0  ;;  %12473 = vmatmul.mubr.bf16.vlgmr.msra.gmra.mxu1 %v13495_v58  ;;  %v743_v58 = vpop.f32.mrf.mxu0 }
 0x167   : > { %18672 = vst [vmem:[#allocation36_spill] sm:$0xff] %v14474_v5  ;;  %v13514_v63 = vld [vmem:[#allocation9 + $0x90] sm:$0xff]   ;;  %1295 = vst [vmem:[#allocation2 + $0x2c] sm:$0x1] %v1294_v61  ;;  %v1043_v32 = vor.u32 %v1041_v22, %v1040_v45  ;;  %v1044_v8 = vrot.slane %v1040_v45, 4  ;;  %v1049_v20 = vshll.u32 %v11897_v48, 16  ;;  %v11895_v35 = vpack.c.bf16 %v14474_v5, %v14474_v5  ;;  %12553 = vmatpush3.bf16.msra.mxu1 %v14264_v21 }
 0x168   : > { %v1303_v54 = vld [vmem:[#allocation2 + $0x3c] sm:$0xf]  ;;  %v1026_v9 = vor.u32 %v1024_v43, %v14480_v62  ;;  %v1027_v27 = vrot.slane %v14480_v62, 4  ;;  %v1314_v53 = vld [vmem:[#allocation2 + $0x50] sm:$0x1]  ;;  %v1092_v38 = vshll.u32 %v14367_v41, 16  ;;  %12476 = vmatprep.mubr.bf16.mxu1 %v13496_v2  ;;  %v14498_v43 = vadd.f32 %v12438_v56, %v14304_v7  ;;  %12554 = vmatprep.subr.bf16.mxu1 %v13497_v59  ;;  %v14507_v2 = vpop.f32.mrf.mxu1  ;;  %v12439_v28 = vpop.f32.mrf.mxu0 }
 0x169   : > { %v1311_v22 = vsel %vm14376_vm13, %v1043_v32, %v1310_v46  ;;  %v1048_v45 = vrot.slane %v1046_v49, 7  ;;  %v1331_v0 = vld [vmem:[#allocation2 + $0x6c] sm:$0xf]  ;;  %v14500_v36 = vld [vmem:[#allocation9 + $0x68] sm:$0xff]   ;;  %12609 = vmatpush3.bf16.msra.mxu0 %v13512_v6  ;;  %v1029_v41 = vshrl.u32 %v11895_v35, 16  ;;  %v1032_v46 = vshll.u32 %v11895_v35, 16 }
 0x16a   : > { %18673 = vst [vmem:[#allocation37_spill] sm:$0xff] %v14498_v43  ;;  %v14502_v61 = vld [vmem:[#allocation9 + $0x88] sm:$0xff]   ;;  %1312 = vst [vmem:[#allocation2 + $0x48] sm:$0xf] %v1311_v22  ;;  %v1304_v21 = vsel %vm14376_vm13, %v1026_v9, %v1303_v54  ;;  %v1094_v62 = vor.u32 %v1092_v38, %v14484_v40  ;;  %12610 = vmatprep.subr.bf16.mxu0 %v13514_v63  ;;  %v11900_v49 = vpack.c.bf16 %v14498_v43, %v14498_v43 }
 0x16b   : > { %1305 = vst [vmem:[#allocation2 + $0x3c] sm:$0xf] %v1304_v21  ;;  %v1051_v56 = vor.u32 %v1049_v20, %v1048_v45  ;;  %v1053_v32 = vrot.slane %v1048_v45, 4  ;;  %v11905_v6 = vpack.c.bf16 %v14370_v42, %v14370_v42  ;;  %v1031_v22 = vrot.slane %v1029_v41, 7  ;;  %12555 = vmatpush3.bf16.msra.mxu1 %v13497_v59  ;;  %v1307_v45 = vld [vmem:[#allocation2 + $0x44] sm:$0x1] }
 0x16c   : > { %v1332_v54 = vsel %vm14376_vm13, %v1094_v62, %v1331_v0  ;;  %v14516_v9 = vadd.f32 %v14304_v7, %v743_v58  ;;  %v14520_v35 = vadd.f32 %v14304_v7, %v14443_v3  ;;  %v1072_v21 = vshrl.u32 %v11900_v49, 16  ;;  %12556 = vmatprep.subr.bf16.mxu1 %v14500_v36  ;;  %v14527_v62 = vpop.f32.mrf.mxu1 }
 0x16d   : > { %v1052_v20 = vsel %vm14406_vm14, %v1044_v8, %v1051_v56  ;;  %v1315_v38 = vsel %vm14200_vm2, %v1053_v32, %v1314_v53  ;;  %1333 = vst [vmem:[#allocation2 + $0x6c] sm:$0xf] %v1332_v54  ;;  %v1075_v41 = vshll.u32 %v11900_v49, 16  ;;  %12611 = vmatpush3.bf16.msra.mxu0 %v13514_v63  ;;  %v1034_v0 = vor.u32 %v1032_v46, %v1031_v22  ;;  %v13498_v8 = vld [vmem:[#allocation2 + $0x24] sm:$0xff]   ;;  %v13499_v46 = vld [vmem:[#allocation2 + $0x30] sm:$0xff]   ;;  %v13505_v49 = vld [vmem:[#allocation9 + $0x60] sm:$0xff]  }
 0x16e   : > { %18674 = vst [vmem:[#allocation38_spill] sm:$0xff] %v14516_v9  ;;  %18675 = vst [vmem:[#allocation39_spill] sm:$0xff] %v14520_v35  ;;  %v1036_v3 = vrot.slane %v1031_v22, 4  ;;  %v1114_v58 = vshrl.u32 %v11905_v6, 16  ;;  %v1117_v59 = vshll.u32 %v11905_v6, 16  ;;  %12612 = vmatprep.subr.bf16.mxu0 %v14502_v61  ;;  %v14530_v53 = vrot.slane %v1072_v21, 7  ;;  %12477 = vmatmul.mubr.bf16.gmra.mxu1 %v13498_v8 }
 0x16f   : > { %1313 = vst [vmem:[#allocation2 + $0x4c] sm:$0xf] %v1052_v20  ;;  %1316 = vst [vmem:[#allocation2 + $0x50] sm:$0x1] %v1315_v38  ;;  %v11898_v56 = vpack.c.bf16 %v14516_v9, %v14516_v9  ;;  %v11903_v32 = vpack.c.bf16 %v14520_v35, %v14520_v35  ;;  %v858_v63 = vpack.c.bf16 %v14474_v5, %v14446_v37  ;;  %v13519_v22 = vld [vmem:[#allocation9 + $0x80] sm:$0xff]   ;;  %12480 = vmatprep.mubr.bf16.mxu1 %v13499_v46 }
 0x170   : > { %v1035_v6 = vsel %vm14406_vm14, %v1027_v27, %v1034_v0  ;;  %v1308_v54 = vsel %vm14200_vm2, %v1036_v3, %v1307_v45  ;;  %v1324_v20 = vld [vmem:[#allocation2 + $0x60] sm:$0xf]  ;;  %v1116_v38 = vrot.slane %v1114_v58, 7  ;;  %v14543_v29 = vadd.f32 %v12439_v28, %v14304_v7  ;;  %v14547_v58 = vpop.f32.mrf.mxu1  ;;  %12557 = vmatpush3.bf16.msra.mxu1 %v14500_v36  ;;  %v1317_v8 = vld [vmem:[#allocation2 + $0x54] sm:$0xf] }
 0x171   : > { %v1342_v21 = vld [vmem:[#allocation2 + $0x80] sm:$0x1]  ;;  %1306 = vst [vmem:[#allocation2 + $0x40] sm:$0xf] %v1035_v6  ;;  %1309 = vst [vmem:[#allocation2 + $0x44] sm:$0x1] %v1308_v54  ;;  %v1077_v30 = vor.u32 %v1075_v41, %v14530_v53  ;;  %12528 = vmatprep.mubr.bf16.mxu0 %v858_v63  ;;  %12613 = vmatpush3.bf16.msra.mxu0 %v14502_v61  ;;  %v859_v6 = vpack.c.bf16 %v14458_v1, %v14441_v31 }
 0x172   : > { %18676 = vst [vmem:[#allocation40_spill] sm:$0xff] %v14543_v29  ;;  %v1078_v48 = vrot.slane %v14530_v53, 4  ;;  %v1055_v44 = vshrl.u32 %v11898_v56, 16  ;;  %v1058_v5 = vshll.u32 %v11898_v56, 16  ;;  %v1119_v27 = vor.u32 %v1117_v59, %v1116_v38  ;;  %12558 = vmatprep.subr.bf16.mxu1 %v13505_v49  ;;  %v13510_v63 = vld [vmem:[#allocation9 + $0x58] sm:$0xff]   ;;  %12614 = vmatprep.subr.bf16.mxu0 %v13519_v22  ;;  %v13520_v53 = vld [vmem:[#allocation9 + $0x48] sm:$0xff]  }
 0x173   : > { %v1121_v0 = vrot.slane %v1116_v38, 4  ;;  %v1097_v45 = vshrl.u32 %v11903_v32, 16  ;;  %v1100_v3 = vshll.u32 %v11903_v32, 16  ;;  %v1325_v28 = vsel %vm14376_vm13, %v1077_v30, %v1324_v20  ;;  %v746_v32 = vpop.f32.mrf.mxu0  ;;  %v1335_v46 = vld [vmem:[#allocation2 + $0x74] sm:$0x1]  ;;  %12529 = vmatmul.mubr.bf16.gmra.mxu0 %v859_v6 }
 0x174   : > { %v14553_v41 = vrot.slane %v1055_v44, 7  ;;  %v11901_v56 = vpack.c.bf16 %v14543_v29, %v14543_v29  ;;  %v14559_v59 = vadd.f32 %v14463_v4, %v14304_v7  ;;  %1326 = vst [vmem:[#allocation2 + $0x60] sm:$0xf] %v1325_v28  ;;  %v18678_v36 = vrot.slane %v14385_v52, 4  ;;  %v14569_v4 = vld [vmem:[#allocation9 + $0x178] sm:$0xff]   ;;  %12559 = vmatpush3.bf16.msra.mxu1 %v13505_v49 }
 0x175   : > { %v1343_v44 = vsel %vm14200_vm2, %v1121_v0, %v1342_v21  ;;  %v1099_v61 = vrot.slane %v1097_v45, 7  ;;  %v14576_v0 = vadd.f32 %v14304_v7, %v746_v32  ;;  %v14578_v45 = vpop.f32.mrf.mxu1  ;;  %12560 = vmatprep.subr.bf16.mxu1 %v13510_v63  ;;  %12615 = vmatpush3.bf16.msra.mxu0 %v13519_v22  ;;  %v18682_v32 = vrot.slane %v14484_v40, 4 }
 0x176   : > { %18677 = vst [vmem:[#allocation41_spill] sm:$0xff] %v14559_v59  ;;  %v1120_v30 = vsel %vm14406_vm14, %v18678_v36, %v1119_v27  ;;  %1344 = vst [vmem:[#allocation2 + $0x80] sm:$0x1] %v1343_v44  ;;  %v1060_v54 = vor.u32 %v1058_v5, %v14553_v41  ;;  %v1080_v52 = vshrl.u32 %v11901_v56, 16  ;;  %v1083_v38 = vshll.u32 %v11901_v56, 16  ;;  %12696 = vmatprep.subr.bf16.mxu0 %v14569_v4 }
 0x177   : > { %1341 = vst [vmem:[#allocation2 + $0x7c] sm:$0xf] %v1120_v30  ;;  %v1102_v28 = vor.u32 %v1100_v3, %v1099_v61  ;;  %v1104_v27 = vrot.slane %v1099_v61, 4  ;;  %v11908_v21 = vpack.c.bf16 %v14559_v59, %v14559_v59  ;;  %18679 = vst [vmem:[#allocation42_spill] sm:$0xff] %v14576_v0  ;;  %v1328_v30 = vld [vmem:[#allocation2 + $0x68] sm:$0x1]  ;;  %v14584_v56 = vadd.f32 %v14304_v7, %v14486_v55 }
 0x178   : > { %v1318_v36 = vsel %vm14376_vm13, %v1060_v54, %v1317_v8  ;;  %v1082_v5 = vrot.slane %v1080_v52, 7  ;;  %v14588_v3 = vadd.f32 %v14507_v2, %v14304_v7  ;;  %v13501_v6 = vld [vmem:[#allocation2 + $0x3c] sm:$0xff]   ;;  %v13515_v55 = vld [vmem:[#allocation9 + $0x50] sm:$0xff]   ;;  %v11899_v22 = vpack.c.bf16 %v14576_v0, %v14576_v0  ;;  %12561 = vmatpush3.bf16.msra.mxu1 %v13510_v63 }
 0x179   : > { %18680 = vst [vmem:[#allocation43_spill] sm:$0xff] %v14584_v56  ;;  %1319 = vst [vmem:[#allocation2 + $0x54] sm:$0xf] %v1318_v36  ;;  %v1103_v49 = vsel %vm14406_vm14, %v18682_v32, %v1102_v28  ;;  %v1336_v8 = vsel %vm14200_vm2, %v1104_v27, %v1335_v46  ;;  %v1140_v44 = vshrl.u32 %v11908_v21, 16  ;;  %v1143_v61 = vshll.u32 %v11908_v21, 16  ;;  %v13503_v52 = vld [vmem:[#allocation2 + $0x48] sm:$0xff]   ;;  %12481 = vmatmul.mubr.bf16.gmra.mxu1 %v13501_v6 }
 0x17a   : > { %18681 = vst [vmem:[#allocation44_spill] sm:$0xff] %v14588_v3  ;;  %1334 = vst [vmem:[#allocation2 + $0x70] sm:$0xf] %v1103_v49  ;;  %v1085_v2 = vor.u32 %v1083_v38, %v1082_v5  ;;  %v1087_v54 = vrot.slane %v1082_v5, 4  ;;  %v11906_v40 = vpack.c.bf16 %v14584_v56, %v14584_v56  ;;  %v11909_v46 = vpack.c.bf16 %v14588_v3, %v14588_v3  ;;  %v14609_v38 = vpop.f32.mrf.mxu1  ;;  %v1352_v32 = vld [vmem:[#allocation2 + $0x90] sm:$0xf] }
 0x17b   : > { %1337 = vst [vmem:[#allocation2 + $0x74] sm:$0x1] %v1336_v8  ;;  %v1142_v28 = vrot.slane %v1140_v44, 7  ;;  %v14605_v27 = vadd.f32 %v14304_v7, %v14527_v62  ;;  %v860_v21 = vpack.c.bf16 %v14576_v0, %v14516_v9  ;;  %v1063_v49 = vshrl.u32 %v11899_v22, 16  ;;  %12484 = vmatprep.mubr.bf16.mxu1 %v13503_v52  ;;  %12562 = vmatprep.subr.bf16.mxu1 %v13515_v55  ;;  %v1321_v9 = vld [vmem:[#allocation2 + $0x5c] sm:$0x1] }
 0x17c   : > { %v1086_v36 = vsel %vm14406_vm14, %v1078_v48, %v1085_v2  ;;  %v1329_v5 = vsel %vm14200_vm2, %v1087_v54, %v1328_v30  ;;  %v1066_v8 = vshll.u32 %v11899_v22, 16  ;;  %v1123_v20 = vshrl.u32 %v11906_v40, 16  ;;  %v1345_v22 = vld [vmem:[#allocation2 + $0x84] sm:$0xf]  ;;  %v1356_v52 = vld [vmem:[#allocation2 + $0x98] sm:$0x1]  ;;  %12563 = vmatpush3.bf16.msra.mxu1 %v13515_v55 }
 0x17d   : > { %18683 = vst [vmem:[#allocation45_spill] sm:$0xff] %v14605_v27  ;;  %1327 = vst [vmem:[#allocation2 + $0x64] sm:$0xf] %v1086_v36  ;;  %v1145_v62 = vor.u32 %v1143_v61, %v1142_v28  ;;  %v1146_v44 = vrot.slane %v1142_v28, 4  ;;  %v1126_v0 = vshll.u32 %v11906_v40, 16  ;;  %12532 = vmatprep.mubr.bf16.mxu0 %v860_v21  ;;  %v1065_v6 = vrot.slane %v1063_v49, 7  ;;  %v794_v28 = vpop.f32.mrf.mxu1  ;;  %12564 = vmatprep.subr.bf16.mxu1 %v13520_v53 }
 0x17e   : > { %1330 = vst [vmem:[#allocation2 + $0x68] sm:$0x1] %v1329_v5  ;;  %v1148_v48 = vshrl.u32 %v11909_v46, 16  ;;  %v1151_v2 = vshll.u32 %v11909_v46, 16  ;;  %v11907_v30 = vpack.c.bf16 %v14605_v27, %v14605_v27  ;;  %v1125_v63 = vrot.slane %v1123_v20, 7 }
 0x17f   : > { %v1353_v54 = vsel %vm14376_vm13, %v1145_v62, %v1352_v32  ;;  %v14623_v61 = vadd.f32 %v14547_v58, %v14304_v7  ;;  %v861_v40 = vpack.c.bf16 %v14543_v29, %v14498_v43  ;;  %v1068_v21 = vor.u32 %v1066_v8, %v1065_v6  ;;  %v13523_v58 = vld [vmem:[#allocation9 + $0x40] sm:$0xff]   ;;  %v15401_v15 = vld [vmem:[#allocation2 + $0x80] sm:$0x1] }
 0x180   : > { %1354 = vst [vmem:[#allocation2 + $0x90] sm:$0xf] %v1353_v54  ;;  %v1070_v46 = vrot.slane %v1065_v6, 4  ;;  %v1150_v36 = vrot.slane %v1148_v48, 7  ;;  %v1131_v5 = vshrl.u32 %v11907_v30, 16  ;;  %v1128_v49 = vor.u32 %v1126_v0, %v1125_v63  ;;  %12565 = vmatpush3.bf16.msra.mxu1 %v13520_v53 }
 0x181   : > { %18684 = vst [vmem:[#allocation46_spill] sm:$0xff] %v14623_v61  ;;  %v1129_v1 = vrot.slane %v1125_v63, 4  ;;  %v1134_v32 = vshll.u32 %v11907_v30, 16  ;;  %v11912_v20 = vpack.c.bf16 %v14623_v61, %v14623_v61  ;;  %12533 = vmatmul.mubr.bf16.gmra.mxu0 %v861_v40  ;;  %v18685_v62 = vrot.slane %v14553_v41, 4  ;;  %v12454_v63 = vpop.f32.mrf.mxu1  ;;  %12566 = vmatprep.subr.bf16.mxu1 %v13523_v58 }
 0x182   : > { %v1322_v8 = vsel %vm14200_vm2, %v1070_v46, %v1321_v9  ;;  %v1153_v6 = vor.u32 %v1151_v2, %v1150_v36  ;;  %v1155_v48 = vrot.slane %v1150_v36, 4  ;;  %v1346_v0 = vsel %vm14376_vm13, %v1128_v49, %v1345_v22  ;;  %v14663_v49 = vld [vmem:[#allocation9 + $0xf8] sm:$0xff]  }
 0x183   : > { %v1069_v29 = vsel %vm14406_vm14, %v18685_v62, %v1068_v21  ;;  %1323 = vst [vmem:[#allocation2 + $0x5c] sm:$0x1] %v1322_v8  ;;  %v1133_v55 = vrot.slane %v1131_v5, 7  ;;  %v1174_v30 = vshrl.u32 %v11912_v20, 16  ;;  %v1177_v54 = vshll.u32 %v11912_v20, 16 }
 0x184   : > { %1320 = vst [vmem:[#allocation2 + $0x58] sm:$0xf] %v1069_v29  ;;  %1347 = vst [vmem:[#allocation2 + $0x84] sm:$0xf] %v1346_v0  ;;  %v1154_v41 = vsel %vm14406_vm14, %v1146_v44, %v1153_v6  ;;  %v1357_v40 = vsel %vm14200_vm2, %v1155_v48, %v1356_v52  ;;  %v1349_v21 = vld [vmem:[#allocation2 + $0x8c] sm:$0x1]  ;;  %v862_v9 = vpack.c.bf16 %v14520_v35, %v14340_v25  ;;  %12567 = vmatpush3.bf16.msra.mxu1 %v13523_v58 }
 0x185   : > { %v14645_v29 = vadd.f32 %v14304_v7, %v14578_v45  ;;  %1355 = vst [vmem:[#allocation2 + $0x94] sm:$0xf] %v1154_v41  ;;  %1358 = vst [vmem:[#allocation2 + $0x98] sm:$0x1] %v1357_v40  ;;  %v1136_v2 = vor.u32 %v1134_v32, %v1133_v55  ;;  %v1138_v22 = vrot.slane %v1133_v55, 4  ;;  %v14647_v46 = vrot.slane %v1174_v30, 7  ;;  %12648 = vmatprep.subr.bf16.mxu1 %v14663_v49 }
 0x186   : > { %v14651_v44 = vadd.f32 %v14609_v38, %v14304_v7  ;;  %v1366_v52 = vld [vmem:[#allocation2 + $0xa8] sm:$0xf]  ;;  %12536 = vmatprep.mubr.bf16.mxu0 %v862_v9  ;;  %v14656_v45 = vadd.f32 %v14304_v7, %v794_v28  ;;  %v14659_v53 = vadd.f32 %v12454_v63, %v14304_v7  ;;  %v863_v5 = vpack.c.bf16 %v14370_v42, %v14320_v16  ;;  %v807_v28 = vpop.f32.mrf.mxu1  ;;  %v1359_v55 = vld [vmem:[#allocation2 + $0x9c] sm:$0xf] }
 0x187   : > { %18686 = vst [vmem:[#allocation47_spill] sm:$0xff] %v14645_v29  ;;  %v11910_v36 = vpack.c.bf16 %v14645_v29, %v14645_v29  ;;  %v1137_v38 = vsel %vm14406_vm14, %v1129_v1, %v1136_v2  ;;  %v1350_v32 = vsel %vm14200_vm2, %v1138_v22, %v1349_v21  ;;  %v1179_v20 = vor.u32 %v1177_v54, %v14647_v46 }
 0x188   : > { %18687 = vst [vmem:[#allocation48_spill] sm:$0xff] %v14651_v44  ;;  %18688 = vst [vmem:[#allocation49_spill] sm:$0xff] %v14656_v45  ;;  %v1180_v62 = vrot.slane %v14647_v46, 4  ;;  %v11913_v48 = vpack.c.bf16 %v14651_v44, %v14651_v44  ;;  %v11911_v0 = vpack.c.bf16 %v14656_v45, %v14656_v45  ;;  %v11916_v30 = vpack.c.bf16 %v14659_v53, %v14659_v53 }
 0x189   : > { %18689 = vst [vmem:[#allocation50_spill] sm:$0xff] %v14659_v53  ;;  %1348 = vst [vmem:[#allocation2 + $0x88] sm:$0xf] %v1137_v38  ;;  %v1157_v8 = vshrl.u32 %v11910_v36, 16  ;;  %v1160_v6 = vshll.u32 %v11910_v36, 16  ;;  %v1367_v1 = vsel %vm14376_vm13, %v1179_v20, %v1366_v52  ;;  %12537 = vmatmul.mubr.bf16.gmra.mxu0 %v863_v5  ;;  %v864_v54 = vpack.c.bf16 %v14605_v27, %v14584_v56  ;;  %v12455_v52 = vpop.f32.mrf.mxu1 }
 0x18a   : > { %1351 = vst [vmem:[#allocation2 + $0x8c] sm:$0x1] %v1350_v32  ;;  %v14682_v63 = vadd.f32 %v14304_v7, %v807_v28  ;;  %1368 = vst [vmem:[#allocation2 + $0xa8] sm:$0xf] %v1367_v1  ;;  %v1182_v40 = vshrl.u32 %v11913_v48, 16  ;;  %v1185_v21 = vshll.u32 %v11913_v48, 16 }
 0x18b   : > { %v1159_v41 = vrot.slane %v1157_v8, 7  ;;  %v1165_v9 = vshrl.u32 %v11911_v0, 16  ;;  %v1168_v58 = vshll.u32 %v11911_v0, 16  ;;  %v1208_v2 = vshrl.u32 %v11916_v30, 16  ;;  %12540 = vmatprep.mubr.bf16.mxu0 %v864_v54  ;;  %v13506_v36 = vld [vmem:[#allocation2 + $0x54] sm:$0xff]   ;;  %v13508_v28 = vld [vmem:[#allocation2 + $0x60] sm:$0xff]  }
 0x18c   : > { %18690 = vst [vmem:[#allocation51_spill] sm:$0xff] %v14682_v63  ;;  %v1211_v22 = vshll.u32 %v11916_v30, 16  ;;  %v11914_v46 = vpack.c.bf16 %v14682_v63, %v14682_v63  ;;  %v1184_v32 = vrot.slane %v1182_v40, 7  ;;  %v1370_v8 = vld [vmem:[#allocation2 + $0xb0] sm:$0x1]  ;;  %v14690_v0 = vadd.f32 %v12455_v52, %v14304_v7  ;;  %12485 = vmatmul.mubr.bf16.gmra.mxu1 %v13506_v36 }
 0x18d   : > { %v1162_v5 = vor.u32 %v1160_v6, %v1159_v41  ;;  %v1163_v38 = vrot.slane %v1159_v41, 4  ;;  %v1167_v20 = vrot.slane %v1165_v9, 7  ;;  %v14687_v1 = vrot.slane %v1208_v2, 7  ;;  %v1363_v6 = vld [vmem:[#allocation2 + $0xa4] sm:$0x1]  ;;  %12488 = vmatprep.mubr.bf16.mxu1 %v13508_v28 }
 0x18e   : > { %v1191_v48 = vshrl.u32 %v11914_v46, 16  ;;  %v1194_v43 = vshll.u32 %v11914_v46, 16  ;;  %18691 = vst [vmem:[#allocation52_spill] sm:$0xff] %v14690_v0  ;;  %v1187_v54 = vor.u32 %v1185_v21, %v1184_v32  ;;  %v1189_v27 = vrot.slane %v1184_v32, 4  ;;  %v1380_v41 = vld [vmem:[#allocation2 + $0xc0] sm:$0xf]  ;;  %v810_v46 = vpop.f32.mrf.mxu1 }
 0x18f   : > { %v1360_v30 = vsel %vm14376_vm13, %v1162_v5, %v1359_v55  ;;  %v1170_v37 = vor.u32 %v1168_v58, %v1167_v20  ;;  %v1172_v40 = vrot.slane %v1167_v20, 4  ;;  %v1213_v9 = vor.u32 %v1211_v22, %v14687_v1  ;;  %v1373_v5 = vld [vmem:[#allocation2 + $0xb4] sm:$0xf]  ;;  %v2724_v32 = vld [vmem:[#allocation2 + $0xc] sm:$0xe] }
 0x190   : > { %1361 = vst [vmem:[#allocation2 + $0x9c] sm:$0xf] %v1360_v30  ;;  %v14695_v2 = vrot.slane %v1191_v48, 7  ;;  %v18692_v52 = vsel %vm14344_vm11, %v14312_v13, %v14314_v14  ;;  %v18693_v55 = vsel %vm14344_vm11, %v14310_v12, %v14298_v60  ;;  %v1188_v58 = vsel %vm14406_vm14, %v1180_v62, %v1187_v54  ;;  %v2725_v14 = vld [vmem:[#allocation2 + $0x18] sm:$0xe] }
 0x191   : > { %v14707_v21 = vcombine.low %v18693_v55, %v18692_v52  ;;  %v1371_v22 = vsel %vm14200_vm2, %v1189_v27, %v1370_v8  ;;  %v1171_v36 = vsel %vm14406_vm14, %v1163_v38, %v1170_v37  ;;  %v11917_v13 = vpack.c.bf16 %v14690_v0, %v14690_v0  ;;  %1369 = vst [vmem:[#allocation2 + $0xac] sm:$0xf] %v1188_v58  ;;  %v14728_v8 = vld [vmem:[#allocation2 + $0x10] sm:$0xf]  ;;  %v14730_v48 = vld [vmem:[#allocation2 + $0x1c] sm:$0xf] }
 0x192   : > { %1372 = vst [vmem:[#allocation2 + $0xb0] sm:$0x1] %v1371_v22  ;;  %1362 = vst [vmem:[#allocation2 + $0xa0] sm:$0xf] %v1171_v36  ;;  %v1364_v60 = vsel %vm14200_vm2, %v1172_v40, %v1363_v6  ;;  %v1214_v12 = vrot.slane %v14687_v1, 4  ;;  %v1381_v62 = vsel %vm14376_vm13, %v1213_v9, %v1380_v41  ;;  %v1196_v27 = vor.u32 %v1194_v43, %v14695_v2  ;;  %v13511_v6 = vld [vmem:[#allocation2 + $0x6c] sm:$0xff]  }
 0x193   : > { %1365 = vst [vmem:[#allocation2 + $0xa4] sm:$0x1] %v1364_v60  ;;  %1382 = vst [vmem:[#allocation2 + $0xc0] sm:$0xf] %v1381_v62  ;;  %v1216_v37 = vshrl.u32 %v11917_v13, 16  ;;  %v1219_v38 = vshll.u32 %v11917_v13, 16  ;;  %v14724_v20 = vadd.f32 %v14304_v7, %v810_v46  ;;  %v865_v28 = vpack.c.bf16 %v14588_v3, %v14559_v59 }
 0x194   : > { %v1197_v1 = vrot.slane %v14695_v2, 4  ;;  %v1374_v43 = vsel %vm14376_vm13, %v1196_v27, %v1373_v5  ;;  %v1384_v30 = vld [vmem:[#allocation2 + $0xc8] sm:$0x1]  ;;  %v866_v54 = vpack.c.bf16 %v14656_v45, %v14645_v29  ;;  %v867_v7 = vpack.c.bf16 %v14651_v44, %v14623_v61  ;;  %v14739_v41 = vld [vmem:[#allocation2 + $0x14] sm:$0x1]  ;;  %v13513_v2 = vld [vmem:[#allocation2 + $0x78] sm:$0xff]   ;;  %12489 = vmatmul.mubr.bf16.gmra.mxu1 %v13511_v6 }
 0x195   : > { %18694 = vst [vmem:[#allocation53_spill] sm:$0xff] %v14724_v20  ;;  %1375 = vst [vmem:[#allocation2 + $0xb4] sm:$0xf] %v1374_v43  ;;  %v1218_v40 = vrot.slane %v1216_v37, 7  ;;  %v11915_v9 = vpack.c.bf16 %v14724_v20, %v14724_v20  ;;  %12541 = vmatmul.mubr.bf16.gmra.mxu0 %v865_v28  ;;  %v868_v46 = vpack.c.bf16 %v14724_v20, %v14682_v63  ;;  %v14747_v55 = vld [vmem:[#allocation2 + $0x20] sm:$0x1]  ;;  %12492 = vmatprep.mubr.bf16.mxu1 %v13513_v2 }
 0x196   : > { %v14749_v58 = vld [vmem:[#allocation2 + $0x28] sm:$0xf]  ;;  %v2726_v22 = vld [vmem:[#allocation2 + $0x24] sm:$0xe]  ;;  %12544 = vmatprep.mubr.bf16.mxu0 %v866_v54  ;;  %v11374_v36 = vrot.slane %v2724_v32, 9  ;;  %v2799_v5 = vrot.slane %v14728_v8, 5 }
 0x197   : > { %v11375_v13 = vrot.slane %v2725_v14, 9  ;;  %v2806_v60 = vrot.slane %v14730_v48, 5  ;;  %v1221_v62 = vor.u32 %v1219_v38, %v1218_v40  ;;  %v1223_v27 = vrot.slane %v1218_v40, 4  ;;  %v2727_v43 = vld [vmem:[#allocation2 + $0x30] sm:$0xe] }
 0x198   : > { %v1199_v37 = vshrl.u32 %v11915_v9, 16  ;;  %v1202_v28 = vshll.u32 %v11915_v9, 16  ;;  %v1377_v52 = vld [vmem:[#allocation2 + $0xbc] sm:$0x1]  ;;  %v14755_v20 = vsel %vm14306_vm8, %v11374_v36, %v2799_v5  ;;  %v2801_v63 = vrot.slane %v2799_v5, 4  ;;  %v13564_v59 = vld [vmem:[#allocation2 + $0x90] sm:$0xff]  }
 0x199   : > { %v2802_v54 = vrot.slane %v14739_v41, 5  ;;  %v2808_v32 = vrot.slane %v2806_v60, 4  ;;  %v14758_v6 = vld [vmem:[#allocation2 + $0x2c] sm:$0x1]  ;;  %v1222_v14 = vsel %vm14406_vm14, %v1214_v12, %v1221_v62  ;;  %v1385_v38 = vsel %vm14200_vm2, %v1223_v27, %v1384_v30  ;;  %v14774_v12 = vld [vmem:[#allocation2 + $0x34] sm:$0xf] }
 0x19a   : > { %v1201_v40 = vrot.slane %v1199_v37, 7  ;;  %v14766_v9 = vsel %vm14306_vm8, %v11375_v13, %v2806_v60  ;;  %1383 = vst [vmem:[#allocation2 + $0xc4] sm:$0xf] %v1222_v14  ;;  %1386 = vst [vmem:[#allocation2 + $0xc8] sm:$0x1] %v1385_v38  ;;  %v2809_v36 = vrot.slane %v14747_v55, 5 }
 0x19b   : > { %v14770_v2 = vsel %vm14306_vm8, %v2801_v63, %v2802_v54  ;;  %v11376_v5 = vrot.slane %v2726_v22, 9  ;;  %v2813_v45 = vrot.slane %v14749_v58, 5  ;;  %v2816_v13 = vrot.slane %v14758_v6, 5  ;;  %v14779_v60 = vld [vmem:[#allocation2 + $0x38] sm:$0x1]  ;;  %v13516_v14 = vld [vmem:[#allocation2 + $0x84] sm:$0xff]  }
 0x19c   : > { %v1204_v62 = vor.u32 %v1202_v28, %v1201_v40  ;;  %v1206_v30 = vrot.slane %v1201_v40, 4  ;;  %v1969_v37 = vld [vmem:[#allocation2 + $0xc] sm:$0xf]  ;;  %v14783_v63 = vsel %vm14306_vm8, %v2808_v32, %v2809_v36  ;;  %v11377_v28 = vrot.slane %v2727_v43, 9  ;;  %v13518_v27 = vld [vmem:[#allocation2 + $0x90] sm:$0xff]   ;;  %12493 = vmatmul.mubr.bf16.gmra.mxu1 %v13516_v14 }
 0x19d   : > { %v14787_v22 = vsel %vm14306_vm8, %v11376_v5, %v2813_v45  ;;  %v2815_v54 = vrot.slane %v2813_v45, 4  ;;  %12545 = vmatmul.mubr.bf16.gmra.mxu0 %v867_v7  ;;  %v2820_v32 = vrot.slane %v14774_v12, 5  ;;  %v14796_v36 = vld [vmem:[#allocation2 + $0x40] sm:$0xf]  ;;  %v2728_v29 = vld [vmem:[#allocation2 + $0x3c] sm:$0xe]  ;;  %12496 = vmatprep.mubr.bf16.mxu1 %v13518_v27 }
 0x19e   : > { %v1205_v38 = vsel %vm14406_vm14, %v1197_v1, %v1204_v62  ;;  %v1378_v40 = vsel %vm14200_vm2, %v1206_v30, %v1377_v52  ;;  %12548 = vmatprep.mubr.bf16.mxu0 %v868_v46  ;;  %v2823_v1 = vrot.slane %v14779_v60, 5  ;;  %v2042_v7 = vshrl.u32 %v1969_v37, 16  ;;  %v1972_v30 = vld [vmem:[#allocation2 + $0x18] sm:$0xf]  ;;  %v2729_v61 = vld [vmem:[#allocation2 + $0x48] sm:$0xe] }
 0x19f   : > { %1376 = vst [vmem:[#allocation2 + $0xb8] sm:$0xf] %v1205_v38  ;;  %1379 = vst [vmem:[#allocation2 + $0xbc] sm:$0x1] %v1378_v40  ;;  %v14800_v45 = vsel %vm14306_vm8, %v2815_v54, %v2816_v13  ;;  %v2045_v52 = vshll.u32 %v1969_v37, 16  ;;  %v14807_v5 = vsel %vm14306_vm8, %v11377_v28, %v2820_v32  ;;  %v2822_v62 = vrot.slane %v2820_v32, 4 }
 0x1a0   : > { %v2051_v46 = vshll.u32 %v14728_v8, 16  ;;  %v2044_v14 = vrot.slane %v2042_v7, 4  ;;  %v2055_v13 = vshrl.u32 %v14728_v8, 16  ;;  %v2061_v54 = vshll.u32 %v14739_v41, 16  ;;  %v14812_v40 = vld [vmem:[#allocation2 + $0x44] sm:$0x1] }
 0x1a1   : > { %v2047_v38 = vrot.slane %v2045_v52, 5  ;;  %v14816_v27 = vsel %vm14306_vm8, %v2822_v62, %v2823_v1  ;;  %v11378_v43 = vrot.slane %v2728_v29, 9  ;;  %v2827_v28 = vrot.slane %v14796_v36, 5  ;;  %v14826_v62 = vld [vmem:[#allocation2 + $0x4c] sm:$0xf]  ;;  %v13521_v29 = vld [vmem:[#allocation2 + $0x9c] sm:$0xff]  }
 0x1a2   : > { %v2053_v37 = vrot.slane %v2051_v46, 5  ;;  %v2057_v7 = vrot.slane %v2055_v13, 4  ;;  %v2063_v52 = vrot.slane %v2061_v54, 5  ;;  %v2830_v3 = vrot.slane %v14812_v40, 5  ;;  %v13572_v16 = vld [vmem:[#allocation2 + $0xc0] sm:$0xff]  }
 0x1a3   : > { %v2048_v44 = vor.u32 %v2047_v38, %v2044_v14  ;;  %v14823_v8 = vsel %vm14306_vm8, %v11378_v43, %v2827_v28  ;;  %v2829_v41 = vrot.slane %v2827_v28, 4  ;;  %v2066_v1 = vshrl.u32 %v1972_v30, 16  ;;  %v14829_v14 = vld [vmem:[#allocation2 + $0x50] sm:$0x1]  ;;  %v13522_v43 = vld [vmem:[#allocation2 + $0xa8] sm:$0xff]  }
 0x1a4   : > { %v2058_v31 = vor.u32 %v2057_v7, %v2053_v37  ;;  %v2069_v51 = vshll.u32 %v1972_v30, 16  ;;  %v2075_v32 = vshll.u32 %v14730_v48, 16  ;;  %v18695_v38 = vpack.c.bf16 %v14690_v0, %v14659_v53  ;;  %12497 = vmatmul.mubr.bf16.gmra.mxu1 %v13521_v29 }
 0x1a5   : > { %v2049_v46 = vrot.slane %v2048_v44, 4  ;;  %v14836_v13 = vsel %vm14306_vm8, %v2829_v41, %v2830_v3  ;;  %v2068_v54 = vrot.slane %v2066_v1, 4  ;;  %v2079_v28 = vshrl.u32 %v14730_v48, 16  ;;  %v1975_v3 = vld [vmem:[#allocation2 + $0x24] sm:$0xf]  ;;  %12500 = vmatprep.mubr.bf16.mxu1 %v13522_v43 }
 0x1a6   : > { %12549 = vmatmul.mubr.bf16.gmra.mxu0 %v18695_v38  ;;  %v2085_v44 = vshll.u32 %v14747_v55, 16  ;;  %v18696_v30 = vcombine.low %v14324_v17, %v14328_v18  ;;  %v2059_v0 = vrot.slane %v2058_v31, 4  ;;  %v2071_v53 = vrot.slane %v2069_v51, 5  ;;  %v14853_v51 = vld [vmem:[#allocation2 + $0x58] sm:$0xf]  ;;  %v13529_v38 = vld [vmem:[#allocation9 + $0x170] sm:$0xff]  }
 0x1a7   : > { %v2054_v7 = vsel %vm14344_vm11, %v2049_v46, %v2053_v37  ;;  %v2077_v41 = vrot.slane %v2075_v32, 5  ;;  %v2081_v1 = vrot.slane %v2079_v28, 4  ;;  %v11379_v56 = vrot.slane %v2729_v61, 9  ;;  %v2730_v43 = vld [vmem:[#allocation2 + $0x54] sm:$0xe] }
 0x1a8   : > { %12616 = vmatprep.mubr.bf16.mxu0 %v18696_v30  ;;  %v2087_v48 = vrot.slane %v2085_v44, 5  ;;  %v2064_v55 = vsel %vm14344_vm11, %v2059_v0, %v2063_v52  ;;  %v2072_v17 = vor.u32 %v2071_v53, %v2068_v54  ;;  %v2834_v18 = vrot.slane %v14826_v62, 5  ;;  %v1978_v0 = vld [vmem:[#allocation2 + $0x30] sm:$0xf] }
 0x1a9   : > { %v2837_v29 = vrot.slane %v14829_v14, 5  ;;  %v14851_v37 = vcombine.low %v2054_v7, %v2064_v55  ;;  %v2082_v31 = vor.u32 %v2081_v1, %v2077_v41  ;;  %v2090_v46 = vshrl.u32 %v1975_v3, 16  ;;  %v13524_v1 = vld [vmem:[#allocation2 + $0xb4] sm:$0xff]  }
 0x1aa   : > { %v2093_v30 = vshll.u32 %v1975_v3, 16  ;;  %v2073_v32 = vrot.slane %v2072_v17, 4  ;;  %v14857_v61 = vsel %vm14306_vm8, %v11379_v56, %v2834_v18  ;;  %v2836_v28 = vrot.slane %v2834_v18, 4  ;;  %v14868_v18 = vld [vmem:[#allocation2 + $0x5c] sm:$0x1] }
 0x1ab   : > { %v2099_v53 = vshll.u32 %v14749_v58, 16  ;;  %v2083_v52 = vrot.slane %v2082_v31, 4  ;;  %v2092_v54 = vrot.slane %v2090_v46, 4  ;;  %v2103_v7 = vshrl.u32 %v14749_v58, 16 }
 0x1ac   : > { %v2095_v44 = vrot.slane %v2093_v30, 5  ;;  %v2078_v3 = vsel %vm14344_vm11, %v2073_v32, %v2077_v41  ;;  %v14865_v55 = vsel %vm14306_vm8, %v2836_v28, %v2837_v29  ;;  %v2109_v56 = vshll.u32 %v14758_v6, 16  ;;  %12501 = vmatmul.mubr.bf16.gmra.mxu1 %v13524_v1 }
 0x1ad   : > { %v2101_v17 = vrot.slane %v2099_v53, 5  ;;  %v18697_v31 = vcombine.low %v14755_v20, %v14770_v2  ;;  %v2088_v58 = vsel %vm14344_vm11, %v2083_v52, %v2087_v48  ;;  %v2105_v30 = vrot.slane %v2103_v7, 4  ;;  %12568 = vmatprep.mubr.bf16.mxu1 %v14707_v21  ;;  %v1981_v7 = vld [vmem:[#allocation2 + $0x3c] sm:$0xf]  ;;  %v13531_v21 = vld [vmem:[#allocation9 + $0x168] sm:$0xff]  }
 0x1ae   : > { %v2096_v46 = vor.u32 %v2095_v44, %v2092_v54  ;;  %v18698_v29 = vcombine.low %v14766_v9, %v14783_v63  ;;  %v11351_v6 = vcombine.low %v2078_v3, %v2088_v58  ;;  %v2111_v32 = vrot.slane %v2109_v56, 5  ;;  %v14889_v44 = vld [vmem:[#allocation2 + $0x64] sm:$0xf]  ;;  %v14894_v58 = vld [vmem:[#allocation2 + $0x68] sm:$0x1] }
 0x1af   : > { %12617 = vmatmul.mubr.bf16.vlgmr.msra.gmra.mxu0 %v18697_v31  ;;  %v11380_v28 = vrot.slane %v2730_v43, 9  ;;  %v2841_v53 = vrot.slane %v14853_v51, 5  ;;  %v2106_v2 = vor.u32 %v2105_v30, %v2101_v17  ;;  %v2844_v48 = vrot.slane %v14868_v18, 5  ;;  %v2731_v31 = vld [vmem:[#allocation2 + $0x60] sm:$0xe] }
 0x1b0   : > { %12620 = vmatprep.mubr.bf16.mxu0 %v18698_v29  ;;  %v2097_v20 = vrot.slane %v2096_v46, 4  ;;  %v2114_v52 = vshrl.u32 %v1978_v0, 16  ;;  %12697 = vmatpush3.bf16.msra.mxu0 %v14569_v4  ;;  %v2117_v54 = vshll.u32 %v1978_v0, 16  ;;  %v2123_v43 = vshll.u32 %v14774_v12, 16 }
 0x1b1   : > { %v14886_v9 = vsel %vm14306_vm8, %v11380_v28, %v2841_v53  ;;  %v2843_v63 = vrot.slane %v2841_v53, 4  ;;  %12698 = vmatprep.subr.bf16.mxu0 %v13529_v38  ;;  %v2107_v3 = vrot.slane %v2106_v2, 4  ;;  %v2127_v4 = vshrl.u32 %v14774_v12, 16  ;;  %v13526_v12 = vld [vmem:[#allocation9 + $0xf0] sm:$0xff]  }
 0x1b2   : > { %v2102_v1 = vsel %vm14344_vm11, %v2097_v20, %v2101_v17  ;;  %v2116_v56 = vrot.slane %v2114_v52, 4  ;;  %v2119_v0 = vrot.slane %v2117_v54, 5  ;;  %v2125_v30 = vrot.slane %v2123_v43, 5 }
 0x1b3   : > { %v14898_v46 = vsel %vm14306_vm8, %v2843_v63, %v2844_v48  ;;  %v2133_v29 = vshll.u32 %v14779_v60, 16  ;;  %v2112_v28 = vsel %vm14344_vm11, %v2107_v3, %v2111_v32  ;;  %v2129_v53 = vrot.slane %v2127_v4, 4  ;;  %v2732_v3 = vld [vmem:[#allocation2 + $0x6c] sm:$0xe] }
 0x1b4   : > { %v11396_v17 = vcombine.low %v14886_v9, %v14898_v46  ;;  %v11381_v20 = vrot.slane %v2731_v31, 9  ;;  %12699 = vmatpush3.bf16.msra.mxu0 %v13529_v38  ;;  %v14905_v2 = vcombine.low %v2102_v1, %v2112_v28  ;;  %v2120_v52 = vor.u32 %v2119_v0, %v2116_v56  ;;  %v13532_v31 = vld [vmem:[#allocation9 + $0x160] sm:$0xff]   ;;  %12569 = vmatmul.mubr.bf16.vlgmr.msra.gmra.mxu1 %v14851_v37 }
 0x1b5   : > { %v2135_v41 = vrot.slane %v2133_v29, 5  ;;  %v2848_v48 = vrot.slane %v14889_v44, 5  ;;  %12700 = vmatprep.subr.bf16.mxu0 %v13531_v21  ;;  %v18699_v60 = vcombine.low %v14787_v22, %v14800_v45  ;;  %v2130_v63 = vor.u32 %v2129_v53, %v2125_v30  ;;  %v13527_v45 = vld [vmem:[#allocation9 + $0xe8] sm:$0xff]   ;;  %12649 = vmatpush3.bf16.msra.mxu1 %v14663_v49  ;;  %v14932_v49 = vld [vmem:[#allocation2 + $0x74] sm:$0x1] }
 0x1b6   : > { %v2851_v32 = vrot.slane %v14894_v58, 5  ;;  %v2138_v54 = vshrl.u32 %v1981_v7, 16  ;;  %v2141_v43 = vshll.u32 %v1981_v7, 16  ;;  %v18700_v38 = vcombine.low %v14807_v5, %v14816_v27  ;;  %12572 = vmatprep.mubr.bf16.mxu1 %v11351_v6  ;;  %v1984_v27 = vld [vmem:[#allocation2 + $0x48] sm:$0xf]  ;;  %12650 = vmatprep.subr.bf16.mxu1 %v13526_v12 }
 0x1b7   : > { %12621 = vmatmul.mubr.bf16.gmra.mxu0 %v18699_v60  ;;  %v2121_v1 = vrot.slane %v2120_v52, 4  ;;  %v14918_v56 = vsel %vm14306_vm8, %v11381_v20, %v2848_v48  ;;  %v2850_v22 = vrot.slane %v2848_v48, 4  ;;  %v2147_v4 = vshll.u32 %v14796_v36, 16  ;;  %v14930_v52 = vld [vmem:[#allocation2 + $0x70] sm:$0xf] }
 0x1b8   : > { %12624 = vmatprep.mubr.bf16.mxu0 %v18700_v38  ;;  %v2131_v7 = vrot.slane %v2130_v63, 4  ;;  %v2140_v0 = vrot.slane %v2138_v54, 4  ;;  %v2143_v29 = vrot.slane %v2141_v43, 5  ;;  %v2151_v5 = vshrl.u32 %v14796_v36, 16  ;;  %12701 = vmatpush3.bf16.msra.mxu0 %v13531_v21  ;;  %v13534_v60 = vld [vmem:[#allocation9 + $0x158] sm:$0xff]  }
 0x1b9   : > { %v2126_v37 = vsel %vm14344_vm11, %v2121_v1, %v2125_v30  ;;  %v14927_v28 = vsel %vm14306_vm8, %v2850_v22, %v2851_v32  ;;  %v2149_v53 = vrot.slane %v2147_v4, 5  ;;  %v2157_v20 = vshll.u32 %v14812_v40, 16  ;;  %12702 = vmatprep.subr.bf16.mxu0 %v13532_v31  ;;  %12651 = vmatpush3.bf16.msra.mxu1 %v13526_v12  ;;  %v2733_v22 = vld [vmem:[#allocation2 + $0x78] sm:$0xe] }
 0x1ba   : > { %v2136_v36 = vsel %vm14344_vm11, %v2131_v7, %v2135_v41  ;;  %v11397_v6 = vcombine.low %v14918_v56, %v14927_v28  ;;  %v2144_v48 = vor.u32 %v2143_v29, %v2140_v0  ;;  %v2153_v30 = vrot.slane %v2151_v5, 4  ;;  %12652 = vmatprep.subr.bf16.mxu1 %v13527_v45  ;;  %v14945_v29 = vld [vmem:[#allocation2 + $0x80] sm:$0x1]  ;;  %v1987_v5 = vld [vmem:[#allocation2 + $0x54] sm:$0xf] }
 0x1bb   : > { %v11353_v63 = vcombine.low %v2126_v37, %v2136_v36  ;;  %v2159_v32 = vrot.slane %v2157_v20, 5  ;;  %v11382_v54 = vrot.slane %v2732_v3, 9  ;;  %v2855_v40 = vrot.slane %v14930_v52, 5  ;;  %v13530_v3 = vld [vmem:[#allocation9 + $0xe0] sm:$0xff]  }
 0x1bc   : > { %v2145_v43 = vrot.slane %v2144_v48, 4  ;;  %v2154_v38 = vor.u32 %v2153_v30, %v2149_v53  ;;  %v2858_v21 = vrot.slane %v14932_v49, 5  ;;  %v2162_v1 = vshrl.u32 %v1984_v27, 16  ;;  %12703 = vmatpush3.bf16.msra.mxu0 %v13532_v31  ;;  %12573 = vmatmul.mubr.bf16.gmra.mxu1 %v14905_v2 }
 0x1bd   : > { %v14942_v41 = vsel %vm14306_vm8, %v11382_v54, %v2855_v40  ;;  %v2857_v4 = vrot.slane %v2855_v40, 4  ;;  %v2165_v7 = vshll.u32 %v1984_v27, 16  ;;  %v2171_v0 = vshll.u32 %v14826_v62, 16  ;;  %12704 = vmatprep.subr.bf16.mxu0 %v13534_v60  ;;  %v13535_v27 = vld [vmem:[#allocation9 + $0x150] sm:$0xff]   ;;  %12576 = vmatprep.mubr.bf16.mxu1 %v11353_v63 }
 0x1be   : > { %v18701_v12 = vcombine.low %v14823_v8, %v14836_v13  ;;  %v2150_v37 = vsel %vm14344_vm11, %v2145_v43, %v2149_v53  ;;  %v2155_v20 = vrot.slane %v2154_v38, 4  ;;  %v2164_v36 = vrot.slane %v2162_v1, 4  ;;  %12653 = vmatpush3.bf16.msra.mxu1 %v13527_v45  ;;  %v13533_v1 = vld [vmem:[#allocation9 + $0xd8] sm:$0xff]  }
 0x1bf   : > { %v2175_v48 = vshrl.u32 %v14826_v62, 16  ;;  %v18702_v30 = vcombine.low %v14857_v61, %v14865_v55  ;;  %v14959_v31 = vsel %vm14306_vm8, %v2857_v4, %v2858_v21  ;;  %v2167_v8 = vrot.slane %v2165_v7, 5  ;;  %v14966_v55 = vld [vmem:[#allocation2 + $0x7c] sm:$0xf]  ;;  %12654 = vmatprep.subr.bf16.mxu1 %v13530_v3  ;;  %v13537_v7 = vld [vmem:[#allocation9 + $0x148] sm:$0xff]  }
 0x1c0   : > { %12625 = vmatmul.mubr.bf16.gmra.mxu0 %v18701_v12  ;;  %v2173_v13 = vrot.slane %v2171_v0, 5  ;;  %v2181_v53 = vshll.u32 %v14829_v14, 16  ;;  %v2160_v62 = vsel %vm14344_vm11, %v2155_v20, %v2159_v32  ;;  %v11398_v54 = vcombine.low %v14942_v41, %v14959_v31  ;;  %v13536_v20 = vld [vmem:[#allocation9 + $0xd0] sm:$0xff]  }
 0x1c1   : > { %12628 = vmatprep.mubr.bf16.mxu0 %v18702_v30  ;;  %v2177_v61 = vrot.slane %v2175_v48, 4  ;;  %v11383_v2 = vrot.slane %v2733_v22, 9  ;;  %v11354_v40 = vcombine.low %v2150_v37, %v2160_v62  ;;  %v2168_v43 = vor.u32 %v2167_v8, %v2164_v36  ;;  %12705 = vmatpush3.bf16.msra.mxu0 %v13534_v60  ;;  %v1990_v37 = vld [vmem:[#allocation2 + $0x60] sm:$0xf]  ;;  %v2734_v8 = vld [vmem:[#allocation2 + $0x84] sm:$0xe] }
 0x1c2   : > { %v2183_v38 = vrot.slane %v2181_v53, 5  ;;  %v2862_v21 = vrot.slane %v14966_v55, 5  ;;  %v2865_v63 = vrot.slane %v14945_v29, 5  ;;  %v2186_v32 = vshrl.u32 %v1987_v5, 16  ;;  %12706 = vmatprep.subr.bf16.mxu0 %v13535_v27  ;;  %12655 = vmatpush3.bf16.msra.mxu1 %v13530_v3 }
 0x1c3   : > { %v2178_v14 = vor.u32 %v2177_v61, %v2173_v13  ;;  %v2189_v4 = vshll.u32 %v1987_v5, 16  ;;  %v2169_v45 = vrot.slane %v2168_v43, 4  ;;  %v2195_v12 = vshll.u32 %v14853_v51, 16  ;;  %12656 = vmatprep.subr.bf16.mxu1 %v13533_v1 }
 0x1c4   : > { %v14972_v0 = vsel %vm14306_vm8, %v11383_v2, %v2862_v21  ;;  %v2864_v22 = vrot.slane %v2862_v21, 4  ;;  %v2188_v48 = vrot.slane %v2186_v32, 4  ;;  %v2199_v30 = vshrl.u32 %v14853_v51, 16  ;;  %v14983_v2 = vld [vmem:[#allocation2 + $0x8c] sm:$0x1]  ;;  %12577 = vmatmul.mubr.bf16.gmra.mxu1 %v11354_v40 }
 0x1c5   : > { %v2179_v36 = vrot.slane %v2178_v14, 4  ;;  %v2191_v60 = vrot.slane %v2189_v4, 5  ;;  %v2174_v5 = vsel %vm14344_vm11, %v2169_v45, %v2173_v13  ;;  %v2197_v62 = vrot.slane %v2195_v12, 5  ;;  %12707 = vmatpush3.bf16.msra.mxu0 %v13535_v27  ;;  %v14992_v21 = vld [vmem:[#allocation2 + $0x88] sm:$0xf] }
 0x1c6   : > { %v14980_v53 = vsel %vm14306_vm8, %v2864_v22, %v2865_v63  ;;  %v2205_v61 = vshll.u32 %v14868_v18, 16  ;;  %v2201_v43 = vrot.slane %v2199_v30, 4  ;;  %12708 = vmatprep.subr.bf16.mxu0 %v13537_v7  ;;  %v11384_v9 = vrot.slane %v2734_v8, 9  ;;  %v2735_v4 = vld [vmem:[#allocation2 + $0x90] sm:$0xe]  ;;  %12657 = vmatpush3.bf16.msra.mxu1 %v13533_v1 }
 0x1c7   : > { %v2184_v51 = vsel %vm14344_vm11, %v2179_v36, %v2183_v38  ;;  %v11399_v3 = vcombine.low %v14972_v0, %v14980_v53  ;;  %v2192_v13 = vor.u32 %v2191_v60, %v2188_v48  ;;  %v2869_v46 = vrot.slane %v14992_v21, 5  ;;  %v1993_v40 = vld [vmem:[#allocation2 + $0x6c] sm:$0xf]  ;;  %12658 = vmatprep.subr.bf16.mxu1 %v13536_v20  ;;  %v13539_v0 = vld [vmem:[#allocation9 + $0xc8] sm:$0xff]   ;;  %v15012_v8 = vld [vmem:[#allocation2 + $0x98] sm:$0x1] }
 0x1c8   : > { %12629 = vmatmul.mubr.bf16.gmra.mxu0 %v11396_v17  ;;  %v11355_v18 = vcombine.low %v2174_v5, %v2184_v51  ;;  %v2207_v27 = vrot.slane %v2205_v61, 5  ;;  %v13538_v17 = vld [vmem:[#allocation9 + $0x140] sm:$0xff]   ;;  %v2202_v14 = vor.u32 %v2201_v43, %v2197_v62  ;;  %v2872_v63 = vrot.slane %v14983_v2, 5  ;;  %v15020_v51 = vld [vmem:[#allocation9 + $0x1f8] sm:$0xff]  }
 0x1c9   : > { %12632 = vmatprep.mubr.bf16.mxu0 %v11397_v6  ;;  %v2193_v38 = vrot.slane %v2192_v13, 4  ;;  %v2210_v32 = vshrl.u32 %v1990_v37, 16  ;;  %v15001_v45 = vsel %vm14306_vm8, %v11384_v9, %v2869_v46  ;;  %v2871_v56 = vrot.slane %v2869_v46, 4  ;;  %12709 = vmatpush3.bf16.msra.mxu0 %v13537_v7  ;;  %v13540_v61 = vld [vmem:[#allocation9 + $0xc0] sm:$0xff]  }
 0x1ca   : > { %12580 = vmatprep.mubr.bf16.mxu1 %v11355_v18  ;;  %v2213_v28 = vshll.u32 %v1990_v37, 16  ;;  %v2219_v6 = vshll.u32 %v14889_v44, 16  ;;  %v2203_v12 = vrot.slane %v2202_v14, 4  ;;  %v2223_v48 = vshrl.u32 %v14889_v44, 16  ;;  %12710 = vmatprep.subr.bf16.mxu0 %v13538_v17  ;;  %v15018_v44 = vld [vmem:[#allocation2 + $0x94] sm:$0xf] }
 0x1cb   : > { %v2198_v22 = vsel %vm14344_vm11, %v2193_v38, %v2197_v62  ;;  %v2212_v36 = vrot.slane %v2210_v32, 4  ;;  %v15009_v1 = vsel %vm14306_vm8, %v2871_v56, %v2872_v63  ;;  %v2229_v37 = vshll.u32 %v14894_v58, 16  ;;  %12659 = vmatpush3.bf16.msra.mxu1 %v13536_v20  ;;  %v15030_v56 = vld [vmem:[#allocation9 + $0x1b8] sm:$0xff]  }
 0x1cc   : > { %v2215_v60 = vrot.slane %v2213_v28, 5  ;;  %v2221_v30 = vrot.slane %v2219_v6, 5  ;;  %v2208_v5 = vsel %vm14344_vm11, %v2203_v12, %v2207_v27  ;;  %v11400_v53 = vcombine.low %v15001_v45, %v15009_v1  ;;  %12660 = vmatprep.subr.bf16.mxu1 %v13539_v0  ;;  %v1996_v45 = vld [vmem:[#allocation2 + $0x78] sm:$0xf]  ;;  %v15033_v6 = vld [vmem:[#allocation2 + $0xa4] sm:$0x1] }
 0x1cd   : > { %v2225_v62 = vrot.slane %v2223_v48, 4  ;;  %v11385_v7 = vrot.slane %v2735_v4, 9  ;;  %v11356_v13 = vcombine.low %v2198_v22, %v2208_v5  ;;  %v2231_v58 = vrot.slane %v2229_v37, 5  ;;  %v2736_v4 = vld [vmem:[#allocation2 + $0x9c] sm:$0xe]  ;;  %12711 = vmatpush3.bf16.msra.mxu0 %v13538_v17 }
 0x1ce   : > { %v2216_v43 = vor.u32 %v2215_v60, %v2212_v36  ;;  %v2876_v18 = vrot.slane %v15018_v44, 5  ;;  %v2879_v9 = vrot.slane %v15012_v8, 5  ;;  %v2234_v46 = vshrl.u32 %v1993_v40, 16  ;;  %12792 = vmatprep.subr.bf16.mxu0 %v15020_v51  ;;  %v15043_v17 = vld [vmem:[#allocation2 + $0xa0] sm:$0xf] }
 0x1cf   : > { %v2226_v27 = vor.u32 %v2225_v62, %v2221_v30  ;;  %v2237_v38 = vshll.u32 %v1993_v40, 16  ;;  %12581 = vmatmul.mubr.bf16.gmra.mxu1 %v11356_v13  ;;  %v2243_v32 = vshll.u32 %v14930_v52, 16  ;;  %v2247_v28 = vshrl.u32 %v14930_v52, 16  ;;  %v2737_v5 = vld [vmem:[#allocation2 + $0xa8] sm:$0xe] }
 0x1d0   : > { %12633 = vmatmul.mubr.bf16.gmra.mxu0 %v11398_v54  ;;  %v2217_v20 = vrot.slane %v2216_v43, 4  ;;  %v2877_v14 = vsel %vm14306_vm8, %v11385_v7, %v2876_v18  ;;  %v2878_v63 = vrot.slane %v2876_v18, 4  ;;  %v2236_v31 = vrot.slane %v2234_v46, 4  ;;  %12661 = vmatpush3.bf16.msra.mxu1 %v13539_v0 }
 0x1d1   : > { %12636 = vmatprep.mubr.bf16.mxu0 %v11399_v3  ;;  %v2227_v41 = vrot.slane %v2226_v27, 4  ;;  %v2239_v54 = vrot.slane %v2237_v38, 5  ;;  %v2245_v22 = vrot.slane %v2243_v32, 5  ;;  %v2253_v12 = vshll.u32 %v14932_v49, 16  ;;  %12662 = vmatprep.subr.bf16.mxu1 %v13540_v61 }
 0x1d2   : > { %v2222_v3 = vsel %vm14344_vm11, %v2217_v20, %v2221_v30  ;;  %v2880_v40 = vsel %vm14306_vm8, %v2878_v63, %v2879_v9  ;;  %v2249_v1 = vrot.slane %v2247_v28, 4  ;;  %v11386_v30 = vrot.slane %v2736_v4, 9 }
 0x1d3   : > { %v2232_v36 = vsel %vm14344_vm11, %v2227_v41, %v2231_v58  ;;  %v11401_v52 = vcombine.low %v2877_v14, %v2880_v40  ;;  %v2240_v48 = vor.u32 %v2239_v54, %v2236_v31  ;;  %v2255_v60 = vrot.slane %v2253_v12, 5  ;;  %v1999_v14 = vld [vmem:[#allocation2 + $0x84] sm:$0xf]  ;;  %v15061_v54 = vld [vmem:[#allocation2 + $0xac] sm:$0xf] }
 0x1d4   : > { %v11357_v0 = vcombine.low %v2222_v3, %v2232_v36  ;;  %v2883_v37 = vrot.slane %v15043_v17, 5  ;;  %v2250_v7 = vor.u32 %v2249_v1, %v2245_v22  ;;  %v2886_v49 = vrot.slane %v15033_v6, 5  ;;  %12663 = vmatpush3.bf16.msra.mxu1 %v13540_v61 }
 0x1d5   : > { %v2241_v62 = vrot.slane %v2240_v48, 4  ;;  %v2258_v13 = vshrl.u32 %v1996_v45, 16  ;;  %v2261_v18 = vshll.u32 %v1996_v45, 16  ;;  %v2267_v27 = vshll.u32 %v14966_v55, 16  ;;  %12744 = vmatprep.subr.bf16.mxu1 %v15030_v56  ;;  %v15057_v45 = vld [vmem:[#allocation2 + $0xb0] sm:$0x1] }
 0x1d6   : > { %12584 = vmatprep.mubr.bf16.mxu1 %v11357_v0  ;;  %v2884_v43 = vsel %vm14306_vm8, %v11386_v30, %v2883_v37  ;;  %v2885_v58 = vrot.slane %v2883_v37, 4  ;;  %v2251_v46 = vrot.slane %v2250_v7, 4  ;;  %v2271_v20 = vshrl.u32 %v14966_v55, 16  ;;  %v2738_v30 = vld [vmem:[#allocation2 + $0xb4] sm:$0xe] }
 0x1d7   : > { %v2246_v9 = vsel %vm14344_vm11, %v2241_v62, %v2245_v22  ;;  %v2260_v38 = vrot.slane %v2258_v13, 4  ;;  %v2263_v63 = vrot.slane %v2261_v18, 5  ;;  %v2269_v32 = vrot.slane %v2267_v27, 5  ;;  %v2002_v37 = vld [vmem:[#allocation2 + $0x90] sm:$0xf] }
 0x1d8   : > { %12637 = vmatmul.mubr.bf16.gmra.mxu0 %v11400_v53  ;;  %v2887_v61 = vsel %vm14306_vm8, %v2885_v58, %v2886_v49  ;;  %v2277_v4 = vshll.u32 %v14945_v29, 16  ;;  %v2256_v53 = vsel %vm14344_vm11, %v2251_v46, %v2255_v60  ;;  %v2273_v31 = vrot.slane %v2271_v20, 4  ;;  %v15074_v27 = vld [vmem:[#allocation2 + $0xbc] sm:$0x1] }
 0x1d9   : > { %12640 = vmatprep.mubr.bf16.mxu0 %v11401_v52  ;;  %v11402_v41 = vcombine.low %v2884_v43, %v2887_v61  ;;  %v11387_v28 = vrot.slane %v2737_v5, 9  ;;  %v11358_v55 = vcombine.low %v2246_v9, %v2256_v53  ;;  %v2264_v3 = vor.u32 %v2263_v63, %v2260_v38 }
 0x1da   : > { %v2279_v40 = vrot.slane %v2277_v4, 5  ;;  %v2890_v22 = vrot.slane %v15061_v54, 5  ;;  %v2274_v12 = vor.u32 %v2273_v31, %v2269_v32  ;;  %v2893_v36 = vrot.slane %v15057_v45, 5  ;;  %v3610_v4 = vld [vmem:[#allocation2 + $0xc] sm:$0xe] }
 0x1db   : > { %v2282_v52 = vshrl.u32 %v1999_v14, 16  ;;  %v2285_v29 = vshll.u32 %v1999_v14, 16  ;;  %12585 = vmatmul.mubr.bf16.gmra.mxu1 %v11358_v55  ;;  %v2265_v48 = vrot.slane %v2264_v3, 4  ;;  %v2291_v60 = vshll.u32 %v14992_v21, 16  ;;  %v15078_v14 = vld [vmem:[#allocation2 + $0xb8] sm:$0xf] }
 0x1dc   : > { %v2891_v1 = vsel %vm14306_vm8, %v11387_v28, %v2890_v22  ;;  %v2892_v0 = vrot.slane %v2890_v22, 4  ;;  %v2275_v5 = vrot.slane %v2274_v12, 4  ;;  %v2295_v49 = vshrl.u32 %v14992_v21, 16  ;;  %v3611_v22 = vld [vmem:[#allocation2 + $0x10] sm:$0xf] }
 0x1dd   : > { %v2284_v62 = vrot.slane %v2282_v52, 4  ;;  %v2287_v7 = vrot.slane %v2285_v29, 5  ;;  %v2270_v13 = vsel %vm14344_vm11, %v2265_v48, %v2269_v32  ;;  %v2293_v58 = vrot.slane %v2291_v60, 5  ;;  %v3612_v48 = vld [vmem:[#allocation2 + $0x14] sm:$0x1] }
 0x1de   : > { %v2894_v43 = vsel %vm14306_vm8, %v2892_v0, %v2893_v36  ;;  %v2301_v18 = vshll.u32 %v14983_v2, 16  ;;  %v2280_v9 = vsel %vm14344_vm11, %v2275_v5, %v2279_v40  ;;  %v2297_v20 = vrot.slane %v2295_v49, 4  ;;  %v2005_v5 = vld [vmem:[#allocation2 + $0x9c] sm:$0xf] }
 0x1df   : > { %v11403_v46 = vcombine.low %v2891_v1, %v2894_v43  ;;  %v2288_v38 = vor.u32 %v2287_v7, %v2284_v62  ;;  %v11359_v21 = vcombine.low %v2270_v13, %v2280_v9  ;;  %v11388_v63 = vrot.slane %v2738_v30, 9 }
 0x1e0   : > { %12641 = vmatmul.mubr.bf16.gmra.mxu0 %v11402_v41  ;;  %v2303_v61 = vrot.slane %v2301_v18, 5  ;;  %v2897_v32 = vrot.slane %v15078_v14, 5  ;;  %v2298_v2 = vor.u32 %v2297_v20, %v2293_v58  ;;  %v2900_v31 = vrot.slane %v15074_v27, 5  ;;  %v3613_v20 = vld [vmem:[#allocation2 + $0x18] sm:$0xe] }
 0x1e1   : > { %12644 = vmatprep.mubr.bf16.mxu0 %v11403_v46  ;;  %v2289_v53 = vrot.slane %v2288_v38, 4  ;;  %v2306_v41 = vshrl.u32 %v2002_v37, 16  ;;  %12588 = vmatprep.mubr.bf16.mxu1 %v11359_v21  ;;  %v2309_v3 = vshll.u32 %v2002_v37, 16  ;;  %v2315_v40 = vshll.u32 %v15018_v44, 16  ;;  %v3614_v21 = vld [vmem:[#allocation2 + $0x1c] sm:$0xf] }
 0x1e2   : > { %v2898_v28 = vsel %vm14306_vm8, %v11388_v63, %v2897_v32  ;;  %v2899_v55 = vrot.slane %v2897_v32, 4  ;;  %v2299_v36 = vrot.slane %v2298_v2, 4  ;;  %v2319_v29 = vshrl.u32 %v15018_v44, 16 }
 0x1e3   : > { %v2294_v12 = vsel %vm14344_vm11, %v2289_v53, %v2293_v58  ;;  %v2308_v52 = vrot.slane %v2306_v41, 4  ;;  %v2311_v0 = vrot.slane %v2309_v3, 5  ;;  %v2317_v60 = vrot.slane %v2315_v40, 5  ;;  %v3615_v40 = vld [vmem:[#allocation2 + $0x20] sm:$0x1] }
 0x1e4   : > { %v2901_v1 = vsel %vm14306_vm8, %v2899_v55, %v2900_v31  ;;  %v2325_v30 = vshll.u32 %v15012_v8, 16  ;;  %v2304_v37 = vsel %vm14344_vm11, %v2299_v36, %v2303_v61  ;;  %v2321_v7 = vrot.slane %v2319_v29, 4 }
 0x1e5   : > { %v11404_v62 = vcombine.low %v2898_v28, %v2901_v1  ;;  %v11437_v49 = vrot.slane %v3610_v4, 9  ;;  %v11360_v13 = vcombine.low %v2294_v12, %v2304_v37  ;;  %v2312_v43 = vor.u32 %v2311_v0, %v2308_v52 }
 0x1e6   : > { %v2327_v58 = vrot.slane %v2325_v30, 5  ;;  %v3708_v18 = vrot.slane %v3611_v22, 5  ;;  %v2322_v44 = vor.u32 %v2321_v7, %v2317_v60  ;;  %v3711_v9 = vrot.slane %v3612_v48, 5  ;;  %v2008_v22 = vld [vmem:[#allocation2 + $0xa8] sm:$0xf] }
 0x1e7   : > { %v2330_v46 = vshrl.u32 %v2005_v5, 16  ;;  %v2333_v38 = vshll.u32 %v2005_v5, 16  ;;  %12589 = vmatmul.mubr.bf16.gmra.mxu1 %v11360_v13  ;;  %v2313_v8 = vrot.slane %v2312_v43, 4  ;;  %v2339_v32 = vshll.u32 %v15043_v17, 16  ;;  %v3616_v30 = vld [vmem:[#allocation2 + $0x24] sm:$0xe] }
 0x1e8   : > { %12645 = vmatmul.mubr.bf16.gmra.mxu0 %v11404_v62  ;;  %v3709_v63 = vsel %vm14306_vm8, %v11437_v49, %v3708_v18  ;;  %v3710_v61 = vrot.slane %v3708_v18, 4  ;;  %v2323_v4 = vrot.slane %v2322_v44, 4  ;;  %v2343_v31 = vshrl.u32 %v15043_v17, 16  ;;  %v3617_v7 = vld [vmem:[#allocation2 + $0x28] sm:$0xf] }
 0x1e9   : > { %v2332_v53 = vrot.slane %v2330_v46, 4  ;;  %v2335_v2 = vrot.slane %v2333_v38, 5  ;;  %v2318_v41 = vsel %vm14344_vm11, %v2313_v8, %v2317_v60  ;;  %v2341_v55 = vrot.slane %v2339_v32, 5  ;;  %v2011_v38 = vld [vmem:[#allocation2 + $0xb4] sm:$0xf] }
 0x1ea   : > { %v3712_v28 = vsel %vm14306_vm8, %v3710_v61, %v3711_v9  ;;  %v2349_v3 = vshll.u32 %v15033_v6, 16  ;;  %v2328_v12 = vsel %vm14344_vm11, %v2323_v4, %v2327_v58  ;;  %v2345_v29 = vrot.slane %v2343_v31, 4  ;;  %v3618_v58 = vld [vmem:[#allocation2 + $0x2c] sm:$0x1] }
 0x1eb   : > { %v11453_v36 = vcombine.low %v3709_v63, %v3712_v28  ;;  %v2336_v52 = vor.u32 %v2335_v2, %v2332_v53  ;;  %v11361_v48 = vcombine.low %v2318_v41, %v2328_v12  ;;  %v11438_v17 = vrot.slane %v3613_v20, 9  ;;  %v13552_v2 = vld [vmem:[#allocation9 + $0x1f0] sm:$0xff]   ;;  %v3620_v12 = vld [vmem:[#allocation2 + $0x34] sm:$0xf] }
 0x1ec   : > { %v2351_v1 = vrot.slane %v2349_v3, 5  ;;  %v3715_v0 = vrot.slane %v3614_v21, 5  ;;  %v2346_v5 = vor.u32 %v2345_v29, %v2341_v55  ;;  %v3718_v37 = vrot.slane %v3615_v40, 5 }
 0x1ed   : > { %12712 = vmatprep.mubr.bf16.mxu0 %v11453_v36  ;;  %v2337_v60 = vrot.slane %v2336_v52, 4  ;;  %v2354_v62 = vshrl.u32 %v2008_v22, 16  ;;  %12592 = vmatprep.mubr.bf16.mxu1 %v11361_v48  ;;  %v2357_v13 = vshll.u32 %v2008_v22, 16  ;;  %v2363_v43 = vshll.u32 %v15061_v54, 16 }
 0x1ee   : > { %v3716_v6 = vsel %vm14306_vm8, %v11438_v17, %v3715_v0  ;;  %v3717_v49 = vrot.slane %v3715_v0, 4  ;;  %v2347_v44 = vrot.slane %v2346_v5, 4  ;;  %v2367_v46 = vshrl.u32 %v15061_v54, 16 }
 0x1ef   : > { %v2342_v18 = vsel %vm14344_vm11, %v2337_v60, %v2341_v55  ;;  %v2356_v9 = vrot.slane %v2354_v62, 4  ;;  %v2359_v21 = vrot.slane %v2357_v13, 5  ;;  %v2365_v8 = vrot.slane %v2363_v43, 5  ;;  %v13555_v60 = vld [vmem:[#allocation9 + $0x1e8] sm:$0xff]  }
 0x1f0   : > { %v3719_v20 = vsel %vm14306_vm8, %v3717_v49, %v3718_v37  ;;  %v2373_v63 = vshll.u32 %v15057_v45, 16  ;;  %v2352_v61 = vsel %vm14344_vm11, %v2347_v44, %v2351_v1  ;;  %v2369_v4 = vrot.slane %v2367_v46, 4  ;;  %v3623_v49 = vld [vmem:[#allocation2 + $0x40] sm:$0xf]  ;;  %v3622_v44 = vld [vmem:[#allocation2 + $0x3c] sm:$0xe] }
 0x1f1   : > { %v11454_v32 = vcombine.low %v3716_v6, %v3719_v20  ;;  %v11439_v53 = vrot.slane %v3616_v30, 9  ;;  %v11362_v31 = vcombine.low %v2342_v18, %v2352_v61  ;;  %v2360_v41 = vor.u32 %v2359_v21, %v2356_v9  ;;  %v3619_v30 = vld [vmem:[#allocation2 + $0x30] sm:$0xe]  ;;  %v3621_v6 = vld [vmem:[#allocation2 + $0x38] sm:$0x1] }
 0x1f2   : > { %v2375_v28 = vrot.slane %v2373_v63, 5  ;;  %v3722_v55 = vrot.slane %v3617_v7, 5  ;;  %v2370_v54 = vor.u32 %v2369_v4, %v2365_v8  ;;  %v3725_v3 = vrot.slane %v3618_v58, 5  ;;  %v3626_v9 = vld [vmem:[#allocation2 + $0x4c] sm:$0xf] }
 0x1f3   : > { %12713 = vmatmul.mubr.bf16.vlgmr.msra.gmra.mxu0 %v11454_v32  ;;  %v2378_v40 = vshrl.u32 %v2011_v38, 16  ;;  %v2381_v22 = vshll.u32 %v2011_v38, 16  ;;  %12593 = vmatmul.mubr.bf16.gmra.mxu1 %v11362_v31  ;;  %v2361_v36 = vrot.slane %v2360_v41, 4  ;;  %v2387_v29 = vshll.u32 %v15078_v14, 16  ;;  %v3624_v21 = vld [vmem:[#allocation2 + $0x44] sm:$0x1] }
 0x1f4   : > { %v3723_v45 = vsel %vm14306_vm8, %v11439_v53, %v3722_v55  ;;  %v3724_v52 = vrot.slane %v3722_v55, 4  ;;  %12793 = vmatpush3.bf16.msra.mxu0 %v15020_v51  ;;  %v2371_v48 = vrot.slane %v2370_v54, 4  ;;  %v2391_v0 = vshrl.u32 %v15078_v14, 16  ;;  %v3629_v4 = vld [vmem:[#allocation2 + $0x58] sm:$0xf] }
 0x1f5   : > { %v2380_v1 = vrot.slane %v2378_v40, 4  ;;  %v2383_v17 = vrot.slane %v2381_v22, 5  ;;  %12794 = vmatprep.subr.bf16.mxu0 %v13552_v2  ;;  %v2366_v5 = vsel %vm14344_vm11, %v2361_v36, %v2365_v8  ;;  %v2389_v62 = vrot.slane %v2387_v29, 5  ;;  %v13560_v29 = vld [vmem:[#allocation9 + $0x1d8] sm:$0xff]  }
 0x1f6   : > { %v3726_v37 = vsel %vm14306_vm8, %v3724_v52, %v3725_v3  ;;  %v2397_v7 = vshll.u32 %v15074_v27, 16  ;;  %v2376_v51 = vsel %vm14344_vm11, %v2371_v48, %v2375_v28  ;;  %v2393_v14 = vrot.slane %v2391_v0, 4  ;;  %v13557_v27 = vld [vmem:[#allocation9 + $0x1e0] sm:$0xff]  }
 0x1f7   : > { %v11455_v13 = vcombine.low %v3723_v45, %v3726_v37  ;;  %v2384_v43 = vor.u32 %v2383_v17, %v2380_v1  ;;  %v11363_v58 = vcombine.low %v2366_v5, %v2376_v51  ;;  %v3729_v18 = vrot.slane %v3620_v12, 5  ;;  %v13541_v12 = vld [vmem:[#allocation2 + $0xc] sm:$0xff]   ;;  %v3630_v52 = vld [vmem:[#allocation2 + $0x5c] sm:$0x1]  ;;  %v3628_v5 = vld [vmem:[#allocation2 + $0x54] sm:$0xe] }
 0x1f8   : > { %12795 = vmatpush3.bf16.msra.mxu0 %v13552_v2  ;;  %v2394_v38 = vor.u32 %v2393_v14, %v2389_v62  ;;  %v2399_v20 = vrot.slane %v2397_v7, 5  ;;  %v11440_v8 = vrot.slane %v3619_v30, 9  ;;  %v3732_v61 = vrot.slane %v3621_v6, 5  ;;  %v3627_v45 = vld [vmem:[#allocation2 + $0x50] sm:$0x1] }
 0x1f9   : > { %12716 = vmatprep.mubr.bf16.mxu0 %v11455_v13  ;;  %v2385_v46 = vrot.slane %v2384_v43, 4  ;;  %12796 = vmatprep.subr.bf16.mxu0 %v13555_v60  ;;  %v3731_v63 = vrot.slane %v3729_v18, 4  ;;  %v3736_v32 = vrot.slane %v3623_v49, 5  ;;  %v11441_v41 = vrot.slane %v3622_v44, 9  ;;  %v15139_v37 = vld [vmem:[#allocation2 + $0x64] sm:$0xf] }
 0x1fa   : > { %12596 = vmatprep.mubr.bf16.mxu1 %v11363_v58  ;;  %v2395_v31 = vrot.slane %v2394_v38, 4  ;;  %v3743_v28 = vrot.slane %v3626_v9, 5  ;;  %v3730_v2 = vsel %vm14306_vm8, %v11440_v8, %v3729_v18  ;;  %v3739_v3 = vrot.slane %v3624_v21, 5  ;;  %v3635_v6 = vld [vmem:[#allocation2 + $0x70] sm:$0xf]  ;;  %v13562_v43 = vld [vmem:[#allocation9 + $0x1d0] sm:$0xff]  }
 0x1fb   : > { %v2390_v53 = vsel %vm14344_vm11, %v2385_v46, %v2389_v62  ;;  %v3733_v55 = vsel %vm14306_vm8, %v3731_v63, %v3732_v61  ;;  %v3738_v54 = vrot.slane %v3736_v32, 4  ;;  %v3737_v36 = vsel %vm14306_vm8, %v11441_v41, %v3736_v32  ;;  %v3634_v51 = vld [vmem:[#allocation2 + $0x6c] sm:$0xe]  ;;  %v15141_v13 = vld [vmem:[#allocation2 + $0x7c] sm:$0xf]  ;;  %v13544_v63 = vld [vmem:[#allocation2 + $0x24] sm:$0xff]  }
 0x1fc   : > { %12797 = vmatpush3.bf16.msra.mxu0 %v13555_v60  ;;  %v2400_v40 = vsel %vm14344_vm11, %v2395_v31, %v2399_v20  ;;  %v11456_v22 = vcombine.low %v3730_v2, %v3733_v55  ;;  %v3745_v17 = vrot.slane %v3743_v28, 4  ;;  %v3750_v0 = vrot.slane %v3629_v4, 5  ;;  %v3625_v60 = vld [vmem:[#allocation2 + $0x48] sm:$0xe]  ;;  %v13543_v38 = vld [vmem:[#allocation2 + $0x18] sm:$0xff]  }
 0x1fd   : > { %12798 = vmatprep.subr.bf16.mxu0 %v13557_v27  ;;  %v11364_v48 = vcombine.low %v2390_v53, %v2400_v40  ;;  %v3740_v1 = vsel %vm14306_vm8, %v3738_v54, %v3739_v3  ;;  %v3746_v62 = vrot.slane %v3627_v45, 5  ;;  %v3753_v49 = vrot.slane %v3630_v52, 5  ;;  %v3636_v21 = vld [vmem:[#allocation2 + $0x74] sm:$0x1]  ;;  %v13545_v32 = vld [vmem:[#allocation9 + $0x1b0] sm:$0xff]  }
 0x1fe   : > { %12717 = vmatmul.mubr.bf16.gmra.mxu0 %v11456_v22  ;;  %v11457_v30 = vcombine.low %v3737_v36, %v3740_v1  ;;  %v3752_v7 = vrot.slane %v3750_v0, 4  ;;  %v11442_v14 = vrot.slane %v3625_v60, 9  ;;  %v3757_v18 = vrot.slane %v15139_v37, 5  ;;  %v3633_v4 = vld [vmem:[#allocation2 + $0x68] sm:$0x1]  ;;  %v13548_v60 = vld [vmem:[#allocation9 + $0x1a8] sm:$0xff]  }
 0x1ff   : > { %12597 = vmatmul.mubr.bf16.gmra.mxu1 %v11364_v48  ;;  %v3747_v58 = vsel %vm14306_vm8, %v3745_v17, %v3746_v62  ;;  %v11443_v44 = vrot.slane %v3628_v5, 9  ;;  %v3764_v46 = vrot.slane %v3635_v6, 5  ;;  %v3771_v53 = vrot.slane %v15141_v13, 5  ;;  %v3637_v55 = vld [vmem:[#allocation2 + $0x78] sm:$0xe] }
 0x200   : > { %12799 = vmatpush3.bf16.msra.mxu0 %v13557_v27  ;;  %12664 = vmatprep.mubr.bf16.mxu1 %v13541_v12  ;;  %v3754_v9 = vsel %vm14306_vm8, %v3752_v7, %v3753_v49  ;;  %v3744_v20 = vsel %vm14306_vm8, %v11442_v14, %v3743_v28  ;;  %v15150_v27 = vld [vmem:[#allocation2 + $0x88] sm:$0xf]  ;;  %v3759_v41 = vrot.slane %v3757_v18, 4  ;;  %v11445_v2 = vrot.slane %v3634_v51, 9  ;;  %v3639_v54 = vld [vmem:[#allocation2 + $0x80] sm:$0x1] }
 0x201   : > { %12720 = vmatprep.mubr.bf16.mxu0 %v11457_v30  ;;  %12800 = vmatprep.subr.bf16.mxu0 %v13560_v29  ;;  %v11458_v8 = vcombine.low %v3744_v20, %v3747_v58  ;;  %v3751_v61 = vsel %vm14306_vm8, %v11443_v44, %v3750_v0  ;;  %v3631_v28 = vld [vmem:[#allocation2 + $0x60] sm:$0xe]  ;;  %v3766_v3 = vrot.slane %v3764_v46, 4  ;;  %v3767_v40 = vrot.slane %v3636_v21, 5  ;;  %v3640_v45 = vld [vmem:[#allocation2 + $0x84] sm:$0xe] }
 0x202   : > { %v11459_v31 = vcombine.low %v3751_v61, %v3754_v9  ;;  %v3778_v22 = vrot.slane %v15150_v27, 5  ;;  %v13565_v12 = vld [vmem:[#allocation9 + $0x1c8] sm:$0xff]   ;;  %v3760_v36 = vrot.slane %v3633_v4, 5  ;;  %v3642_v52 = vld [vmem:[#allocation2 + $0x8c] sm:$0x1]  ;;  %v3773_v48 = vrot.slane %v3771_v53, 4 }
 0x203   : > { %v3774_v1 = vrot.slane %v3639_v54, 5  ;;  %v11444_v17 = vrot.slane %v3631_v28, 9  ;;  %v3765_v30 = vsel %vm14306_vm8, %v11445_v2, %v3764_v46  ;;  %v3768_v5 = vsel %vm14306_vm8, %v3766_v3, %v3767_v40  ;;  %v3643_v7 = vld [vmem:[#allocation2 + $0x90] sm:$0xe]  ;;  %v13567_v6 = vld [vmem:[#allocation9 + $0x1c0] sm:$0xff]  }
 0x204   : > { %12801 = vmatpush3.bf16.msra.mxu0 %v13560_v29  ;;  %v11446_v29 = vrot.slane %v3637_v55, 9  ;;  %v3761_v0 = vsel %vm14306_vm8, %v3759_v41, %v3760_v36  ;;  %v11447_v37 = vrot.slane %v3640_v45, 9  ;;  %v3780_v62 = vrot.slane %v3778_v22, 4  ;;  %v13546_v49 = vld [vmem:[#allocation2 + $0x30] sm:$0xff]   ;;  %v15165_v14 = vld [vmem:[#allocation2 + $0x98] sm:$0x1] }
 0x205   : > { %12802 = vmatprep.subr.bf16.mxu0 %v13562_v43  ;;  %v3758_v51 = vsel %vm14306_vm8, %v11444_v17, %v3757_v18  ;;  %v3644_v13 = vld [vmem:[#allocation2 + $0x94] sm:$0xf]  ;;  %v15173_v44 = vsel %vm14306_vm8, %v3773_v48, %v3774_v1  ;;  %v15175_v9 = vld [vmem:[#allocation2 + $0x9c] sm:$0xe]  ;;  %v15177_v46 = vld [vmem:[#allocation2 + $0xa0] sm:$0xf]  ;;  %v11461_v20 = vcombine.low %v3765_v30, %v3768_v5 }
 0x206   : > { %12721 = vmatmul.mubr.bf16.gmra.mxu0 %v11458_v8  ;;  %v11460_v58 = vcombine.low %v3758_v51, %v3761_v0  ;;  %v13553_v18 = vld [vmem:[#allocation9 + $0x1a0] sm:$0xff]   ;;  %v11448_v21 = vrot.slane %v3643_v7, 9  ;;  %v15179_v27 = vld [vmem:[#allocation2 + $0xa4] sm:$0x1]  ;;  %v3779_v61 = vsel %vm14306_vm8, %v11447_v37, %v3778_v22  ;;  %v3785_v4 = vrot.slane %v3644_v13, 5  ;;  %v13558_v54 = vld [vmem:[#allocation9 + $0x198] sm:$0xff]  }
 0x207   : > { %12665 = vmatmul.mubr.bf16.vlgmr.msra.gmra.mxu1 %v13543_v38  ;;  %12724 = vmatprep.mubr.bf16.mxu0 %v11459_v31  ;;  %v4528_v38 = vld [vmem:[#allocation2 + $0x1c] sm:$0xf]  ;;  %v4527_v8 = vld [vmem:[#allocation2 + $0x18] sm:$0xf]  ;;  %v3788_v2 = vrot.slane %v15165_v14, 5  ;;  %v3792_v55 = vrot.slane %v15177_v46, 5 }
 0x208   : > { %12745 = vmatpush3.bf16.msra.mxu1 %v15030_v56  ;;  %12668 = vmatprep.mubr.bf16.mxu1 %v13544_v63  ;;  %v3781_v56 = vrot.slane %v3642_v52, 5  ;;  %v13547_v63 = vld [vmem:[#allocation2 + $0x3c] sm:$0xff]   ;;  %v15187_v31 = vld [vmem:[#allocation2 + $0xb8] sm:$0xf]  ;;  %v15193_v28 = vld [vmem:[#allocation2 + $0xa8] sm:$0xe]  ;;  %v15202_v1 = vsel %vm14306_vm8, %v11448_v21, %v3785_v4 }
 0x209   : > { %12746 = vmatprep.subr.bf16.mxu1 %v13545_v32  ;;  %12803 = vmatpush3.bf16.msra.mxu0 %v13562_v43  ;;  %v15169_v43 = vsel %vm14306_vm8, %v11446_v29, %v3771_v53  ;;  %v15185_v53 = vld [vmem:[#allocation2 + $0xac] sm:$0xf]  ;;  %v15195_v3 = vld [vmem:[#allocation2 + $0xb0] sm:$0x1]  ;;  %v4585_v40 = vshll.u32 %v4528_v38, 16  ;;  %v4576_v45 = vshrl.u32 %v4527_v8, 16 }
 0x20a   : > { %12804 = vmatprep.subr.bf16.mxu0 %v13565_v12  ;;  %v11462_v41 = vcombine.low %v15169_v43, %v15173_v44  ;;  %v4530_v22 = vld [vmem:[#allocation2 + $0x24] sm:$0xf]  ;;  %v4579_v52 = vshll.u32 %v4527_v8, 16  ;;  %v4589_v29 = vshrl.u32 %v4528_v38, 16  ;;  %v3799_v17 = vrot.slane %v15185_v53, 5 }
 0x20b   : > { %v15198_v36 = vld [vmem:[#allocation2 + $0xc4] sm:$0xf]  ;;  %v3652_v0 = vld [vmem:[#allocation2 + $0xb4] sm:$0xe]  ;;  %v3654_v30 = vld [vmem:[#allocation2 + $0xbc] sm:$0x1] }
 0x20c   : > { %12747 = vmatpush3.bf16.msra.mxu1 %v13545_v32  ;;  %v3782_v32 = vsel %vm14306_vm8, %v3780_v62, %v3781_v56  ;;  %v3806_v5 = vrot.slane %v15187_v31, 5  ;;  %v3795_v37 = vrot.slane %v15179_v27, 5  ;;  %v3655_v62 = vld [vmem:[#allocation2 + $0xc0] sm:$0xe]  ;;  %v4600_v56 = vshrl.u32 %v4530_v22, 16 }
 0x20d   : > { %12748 = vmatprep.subr.bf16.mxu1 %v13548_v60  ;;  %12805 = vmatpush3.bf16.msra.mxu0 %v13565_v12  ;;  %v11449_v12 = vrot.slane %v15175_v9, 9  ;;  %v11463_v48 = vcombine.low %v3779_v61, %v3782_v32  ;;  %v4603_v7 = vshll.u32 %v4530_v22, 16  ;;  %v3794_v51 = vrot.slane %v3792_v55, 4  ;;  %v3657_v13 = vld [vmem:[#allocation2 + $0xc8] sm:$0x1] }
 0x20e   : > { %12725 = vmatmul.mubr.bf16.gmra.mxu0 %v11460_v58  ;;  %12806 = vmatprep.subr.bf16.mxu0 %v13567_v6  ;;  %v3813_v14 = vrot.slane %v15198_v36, 5  ;;  %v15208_v58 = vrot.slane %v4585_v40, 5  ;;  %v4591_v43 = vrot.slane %v4589_v29, 4  ;;  %v11450_v44 = vrot.slane %v15193_v28, 9  ;;  %v4531_v38 = vld [vmem:[#allocation2 + $0x28] sm:$0xf] }
 0x20f   : > { %12669 = vmatmul.mubr.bf16.gmra.mxu1 %v13546_v49  ;;  %12728 = vmatprep.mubr.bf16.mxu0 %v11461_v20  ;;  %v13549_v49 = vld [vmem:[#allocation2 + $0x48] sm:$0xff]   ;;  %v3802_v9 = vrot.slane %v15195_v3, 5  ;;  %v4581_v46 = vrot.slane %v4579_v52, 5  ;;  %v13551_v20 = vld [vmem:[#allocation2 + $0x54] sm:$0xff]   ;;  %v3801_v21 = vrot.slane %v3799_v17, 4  ;;  %v11451_v27 = vrot.slane %v3652_v0, 9 }
 0x210   : > { %12672 = vmatprep.mubr.bf16.mxu1 %v13547_v63  ;;  %12749 = vmatpush3.bf16.msra.mxu1 %v13548_v60  ;;  %v3787_v60 = vrot.slane %v3785_v4, 4  ;;  %v3808_v8 = vrot.slane %v3806_v5, 4  ;;  %v3809_v63 = vrot.slane %v3654_v30, 5  ;;  %v13563_v61 = vld [vmem:[#allocation9 + $0x190] sm:$0xff]   ;;  %v11452_v32 = vrot.slane %v3655_v62, 9  ;;  %v13568_v30 = vld [vmem:[#allocation9 + $0x188] sm:$0xff]  }
 0x211   : > { %12750 = vmatprep.subr.bf16.mxu1 %v13553_v18  ;;  %12807 = vmatpush3.bf16.msra.mxu0 %v13567_v6  ;;  %v4578_v6 = vrot.slane %v4576_v45, 4  ;;  %v3816_v4 = vrot.slane %v3657_v13, 5  ;;  %v4529_v53 = vld [vmem:[#allocation2 + $0x20] sm:$0x1]  ;;  %v4602_v31 = vrot.slane %v4600_v56, 4  ;;  %v3815_v28 = vrot.slane %v3813_v14, 4 }
 0x212   : > { %v4592_v3 = vor.u32 %v4591_v43, %v15208_v58  ;;  %v4609_v40 = vshll.u32 %v4531_v38, 16  ;;  %v4613_v22 = vshrl.u32 %v4531_v38, 16  ;;  %v3789_v36 = vsel %vm14306_vm8, %v3787_v60, %v3788_v2  ;;  %v4532_v2 = vld [vmem:[#allocation2 + $0x2c] sm:$0x1]  ;;  %v4533_v60 = vld [vmem:[#allocation2 + $0x30] sm:$0xf] }
 0x213   : > { %v3793_v45 = vsel %vm14306_vm8, %v11449_v12, %v3792_v55  ;;  %v3796_v52 = vsel %vm14306_vm8, %v3794_v51, %v3795_v37  ;;  %v15221_v29 = vsel %vm14306_vm8, %v11450_v44, %v3799_v17  ;;  %v4595_v0 = vshll.u32 %v4529_v53, 16  ;;  %v13571_v38 = vld [vmem:[#allocation9 + $0x180] sm:$0xff]  }
 0x214   : > { %12751 = vmatpush3.bf16.msra.mxu1 %v13553_v18  ;;  %v4605_v18 = vrot.slane %v4603_v7, 5  ;;  %v15229_v55 = vsel %vm14306_vm8, %v3801_v21, %v3802_v9  ;;  %v15237_v12 = vsel %vm14306_vm8, %v11452_v32, %v3813_v14  ;;  %v4593_v37 = vrot.slane %v4592_v3, 4  ;;  %v4534_v14 = vld [vmem:[#allocation2 + $0x34] sm:$0xf]  ;;  %v13556_v21 = vld [vmem:[#allocation2 + $0x6c] sm:$0xff]  }
 0x215   : > { %12752 = vmatprep.subr.bf16.mxu1 %v13558_v54  ;;  %v15245_v56 = vrot.slane %v4609_v40, 5  ;;  %v4615_v7 = vrot.slane %v4613_v22, 4  ;;  %v11464_v51 = vcombine.low %v15202_v1, %v3789_v36  ;;  %v4619_v43 = vshll.u32 %v4532_v2, 16  ;;  %v4540_v32 = vld [vmem:[#allocation2 + $0x4c] sm:$0xf] }
 0x216   : > { %12729 = vmatmul.mubr.bf16.gmra.mxu0 %v11462_v41  ;;  %v4582_v41 = vor.u32 %v4581_v46, %v4578_v6  ;;  %v4606_v17 = vor.u32 %v4605_v18, %v4602_v31  ;;  %v11465_v44 = vcombine.low %v3793_v45, %v3796_v52  ;;  %v4597_v9 = vrot.slane %v4595_v0, 5  ;;  %v4535_v31 = vld [vmem:[#allocation2 + $0x38] sm:$0x1]  ;;  %v4536_v3 = vld [vmem:[#allocation2 + $0x3c] sm:$0xf] }
 0x217   : > { %12673 = vmatmul.mubr.bf16.gmra.mxu1 %v13549_v49  ;;  %12732 = vmatprep.mubr.bf16.mxu0 %v11463_v48  ;;  %v15225_v48 = vsel %vm14306_vm8, %v11451_v27, %v3806_v5  ;;  %v15241_v5 = vsel %vm14306_vm8, %v3815_v28, %v3816_v4  ;;  %v15243_v62 = vpop.f32.mrf.mxu0  ;;  %v13554_v49 = vld [vmem:[#allocation2 + $0x60] sm:$0xff]   ;;  %v4624_v6 = vshrl.u32 %v4533_v60, 16  ;;  %v4627_v46 = vshll.u32 %v4533_v60, 16  ;;  %v4542_v60 = vld [vmem:[#allocation2 + $0x54] sm:$0xf] }
 0x218   : > { %12676 = vmatprep.mubr.bf16.mxu1 %v13551_v20  ;;  %12753 = vmatpush3.bf16.msra.mxu1 %v13558_v54  ;;  %v15233_v54 = vsel %vm14306_vm8, %v3808_v8, %v3809_v63  ;;  %v4583_v13 = vrot.slane %v4582_v41, 4  ;;  %v4537_v20 = vld [vmem:[#allocation2 + $0x40] sm:$0xf]  ;;  %v11466_v27 = vcombine.low %v15221_v29, %v15229_v55  ;;  %v15254_v63 = vrot.slane %v4606_v17, 4  ;;  %v15266_v41 = vld [vmem:[#allocation9 + $0x238] sm:$0xff]  }
 0x219   : > { %12754 = vmatprep.subr.bf16.mxu1 %v13563_v61  ;;  %v11467_v8 = vcombine.low %v15225_v48, %v15233_v54  ;;  %v4598_v4 = vsel %vm14344_vm11, %v4593_v37, %v4597_v9  ;;  %v4616_v53 = vor.u32 %v4615_v7, %v15245_v56  ;;  %v4633_v18 = vshll.u32 %v4534_v14, 16  ;;  %v4539_v48 = vld [vmem:[#allocation2 + $0x48] sm:$0xf]  ;;  %v4548_v1 = vld [vmem:[#allocation2 + $0x6c] sm:$0xf] }
 0x21a   : > { %v4637_v28 = vshrl.u32 %v4534_v14, 16  ;;  %v4588_v40 = vsel %vm14344_vm11, %v4583_v13, %v15208_v58  ;;  %v15264_v22 = vrot.slane %v4619_v43, 5  ;;  %v4657_v36 = vshll.u32 %v4537_v20, 16  ;;  %v4543_v13 = vld [vmem:[#allocation2 + $0x58] sm:$0xf] }
 0x21b   : > { %v4661_v45 = vshrl.u32 %v4537_v20, 16  ;;  %v4626_v52 = vrot.slane %v4624_v6, 4  ;;  %v4629_v29 = vrot.slane %v4627_v46, 5  ;;  %v4681_v0 = vshll.u32 %v4540_v32, 16  ;;  %v4538_v43 = vld [vmem:[#allocation2 + $0x44] sm:$0x1] }
 0x21c   : > { %12755 = vmatpush3.bf16.msra.mxu1 %v13563_v61  ;;  %v15256_v61 = vpop.f32.mrf.mxu0  ;;  %v4685_v2 = vshrl.u32 %v4540_v32, 16  ;;  %v15268_v55 = vcombine.low %v4588_v40, %v4598_v4  ;;  %v4612_v58 = vsel %vm14344_vm11, %v15254_v63, %v15245_v56  ;;  %v4648_v17 = vshrl.u32 %v4536_v3, 16  ;;  %v13559_v46 = vld [vmem:[#allocation2 + $0x78] sm:$0xff]   ;;  %v13561_v32 = vld [vmem:[#allocation2 + $0x84] sm:$0xff]  }
 0x21d   : > { %12756 = vmatprep.subr.bf16.mxu1 %v13568_v30  ;;  %v4617_v37 = vrot.slane %v4616_v53, 4  ;;  %v15276_v7 = vrot.slane %v4633_v18, 5  ;;  %v15278_v14 = vrot.slane %v4657_v36, 5  ;;  %v4672_v9 = vshrl.u32 %v4539_v48, 16 }
 0x21e   : > { %12733 = vmatmul.mubr.bf16.gmra.mxu0 %v11464_v51  ;;  %v15274_v54 = vpop.f32.mrf.mxu0  ;;  %v4651_v51 = vshll.u32 %v4536_v3, 16  ;;  %v4675_v6 = vshll.u32 %v4539_v48, 16  ;;  %v15280_v56 = vrot.slane %v4681_v0, 5  ;;  %v4687_v20 = vrot.slane %v4685_v2, 4 }
 0x21f   : > { %12677 = vmatmul.mubr.bf16.gmra.mxu1 %v13554_v49  ;;  %12736 = vmatprep.mubr.bf16.mxu0 %v11465_v44  ;;  %v4639_v49 = vrot.slane %v4637_v28, 4  ;;  %v4663_v44 = vrot.slane %v4661_v45, 4  ;;  %v4699_v63 = vshll.u32 %v4542_v60, 16  ;;  %v4630_v4 = vor.u32 %v4629_v29, %v4626_v52  ;;  %v4545_v45 = vld [vmem:[#allocation2 + $0x60] sm:$0xf] }
 0x220   : > { %12680 = vmatprep.mubr.bf16.mxu1 %v13556_v21  ;;  %12757 = vmatpush3.bf16.msra.mxu1 %v13568_v30  ;;  %v4643_v30 = vshll.u32 %v4535_v31, 16  ;;  %v4696_v21 = vshrl.u32 %v4542_v60, 16  ;;  %v15287_v31 = vld [vmem:[#allocation2 + $0x50] sm:$0x1]  ;;  %v4705_v18 = vshll.u32 %v4543_v13, 16  ;;  %v4709_v28 = vshrl.u32 %v4543_v13, 16 }
 0x221   : > { %12758 = vmatprep.subr.bf16.mxu1 %v13571_v38  ;;  %v4622_v3 = vsel %vm14344_vm11, %v4617_v37, %v15264_v22  ;;  %v4640_v40 = vor.u32 %v4639_v49, %v15276_v7  ;;  %v4650_v36 = vrot.slane %v4648_v17, 4  ;;  %v4653_v52 = vrot.slane %v4651_v51, 5 }
 0x222   : > { %v15283_v53 = vrot.slane %v4643_v30, 5  ;;  %v4664_v29 = vor.u32 %v4663_v44, %v15278_v14  ;;  %v4674_v48 = vrot.slane %v4672_v9, 4  ;;  %v4677_v0 = vrot.slane %v4675_v6, 5  ;;  %v15303_v9 = vld [vmem:[#allocation2 + $0x64] sm:$0xf] }
 0x223   : > { %v4688_v2 = vor.u32 %v4687_v20, %v15280_v56  ;;  %v4691_v30 = vshll.u32 %v15287_v31, 16  ;;  %v4701_v60 = vrot.slane %v4699_v63, 5  ;;  %v4631_v13 = vrot.slane %v4630_v4, 4 }
 0x224   : > { %12759 = vmatpush3.bf16.msra.mxu1 %v13571_v38  ;;  %v15285_v38 = vpop.f32.mrf.mxu0  ;;  %v15296_v37 = vrot.slane %v4705_v18, 5  ;;  %v4711_v17 = vrot.slane %v4709_v28, 4  ;;  %v4720_v49 = vshrl.u32 %v4545_v45, 16  ;;  %v4641_v51 = vrot.slane %v4640_v40, 4  ;;  %v15311_v40 = vld [vmem:[#allocation2 + $0x5c] sm:$0x1] }
 0x225   : > { %12840 = vmatprep.subr.bf16.mxu1 %v15266_v41  ;;  %v4723_v6 = vshll.u32 %v4545_v45, 16  ;;  %v4654_v20 = vor.u32 %v4653_v52, %v4650_v36  ;;  %v4678_v63 = vor.u32 %v4677_v0, %v4674_v48  ;;  %v4689_v18 = vrot.slane %v4688_v2, 4 }
 0x226   : > { %12737 = vmatmul.mubr.bf16.gmra.mxu0 %v11466_v27  ;;  %v4667_v27 = vshll.u32 %v4538_v43, 16  ;;  %v12474_v22 = vpop.f32.mrf.mxu1  ;;  %v15298_v43 = vcombine.low %v4612_v58, %v4622_v3  ;;  %v4693_v33 = vrot.slane %v4691_v30, 5  ;;  %v13566_v3 = vld [vmem:[#allocation2 + $0x9c] sm:$0xff]   ;;  %v4712_v36 = vor.u32 %v4711_v17, %v15296_v37 }
 0x227   : > { %12681 = vmatmul.mubr.bf16.gmra.mxu1 %v13559_v46  ;;  %12740 = vmatprep.mubr.bf16.mxu0 %v11467_v8  ;;  %v4698_v8 = vrot.slane %v4696_v21, 4  ;;  %v12526_v46 = vpop.f32.mrf.mxu0  ;;  %v15301_v44 = vadd.f32 %v15243_v62, %v12474_v22  ;;  %v18703_v62 = vcombine.low %v15237_v12, %v15241_v5  ;;  %v4729_v45 = vshll.u32 %v15303_v9, 16 }
 0x228   : > { %12684 = vmatprep.mubr.bf16.mxu1 %v13561_v32  ;;  %v4665_v32 = vrot.slane %v4664_v29, 4  ;;  %v4669_v21 = vrot.slane %v4667_v27, 5  ;;  %v1630_v4 = vpop.f32.mrf.mxu1  ;;  %v4722_v27 = vrot.slane %v4720_v49, 4  ;;  %v4733_v52 = vshrl.u32 %v15303_v9, 16 }
 0x229   : > { %v1855_v28 = vpop.f32.mrf.mxu0  ;;  %v4702_v35 = vor.u32 %v4701_v60, %v4698_v8  ;;  %v15306_v58 = vadd.f32 %v15256_v61, %v1630_v4  ;;  %v4725_v61 = vrot.slane %v4723_v6, 5  ;;  %v4744_v12 = vshrl.u32 %v4548_v1, 16 }
 0x22a   : > { %v12475_v29 = vpop.f32.mrf.mxu1  ;;  %v4747_v5 = vshll.u32 %v4548_v1, 16  ;;  %v4636_v0 = vsel %vm14344_vm11, %v4631_v13, %v15276_v7  ;;  %v4646_v2 = vsel %vm14344_vm11, %v4641_v51, %v15283_v53  ;;  %v4655_v30 = vrot.slane %v4654_v20, 4  ;;  %v15336_v13 = vld [vmem:[#allocation2 + $0x70] sm:$0xf] }
 0x22b   : > { %v15318_v48 = vadd.f32 %v15274_v54, %v12475_v29  ;;  %v4679_v54 = vrot.slane %v4678_v63, 4  ;;  %v4694_v1 = vsel %vm14344_vm11, %v4689_v18, %v4693_v33  ;;  %v12527_v60 = vpop.f32.mrf.mxu0  ;;  %v4715_v22 = vshll.u32 %v15311_v40, 16  ;;  %v13569_v63 = vld [vmem:[#allocation2 + $0xa8] sm:$0xff]   ;;  %v4551_v29 = vld [vmem:[#allocation2 + $0x78] sm:$0xf] }
 0x22c   : > { %v1633_v8 = vpop.f32.mrf.mxu1  ;;  %v15338_v53 = vrot.slane %v4702_v35, 4  ;;  %v15340_v17 = vrot.slane %v4712_v36, 4  ;;  %v15342_v49 = vrot.slane %v4729_v45, 5  ;;  %v4735_v51 = vrot.slane %v4733_v52, 4  ;;  %v15356_v45 = vld [vmem:[#allocation2 + $0x74] sm:$0x1] }
 0x22d   : > { %v15334_v7 = vadd.f32 %v15285_v38, %v1633_v8  ;;  %v4726_v6 = vor.u32 %v4725_v61, %v4722_v27  ;;  %v4746_v33 = vrot.slane %v4744_v12, 4  ;;  %v11503_v4 = vcombine.low %v4636_v0, %v4646_v2  ;;  %v1858_v36 = vpop.f32.mrf.mxu0 }
 0x22e   : > { %12741 = vmatmul.mubr.bf16.gmra.mxu0 %v18703_v62  ;;  %v4660_v38 = vsel %vm14344_vm11, %v4655_v30, %v15278_v14  ;;  %v4753_v35 = vshll.u32 %v15336_v13, 16  ;;  %v15354_v27 = vrot.slane %v4715_v22, 5  ;;  %v4757_v52 = vshrl.u32 %v15336_v13, 16  ;;  %v13570_v14 = vld [vmem:[#allocation2 + $0xb4] sm:$0xff]  }
 0x22f   : > { %12685 = vmatmul.mubr.bf16.gmra.mxu1 %v13564_v59  ;;  %12808 = vmatprep.mubr.bf16.mxu0 %v15268_v55  ;;  %v4670_v59 = vsel %vm14344_vm11, %v4665_v32, %v4669_v21  ;;  %v15328_v55 = vld [vmem:[#allocation2 + $0x68] sm:$0x1]  ;;  %v12478_v32 = vpop.f32.mrf.mxu1  ;;  %v4749_v21 = vrot.slane %v4747_v5, 5  ;;  %v15365_v5 = vld [vmem:[#allocation2 + $0x7c] sm:$0xf]  ;;  %v15373_v2 = vrot.slane %v4726_v6, 4 }
 0x230   : > { %12688 = vmatprep.mubr.bf16.mxu1 %v13566_v3  ;;  %v4739_v20 = vshll.u32 %v15328_v55, 16  ;;  %v15348_v18 = vadd.f32 %v12526_v46, %v12478_v32  ;;  %v11504_v62 = vcombine.low %v4660_v38, %v4670_v59  ;;  %v4684_v3 = vsel %vm14344_vm11, %v4679_v54, %v15280_v56  ;;  %v4554_v54 = vld [vmem:[#allocation2 + $0x84] sm:$0xf] }
 0x231   : > { %v1646_v61 = vpop.f32.mrf.mxu1  ;;  %v11505_v46 = vcombine.low %v4684_v3, %v4694_v1  ;;  %v4736_v56 = vor.u32 %v4735_v51, %v15342_v49  ;;  %v4750_v59 = vor.u32 %v4749_v21, %v4746_v33  ;;  %v15377_v1 = vld [vmem:[#allocation2 + $0x88] sm:$0xf]  ;;  %v15379_v22 = vrot.slane %v4753_v35, 5  ;;  %v15386_v3 = vld [vmem:[#allocation2 + $0x94] sm:$0xf] }
 0x232   : > { %v15367_v0 = vadd.f32 %v1855_v28, %v1646_v61  ;;  %v15375_v30 = vrot.slane %v4739_v20, 5  ;;  %18704 = vst [vmem:[#allocation54_spill] sm:$0xff] %v15377_v1  ;;  %v4763_v28 = vshll.u32 %v15356_v45, 16  ;;  %v4768_v51 = vshrl.u32 %v4551_v29, 16  ;;  %18705 = vst [vmem:[#allocation55_spill] sm:$0xff] %v15386_v3 }
 0x233   : > { %v12479_v8 = vpop.f32.mrf.mxu1  ;;  %v4759_v38 = vrot.slane %v4757_v52, 4  ;;  %v4771_v6 = vshll.u32 %v4551_v29, 16  ;;  %v4777_v20 = vshll.u32 %v15365_v5, 16  ;;  %v4781_v33 = vshrl.u32 %v15365_v5, 16 }
 0x234   : > { %v15382_v32 = vadd.f32 %v12527_v60, %v12479_v8  ;;  %v4737_v61 = vrot.slane %v4736_v56, 4  ;;  %v4792_v35 = vshrl.u32 %v4554_v54, 16  ;;  %v4795_v12 = vshll.u32 %v4554_v54, 16 }
 0x235   : > { %v1649_v21 = vpop.f32.mrf.mxu1  ;;  %v15390_v42 = vrot.slane %v4750_v59, 4  ;;  %v4801_v60 = vshll.u32 %v15377_v1, 16  ;;  %v4805_v52 = vshrl.u32 %v15377_v1, 16  ;;  %v4770_v8 = vrot.slane %v4768_v51, 4  ;;  %v15526_v1 = vld [vmem:[#allocation2 + $0xd0] sm:$0xf] }
 0x236   : > { %12809 = vmatmul.mubr.bf16.vlgmr.msra.gmra.mxu0 %v15298_v43  ;;  %v4825_v25 = vshll.u32 %v15386_v3, 16  ;;  %v4829_v57 = vshrl.u32 %v15386_v3, 16  ;;  %v15397_v54 = vrot.slane %v4777_v20, 5  ;;  %v4783_v59 = vrot.slane %v4781_v33, 4  ;;  %v15408_v20 = vld [vmem:[#allocation2 + $0x8c] sm:$0x1] }
 0x237   : > { %12689 = vmatmul.mubr.bf16.gmra.mxu1 %v13569_v63  ;;  %12812 = vmatprep.mubr.bf16.mxu0 %v11503_v4  ;;  %v4557_v63 = vld [vmem:[#allocation2 + $0x90] sm:$0xf]  ;;  %v12530_v4 = vpop.f32.mrf.mxu0  ;;  %v15399_v23 = vrot.slane %v4763_v28, 5  ;;  %v4797_v24 = vrot.slane %v4795_v12, 5  ;;  %18706 = vst [vmem:[#allocation56_spill] sm:$0xff] %v15408_v20  ;;  %v15410_v33 = vrot.slane %v4801_v60, 5 }
 0x238   : > { %12692 = vmatprep.mubr.bf16.mxu1 %v13570_v14  ;;  %v15388_v14 = vadd.f32 %v1858_v36, %v1649_v21  ;;  %v4816_v29 = vshrl.u32 %v4557_v63, 16  ;;  %v4819_v19 = vshll.u32 %v4557_v63, 16  ;;  %v4760_v36 = vor.u32 %v4759_v38, %v15379_v22  ;;  %v15412_v3 = vld [vmem:[#allocation2 + $0x98] sm:$0x1] }
 0x239   : > { %v1871_v43 = vpop.f32.mrf.mxu0  ;;  %v4773_v21 = vrot.slane %v4771_v6, 5  ;;  %v12482_v50 = vpop.f32.mrf.mxu1  ;;  %v4794_v63 = vrot.slane %v4792_v35, 4  ;;  %v4742_v38 = vsel %vm14344_vm11, %v4737_v61, %v15375_v30  ;;  %18707 = vst [vmem:[#allocation57_spill] sm:$0xff] %v15412_v3  ;;  %v4784_v30 = vor.u32 %v4783_v59, %v15397_v54  ;;  %v15448_v59 = vld [vmem:[#allocation2 + $0xa0] sm:$0xf] }
 0x23a   : > { %v15403_v51 = vadd.f32 %v12530_v4, %v12482_v50  ;;  %v4818_v28 = vrot.slane %v4816_v29, 4  ;;  %v4821_v50 = vrot.slane %v4819_v19, 5  ;;  %v15414_v4 = vrot.slane %v4825_v25, 5  ;;  %18710 = vst [vmem:[#allocation58_spill] sm:$0xff] %v15448_v59 }
 0x23b   : > { %v12531_v56 = vpop.f32.mrf.mxu0  ;;  %v1662_v47 = vpop.f32.mrf.mxu1  ;;  %v4761_v12 = vrot.slane %v4760_v36, 4  ;;  %v4774_v35 = vor.u32 %v4773_v21, %v4770_v8  ;;  %v4787_v61 = vshll.u32 %v15401_v15, 16  ;;  %v4811_v19 = vshll.u32 %v15408_v20, 16  ;;  %v13575_v36 = vld [vmem:[#allocation2 + $0x24] sm:$0xff]   ;;  %v13576_v21 = vld [vmem:[#allocation2 + $0x30] sm:$0xff]  }
 0x23d   : > { %v1874_v6 = vpop.f32.mrf.mxu0  ;;  %v12483_v60 = vpop.f32.mrf.mxu1 }
 0x23e   : > { %12813 = vmatmul.mubr.bf16.gmra.mxu0 %v11504_v62  ;;  %v4807_v62 = vrot.slane %v4805_v52, 4  ;;  %v4798_v52 = vor.u32 %v4797_v24, %v4794_v63  ;;  %v15425_v25 = vadd.f32 %v12531_v56, %v12483_v60  ;;  %v4560_v56 = vld [vmem:[#allocation2 + $0x9c] sm:$0xf]  ;;  %v13577_v63 = vld [vmem:[#allocation9 + $0x230] sm:$0xff]   ;;  %v4785_v60 = vrot.slane %v4784_v30, 4 }
 0x23f   : > { %12693 = vmatmul.mubr.bf16.gmra.mxu1 %v13572_v16  ;;  %12816 = vmatprep.mubr.bf16.mxu0 %v11505_v46  ;;  %v4831_v16 = vrot.slane %v4829_v57, 4  ;;  %v15416_v46 = vadd.f32 %v1871_v43, %v1662_v47  ;;  %v18708_v47 = vsel %vm14344_vm11, %v15340_v17, %v15354_v27  ;;  %v18709_v57 = vsel %vm14344_vm11, %v15338_v53, %v15296_v37 }
 0x240   : > { %12760 = vmatprep.mubr.bf16.mxu1 %v13573_v34  ;;  %v4732_v34 = vsel %vm14344_vm11, %v15373_v2, %v15342_v49  ;;  %v11506_v43 = vcombine.low %v18709_v57, %v18708_v47  ;;  %v4808_v24 = vor.u32 %v4807_v62, %v15410_v33  ;;  %v4835_v49 = vshll.u32 %v15412_v3, 16  ;;  %v1665_v2 = vpop.f32.mrf.mxu1  ;;  %v4563_v57 = vld [vmem:[#allocation2 + $0xa8] sm:$0xf] }
 0x241   : > { %v11507_v29 = vcombine.low %v4732_v34, %v4742_v38  ;;  %v15437_v8 = vpop.f32.mrf.mxu0  ;;  %v4756_v17 = vsel %vm14344_vm11, %v15390_v42, %v15379_v22  ;;  %v4822_v27 = vor.u32 %v4821_v50, %v4818_v28  ;;  %v4832_v37 = vor.u32 %v4831_v16, %v15414_v4 }
 0x242   : > { %v15446_v53 = vadd.f32 %v1874_v6, %v1665_v2  ;;  %v4766_v38 = vsel %vm14344_vm11, %v4761_v12, %v15399_v23  ;;  %v4775_v62 = vrot.slane %v4774_v35, 4  ;;  %v4789_v34 = vrot.slane %v4787_v61, 5  ;;  %v15455_v6 = vld [vmem:[#allocation2 + $0xac] sm:$0xf]  ;;  %v15459_v23 = vld [vmem:[#allocation2 + $0xa4] sm:$0x1] }
 0x243   : > { %v15453_v47 = vpop.f32.mrf.mxu0  ;;  %v4799_v42 = vrot.slane %v4798_v52, 4  ;;  %v4813_v22 = vrot.slane %v4811_v19, 5  ;;  %v4840_v28 = vshrl.u32 %v4560_v56, 16  ;;  %v4843_v50 = vshll.u32 %v4560_v56, 16  ;;  %18711 = vst [vmem:[#allocation59_spill] sm:$0xff] %v15455_v6  ;;  %18712 = vst [vmem:[#allocation60_spill] sm:$0xff] %v15459_v23 }
 0x244   : > { %v4809_v2 = vrot.slane %v4808_v24, 4  ;;  %v4837_v3 = vrot.slane %v4835_v49, 5  ;;  %v4849_v12 = vshll.u32 %v15448_v59, 16  ;;  %v4853_v35 = vshrl.u32 %v15448_v59, 16  ;;  %v13580_v49 = vld [vmem:[#allocation9 + $0x228] sm:$0xff]  }
 0x245   : > { %v15457_v16 = vpop.f32.mrf.mxu0  ;;  %v4823_v30 = vrot.slane %v4822_v27, 4  ;;  %v4833_v61 = vrot.slane %v4832_v37, 4  ;;  %v4864_v52 = vshrl.u32 %v4563_v57, 16  ;;  %v4867_v19 = vshll.u32 %v4563_v57, 16 }
 0x246   : > { %12817 = vmatmul.mubr.bf16.gmra.mxu0 %v11506_v43  ;;  %v11508_v43 = vcombine.low %v4756_v17, %v4766_v38  ;;  %v4873_v56 = vshll.u32 %v15455_v6, 16  ;;  %v4845_v27 = vrot.slane %v4843_v50, 5  ;;  %v4859_v37 = vshll.u32 %v15459_v23, 16 }
 0x247   : > { %12761 = vmatmul.mubr.bf16.vlgmr.msra.gmra.mxu1 %v13575_v36  ;;  %12820 = vmatprep.mubr.bf16.mxu0 %v11507_v29  ;;  %v4780_v29 = vsel %vm14344_vm11, %v4775_v62, %v15397_v54  ;;  %v15467_v24 = vpop.f32.mrf.mxu0  ;;  %v4877_v36 = vshrl.u32 %v15455_v6, 16  ;;  %v4804_v54 = vsel %vm14344_vm11, %v4799_v42, %v15410_v33  ;;  %v4814_v17 = vsel %vm14344_vm11, %v4809_v2, %v4813_v22  ;;  %v4566_v6 = vld [vmem:[#allocation2 + $0xb4] sm:$0xf]  ;;  %v13578_v33 = vld [vmem:[#allocation2 + $0x3c] sm:$0xff]  }
 0x248   : > { %12841 = vmatpush3.bf16.msra.mxu1 %v15266_v41  ;;  %12764 = vmatprep.mubr.bf16.mxu1 %v13576_v21  ;;  %v4790_v41 = vsel %vm14344_vm11, %v4785_v60, %v4789_v34  ;;  %v4842_v21 = vrot.slane %v4840_v28, 4  ;;  %v15481_v38 = vrot.slane %v4849_v12, 5  ;;  %v4855_v62 = vrot.slane %v4853_v35, 4  ;;  %v15488_v28 = vld [vmem:[#allocation2 + $0xb0] sm:$0x1]  ;;  %v13583_v2 = vld [vmem:[#allocation9 + $0x220] sm:$0xff]  }
 0x249   : > { %12842 = vmatprep.subr.bf16.mxu1 %v13577_v63  ;;  %v15474_v57 = vpop.f32.mrf.mxu0  ;;  %v4828_v60 = vsel %vm14344_vm11, %v4823_v30, %v15414_v4  ;;  %v4838_v34 = vsel %vm14344_vm11, %v4833_v61, %v4837_v3  ;;  %18713 = vst [vmem:[#allocation61_spill] sm:$0xff] %v15488_v28  ;;  %v4866_v50 = vrot.slane %v4864_v52, 4  ;;  %v4869_v23 = vrot.slane %v4867_v19, 5  ;;  %v403_v35 = vld [vmem:[#allocation2 + $0xcc] sm:$0x1] }
 0x24a   : > { %v11509_v42 = vcombine.low %v4780_v29, %v4790_v41  ;;  %v15492_v12 = vrot.slane %v4873_v56, 5  ;;  %v13579_v4 = vld [vmem:[#allocation2 + $0x48] sm:$0xff]   ;;  %v11510_v30 = vcombine.low %v4804_v54, %v4814_v17  ;;  %v4846_v59 = vor.u32 %v4845_v27, %v4842_v21  ;;  %v15496_v61 = vld [vmem:[#allocation2 + $0xb8] sm:$0xf]  ;;  %v4569_v52 = vld [vmem:[#allocation2 + $0xc0] sm:$0xf] }
 0x24b   : > { %v15490_v22 = vpop.f32.mrf.mxu0  ;;  %v15494_v3 = vrot.slane %v4859_v37, 5  ;;  %18714 = vst [vmem:[#allocation62_spill] sm:$0xff] %v15496_v61  ;;  %v11511_v19 = vcombine.low %v4828_v60, %v4838_v34  ;;  %v4856_v56 = vor.u32 %v4855_v62, %v15481_v38  ;;  %v4888_v20 = vshrl.u32 %v4566_v6, 16  ;;  %v459_v17 = vld [vmem:[#allocation2 + $0xd4] sm:$0x1] }
 0x24c   : > { %12843 = vmatpush3.bf16.msra.mxu1 %v13577_v63  ;;  %v4879_v63 = vrot.slane %v4877_v36, 4  ;;  %v12486_v41 = vpop.f32.mrf.mxu1  ;;  %v4883_v36 = vshll.u32 %v15488_v28, 16  ;;  %v4870_v27 = vor.u32 %v4869_v23, %v4866_v50  ;;  %v4891_v37 = vshll.u32 %v4566_v6, 16  ;;  %v13586_v34 = vld [vmem:[#allocation9 + $0x218] sm:$0xff]  }
 0x24d   : > { %12844 = vmatprep.subr.bf16.mxu1 %v13580_v49  ;;  %v15498_v29 = vpop.f32.mrf.mxu0  ;;  %v15505_v21 = vadd.f32 %v15437_v8, %v12486_v41  ;;  %v404_v54 = vsel %vm14200_vm2, 0, %v403_v35  ;;  %v4915_v6 = vshll.u32 %v4569_v52, 16  ;;  %v13581_v35 = vld [vmem:[#allocation2 + $0x54] sm:$0xff]   ;;  %v4857_v41 = vrot.slane %v4856_v56, 4  ;;  %v15528_v56 = vld [vmem:[#allocation2 + $0xbc] sm:$0x1] }
 0x24e   : > { %12821 = vmatmul.mubr.bf16.gmra.mxu0 %v11508_v43  ;;  %v15502_v43 = vld [vmem:[#allocation2 + $0xc4] sm:$0xf]  ;;  %v4880_v60 = vor.u32 %v4879_v63, %v15492_v12  ;;  %v1678_v62 = vpop.f32.mrf.mxu1  ;;  %405 = vst [vmem:[#allocation2 + $0xcc] sm:$0x1] %v404_v54  ;;  %v4847_v63 = vrot.slane %v4846_v59, 4  ;;  %v15519_v10 = vrot.slane %v4883_v36, 5 }
 0x24f   : > { %12765 = vmatmul.mubr.bf16.gmra.mxu1 %v13578_v33  ;;  %12824 = vmatprep.mubr.bf16.mxu0 %v11509_v42  ;;  %18715 = vst [vmem:[#allocation63_spill] sm:$0xff] %v15502_v43  ;;  %v4897_v33 = vshll.u32 %v15496_v61, 16  ;;  %v4901_v42 = vshrl.u32 %v15496_v61, 16  ;;  %v15515_v8 = vadd.f32 %v15453_v47, %v1678_v62  ;;  %v4921_v23 = vshll.u32 %v15502_v43, 16  ;;  %v13589_v62 = vld [vmem:[#allocation9 + $0x210] sm:$0xff]   ;;  %18717 = vst [vmem:[#allocation65_spill] sm:$0xff] %v15528_v56 }
 0x250   : > { %12768 = vmatprep.mubr.bf16.mxu1 %v13579_v4  ;;  %12845 = vmatpush3.bf16.msra.mxu1 %v13580_v49  ;;  %v4912_v4 = vshrl.u32 %v4569_v52, 16  ;;  %v15512_v49 = vpop.f32.mrf.mxu0  ;;  %v4925_v50 = vshrl.u32 %v15502_v43, 16  ;;  %v12487_v28 = vpop.f32.mrf.mxu1  ;;  %v460_v61 = vsel %vm14224_vm4, 0, %v459_v17  ;;  %v4871_v54 = vrot.slane %v4870_v27, 4 }
 0x251   : > { %12846 = vmatprep.subr.bf16.mxu1 %v13583_v2  ;;  %18716 = vst [vmem:[#allocation64_spill] sm:$0xff] %v15512_v49  ;;  %v15524_v49 = vadd.f32 %v15457_v16, %v12487_v28  ;;  %v4890_v47 = vrot.slane %v4888_v20, 4  ;;  %v4893_v52 = vrot.slane %v4891_v37, 5  ;;  %461 = vst [vmem:[#allocation2 + $0xd4] sm:$0x1] %v460_v61  ;;  %v4881_v43 = vrot.slane %v4880_v60, 4 }
 0x252   : > { %v1681_v59 = vpop.f32.mrf.mxu1  ;;  %v15530_v36 = vrot.slane %v4897_v33, 5  ;;  %v4903_v39 = vrot.slane %v4901_v42, 4  ;;  %v4914_v17 = vrot.slane %v4912_v4, 4  ;;  %v4917_v16 = vrot.slane %v4915_v6, 5  ;;  %v15545_v33 = vld [vmem:[#allocation2 + $0xc8] sm:$0x1] }
 0x253   : > { %v15535_v20 = vadd.f32 %v15467_v24, %v1681_v59  ;;  %v15537_v28 = vrot.slane %v4921_v23, 5  ;;  %v4927_v61 = vrot.slane %v4925_v50, 4  ;;  %v4852_v37 = vsel %vm14344_vm11, %v4847_v63, %v15481_v38  ;;  %18718 = vst [vmem:[#allocation66_spill] sm:$0xff] %v15545_v33 }
 0x254   : > { %12847 = vmatpush3.bf16.msra.mxu1 %v13583_v2  ;;  %v13582_v2 = vld [vmem:[#allocation2 + $0x60] sm:$0xff]   ;;  %v12490_v60 = vpop.f32.mrf.mxu1  ;;  %v4945_v24 = vshll.u32 %v15526_v1, 16  ;;  %v4949_v42 = vshrl.u32 %v15526_v1, 16  ;;  %v4894_v38 = vor.u32 %v4893_v52, %v4890_v47  ;;  %v4907_v23 = vshll.u32 %v15528_v56, 16 }
 0x255   : > { %12848 = vmatprep.subr.bf16.mxu1 %v13586_v34  ;;  %v15532_v27 = vpop.f32.mrf.mxu0  ;;  %v15553_v6 = vadd.f32 %v15474_v57, %v12490_v60  ;;  %v4886_v50 = vsel %vm14344_vm11, %v4881_v43, %v15519_v10  ;;  %v4928_v57 = vor.u32 %v4927_v61, %v15537_v28  ;;  %v4931_v47 = vshll.u32 %v15545_v33, 16 }
 0x256   : > { %12825 = vmatmul.mubr.bf16.gmra.mxu0 %v11510_v30  ;;  %v4862_v30 = vsel %vm14344_vm11, %v4857_v41, %v15494_v3  ;;  %v4572_v3 = vld [vmem:[#allocation2 + $0xcc] sm:$0xf]  ;;  %v1694_v63 = vpop.f32.mrf.mxu1  ;;  %v13592_v41 = vld [vmem:[#allocation9 + $0x208] sm:$0xff]   ;;  %v15565_v10 = vrot.slane %v4945_v24, 5  ;;  %v4951_v43 = vrot.slane %v4949_v42, 4  ;;  %v4895_v33 = vrot.slane %v4894_v38, 4 }
 0x257   : > { %12769 = vmatmul.mubr.bf16.gmra.mxu1 %v13581_v35  ;;  %12828 = vmatprep.mubr.bf16.mxu0 %v11511_v19  ;;  %v4876_v19 = vsel %vm14344_vm11, %v4871_v54, %v15492_v12  ;;  %v1919_v4 = vpop.f32.mrf.mxu0  ;;  %18719 = vst [vmem:[#allocation67_spill] sm:$0xff] %v15553_v6  ;;  %v4904_v35 = vor.u32 %v4903_v39, %v15530_v36  ;;  %v4936_v59 = vshrl.u32 %v4572_v3, 16  ;;  %v4939_v12 = vshll.u32 %v4572_v3, 16  ;;  %v13595_v24 = vld [vmem:[#allocation9 + $0x200] sm:$0xff]  }
 0x258   : > { %12772 = vmatprep.mubr.bf16.mxu1 %v13582_v2  ;;  %12849 = vmatpush3.bf16.msra.mxu1 %v13586_v34  ;;  %v4918_v2 = vor.u32 %v4917_v16, %v4914_v17  ;;  %v15563_v34 = vadd.f32 %v15490_v22, %v1694_v63  ;;  %v12491_v52 = vpop.f32.mrf.mxu1  ;;  %v11512_v39 = vcombine.low %v4852_v37, %v4862_v30  ;;  %v15572_v17 = vld [vmem:[#allocation2 + $0xd4] sm:$0x1]  ;;  %v13584_v16 = vld [vmem:[#allocation2 + $0x6c] sm:$0xff]   ;;  %v4909_v63 = vrot.slane %v4907_v23, 5  ;;  %v13585_v42 = vld [vmem:[#allocation2 + $0x78] sm:$0xff]  }
 0x259   : > { %12850 = vmatprep.subr.bf16.mxu1 %v13589_v62  ;;  %v12543_v54 = vpop.f32.mrf.mxu0  ;;  %v4938_v60 = vrot.slane %v4936_v59, 4  ;;  %v4941_v56 = vrot.slane %v4939_v12, 5  ;;  %v15570_v3 = vadd.f32 %v15498_v29, %v12491_v52  ;;  %v11513_v61 = vcombine.low %v4876_v19, %v4886_v50 }
 0x25a   : > { %18720 = vst [vmem:[#allocation68_spill] sm:$0xff] %v15563_v34  ;;  %v4905_v22 = vrot.slane %v4904_v35, 4  ;;  %v15574_v34 = vpop.f32.mrf.mxu1  ;;  %v4919_v30 = vrot.slane %v4918_v2, 4  ;;  %v4929_v59 = vrot.slane %v4928_v57, 4  ;;  %v4933_v12 = vrot.slane %v4931_v47, 5 }
 0x25b   : > { %v15567_v6 = vpop.f32.mrf.mxu0  ;;  %v4952_v52 = vor.u32 %v4951_v43, %v15565_v10  ;;  %v4955_v19 = vshll.u32 %v15572_v17, 16  ;;  %v4900_v50 = vsel %vm14344_vm11, %v4895_v33, %v15530_v36 }
 0x25c   : > { %18721 = vst [vmem:[#allocation69_spill] sm:$0xff] %v15567_v6  ;;  %12851 = vmatpush3.bf16.msra.mxu1 %v13589_v62  ;;  %v12494_v29 = vpop.f32.mrf.mxu1  ;;  %v4942_v62 = vor.u32 %v4941_v56, %v4938_v60  ;;  %v4910_v35 = vsel %vm14344_vm11, %v4905_v22, %v4909_v63  ;;  %v4924_v56 = vsel %vm14344_vm11, %v4919_v30, %v15537_v28  ;;  %v13588_v28 = vld [vmem:[#allocation2 + $0x90] sm:$0xff]  }
 0x25d   : > { %12852 = vmatprep.subr.bf16.mxu1 %v13592_v41  ;;  %v12546_v37 = vpop.f32.mrf.mxu0  ;;  %v15579_v23 = vadd.f32 %v15532_v27, %v12494_v29  ;;  %v4934_v57 = vsel %vm14344_vm11, %v4929_v59, %v4933_v12  ;;  %v4953_v43 = vrot.slane %v4952_v52, 4  ;;  %v11514_v36 = vcombine.low %v4900_v50, %v4910_v35 }
 0x25e   : > { %12829 = vmatmul.mubr.bf16.gmra.mxu0 %v11512_v39  ;;  %v1710_v2 = vpop.f32.mrf.mxu1  ;;  %v4943_v60 = vrot.slane %v4942_v62, 4  ;;  %v4957_v39 = vrot.slane %v4955_v19, 5  ;;  %v11515_v22 = vcombine.low %v4924_v56, %v4934_v57 }
 0x25f   : > { %12773 = vmatmul.mubr.bf16.gmra.mxu1 %v13584_v16  ;;  %12832 = vmatprep.mubr.bf16.mxu0 %v11513_v61  ;;  %v1935_v38 = vpop.f32.mrf.mxu0  ;;  %v15591_v27 = vadd.f32 %v1919_v4, %v1710_v2  ;;  %v13587_v61 = vld [vmem:[#allocation2 + $0x84] sm:$0xff]   ;;  %v13590_v2 = vld [vmem:[#allocation2 + $0x9c] sm:$0xff]  }
 0x260   : > { %12776 = vmatprep.mubr.bf16.mxu1 %v13585_v42  ;;  %12853 = vmatpush3.bf16.msra.mxu1 %v13592_v41  ;;  %v12495_v41 = vpop.f32.mrf.mxu1  ;;  %v4948_v30 = vsel %vm14344_vm11, %v4943_v60, %v15565_v10  ;;  %v4958_v59 = vsel %vm14344_vm11, %v4953_v43, %v4957_v39  ;;  %v13591_v10 = vld [vmem:[#allocation2 + $0xa8] sm:$0xff]  }
 0x261   : > { %12854 = vmatprep.subr.bf16.mxu1 %v13595_v24  ;;  %v12547_v47 = vpop.f32.mrf.mxu0  ;;  %v15595_v16 = vadd.f32 %v12543_v54, %v12495_v41  ;;  %v11516_v52 = vcombine.low %v4948_v30, %v4958_v59  ;;  %v13593_v30 = vld [vmem:[#allocation2 + $0xb4] sm:$0xff]  }
 0x262   : > { %v15597_v63 = vpop.f32.mrf.mxu1 }
 0x263   : > { %v15593_v33 = vpop.f32.mrf.mxu0  ;;  %18723 = vst [vmem:[#allocation71_spill] sm:$0xff] %v15597_v63  ;;  %v13788_v63 = vld [vmem:[#allocation2 + $0x4c] sm:$0xf] }
 0x264   : > { %18722 = vst [vmem:[#allocation70_spill] sm:$0xff] %v15593_v33  ;;  %12855 = vmatpush3.bf16.msra.mxu1 %v13595_v24  ;;  %v12498_v4 = vpop.f32.mrf.mxu1 }
 0x265   : > { %v15604_v24 = vadd.f32 %v12546_v37, %v12498_v4 }
 0x266   : > { %12833 = vmatmul.mubr.bf16.gmra.mxu0 %v11514_v36  ;;  %v12550_v42 = vpop.f32.mrf.mxu0  ;;  %v1726_v12 = vpop.f32.mrf.mxu1  ;;  %v5296_v36 = vld [vmem:[#allocation2 + $0xcc] sm:$0xe] }
 0x267   : > { %12777 = vmatmul.mubr.bf16.gmra.mxu1 %v13587_v61  ;;  %12836 = vmatprep.mubr.bf16.mxu0 %v11515_v22  ;;  %v15606_v62 = vadd.f32 %v1935_v38, %v1726_v12  ;;  %v13781_v61 = vld [vmem:[#allocation2 + $0x1c] sm:$0xf]  ;;  %v11540_v12 = vrot.slane %v5296_v36, 9  ;;  %v13782_v36 = vld [vmem:[#allocation2 + $0x20] sm:$0x1] }
 0x268   : > { %12780 = vmatprep.mubr.bf16.mxu1 %v13588_v28  ;;  %v1951_v54 = vpop.f32.mrf.mxu0  ;;  %v12499_v19 = vpop.f32.mrf.mxu1  ;;  %v5350_v26 = vrot.slane %v13782_v36, 5 }
 0x269   : > { %v15610_v35 = vadd.f32 %v12547_v47, %v12499_v19  ;;  %v5347_v47 = vrot.slane %v13781_v61, 5 }
 0x26a   : > { %v12551_v29 = vpop.f32.mrf.mxu0  ;;  %v15612_v56 = vpop.f32.mrf.mxu1 }
 0x26b   : > { %18725 = vst [vmem:[#allocation73_spill] sm:$0xff] %v15612_v56 }
 0x26c   : > { %v15608_v50 = vpop.f32.mrf.mxu0  ;;  %v12502_v41 = vpop.f32.mrf.mxu1 }
 0x26d   : > { %18724 = vst [vmem:[#allocation72_spill] sm:$0xff] %v15608_v50  ;;  %v15614_v60 = vadd.f32 %v12550_v42, %v12502_v41  ;;  %v5452_v42 = vrot.slane %v15526_v1, 5  ;;  %v5281_v41 = vld [vmem:[#allocation2 + $0x18] sm:$0xe]  ;;  %v13783_v1 = vld [vmem:[#allocation2 + $0x28] sm:$0xf] }
 0x26e   : > { %12837 = vmatmul.mubr.bf16.gmra.mxu0 %v11516_v52  ;;  %v1742_v38 = vpop.f32.mrf.mxu1  ;;  %v13594_v52 = vld [vmem:[#allocation2 + $0xc0] sm:$0xff]  }
 0x26f   : > { %v12618_v57 = vpop.f32.mrf.mxu0  ;;  %12781 = vmatmul.mubr.bf16.gmra.mxu1 %v13590_v2  ;;  %v15616_v39 = vadd.f32 %v1951_v54, %v1742_v38  ;;  %v5455_v2 = vrot.slane %v15572_v17, 5  ;;  %v5349_v54 = vrot.slane %v5347_v47, 4 }
 0x270   : > { %12784 = vmatprep.mubr.bf16.mxu1 %v13591_v10  ;;  %v12503_v22 = vpop.f32.mrf.mxu1 }
 0x271   : > { %v3065_v37 = vpop.f32.mrf.mxu0  ;;  %v15620_v4 = vadd.f32 %v12551_v29, %v12503_v22  ;;  %v15629_v29 = vsel %vm14306_vm8, %v11540_v12, %v5452_v42  ;;  %v5454_v22 = vrot.slane %v5452_v42, 4  ;;  %v5351_v12 = vsel %vm14306_vm8, %v5349_v54, %v5350_v26  ;;  %v13784_v42 = vld [vmem:[#allocation2 + $0x34] sm:$0xf] }
 0x272   : > { %v15622_v59 = vpop.f32.mrf.mxu1  ;;  %v5361_v33 = vrot.slane %v13784_v42, 5 }
 0x273   : > { %v12619_v43 = vpop.f32.mrf.mxu0  ;;  %18727 = vst [vmem:[#allocation75_spill] sm:$0xff] %v15622_v59  ;;  %v5354_v59 = vrot.slane %v13783_v1, 5 }
 0x274   : > { %v12570_v10 = vpop.f32.mrf.mxu1  ;;  %v5363_v56 = vrot.slane %v5361_v33, 4 }
 0x275   : > { %v15618_v28 = vpop.f32.mrf.mxu0  ;;  %v2693_v61 = vadd.f32 %v12570_v10, %v15301_v44  ;;  %v13596_v44 = vld [vmem:[#allocation2 + $0xcc] sm:$0xff]   ;;  %v11525_v10 = vrot.slane %v5281_v41, 9  ;;  %v5356_v26 = vrot.slane %v5354_v59, 4 }
 0x276   : > { %18726 = vst [vmem:[#allocation74_spill] sm:$0xff] %v15618_v28  ;;  %v2564_v28 = vpop.f32.mrf.mxu1 }
 0x277   : > { %v12622_v19 = vpop.f32.mrf.mxu0  ;;  %12785 = vmatmul.mubr.bf16.gmra.mxu1 %v13593_v30  ;;  %v2691_v17 = vadd.f32 %v2564_v28, %v15306_v58  ;;  %v15634_v30 = vsel %vm14306_vm8, %v5454_v22, %v5455_v2  ;;  %v5282_v22 = vld [vmem:[#allocation2 + $0x24] sm:$0xe] }
 0x278   : > { %12788 = vmatprep.mubr.bf16.mxu1 %v13594_v52  ;;  %v15636_v52 = vadd.f32 %v12618_v57, %v2693_v61  ;;  %v12571_v36 = vpop.f32.mrf.mxu1  ;;  %v5348_v57 = vsel %vm14306_vm8, %v11525_v10, %v5347_v47  ;;  %v11526_v10 = vrot.slane %v5282_v22, 9 }
 0x279   : > { %v3081_v38 = vpop.f32.mrf.mxu0  ;;  %v2694_v58 = vadd.f32 %v12571_v36, %v15318_v48  ;;  %v15645_v28 = vadd.f32 %v3065_v37, %v2691_v17  ;;  %v11541_v41 = vcombine.low %v5348_v57, %v5351_v12  ;;  %v13785_v48 = vld [vmem:[#allocation2 + $0x2c] sm:$0x1]  ;;  %v5283_v17 = vld [vmem:[#allocation2 + $0x30] sm:$0xe]  ;;  %v13786_v12 = vld [vmem:[#allocation2 + $0x38] sm:$0x1] }
 0x27a   : > { %v2567_v2 = vpop.f32.mrf.mxu1  ;;  %v5357_v37 = vrot.slane %v13785_v48, 5  ;;  %v5364_v57 = vrot.slane %v13786_v12, 5  ;;  %v5355_v22 = vsel %vm14306_vm8, %v11526_v10, %v5354_v59 }
 0x27b   : > { %v12623_v50 = vpop.f32.mrf.mxu0  ;;  %v15650_v54 = vadd.f32 %v2567_v2, %v15334_v7  ;;  %v15652_v42 = vadd.f32 %v12619_v43, %v2694_v58  ;;  %v13787_v43 = vld [vmem:[#allocation2 + $0x40] sm:$0xf] }
 0x27c   : > { %v5358_v7 = vsel %vm14306_vm8, %v5356_v26, %v5357_v37  ;;  %v5368_v58 = vrot.slane %v13787_v43, 5  ;;  %v5365_v48 = vsel %vm14306_vm8, %v5363_v56, %v5364_v57  ;;  %v5284_v56 = vld [vmem:[#allocation2 + $0x3c] sm:$0xe] }
 0x27d   : > { %v15642_v1 = vpop.f32.mrf.mxu0  ;;  %18729 = vst [vmem:[#allocation77_spill] sm:$0xff] %v15650_v54  ;;  %v11542_v43 = vcombine.low %v5355_v22, %v5358_v7  ;;  %v5285_v7 = vld [vmem:[#allocation2 + $0x48] sm:$0xe] }
 0x27e   : > { %18728 = vst [vmem:[#allocation76_spill] sm:$0xff] %v15642_v1  ;;  %v12574_v1 = vpop.f32.mrf.mxu1 }
 0x27f   : > { %12789 = vmatmul.mubr.bf16.gmra.mxu1 %v13596_v44  ;;  %v2697_v47 = vadd.f32 %v12574_v1, %v15348_v18  ;;  %v5375_v18 = vrot.slane %v13788_v63, 5 }
 0x280   : > { %v12626_v61 = vpop.f32.mrf.mxu0  ;;  %12856 = vmatprep.mubr.bf16.mxu1 %v11541_v41  ;;  %v2580_v6 = vpop.f32.mrf.mxu1  ;;  %v11527_v41 = vrot.slane %v5283_v17, 9 }
 0x281   : > { %v2695_v44 = vadd.f32 %v2580_v6, %v15367_v0  ;;  %v15658_v54 = vadd.f32 %v12622_v19, %v2697_v47  ;;  %v5370_v47 = vrot.slane %v5368_v58, 4  ;;  %v5377_v59 = vrot.slane %v5375_v18, 4 }
 0x282   : > { %v3097_v36 = vpop.f32.mrf.mxu0  ;;  %v12575_v1 = vpop.f32.mrf.mxu1  ;;  %v5362_v0 = vsel %vm14306_vm8, %v11527_v41, %v5361_v33  ;;  %v11528_v41 = vrot.slane %v5284_v56, 9 }
 0x283   : > { %v2698_v26 = vadd.f32 %v12575_v1, %v15382_v32  ;;  %v15667_v37 = vadd.f32 %v3081_v38, %v2695_v44  ;;  %v11543_v19 = vcombine.low %v5362_v0, %v5365_v48  ;;  %v13789_v32 = vld [vmem:[#allocation2 + $0x44] sm:$0x1]  ;;  %v5378_v48 = vrot.slane %v15287_v31, 5 }
 0x284   : > { %v12627_v2 = vpop.f32.mrf.mxu0  ;;  %v2583_v6 = vpop.f32.mrf.mxu1  ;;  %v5371_v38 = vrot.slane %v13789_v32, 5  ;;  %v5369_v31 = vsel %vm14306_vm8, %v11528_v41, %v5368_v58 }
 0x285   : > { %v15672_v63 = vadd.f32 %v2583_v6, %v15388_v14  ;;  %v15674_v57 = vadd.f32 %v12623_v50, %v2698_v26  ;;  %v13790_v50 = vld [vmem:[#allocation2 + $0x58] sm:$0xf]  ;;  %v11529_v6 = vrot.slane %v5285_v7, 9 }
 0x286   : > { %v15664_v12 = vpop.f32.mrf.mxu0  ;;  %v12578_v10 = vpop.f32.mrf.mxu1  ;;  %v5372_v14 = vsel %vm14306_vm8, %v5370_v47, %v5371_v38  ;;  %v5382_v26 = vrot.slane %v13790_v50, 5 }
 0x287   : > { %12857 = vmatmul.mubr.bf16.vlgmr.msra.gmra.mxu1 %v11542_v43  ;;  %v2701_v33 = vadd.f32 %v12578_v10, %v15403_v51  ;;  %v5389_v51 = vrot.slane %v15303_v9, 5  ;;  %v11544_v38 = vcombine.low %v5369_v31, %v5372_v14 }
 0x288   : > { %v12630_v17 = vpop.f32.mrf.mxu0  ;;  %12860 = vmatprep.mubr.bf16.mxu1 %v11543_v19  ;;  %v2596_v1 = vpop.f32.mrf.mxu1  ;;  %v5379_v19 = vsel %vm14306_vm8, %v5377_v59, %v5378_v48  ;;  %v5286_v59 = vld [vmem:[#allocation2 + $0x54] sm:$0xe]  ;;  %v5384_v9 = vrot.slane %v5382_v26, 4 }
 0x289   : > { %v2699_v43 = vadd.f32 %v2596_v1, %v15416_v46  ;;  %v15681_v0 = vadd.f32 %v12626_v61, %v2701_v33  ;;  %v5376_v46 = vsel %vm14306_vm8, %v11529_v6, %v5375_v18  ;;  %v5391_v41 = vrot.slane %v5389_v51, 4  ;;  %v5287_v1 = vld [vmem:[#allocation2 + $0x60] sm:$0xe] }
 0x28a   : > { %v3113_v44 = vpop.f32.mrf.mxu0  ;;  %v12579_v56 = vpop.f32.mrf.mxu1  ;;  %v11545_v7 = vcombine.low %v5376_v46, %v5379_v19  ;;  %v11530_v50 = vrot.slane %v5286_v59, 9  ;;  %v5288_v19 = vld [vmem:[#allocation2 + $0x6c] sm:$0xe] }
 0x28b   : > { %v2702_v47 = vadd.f32 %v12579_v56, %v15425_v25  ;;  %v15691_v32 = vadd.f32 %v3097_v36, %v2699_v43  ;;  %v5385_v36 = vrot.slane %v15311_v40, 5  ;;  %v5392_v43 = vrot.slane %v15328_v55, 5 }
 0x28c   : > { %v12631_v22 = vpop.f32.mrf.mxu0  ;;  %v2599_v61 = vpop.f32.mrf.mxu1  ;;  %v5396_v56 = vrot.slane %v15336_v13, 5  ;;  %v5383_v46 = vsel %vm14306_vm8, %v11530_v50, %v5382_v26  ;;  %v5406_v50 = vrot.slane %v15401_v15, 5 }
 0x28d   : > { %v15698_v48 = vadd.f32 %v2599_v61, %v15446_v53  ;;  %v15700_v58 = vadd.f32 %v12627_v2, %v2702_v47  ;;  %v5386_v53 = vsel %vm14306_vm8, %v5384_v9, %v5385_v36  ;;  %v11531_v47 = vrot.slane %v5287_v1, 9 }
 0x28e   : > { %v15688_v10 = vpop.f32.mrf.mxu0  ;;  %v11532_v9 = vrot.slane %v5288_v19, 9  ;;  %v5398_v1 = vrot.slane %v5396_v56, 4 }
 0x28f   : > { %12861 = vmatmul.mubr.bf16.gmra.mxu1 %v11544_v38  ;;  %v12582_v25 = vpop.f32.mrf.mxu1  ;;  %v5403_v38 = vrot.slane %v15365_v5, 5 }
 0x290   : > { %v15695_v33 = vpop.f32.mrf.mxu0  ;;  %12864 = vmatprep.mubr.bf16.mxu1 %v11545_v7  ;;  %v2705_v18 = vadd.f32 %v12582_v25, %v15505_v21  ;;  %v5393_v21 = vsel %vm14306_vm8, %v5391_v41, %v5392_v43  ;;  %v5289_v7 = vld [vmem:[#allocation2 + $0x78] sm:$0xe]  ;;  %v5399_v41 = vrot.slane %v15356_v45, 5  ;;  %v5397_v45 = vsel %vm14306_vm8, %v11532_v9, %v5396_v56 }
 0x291   : > { %v2612_v6 = vpop.f32.mrf.mxu1  ;;  %v18734_v56 = vld [vmem:[#allocation67_spill] sm:$0xff] }
 0x292   : > { %v15703_v14 = vpop.f32.mrf.mxu0  ;;  %v2703_v31 = vadd.f32 %v2612_v6, %v15515_v8  ;;  %v15713_v40 = vadd.f32 %v12630_v17, %v2705_v18  ;;  %v11546_v8 = vcombine.low %v5383_v46, %v5386_v53  ;;  %v5390_v17 = vsel %vm14306_vm8, %v11531_v47, %v5389_v51  ;;  %v18731_v53 = vld [vmem:[#allocation54_spill] sm:$0xff]  ;;  %v18732_v47 = vld [vmem:[#allocation55_spill] sm:$0xff] }
 0x293   : > { %v12583_v55 = vpop.f32.mrf.mxu1  ;;  %v11547_v5 = vcombine.low %v5390_v17, %v5393_v21  ;;  %v5400_v43 = vsel %vm14306_vm8, %v5398_v1, %v5399_v41  ;;  %v5417_v21 = vrot.slane %v18732_v47, 5  ;;  %v18735_v17 = vld [vmem:[#allocation56_spill] sm:$0xff]  ;;  %v18737_v47 = vld [vmem:[#allocation57_spill] sm:$0xff] }
 0x294   : > { %v15709_v2 = vpop.f32.mrf.mxu0  ;;  %v2706_v59 = vadd.f32 %v12583_v55, %v15524_v49  ;;  %v15723_v13 = vadd.f32 %v3113_v44, %v2703_v31  ;;  %v11533_v49 = vrot.slane %v5289_v7, 9  ;;  %v5405_v44 = vrot.slane %v5403_v38, 4  ;;  %v5291_v7 = vld [vmem:[#allocation2 + $0x90] sm:$0xe]  ;;  %v18736_v1 = vld [vmem:[#allocation68_spill] sm:$0xff] }
 0x295   : > { %v2615_v25 = vpop.f32.mrf.mxu1  ;;  %v5413_v9 = vrot.slane %v18735_v17, 5 }
 0x296   : > { %v15720_v61 = vpop.f32.mrf.mxu0  ;;  %v15731_v26 = vadd.f32 %v2615_v25, %v15535_v20  ;;  %v15733_v18 = vadd.f32 %v12631_v22, %v2706_v59  ;;  %v5290_v20 = vld [vmem:[#allocation2 + $0x84] sm:$0xe]  ;;  %v5410_v22 = vrot.slane %v18731_v53, 5  ;;  %v5404_v19 = vsel %vm14306_vm8, %v11533_v49, %v5403_v38 }
 0x297   : > { %18730 = vst [vmem:[#allocation78_spill] sm:$0xff] %v15720_v61  ;;  %12865 = vmatmul.mubr.bf16.gmra.mxu1 %v11546_v8  ;;  %v5407_v15 = vsel %vm14306_vm8, %v5405_v44, %v5406_v50  ;;  %v11548_v59 = vcombine.low %v5397_v45, %v5400_v43  ;;  %v11534_v8 = vrot.slane %v5290_v20, 9  ;;  %v11535_v50 = vrot.slane %v5291_v7, 9  ;;  %v18738_v7 = vld [vmem:[#allocation58_spill] sm:$0xff]  ;;  %v18745_v61 = vld [vmem:[#allocation65_spill] sm:$0xff] }
 0x298   : > { %v15728_v36 = vpop.f32.mrf.mxu0  ;;  %12868 = vmatprep.mubr.bf16.mxu1 %v11547_v5  ;;  %v11549_v25 = vcombine.low %v5404_v19, %v5407_v15  ;;  %v5412_v38 = vrot.slane %v5410_v22, 4  ;;  %v5419_v53 = vrot.slane %v5417_v21, 4 }
 0x299   : > { %v5411_v19 = vsel %vm14306_vm8, %v11534_v8, %v5410_v22  ;;  %v18739_v22 = vld [vmem:[#allocation59_spill] sm:$0xff] }
 0x29a   : > { %v15736_v51 = vpop.f32.mrf.mxu0  ;;  %v5431_v8 = vrot.slane %v18739_v22, 5 }
 0x29b   : > { %v12586_v31 = vpop.f32.mrf.mxu1 }
 0x29c   : > { %v15742_v6 = vpop.f32.mrf.mxu0  ;;  %v2709_v46 = vadd.f32 %v12586_v31, %v18734_v56  ;;  %v5420_v31 = vrot.slane %v18737_v47, 5 }
 0x29d   : > { %v2628_v41 = vpop.f32.mrf.mxu1 }
 0x29e   : > { %v15750_v55 = vpop.f32.mrf.mxu0  ;;  %v2707_v49 = vadd.f32 %v2628_v41, %v18736_v1  ;;  %v15758_v44 = vadd.f32 %v15695_v33, %v2709_v46  ;;  %v5414_v33 = vsel %vm14306_vm8, %v5412_v38, %v5413_v9  ;;  %v5292_v46 = vld [vmem:[#allocation2 + $0x9c] sm:$0xe]  ;;  %v5293_v9 = vld [vmem:[#allocation2 + $0xa8] sm:$0xe] }
 0x29f   : > { %18733 = vst [vmem:[#allocation54_spill] sm:$0xff] %v15750_v55  ;;  %12869 = vmatmul.mubr.bf16.gmra.mxu1 %v11548_v59  ;;  %v12587_v56 = vpop.f32.mrf.mxu1  ;;  %v5424_v59 = vrot.slane %v18738_v7, 5  ;;  %v11550_v38 = vcombine.low %v5411_v19, %v5414_v33  ;;  %v11536_v1 = vrot.slane %v5292_v46, 9  ;;  %v5433_v7 = vrot.slane %v5431_v8, 4 }
 0x2a0   : > { %v15754_v5 = vpop.f32.mrf.mxu0  ;;  %12872 = vmatprep.mubr.bf16.mxu1 %v11549_v25  ;;  %v2710_v43 = vadd.f32 %v12587_v56, %v15570_v3  ;;  %v15765_v20 = vadd.f32 %v15703_v14, %v2707_v49  ;;  %v5418_v3 = vsel %vm14306_vm8, %v11535_v50, %v5417_v21  ;;  %v5421_v14 = vsel %vm14306_vm8, %v5419_v53, %v5420_v31  ;;  %v18741_v56 = vld [vmem:[#allocation60_spill] sm:$0xff]  ;;  %v18742_v53 = vld [vmem:[#allocation61_spill] sm:$0xff] }
 0x2a1   : > { %v15781_v41 = vpop.f32.mrf.mxu1  ;;  %v11551_v49 = vcombine.low %v5418_v3, %v5421_v14  ;;  %v11537_v50 = vrot.slane %v5293_v9, 9  ;;  %v5434_v31 = vrot.slane %v18742_v53, 5  ;;  %v5425_v19 = vsel %vm14306_vm8, %v11536_v1, %v5424_v59  ;;  %v5294_v9 = vld [vmem:[#allocation2 + $0xb4] sm:$0xe] }
 0x2a2   : > { %v15761_v45 = vpop.f32.mrf.mxu0  ;;  %v15775_v17 = vadd.f32 %v15709_v2, %v2710_v43  ;;  %v5426_v2 = vrot.slane %v5424_v59, 4  ;;  %v5427_v43 = vrot.slane %v18741_v56, 5 }
 0x2a3   : > { %v5435_v59 = vsel %vm14306_vm8, %v5433_v7, %v5434_v31 }
 0x2a4   : > { %v15771_v15 = vpop.f32.mrf.mxu0  ;;  %v5428_v46 = vsel %vm14306_vm8, %v5426_v2, %v5427_v43 }
 0x2a6   : > { %v15784_v25 = vpop.f32.mrf.mxu0 }
 0x2a7   : > { %18740 = vst [vmem:[#allocation55_spill] sm:$0xff] %v15784_v25  ;;  %12873 = vmatmul.mubr.bf16.gmra.mxu1 %v11550_v38  ;;  %v12590_v21 = vpop.f32.mrf.mxu1  ;;  %v18743_v38 = vld [vmem:[#allocation62_spill] sm:$0xff] }
 0x2a8   : > { %v15786_v47 = vpop.f32.mrf.mxu0  ;;  %12876 = vmatprep.mubr.bf16.mxu1 %v11551_v49  ;;  %v2713_v22 = vadd.f32 %v12590_v21, %v15579_v23  ;;  %v5438_v56 = vrot.slane %v18743_v38, 5  ;;  %v5432_v23 = vsel %vm14306_vm8, %v11537_v50, %v5431_v8  ;;  %v18744_v21 = vld [vmem:[#allocation63_spill] sm:$0xff]  ;;  %v11538_v38 = vrot.slane %v5294_v9, 9 }
 0x2a9   : > { %v2644_v33 = vpop.f32.mrf.mxu1  ;;  %v5445_v53 = vrot.slane %v18744_v21, 5  ;;  %v11553_v25 = vcombine.low %v5432_v23, %v5435_v59  ;;  %v5441_v8 = vrot.slane %v18745_v61, 5 }
 0x2aa   : > { %v15791_v55 = vpop.f32.mrf.mxu0  ;;  %v2711_v3 = vadd.f32 %v2644_v33, %v15591_v27  ;;  %v15802_v49 = vadd.f32 %v15728_v36, %v2713_v22  ;;  %v5295_v27 = vld [vmem:[#allocation2 + $0xc0] sm:$0xe]  ;;  %v11552_v33 = vcombine.low %v5425_v19, %v5428_v46  ;;  %v5440_v22 = vrot.slane %v5438_v56, 4 }
 0x2ab   : > { %v12591_v1 = vpop.f32.mrf.mxu1  ;;  %v11539_v31 = vrot.slane %v5295_v27, 9  ;;  %v5439_v19 = vsel %vm14306_vm8, %v11538_v38, %v5438_v56 }
 0x2ac   : > { %v15798_v14 = vpop.f32.mrf.mxu0  ;;  %v2714_v2 = vadd.f32 %v12591_v1, %v15595_v16  ;;  %v15811_v43 = vadd.f32 %v15736_v51, %v2711_v3  ;;  %v5447_v16 = vrot.slane %v5445_v53, 4  ;;  %v18746_v1 = vld [vmem:[#allocation66_spill] sm:$0xff]  ;;  %v5442_v46 = vsel %vm14306_vm8, %v5440_v22, %v5441_v8 }
 0x2ad   : > { %v15819_v7 = vpop.f32.mrf.mxu1  ;;  %v5448_v21 = vrot.slane %v18746_v1, 5  ;;  %v11554_v59 = vcombine.low %v5439_v19, %v5442_v46  ;;  %v18747_v1 = vcombine.low %v15629_v29, %v15634_v30 }
 0x2ae   : > { %v15813_v36 = vpop.f32.mrf.mxu0  ;;  %v15817_v50 = vadd.f32 %v15742_v6, %v2714_v2  ;;  %v5446_v6 = vsel %vm14306_vm8, %v11539_v31, %v5445_v53  ;;  %v13597_v31 = vld [vmem:[#allocation10 + $0x38] sm:$0xff]  }
 0x2af   : > { %12877 = vmatmul.mubr.bf16.gmra.mxu1 %v11552_v33  ;;  %v5449_v3 = vsel %vm14306_vm8, %v5447_v16, %v5448_v21  ;;  %12888 = vmatprep.subr.bf16.mxu0 %v13597_v31 }
 0x2b0   : > { %12880 = vmatprep.mubr.bf16.mxu1 %v11553_v25  ;;  %v11555_v2 = vcombine.low %v5446_v6, %v5449_v3  ;;  %12889 = vmatpush3.bf16.msra.mxu0 %v13597_v31 }
 0x2b3   : > { %v15822_v51 = vpop.f32.mrf.mxu0  ;;  %v12594_v61 = vpop.f32.mrf.mxu1 }
 0x2b4   : > { %v2717_v9 = vadd.f32 %v12594_v61, %v15604_v24  ;;  %v13598_v61 = vld [vmem:[#allocation10 + $0x30] sm:$0xff]  }
 0x2b5   : > { %v3981_v23 = vpop.f32.mrf.mxu0  ;;  %v2660_v25 = vpop.f32.mrf.mxu1  ;;  %12890 = vmatprep.subr.bf16.mxu0 %v13598_v61 }
 0x2b6   : > { %v2715_v27 = vadd.f32 %v2660_v25, %v15606_v62  ;;  %v15837_v56 = vadd.f32 %v15754_v5, %v2717_v9  ;;  %12891 = vmatpush3.bf16.msra.mxu0 %v13598_v61 }
 0x2b7   : > { %v15834_v33 = vpop.f32.mrf.mxu0  ;;  %12881 = vmatmul.mubr.bf16.gmra.mxu1 %v11554_v59  ;;  %v12595_v38 = vpop.f32.mrf.mxu1 }
 0x2b8   : > { %12884 = vmatprep.mubr.bf16.mxu1 %v11555_v2  ;;  %v2718_v53 = vadd.f32 %v12595_v38, %v15610_v35  ;;  %v15841_v22 = vadd.f32 %v15761_v45, %v2715_v27 }
 0x2b9   : > { %v15843_v24 = vpop.f32.mrf.mxu0  ;;  %v15848_v62 = vpop.f32.mrf.mxu1 }
 0x2ba   : > { %v15846_v8 = vadd.f32 %v15771_v15, %v2718_v53 }
 0x2be   : > { %v15850_v5 = vpop.f32.mrf.mxu0 }
 0x2bf   : > { %v12598_v16 = vpop.f32.mrf.mxu1  ;;  %12885 = vmatmul.mubr.bf16.gmra.mxu1 %v18747_v1 }
 0x2c0   : > { %v2721_v35 = vadd.f32 %v12598_v16, %v15614_v60  ;;  %v3997_v45 = vpop.f32.mrf.mxu0 }
 0x2c1   : > { %v2676_v21 = vpop.f32.mrf.mxu1 }
 0x2c2   : > { %v2719_v19 = vadd.f32 %v2676_v21, %v15616_v39  ;;  %v15857_v15 = vpop.f32.mrf.mxu0  ;;  %v15860_v46 = vadd.f32 %v15786_v47, %v2721_v35 }
 0x2c3   : > { %v12599_v6 = vpop.f32.mrf.mxu1 }
 0x2c4   : > { %v2722_v3 = vadd.f32 %v12599_v6, %v15620_v4  ;;  %v15863_v9 = vpop.f32.mrf.mxu0  ;;  %v15866_v29 = vadd.f32 %v15791_v55, %v2719_v19 }
 0x2c5   : > { %18748 = vst [vmem:[#allocation67_spill] sm:$0xff] %v15863_v9  ;;  %v15868_v60 = vpop.f32.mrf.mxu1 }
 0x2c6   : > { %v15870_v30 = vpop.f32.mrf.mxu0  ;;  %v15873_v39 = vadd.f32 %v15798_v14, %v2722_v3 }
 0x2c7   : > { %18749 = vst [vmem:[#allocation56_spill] sm:$0xff] %v15870_v30  ;;  %v12666_v47 = vpop.f32.mrf.mxu1 }
 0x2c8   : > { %v15876_v59 = vadd.f32 %v12666_v47, %v15636_v52  ;;  %v4013_v25 = vpop.f32.mrf.mxu0 }
 0x2c9   : > { %v3451_v4 = vpop.f32.mrf.mxu1 }
 0x2ca   : > { %v3578_v2 = vadd.f32 %v3451_v4, %v15645_v28  ;;  %v15879_v27 = vpop.f32.mrf.mxu0 }
 0x2cb   : > { %18750 = vst [vmem:[#allocation68_spill] sm:$0xff] %v15879_v27  ;;  %v12667_v55 = vpop.f32.mrf.mxu1 }
 0x2cc   : > { %v15882_v38 = vadd.f32 %v12667_v55, %v15652_v42  ;;  %v15884_v53 = vpop.f32.mrf.mxu0  ;;  %v15886_v31 = vadd.f32 %v3981_v23, %v3578_v2 }
 0x2cd   : > { %18751 = vst [vmem:[#allocation57_spill] sm:$0xff] %v15884_v53  ;;  %v15888_v14 = vpop.f32.mrf.mxu1 }
 0x2ce   : > { %v15890_v16 = vpop.f32.mrf.mxu0 }
 0x2cf   : > { %18752 = vst [vmem:[#allocation58_spill] sm:$0xff] %v15890_v16  ;;  %v12670_v52 = vpop.f32.mrf.mxu1 }
 0x2d0   : > { %v15893_v1 = vadd.f32 %v12670_v52, %v15658_v54  ;;  %v4029_v35 = vpop.f32.mrf.mxu0 }
 0x2d1   : > { %v3467_v28 = vpop.f32.mrf.mxu1 }
 0x2d2   : > { %v3582_v21 = vadd.f32 %v3467_v28, %v15667_v37  ;;  %v12727_v19 = vpop.f32.mrf.mxu0 }
 0x2d3   : > { %v12671_v61 = vpop.f32.mrf.mxu1 }
 0x2d4   : > { %v15897_v42 = vadd.f32 %v12671_v61, %v15674_v57  ;;  %v15899_v6 = vpop.f32.mrf.mxu0  ;;  %v15901_v23 = vadd.f32 %v3997_v45, %v3582_v21 }
 0x2d5   : > { %18753 = vst [vmem:[#allocation59_spill] sm:$0xff] %v15899_v6  ;;  %v15903_v3 = vpop.f32.mrf.mxu1 }
 0x2d6   : > { %v12730_v47 = vpop.f32.mrf.mxu0 }
 0x2d7   : > { %v12674_v4 = vpop.f32.mrf.mxu1 }
 0x2d8   : > { %v15906_v54 = vadd.f32 %v12674_v4, %v15681_v0  ;;  %v4045_v2 = vpop.f32.mrf.mxu0 }
 0x2d9   : > { %v3483_v55 = vpop.f32.mrf.mxu1 }
 0x2da   : > { %18754 = vst [vmem:[#allocation60_spill] sm:$0xff] %v15906_v54  ;;  %v3586_v37 = vadd.f32 %v3483_v55, %v15691_v32  ;;  %v12731_v52 = vpop.f32.mrf.mxu0 }
 0x2db   : > { %v12675_v28 = vpop.f32.mrf.mxu1 }
 0x2dc   : > { %v15910_v57 = vadd.f32 %v12675_v28, %v15700_v58  ;;  %v15912_v61 = vpop.f32.mrf.mxu0  ;;  %v15914_v45 = vadd.f32 %v4013_v25, %v3586_v37 }
 0x2dd   : > { %18756 = vst [vmem:[#allocation62_spill] sm:$0xff] %v15912_v61  ;;  %v15916_v21 = vpop.f32.mrf.mxu1 }
 0x2de   : > { %18755 = vst [vmem:[#allocation61_spill] sm:$0xff] %v15910_v57  ;;  %v12734_v11 = vpop.f32.mrf.mxu0 }
 0x2df   : > { %v12678_v6 = vpop.f32.mrf.mxu1 }
 0x2e0   : > { %v15919_v0 = vadd.f32 %v12678_v6, %v15713_v40  ;;  %v4061_v4 = vpop.f32.mrf.mxu0 }
 0x2e1   : > { %v3499_v16 = vpop.f32.mrf.mxu1 }
 0x2e2   : > { %18757 = vst [vmem:[#allocation63_spill] sm:$0xff] %v15919_v0  ;;  %v3590_v32 = vadd.f32 %v3499_v16, %v15723_v13  ;;  %v12735_v55 = vpop.f32.mrf.mxu0 }
 0x2e3   : > { %v12679_v53 = vpop.f32.mrf.mxu1 }
 0x2e4   : > { %v3593_v58 = vadd.f32 %v12679_v53, %v15733_v18  ;;  %v15923_v28 = vpop.f32.mrf.mxu0  ;;  %v15925_v61 = vadd.f32 %v4029_v35, %v3590_v32  ;;  %v13599_v18 = vld [vmem:[#allocation10 + $0x28] sm:$0xff]   ;;  %v13600_v53 = vld [vmem:[#allocation10 + $0x138] sm:$0xff]  }
 0x2e5   : > { %18758 = vst [vmem:[#allocation65_spill] sm:$0xff] %v15923_v28  ;;  %v15927_v25 = vpop.f32.mrf.mxu1  ;;  %12892 = vmatprep.subr.bf16.mxu0 %v13599_v18  ;;  %12936 = vmatprep.subr.bf16.mxu1 %v13600_v53 }
 0x2e6   : > { %v12738_v37 = vpop.f32.mrf.mxu0  ;;  %v15929_v27 = vadd.f32 %v12727_v19, %v3593_v58  ;;  %12893 = vmatpush3.bf16.msra.mxu0 %v13599_v18  ;;  %12937 = vmatpush3.bf16.msra.mxu1 %v13600_v53 }
 0x2e7   : > { %v12682_v57 = vpop.f32.mrf.mxu1 }
 0x2e8   : > { %v3596_v40 = vadd.f32 %v12682_v57, %v15758_v44  ;;  %v4077_v6 = vpop.f32.mrf.mxu0 }
 0x2e9   : > { %v3515_v0 = vpop.f32.mrf.mxu1 }
 0x2ea   : > { %v3594_v13 = vadd.f32 %v3515_v0, %v15765_v20  ;;  %v12739_v16 = vpop.f32.mrf.mxu0  ;;  %v15933_v30 = vadd.f32 %v12730_v47, %v3596_v40  ;;  %v13601_v47 = vld [vmem:[#allocation10 + $0x130] sm:$0xff]  }
 0x2eb   : > { %v12683_v28 = vpop.f32.mrf.mxu1  ;;  %12938 = vmatprep.subr.bf16.mxu1 %v13601_v47 }
 0x2ec   : > { %v3597_v35 = vadd.f32 %v12683_v28, %v15775_v17  ;;  %v15936_v32 = vpop.f32.mrf.mxu0  ;;  %v15938_v54 = vadd.f32 %v4045_v2, %v3594_v13  ;;  %12939 = vmatpush3.bf16.msra.mxu1 %v13601_v47 }
 0x2ed   : > { %18759 = vst [vmem:[#allocation66_spill] sm:$0xff] %v15936_v32  ;;  %v15940_v19 = vpop.f32.mrf.mxu1  ;;  %v13603_v32 = vld [vmem:[#allocation10 + $0x128] sm:$0xff]  }
 0x2ee   : > { %v12742_v44 = vpop.f32.mrf.mxu0  ;;  %v15942_v20 = vadd.f32 %v12731_v52, %v3597_v35  ;;  %v13602_v35 = vld [vmem:[#allocation10 + $0x20] sm:$0xff]   ;;  %12940 = vmatprep.subr.bf16.mxu1 %v13603_v32 }
 0x2ef   : > { %v12686_v57 = vpop.f32.mrf.mxu1  ;;  %12894 = vmatprep.subr.bf16.mxu0 %v13602_v35 }
 0x2f0   : > { %v3600_v0 = vadd.f32 %v12686_v57, %v15802_v49  ;;  %v4093_v58 = vpop.f32.mrf.mxu0  ;;  %12895 = vmatpush3.bf16.msra.mxu0 %v13602_v35  ;;  %12941 = vmatpush3.bf16.msra.mxu1 %v13603_v32 }
 0x2f1   : > { %v3531_v17 = vpop.f32.mrf.mxu1 }
 0x2f2   : > { %v3598_v2 = vadd.f32 %v3531_v17, %v15811_v43  ;;  %v12743_v28 = vpop.f32.mrf.mxu0  ;;  %v15946_v40 = vadd.f32 %v12734_v11, %v3600_v0  ;;  %v13604_v11 = vld [vmem:[#allocation10 + $0x120] sm:$0xff]  }
 0x2f3   : > { %v12687_v13 = vpop.f32.mrf.mxu1  ;;  %12942 = vmatprep.subr.bf16.mxu1 %v13604_v11 }
 0x2f4   : > { %v3601_v18 = vadd.f32 %v12687_v13, %v15817_v50  ;;  %v15949_v53 = vpop.f32.mrf.mxu0  ;;  %v15951_v52 = vadd.f32 %v4061_v4, %v3598_v2  ;;  %12943 = vmatpush3.bf16.msra.mxu1 %v13604_v11  ;;  %v13605_v13 = vld [vmem:[#allocation10 + $0x18] sm:$0xff]   ;;  %v13607_v11 = vld [vmem:[#allocation10 + $0x110] sm:$0xff]  }
 0x2f5   : > { %18760 = vst [vmem:[#allocation79_spill] sm:$0xff] %v15949_v53  ;;  %v15953_v9 = vpop.f32.mrf.mxu1  ;;  %12896 = vmatprep.subr.bf16.mxu0 %v13605_v13 }
 0x2f6   : > { %v15955_v49 = vpop.f32.mrf.mxu0  ;;  %v15957_v57 = vadd.f32 %v12735_v55, %v3601_v18  ;;  %v13606_v18 = vld [vmem:[#allocation10 + $0x118] sm:$0xff]   ;;  %12897 = vmatpush3.bf16.msra.mxu0 %v13605_v13 }
 0x2f7   : > { %v12690_v43 = vpop.f32.mrf.mxu1  ;;  %12944 = vmatprep.subr.bf16.mxu1 %v13606_v18 }
 0x2f8   : > { %v3604_v50 = vadd.f32 %v12690_v43, %v15837_v56  ;;  %v15960_v47 = vpop.f32.mrf.mxu0  ;;  %12945 = vmatpush3.bf16.msra.mxu1 %v13606_v18 }
 0x2f9   : > { %v3547_v4 = vpop.f32.mrf.mxu1  ;;  %12946 = vmatprep.subr.bf16.mxu1 %v13607_v11 }
 0x2fa   : > { %v3602_v0 = vadd.f32 %v3547_v4, %v15841_v22  ;;  %v15963_v17 = vpop.f32.mrf.mxu0  ;;  %v15965_v2 = vadd.f32 %v12738_v37, %v3604_v50 }
 0x2fb   : > { %18761 = vst [vmem:[#allocation80_spill] sm:$0xff] %v15963_v17  ;;  %v12691_v55 = vpop.f32.mrf.mxu1 }
 0x2fc   : > { %v3605_v35 = vadd.f32 %v12691_v55, %v15846_v8  ;;  %v15968_v32 = vpop.f32.mrf.mxu0  ;;  %v15970_v53 = vadd.f32 %v4077_v6, %v3602_v0  ;;  %12947 = vmatpush3.bf16.msra.mxu1 %v13607_v11 }
 0x2fd   : > { %18762 = vst [vmem:[#allocation81_spill] sm:$0xff] %v15968_v32  ;;  %v15972_v56 = vpop.f32.mrf.mxu1 }
 0x2fe   : > { %v15974_v43 = vpop.f32.mrf.mxu0  ;;  %v15976_v22 = vadd.f32 %v12739_v16, %v3605_v35  ;;  %v13608_v16 = vld [vmem:[#allocation10 + $0x10] sm:$0xff]   ;;  %v13609_v35 = vld [vmem:[#allocation10 + $0x108] sm:$0xff]  }
 0x2ff   : > { %18763 = vst [vmem:[#allocation82_spill] sm:$0xff] %v15974_v43  ;;  %v12694_v37 = vpop.f32.mrf.mxu1  ;;  %12898 = vmatprep.subr.bf16.mxu0 %v13608_v16  ;;  %12948 = vmatprep.subr.bf16.mxu1 %v13609_v35 }
 0x300   : > { %v3608_v50 = vadd.f32 %v12694_v37, %v15860_v46  ;;  %v15979_v4 = vpop.f32.mrf.mxu0  ;;  %12899 = vmatpush3.bf16.msra.mxu0 %v13608_v16  ;;  %12949 = vmatpush3.bf16.msra.mxu1 %v13609_v35 }
 0x301   : > { %18764 = vst [vmem:[#allocation83_spill] sm:$0xff] %v15979_v4  ;;  %v3563_v8 = vpop.f32.mrf.mxu1 }
 0x302   : > { %v3606_v6 = vadd.f32 %v3563_v8, %v15866_v29  ;;  %v15982_v0 = vpop.f32.mrf.mxu0  ;;  %v15984_v55 = vadd.f32 %v12742_v44, %v3608_v50 }
 0x303   : > { %18765 = vst [vmem:[#allocation84_spill] sm:$0xff] %v15982_v0  ;;  %v12695_v32 = vpop.f32.mrf.mxu1 }
 0x304   : > { %v3609_v13 = vadd.f32 %v12695_v32, %v15873_v39  ;;  %v15987_v18 = vpop.f32.mrf.mxu0  ;;  %v15989_v43 = vadd.f32 %v4093_v58, %v3606_v6  ;;  %v13610_v32 = vld [vmem:[#allocation10 + $0x100] sm:$0xff]  }
 0x305   : > { %18766 = vst [vmem:[#allocation85_spill] sm:$0xff] %v15987_v18  ;;  %v15991_v46 = vpop.f32.mrf.mxu1  ;;  %12950 = vmatprep.subr.bf16.mxu1 %v13610_v32 }
 0x306   : > { %v15993_v37 = vpop.f32.mrf.mxu0  ;;  %v15995_v29 = vadd.f32 %v12743_v28, %v3609_v13  ;;  %12951 = vmatpush3.bf16.msra.mxu1 %v13610_v32 }
 0x307   : > { %18767 = vst [vmem:[#allocation86_spill] sm:$0xff] %v15993_v37  ;;  %v15997_v44 = vpop.f32.mrf.mxu1 }
 0x308   : > { %v15999_v11 = vpop.f32.mrf.mxu0 }
 0x309   : > { %18768 = vst [vmem:[#allocation87_spill] sm:$0xff] %v15999_v11  ;;  %v4368_v50 = vpop.f32.mrf.mxu1  ;;  %v13611_v11 = vld [vmem:[#allocation10 + $0x8] sm:$0xff]  }
 0x30a   : > { %v16002_v39 = vadd.f32 %v4368_v50, %v15886_v31  ;;  %v16004_v58 = vpop.f32.mrf.mxu0  ;;  %12900 = vmatprep.subr.bf16.mxu0 %v13611_v11 }
 0x30b   : > { %18769 = vst [vmem:[#allocation88_spill] sm:$0xff] %v16004_v58  ;;  %v16006_v8 = vpop.f32.mrf.mxu1  ;;  %12901 = vmatpush3.bf16.msra.mxu0 %v13611_v11 }
 0x30c   : > { %v16008_v6 = vpop.f32.mrf.mxu0 }
 0x30d   : > { %18770 = vst [vmem:[#allocation89_spill] sm:$0xff] %v16008_v6  ;;  %v16010_v28 = vpop.f32.mrf.mxu1 }
 0x30e   : > { %v16014_v35 = vpop.f32.mrf.mxu0 }
 0x30f   : > { %v16012_v16 = vpop.f32.mrf.mxu1  ;;  %18771 = vst [vmem:[#allocation90_spill] sm:$0xff] %v16014_v35 }
 0x310   : > { %v16019_v50 = vpop.f32.mrf.mxu0 }
 0x311   : > { %v4384_v13 = vpop.f32.mrf.mxu1  ;;  %18773 = vst [vmem:[#allocation92_spill] sm:$0xff] %v16019_v50 }
 0x312   : > { %v16017_v31 = vadd.f32 %v4384_v13, %v15901_v23  ;;  %v16025_v37 = vpop.f32.mrf.mxu0 }
 0x313   : > { %v16021_v58 = vpop.f32.mrf.mxu1  ;;  %18774 = vst [vmem:[#allocation93_spill] sm:$0xff] %v16025_v37 }
 0x314   : > { %18772 = vst [vmem:[#allocation91_spill] sm:$0xff] %v16017_v31  ;;  %v16032_v0 = vpop.f32.mrf.mxu0 }
 0x315   : > { %v16023_v6 = vpop.f32.mrf.mxu1  ;;  %18776 = vst [vmem:[#allocation95_spill] sm:$0xff] %v16032_v0  ;;  %v13612_v0 = vld [vmem:[#allocation10] sm:$0xff]  }
 0x316   : > { %v16038_v50 = vpop.f32.mrf.mxu0  ;;  %12902 = vmatprep.subr.bf16.mxu0 %v13612_v0 }
 0x317   : > { %v16027_v32 = vpop.f32.mrf.mxu1  ;;  %18778 = vst [vmem:[#allocation97_spill] sm:$0xff] %v16038_v50  ;;  %12903 = vmatpush3.bf16.msra.mxu0 %v13612_v0 }
 0x318   : > { %v16045_v37 = vpop.f32.mrf.mxu0 }
 0x319   : > { %v4400_v18 = vpop.f32.mrf.mxu1  ;;  %18781 = vst [vmem:[#allocation100_spill] sm:$0xff] %v16045_v37 }
 0x31a   : > { %v16030_v35 = vadd.f32 %v4400_v18, %v15914_v45 }
 0x31b   : > { %v16034_v23 = vpop.f32.mrf.mxu1 }
 0x31c   : > { %18775 = vst [vmem:[#allocation94_spill] sm:$0xff] %v16030_v35  ;;  %v16052_v35 = vpop.f32.mrf.mxu0 }
 0x31d   : > { %v16036_v13 = vpop.f32.mrf.mxu1  ;;  %18783 = vst [vmem:[#allocation102_spill] sm:$0xff] %v16052_v35 }
 0x31e   : > { %18777 = vst [vmem:[#allocation96_spill] sm:$0xff] %v16036_v13 }
 0x31f   : > { %v16040_v4 = vpop.f32.mrf.mxu1 }
 0x320   : > { %18779 = vst [vmem:[#allocation98_spill] sm:$0xff] %v16040_v4 }
 0x321   : > { %v4416_v11 = vpop.f32.mrf.mxu1 }
 0x322   : > { %v16043_v31 = vadd.f32 %v4416_v11, %v15925_v61  ;;  %v16060_v11 = vpop.f32.mrf.mxu0 }
 0x323   : > { %v12775_v17 = vpop.f32.mrf.mxu1  ;;  %18785 = vst [vmem:[#allocation104_spill] sm:$0xff] %v16060_v11  ;;  %v16077_v11 = vld [vmem:[#allocation10 + $0x78] sm:$0xff]  }
 0x324   : > { %18780 = vst [vmem:[#allocation99_spill] sm:$0xff] %v16043_v31  ;;  %v16048_v45 = vadd.f32 %v12775_v17, %v15929_v27  ;;  %18791 = vst [vmem:[#allocation110_spill] sm:$0xff] %v16077_v11  ;;  %12984 = vmatprep.subr.bf16.mxu0 %v16077_v11  ;;  %v18801_v11 = vld [vmem:[#allocation75_spill] sm:$0xff] }
 0x325   : > { %v16050_v18 = vpop.f32.mrf.mxu1 }
 0x326   : > { %18782 = vst [vmem:[#allocation101_spill] sm:$0xff] %v16048_v45  ;;  %v16067_v45 = vpop.f32.mrf.mxu0 }
 0x327   : > { %v12778_v13 = vpop.f32.mrf.mxu1  ;;  %18787 = vst [vmem:[#allocation106_spill] sm:$0xff] %v16067_v45 }
 0x328   : > { %v16055_v50 = vadd.f32 %v12778_v13, %v15933_v30  ;;  %v13613_v13 = vld [vmem:[#allocation2] sm:$0xff]  }
 0x329   : > { %v4432_v4 = vpop.f32.mrf.mxu1  ;;  %12904 = vmatprep.mubr.bf16.mxu0 %v13613_v13  ;;  %v18800_v13 = vld [vmem:[#allocation70_spill] sm:$0xff] }
 0x32a   : > { %v16058_v61 = vadd.f32 %v4432_v4, %v15938_v54  ;;  %v16075_v54 = vpop.f32.mrf.mxu0 }
 0x32b   : > { %v12779_v37 = vpop.f32.mrf.mxu1  ;;  %18790 = vst [vmem:[#allocation109_spill] sm:$0xff] %v16075_v54  ;;  %v18796_v54 = vld [vmem:[#allocation64_spill] sm:$0xff] }
 0x32c   : > { %18784 = vst [vmem:[#allocation103_spill] sm:$0xff] %v16058_v61  ;;  %v16063_v27 = vadd.f32 %v12779_v37, %v15942_v20  ;;  %v18802_v61 = vld [vmem:[#allocation72_spill] sm:$0xff] }
 0x32d   : > { %v16065_v17 = vpop.f32.mrf.mxu1 }
 0x32e   : > { %18786 = vst [vmem:[#allocation105_spill] sm:$0xff] %v16063_v27 }
 0x32f   : > { %v12782_v35 = vpop.f32.mrf.mxu1 }
 0x330   : > { %v16070_v31 = vadd.f32 %v12782_v35, %v15946_v40  ;;  %v16085_v40 = vpop.f32.mrf.mxu0 }
 0x331   : > { %v4448_v30 = vpop.f32.mrf.mxu1  ;;  %18794 = vst [vmem:[#allocation113_spill] sm:$0xff] %v16085_v40  ;;  %v1955_v40 = vadd.f32 %v18802_v61, %v18801_v11  ;;  %v18805_v61 = vld [vmem:[#allocation76_spill] sm:$0xff] }
 0x332   : > { %18788 = vst [vmem:[#allocation107_spill] sm:$0xff] %v16070_v31  ;;  %v16073_v0 = vadd.f32 %v4448_v30, %v15951_v52  ;;  %v18799_v31 = vld [vmem:[#allocation73_spill] sm:$0xff]  ;;  %v3197_v11 = vadd.f32 %v18805_v61, %v15672_v63 }
 0x333   : > { %v12783_v4 = vpop.f32.mrf.mxu1  ;;  %v1939_v27 = vadd.f32 %v18800_v13, %v18799_v31 }
 0x334   : > { %18789 = vst [vmem:[#allocation108_spill] sm:$0xff] %v16073_v0  ;;  %v16080_v20 = vadd.f32 %v12783_v4, %v15957_v57  ;;  %v1907_v0 = vadd.f32 %v18796_v54, %v15574_v34  ;;  %v18797_v57 = vld [vmem:[#allocation71_spill] sm:$0xff]  ;;  %v18798_v4 = vld [vmem:[#allocation69_spill] sm:$0xff]  ;;  %v2720_v54 = vadd.f32 %v15868_v60, %v1955_v40  ;;  %v3583_v60 = vadd.f32 %v15903_v3, %v3197_v11 }
 0x335   : > { %v16082_v37 = vpop.f32.mrf.mxu1 }
 0x336   : > { %18792 = vst [vmem:[#allocation111_spill] sm:$0xff] %v16080_v20  ;;  %18793 = vst [vmem:[#allocation112_spill] sm:$0xff] %v16082_v37  ;;  %v1923_v20 = vadd.f32 %v18798_v4, %v18797_v57  ;;  %v16101_v37 = vpop.f32.mrf.mxu0  ;;  %v18804_v57 = vld [vmem:[#allocation74_spill] sm:$0xff] }
 0x337   : > { %v12786_v35 = vpop.f32.mrf.mxu1 }
 0x338   : > { %v16088_v52 = vadd.f32 %v12786_v35, %v15965_v2  ;;  %v2708_v35 = vadd.f32 %v15781_v41, %v1907_v0  ;;  %v2712_v34 = vadd.f32 %v15819_v7, %v1923_v20  ;;  %v3201_v41 = vadd.f32 %v15664_v12, %v15698_v48 }
 0x339   : > { %v4464_v30 = vpop.f32.mrf.mxu1  ;;  %v3205_v7 = vadd.f32 %v15688_v10, %v15731_v26  ;;  %v4110_v20 = vadd.f32 %v15822_v51, %v15876_v59  ;;  %v3221_v48 = vadd.f32 %v15813_v36, %v2720_v54  ;;  %v4111_v10 = vadd.f32 %v15834_v33, %v15882_v38  ;;  %v18811_v54 = vld [vmem:[#allocation56_spill] sm:$0xff] }
 0x33a   : > { %18795 = vst [vmem:[#allocation114_spill] sm:$0xff] %v16088_v52  ;;  %v16093_v45 = vadd.f32 %v4464_v30, %v15970_v53  ;;  %v2716_v53 = vadd.f32 %v15848_v62, %v1939_v27  ;;  %v18803_v30 = vld [vmem:[#allocation77_spill] sm:$0xff]  ;;  %v18806_v27 = vld [vmem:[#allocation78_spill] sm:$0xff]  ;;  %v3587_v3 = vadd.f32 %v15916_v21, %v3201_v41  ;;  %v4114_v36 = vadd.f32 %v15850_v5, %v15893_v1  ;;  %v18817_v41 = vld [vmem:[#allocation59_spill] sm:$0xff] }
 0x33b   : > { %v12787_v2 = vpop.f32.mrf.mxu1  ;;  %v3193_v31 = vadd.f32 %v18804_v57, %v18803_v30  ;;  %v3209_v0 = vadd.f32 %v18806_v27, %v2708_v35  ;;  %v3591_v35 = vadd.f32 %v15927_v25, %v3205_v7  ;;  %v4497_v30 = vadd.f32 %v15997_v44, %v4110_v20  ;;  %v18809_v44 = vld [vmem:[#allocation67_spill] sm:$0xff]  ;;  %v18812_v1 = vld [vmem:[#allocation61_spill] sm:$0xff]  ;;  %v18813_v57 = vld [vmem:[#allocation68_spill] sm:$0xff] }
 0x33c   : > { %v16105_v52 = vadd.f32 %v12787_v2, %v15976_v22  ;;  %v16121_v22 = vpop.f32.mrf.mxu0  ;;  %v18808_v2 = vld [vmem:[#allocation55_spill] sm:$0xff]  ;;  %v4115_v25 = vadd.f32 %v15857_v15, %v15897_v42  ;;  %v18816_v42 = vld [vmem:[#allocation58_spill] sm:$0xff] }
 0x33d   : > { %v16112_v4 = vpop.f32.mrf.mxu1  ;;  %v3579_v13 = vadd.f32 %v15888_v14, %v3193_v31  ;;  %v18807_v14 = vld [vmem:[#allocation54_spill] sm:$0xff]  ;;  %v3217_v12 = vadd.f32 %v18808_v2, %v2716_v53  ;;  %v3595_v59 = vadd.f32 %v15940_v19, %v3209_v0  ;;  %v18810_v19 = vld [vmem:[#allocation60_spill] sm:$0xff]  ;;  %v4119_v31 = vadd.f32 %v18813_v57, %v18812_v1  ;;  %v18815_v15 = vld [vmem:[#allocation63_spill] sm:$0xff] }
 0x33e   : > { %v3213_v40 = vadd.f32 %v18807_v14, %v2712_v34  ;;  %v16146_v33 = vpop.f32.mrf.mxu0  ;;  %v4118_v5 = vadd.f32 %v18811_v54, %v18810_v19  ;;  %v5251_v7 = vadd.f32 %v15955_v49, %v4497_v30  ;;  %v18819_v0 = vld [vmem:[#allocation65_spill] sm:$0xff]  ;;  %v4502_v2 = vadd.f32 %v16021_v58, %v4115_v25  ;;  %v18822_v30 = vld [vmem:[#allocation80_spill] sm:$0xff]  ;;  %v18828_v19 = vld [vmem:[#allocation83_spill] sm:$0xff] }
 0x33f   : > { %v12790_v62 = vpop.f32.mrf.mxu1  ;;  %v4109_v34 = vadd.f32 %v15843_v24, %v3579_v13  ;;  %v3603_v21 = vadd.f32 %v15972_v56, %v3217_v12  ;;  %v4498_v24 = vadd.f32 %v16006_v8, %v4111_v10  ;;  %v18814_v56 = vld [vmem:[#allocation57_spill] sm:$0xff]  ;;  %v4122_v13 = vadd.f32 %v18816_v42, %v18815_v15  ;;  %v18820_v12 = vld [vmem:[#allocation66_spill] sm:$0xff]  ;;  %v18829_v1 = vld [vmem:[#allocation84_spill] sm:$0xff] }
 0x340   : > { %v16128_v63 = vadd.f32 %v12790_v62, %v15984_v55  ;;  %v3599_v55 = vadd.f32 %v15953_v9, %v3213_v40  ;;  %v3607_v9 = vadd.f32 %v15991_v46, %v3221_v48  ;;  %v4117_v11 = vadd.f32 %v18814_v56, %v3587_v3  ;;  %v16170_v62 = vpop.f32.mrf.mxu0  ;;  %v16177_v40 = vld [vmem:[%s18545_s4] ss:$0 sm:$0xff]  ;;  %v18830_v15 = vld [vmem:[#allocation85_spill] sm:$0xff] }
 0x341   : > { %v4480_v26 = vpop.f32.mrf.mxu1  ;;  %v4496_v46 = vadd.f32 %v16010_v28, %v4109_v34  ;;  %v4501_v8 = vadd.f32 %v16012_v16, %v4114_v36  ;;  %v4133_v49 = vadd.f32 %v18820_v12, %v3603_v21  ;;  %v5249_v28 = vadd.f32 %v15960_v47, %v16002_v39  ;;  %v18823_v34 = vld [vmem:[#allocation96_spill] sm:$0xff]  ;;  %v18824_v21 = vld [vmem:[#allocation98_spill] sm:$0xff] }
 0x342   : > { %v16139_v51 = vadd.f32 %v4480_v26, %v15989_v43  ;;  %v4113_v43 = vadd.f32 %v18809_v44, %v3583_v60  ;;  %v18818_v60 = vld [vmem:[#allocation62_spill] sm:$0xff]  ;;  %v4129_v20 = vadd.f32 %v18819_v0, %v3599_v55  ;;  %v4505_v10 = vadd.f32 %v16027_v32, %v4118_v5  ;;  %v18821_v26 = vld [vmem:[#allocation79_spill] sm:$0xff]  ;;  %v16195_v39 = vpop.f32.mrf.mxu0  ;;  %v18825_v32 = vld [vmem:[#allocation81_spill] sm:$0xff] }
 0x343   : > { %v12791_v38 = vpop.f32.mrf.mxu1  ;;  %v4125_v27 = vadd.f32 %v18818_v60, %v3595_v59  ;;  %v16186_v3 = vadd.f32 %v18821_v26, %v3607_v9  ;;  %v5252_v59 = vadd.f32 %v18822_v30, %v4498_v24  ;;  %v4506_v55 = vadd.f32 %v16034_v23, %v4119_v31  ;;  %v18826_v44 = vld [vmem:[#allocation82_spill] sm:$0xff]  ;;  %v18827_v9 = vld [vmem:[#allocation91_spill] sm:$0xff] }
 0x344   : > { %v16153_v53 = vadd.f32 %v12791_v38, %v15995_v29  ;;  %v4121_v29 = vadd.f32 %v18817_v41, %v3591_v35  ;;  %v4500_v16 = vadd.f32 %v16023_v6, %v4113_v43  ;;  %v4504_v58 = vadd.f32 %v18823_v34, %v4117_v11  ;;  %v16207_v56 = vpop.f32.mrf.mxu0  ;;  %v18837_v26 = vld [vmem:[#allocation99_spill] sm:$0xff] }
 0x345   : > { %v16161_v61 = vpop.f32.mrf.mxu1  ;;  %v4509_v47 = vadd.f32 %v18824_v21, %v4122_v13  ;;  %v5250_v25 = vadd.f32 %v18825_v32, %v4496_v46  ;;  %v5255_v43 = vadd.f32 %v18826_v44, %v4501_v8  ;;  %v5253_v24 = vadd.f32 %v18828_v19, %v18827_v9  ;;  %v18831_v13 = vld [vmem:[#allocation86_spill] sm:$0xff]  ;;  %v18833_v46 = vld [vmem:[#allocation87_spill] sm:$0xff]  ;;  %v18842_v44 = vld [vmem:[#allocation97_spill] sm:$0xff] }
 0x346   : > { %v5256_v57 = vadd.f32 %v18829_v1, %v4502_v2  ;;  %v4508_v31 = vadd.f32 %v16050_v18, %v4121_v29  ;;  %v5254_v42 = vadd.f32 %v18830_v15, %v4500_v16  ;;  %v5259_v41 = vadd.f32 %v18831_v13, %v4505_v10  ;;  %v18835_v2 = vld [vmem:[#allocation89_spill] sm:$0xff]  ;;  %v18836_v16 = vld [vmem:[#allocation90_spill] sm:$0xff]  ;;  %v18841_v32 = vld [vmem:[#allocation95_spill] sm:$0xff] }
 0x347   : > { %v12858_v14 = vpop.f32.mrf.mxu1  ;;  %v16222_v18 = vadd.f32 %v18835_v2, %v4504_v58  ;;  %v4512_v29 = vadd.f32 %v16065_v17, %v4125_v27  ;;  %v16226_v10 = vadd.f32 %v18836_v16, %v4509_v47  ;;  %v18839_v58 = vld [vmem:[#allocation101_spill] sm:$0xff]  ;;  %v5234_v17 = vpop.f32.mrf.mxu0  ;;  %v16248_v9 = vadd.f32 %v18842_v44, %v16055_v50  ;;  %v18843_v19 = vld [vmem:[#allocation112_spill] sm:$0xff]  ;;  %v18849_v2 = vld [vmem:[#allocation107_spill] sm:$0xff] }
 0x348   : > { %v5749_v48 = vadd.f32 %v12858_v14, %v5251_v7  ;;  %v18832_v7 = vld [vmem:[#allocation94_spill] sm:$0xff]  ;;  %v18834_v14 = vld [vmem:[#allocation88_spill] sm:$0xff]  ;;  %v18853_v44 = vld [vmem:[#allocation111_spill] sm:$0xff] }
 0x349   : > { %v5620_v35 = vpop.f32.mrf.mxu1  ;;  %v16213_v8 = vadd.f32 %v18833_v46, %v18832_v7  ;;  %v16219_v12 = vadd.f32 %v18834_v14, %v4506_v55  ;;  %v18845_v15 = vld [vmem:[#allocation100_spill] sm:$0xff]  ;;  %v18847_v46 = vld [vmem:[#allocation102_spill] sm:$0xff] }
 0x34a   : > { %v16192_v36 = vadd.f32 %v16177_v40, %v5749_v48  ;;  %v5747_v38 = vadd.f32 %v5620_v35, %v5249_v28  ;;  %v18838_v35 = vld [vmem:[#allocation92_spill] sm:$0xff] }
 0x34b   : > { %v12859_v6 = vpop.f32.mrf.mxu1  ;;  %v16230_v30 = vadd.f32 %v18838_v35, %v18837_v26  ;;  %v18848_v50 = vld [vmem:[#allocation104_spill] sm:$0xff]  ;;  %v4520_v26 = vadd.f32 %v16112_v4, %v4133_v49  ;;  %v12839_v35 = vpop.f32.mrf.mxu0 }
 0x34c   : > { %v5852_v23 = vmin.f32 %v16192_v36, 0.0  ;;  %v16203_v54 = vadd.f32 %v16177_v40, %v5747_v38  ;;  %v5750_v5 = vadd.f32 %v12859_v6, %v5252_v59  ;;  %v16232_v59 = vld [vmem:[#allocation10 + $0xb8] sm:$0xff]   ;;  %v18840_v38 = vld [vmem:[#allocation93_spill] sm:$0xff]  ;;  %v16264_v14 = vadd.f32 %v18848_v50, %v4512_v29  ;;  %v18851_v29 = vld [vmem:[#allocation108_spill] sm:$0xff] }
 0x34d   : > { %v5623_v11 = vpop.f32.mrf.mxu1  ;;  %v16238_v21 = vadd.f32 %v18840_v38, %v18839_v58  ;;  %13032 = vmatprep.subr.bf16.mxu1 %v16232_v59  ;;  %vm5820_vm15 = vcmp.gt.f32.partialorder %v16192_v36, 0.0 }
 0x34e   : > { %v5886_v60 = vmul.f32 1.442695, %v5852_v23  ;;  %v16216_v0 = vadd.f32 %v16177_v40, %v5750_v5  ;;  %v5748_v48 = vadd.f32 %v5623_v11, %v5250_v25  ;;  %v5850_v55 = vmin.f32 %v16203_v54, 0.0  ;;  %v18844_v11 = vld [vmem:[#allocation103_spill] sm:$0xff] }
 0x34f   : > { %v12862_v28 = vpop.f32.mrf.mxu1  ;;  %v16244_v25 = vadd.f32 %v18841_v32, %v4508_v31  ;;  %v4516_v23 = vadd.f32 %v18843_v19, %v4129_v20  ;;  %v16254_v13 = vadd.f32 %v18845_v15, %v18844_v11  ;;  %v18846_v31 = vld [vmem:[#allocation105_spill] sm:$0xff]  ;;  %v16296_v15 = vadd.f32 %v16146_v33, %v16093_v45 }
 0x350   : > { %13717 = vpow2.f32 %v5886_v60  ;;  %v5853_v34 = vmin.f32 %v16216_v0, 0.0  ;;  %v16241_v27 = vadd.f32 %v16177_v40, %v5748_v48  ;;  %v5753_v47 = vadd.f32 %v12862_v28, %v5255_v43  ;;  %v18850_v48 = vld [vmem:[#allocation106_spill] sm:$0xff]  ;;  %v18854_v19 = vld [vmem:[#allocation113_spill] sm:$0xff] }
 0x351   : > { %v5636_v6 = vpop.f32.mrf.mxu1  ;;  %v16261_v60 = vadd.f32 %v18847_v46, %v18846_v31  ;;  %v16268_v20 = vadd.f32 %v18850_v48, %v18849_v2  ;;  %v16288_v4 = vadd.f32 %v16101_v37, %v4516_v23  ;;  %v4524_v31 = vadd.f32 %v16161_v61, %v16186_v3  ;;  %v5237_v46 = vpop.f32.mrf.mxu0 }
 0x352   : > { %v5888_v5 = vmul.f32 1.442695, %v5853_v34  ;;  %v5751_v1 = vadd.f32 %v5636_v6, %v5253_v24  ;;  %v16257_v43 = vadd.f32 %v16177_v40, %v5753_v47  ;;  %v5882_v24 = vmul.f32 1.442695, %v5850_v55  ;;  %v18852_v47 = vld [vmem:[#allocation109_spill] sm:$0xff] }
 0x353   : > { %v12863_v7 = vpop.f32.mrf.mxu1  ;;  %v5851_v34 = vmin.f32 %v16241_v27, 0.0  ;;  %v16278_v6 = vadd.f32 %v18852_v47, %v18851_v29  ;;  %v16307_v45 = vadd.f32 %v16195_v39, %v4520_v26  ;;  %v16317_v48 = vadd.f32 %v5234_v17, %v16139_v51 }
 0x354   : > { %13719 = vpow2.f32 %v5888_v5  ;;  %v16271_v28 = vadd.f32 %v16177_v40, %v5751_v1  ;;  %v5754_v16 = vadd.f32 %v12863_v7, %v5256_v57  ;;  %v5856_v58 = vmin.f32 %v16257_v43, 0.0  ;;  %v18855_v1 = vld [vmem:[#allocation114_spill] sm:$0xff]  ;;  %v7118_v7 = vld [vmem:[#allocation2 + $0x4] sm:$0xf] }
 0x355   : > { %v5639_v38 = vpop.f32.mrf.mxu1  ;;  %v16285_v5 = vadd.f32 %v18854_v19, %v18853_v44  ;;  %v16292_v11 = vadd.f32 %v16121_v22, %v18855_v1  ;;  %13721 = vpow2.f32 %v5882_v24  ;;  %v5884_v22 = vmul.f32 1.442695, %v5851_v34 }
 0x356   : > { %v16281_v32 = vadd.f32 %v16177_v40, %v5754_v16  ;;  %v5752_v55 = vadd.f32 %v5639_v38, %v5254_v42  ;;  %v5894_v49 = vmul.f32 1.442695, %v5856_v58  ;;  %v16300_v42 = vadd.f32 %v16170_v62, %v16105_v52  ;;  %v7871_v62 = vld [vmem:[#allocation2] sm:$0xe] }
 0x357   : > { %v12866_v57 = vpop.f32.mrf.mxu1  ;;  %v5854_v37 = vmin.f32 %v16271_v28, 0.0  ;;  %v16311_v52 = vadd.f32 %v16207_v56, %v16128_v63  ;;  %v7937_v3 = vrot.slane %v7118_v7, 5  ;;  %v16320_v24 = vadd.f32 %v12839_v35, %v16153_v53  ;;  %v7119_v63 = vld [vmem:[#allocation2 + $0x8] sm:$0x1] }
 0x358   : > { %v5857_v23 = vmin.f32 %v16281_v32, 0.0  ;;  %13723 = vpow2.f32 %v5894_v49  ;;  %v5757_v50 = vadd.f32 %v12866_v57, %v5259_v41  ;;  %v16314_v61 = vadd.f32 %v16177_v40, %v5752_v55 }
 0x359   : > { %v5652_v2 = vpop.f32.mrf.mxu1  ;;  %18856 = vst [vmem:[#allocation64_spill] sm:$0xff] %v16320_v24  ;;  %v16326_v56 = vadd.f32 %v5237_v46, %v4524_v31  ;;  %v5890_v26 = vmul.f32 1.442695, %v5854_v37  ;;  %v11686_v17 = vrot.slane %v7871_v62, 9  ;;  %v7940_v29 = vrot.slane %v7119_v63, 5 }
 0x35a   : > { %v5896_v33 = vmul.f32 1.442695, %v5857_v23  ;;  %v16323_v41 = vadd.f32 %v16177_v40, %v5757_v50  ;;  %v5755_v39 = vadd.f32 %v5652_v2, %v16213_v8  ;;  %v5855_v38 = vmin.f32 %v16314_v61, 0.0 }
 0x35b   : > { %v12867_v16 = vpop.f32.mrf.mxu1  ;;  %18857 = vst [vmem:[#allocation71_spill] sm:$0xff] %v16326_v56  ;;  %v7939_v8 = vrot.slane %v7937_v3, 4  ;;  %vm5821_vm0 = vcmp.gt.f32.partialorder %v16216_v0, 0.0  ;;  %vm5824_vm1 = vcmp.gt.f32.partialorder %v16257_v43, 0.0  ;;  %v16350_v23 = vsel %vm14306_vm8, %v11686_v17, %v7937_v3 }
 0x35c   : > { %13725 = vpow2.f32 %v5896_v33  ;;  %v5758_v34 = vadd.f32 %v12867_v16, %v16219_v12  ;;  %v5860_v51 = vmin.f32 %v16323_v41, 0.0  ;;  %v16333_v55 = vadd.f32 %v16177_v40, %v5755_v39  ;;  %18859 = vst [vmem:[#allocation69_spill] sm:$0xff] %v16350_v23 }
 0x35d   : > { %v13718_v58 = vpop.eup %13717  ;;  %13727 = vpow2.f32 %v5884_v22  ;;  %v5655_v53 = vpop.f32.mrf.mxu1  ;;  %v16360_v22 = vsel %vm14306_vm8, %v7939_v8, %v7940_v29  ;;  %vm5825_vm3 = vcmp.gt.f32.partialorder %v16281_v32, 0.0  ;;  %v5892_v2 = vmul.f32 1.442695, %v5855_v38  ;;  %v6451_v29 = vld [vmem:[#allocation2 + $0x38] sm:$0x1] }
 0x35e   : > { %v11568_v35 = vadd.f32 -1.0, %v13718_v58  ;;  %v5902_v47 = vmul.f32 1.442695, %v5860_v51  ;;  %v16336_v44 = vadd.f32 %v16177_v40, %v5758_v34  ;;  %v5756_v12 = vadd.f32 %v5655_v53, %v16222_v18  ;;  %18860 = vst [vmem:[#allocation73_spill] sm:$0xff] %v16360_v22 }
 0x35f   : > { %v12870_v19 = vpop.f32.mrf.mxu1  ;;  %13729 = vpow2.f32 %v5890_v26  ;;  %v5858_v33 = vmin.f32 %v16333_v55, 0.0  ;;  %vm5828_vm4 = vcmp.gt.f32.partialorder %v16323_v41, 0.0  ;;  %vm5818_vm6 = vcmp.gt.f32.partialorder %v16203_v54, 0.0 }
 0x360   : > { %v16340_v49 = vsel %vm5820_vm15, %v16192_v36, %v11568_v35  ;;  %v5761_v57 = vadd.f32 %v12870_v19, %v16226_v10  ;;  %13731 = vpow2.f32 %v5902_v47  ;;  %v5861_v31 = vmin.f32 %v16336_v44, 0.0  ;;  %v6433_v19 = vld [vmem:[#allocation2 + $0x18] sm:$0xf] }
 0x361   : > { %v13720_v1 = vpop.eup %13719  ;;  %v11920_v7 = vpack.c.bf16 %v16340_v49, %v16340_v49  ;;  %v5668_v37 = vpop.f32.mrf.mxu1  ;;  %v16353_v46 = vadd.f32 %v16177_v40, %v5756_v12  ;;  %v5898_v12 = vmul.f32 1.442695, %v5858_v33  ;;  %vm5829_vm5 = vcmp.gt.f32.partialorder %v16336_v44, 0.0 }
 0x362   : > { %v11569_v36 = vadd.f32 -1.0, %v13720_v1  ;;  %v16356_v10 = vadd.f32 %v16177_v40, %v5761_v57  ;;  %v5904_v62 = vmul.f32 1.442695, %v5861_v31  ;;  %v5759_v26 = vadd.f32 %v5668_v37, %v16230_v30  ;;  %v13722_v34 = vpop.eup %13721 }
 0x363   : > { %v6124_v50 = vshrl.u32 %v11920_v7, 16  ;;  %v12871_v3 = vpop.f32.mrf.mxu1  ;;  %v6127_v39 = vshll.u32 %v11920_v7, 16  ;;  %v5859_v38 = vmin.f32 %v16353_v46, 0.0  ;;  %v16383_v37 = vadd.f32 -1.0, %v13722_v34 }
 0x364   : > { %v16367_v16 = vsel %vm5821_vm0, %v16216_v0, %v11569_v36  ;;  %v5864_v63 = vmin.f32 %v16356_v10, 0.0  ;;  %13733 = vpow2.f32 %v5904_v62  ;;  %v5762_v0 = vadd.f32 %v12871_v3, %v16238_v21 }
 0x365   : > { %v6126_v58 = vrot.slane %v6124_v50, 7  ;;  %v11921_v53 = vpack.c.bf16 %v16367_v16, %v16367_v16  ;;  %v5671_v17 = vpop.f32.mrf.mxu1  ;;  %v13724_v35 = vpop.eup %13723  ;;  %13735 = vpow2.f32 %v5892_v2  ;;  %v16381_v7 = vadd.f32 %v16177_v40, %v5759_v26 }
 0x366   : > { %v5910_v8 = vmul.f32 1.442695, %v5864_v63  ;;  %v11572_v1 = vadd.f32 -1.0, %v13724_v35  ;;  %v16388_v2 = vadd.f32 %v16177_v40, %v5762_v0  ;;  %v5900_v63 = vmul.f32 1.442695, %v5859_v38 }
 0x367   : > { %v6129_v30 = vor.u32 %v6127_v39, %v6126_v58  ;;  %v6132_v47 = vshrl.u32 %v11921_v53, 16  ;;  %v6135_v57 = vshll.u32 %v11921_v53, 16  ;;  %v12874_v31 = vpop.f32.mrf.mxu1  ;;  %v5760_v26 = vadd.f32 %v5671_v17, %v16244_v25  ;;  %v6437_v0 = vld [vmem:[#allocation2 + $0x20] sm:$0x1] }
 0x368   : > { %13737 = vpow2.f32 %v5910_v8  ;;  %v16395_v3 = vsel %vm5824_vm1, %v16257_v43, %v11572_v1  ;;  %v6130_v34 = vrot.slane %v6126_v58, 4  ;;  %v5865_v43 = vmin.f32 %v16388_v2, 0.0 }
 0x369   : > { %v13726_v36 = vpop.eup %13725  ;;  %v6434_v50 = vsel %vm14376_vm13, %v6129_v30, %v6433_v19  ;;  %v6134_v62 = vrot.slane %v6132_v47, 7  ;;  %v11924_v8 = vpack.c.bf16 %v16395_v3, %v16395_v3  ;;  %13739 = vpow2.f32 %v5898_v12  ;;  %v5684_v38 = vpop.f32.mrf.mxu1 }
 0x36a   : > { %v16390_v33 = vpop.eup %13727  ;;  %6435 = vst [vmem:[#allocation2 + $0x18] sm:$0xf] %v6434_v50  ;;  %v11573_v39 = vadd.f32 -1.0, %v13726_v36  ;;  %v5862_v1 = vmin.f32 %v16381_v7, 0.0  ;;  %v5912_v12 = vmul.f32 1.442695, %v5865_v43  ;;  %v16418_v50 = vadd.f32 %v16177_v40, %v5760_v26 }
 0x36b   : > { %v6137_v53 = vor.u32 %v6135_v57, %v6134_v62  ;;  %v6139_v35 = vrot.slane %v6134_v62, 4  ;;  %v6158_v57 = vshrl.u32 %v11924_v8, 16  ;;  %v5765_v62 = vadd.f32 %v12874_v31, %v16248_v9  ;;  %v6447_v43 = vld [vmem:[#allocation2 + $0x30] sm:$0xf] }
 0x36c   : > { %v16403_v30 = vsel %vm5825_vm3, %v16281_v32, %v11573_v39  ;;  %v16407_v47 = vpop.eup %13729  ;;  %18864 = vst [vmem:[#allocation70_spill] sm:$0xff] %v16418_v50  ;;  %13741 = vpow2.f32 %v5900_v63  ;;  %vm5832_vm7 = vcmp.gt.f32.partialorder %v16356_v10, 0.0  ;;  %vm5819_vm9 = vcmp.gt.f32.partialorder %v16241_v27, 0.0 }
 0x36d   : > { %v6138_v58 = vsel %vm14406_vm14, %v6130_v34, %v6137_v53  ;;  %v6438_v19 = vsel %vm14200_vm2, %v6139_v35, %v6437_v0  ;;  %v13732_v36 = vpop.eup %13731  ;;  %v11925_v32 = vpack.c.bf16 %v16403_v30, %v16403_v30  ;;  %v6160_v39 = vrot.slane %v6158_v57, 7 }
 0x36e   : > { %6436 = vst [vmem:[#allocation2 + $0x1c] sm:$0xf] %v6138_v58  ;;  %6439 = vst [vmem:[#allocation2 + $0x20] sm:$0x1] %v6438_v19  ;;  %v6161_v34 = vshll.u32 %v11924_v8, 16  ;;  %v11576_v53 = vadd.f32 -1.0, %v13732_v36  ;;  %13743 = vpow2.f32 %v5912_v12  ;;  %v5763_v0 = vadd.f32 %v5684_v38, %v16254_v13  ;;  %v12875_v58 = vpop.f32.mrf.mxu1 }
 0x36f   : > { %v6166_v35 = vshrl.u32 %v11925_v32, 16  ;;  %v16429_v9 = vmul.f32 1.442695, %v5862_v1  ;;  %v16432_v31 = vadd.f32 %v16177_v40, %v5765_v62  ;;  %v6169_v57 = vshll.u32 %v11925_v32, 16 }
 0x370   : > { %v6163_v19 = vor.u32 %v6161_v34, %v6160_v39  ;;  %v16427_v26 = vsel %vm5828_vm4, %v16323_v41, %v11576_v53  ;;  %v5863_v38 = vmin.f32 %v16418_v50, 0.0  ;;  %v6164_v36 = vrot.slane %v6160_v39, 4  ;;  %v16445_v51 = vpop.f32.mrf.mxu1 }
 0x371   : > { %v13734_v63 = vpop.eup %13733  ;;  %v6168_v8 = vrot.slane %v6166_v35, 7  ;;  %v11928_v13 = vpack.c.bf16 %v16427_v26, %v16427_v26  ;;  %v5868_v41 = vmin.f32 %v16432_v31, 0.0  ;;  %v16443_v32 = vadd.f32 %v16177_v40, %v5763_v0 }
 0x372   : > { %v6448_v12 = vsel %vm14376_vm13, %v6163_v19, %v6447_v43  ;;  %v11577_v34 = vadd.f32 -1.0, %v13734_v63  ;;  %v16440_v1 = vpop.eup %13735  ;;  %v11567_v43 = vadd.f32 -1.0, %v16390_v33  ;;  %vm5833_vm10 = vcmp.gt.f32.partialorder %v16388_v2, 0.0 }
 0x373   : > { %6449 = vst [vmem:[#allocation2 + $0x30] sm:$0xf] %v6448_v12  ;;  %v6171_v62 = vor.u32 %v6169_v57, %v6168_v8  ;;  %v6173_v53 = vrot.slane %v6168_v8, 4  ;;  %v6192_v35 = vshrl.u32 %v11928_v13, 16  ;;  %18865 = vst [vmem:[#allocation75_spill] sm:$0xff] %v16443_v32  ;;  %v6195_v22 = vshll.u32 %v11928_v13, 16 }
 0x374   : > { %v16450_v39 = vsel %vm5829_vm5, %v16336_v44, %v11577_v34  ;;  %v5918_v19 = vmul.f32 1.442695, %v5868_v41  ;;  %v5978_v44 = vsel %vm5818_vm6, %v16203_v54, %v16383_v37  ;;  %v16464_v34 = vmul.f32 1.442695, %v5863_v38  ;;  %v12878_v41 = vpop.f32.mrf.mxu1 }
 0x375   : > { %v13738_v63 = vpop.eup %13737  ;;  %v6172_v8 = vsel %vm14406_vm14, %v6164_v36, %v6171_v62  ;;  %v6452_v57 = vsel %vm14200_vm2, %v6173_v53, %v6451_v29  ;;  %v6194_v0 = vrot.slane %v6192_v35, 7  ;;  %v11929_v12 = vpack.c.bf16 %v16450_v39, %v16450_v39  ;;  %v6461_v53 = vld [vmem:[#allocation2 + $0x48] sm:$0xf] }
 0x376   : > { %6450 = vst [vmem:[#allocation2 + $0x34] sm:$0xf] %v6172_v8  ;;  %6453 = vst [vmem:[#allocation2 + $0x38] sm:$0x1] %v6452_v57  ;;  %v11580_v13 = vadd.f32 -1.0, %v13738_v63  ;;  %13745 = vpow2.f32 %v5918_v19  ;;  %v5866_v29 = vmin.f32 %v16443_v32, 0.0  ;;  %v16467_v62 = vpop.eup %13739  ;;  %v5979_v54 = vsel %vm5819_vm9, %v16241_v27, %v11567_v43 }
 0x377   : > { %v6197_v33 = vor.u32 %v6195_v22, %v6194_v0  ;;  %v6200_v36 = vshrl.u32 %v11929_v12, 16  ;;  %v6203_v35 = vshll.u32 %v11929_v12, 16  ;;  %v11918_v22 = vpack.c.bf16 %v5978_v44, %v5978_v44  ;;  %v6465_v43 = vld [vmem:[#allocation2 + $0x50] sm:$0x1] }
 0x378   : > { %v16472_v19 = vsel %vm5832_vm7, %v16356_v10, %v11580_v13  ;;  %v6010_v8 = vpack.c.bf16 %v5979_v54, %v5978_v44  ;;  %v6198_v57 = vrot.slane %v6194_v0, 4  ;;  %v11919_v12 = vpack.c.bf16 %v5979_v54, %v5979_v54  ;;  %v13624_v13 = vld [vmem:[#allocation10 + $0xb0] sm:$0xff]  }
 0x379   : > { %v6462_v37 = vsel %vm14376_vm13, %v6197_v33, %v6461_v53  ;;  %v6202_v38 = vrot.slane %v6200_v36, 7  ;;  %v11932_v63 = vpack.c.bf16 %v16472_v19, %v16472_v19  ;;  %v6107_v23 = vshrl.u32 %v11918_v22, 16  ;;  %v16482_v18 = vpop.eup %13741  ;;  %v5700_v33 = vpop.f32.mrf.mxu1 }
 0x37a   : > { %6463 = vst [vmem:[#allocation2 + $0x48] sm:$0xf] %v6462_v37  ;;  %v5766_v10 = vadd.f32 %v12875_v58, %v16261_v60  ;;  %v6110_v32 = vshll.u32 %v11918_v22, 16  ;;  %12952 = vmatprep.mubr.bf16.mxu1 %v6010_v8  ;;  %v6115_v44 = vshrl.u32 %v11919_v12, 16  ;;  %v18866_v0 = vpack.c.bf16 %v16367_v16, %v16340_v49  ;;  %v6475_v49 = vld [vmem:[#allocation2 + $0x60] sm:$0xf] }
 0x37b   : > { %v6205_v56 = vor.u32 %v6203_v35, %v6202_v38  ;;  %v6207_v27 = vrot.slane %v6202_v38, 4  ;;  %v6226_v24 = vshrl.u32 %v11932_v63, 16  ;;  %v13744_v36 = vpop.eup %13743  ;;  %v6229_v53 = vshll.u32 %v11932_v63, 16  ;;  %v6426_v8 = vld [vmem:[#allocation2 + $0xc] sm:$0xf] }
 0x37c   : > { %v6109_v50 = vrot.slane %v6107_v23, 7  ;;  %12953 = vmatmul.mubr.bf16.vlgmr.msra.gmra.mxu1 %v18866_v0  ;;  %v16488_v60 = vadd.f32 %v16177_v40, %v5766_v10  ;;  %v11581_v22 = vadd.f32 -1.0, %v13744_v36  ;;  %vm5822_vm12 = vcmp.gt.f32.partialorder %v16271_v28, 0.0 }
 0x37d   : > { %v6206_v58 = vsel %vm14406_vm14, %v6198_v57, %v6205_v56  ;;  %v6466_v35 = vsel %vm14200_vm2, %v6207_v27, %v6465_v43  ;;  %v16494_v54 = vrot.slane %v6226_v24, 7  ;;  %13033 = vmatpush3.bf16.msra.mxu1 %v16232_v59  ;;  %v16498_v23 = vmul.f32 1.442695, %v5866_v29  ;;  %v13627_v56 = vld [vmem:[#allocation10 + $0xa8] sm:$0xff]   ;;  %v16508_v29 = vpop.f32.mrf.mxu1 }
 0x37e   : > { %6464 = vst [vmem:[#allocation2 + $0x4c] sm:$0xf] %v6206_v58  ;;  %6467 = vst [vmem:[#allocation2 + $0x50] sm:$0x1] %v6466_v35  ;;  %v6112_v16 = vor.u32 %v6110_v32, %v6109_v50  ;;  %v6117_v37 = vrot.slane %v6115_v44, 7  ;;  %v6118_v38 = vshll.u32 %v11919_v12, 16  ;;  %13034 = vmatprep.subr.bf16.mxu1 %v13624_v13  ;;  %v16504_v24 = vsel %vm5833_vm10, %v16388_v2, %v11581_v22 }
 0x37f   : > { %v6231_v63 = vor.u32 %v6229_v53, %v16494_v54  ;;  %v6113_v59 = vrot.slane %v6109_v50, 4  ;;  %v5869_v57 = vmin.f32 %v16488_v60, 0.0  ;;  %vm5823_vm15 = vcmp.gt.f32.partialorder %v16314_v61, 0.0  ;;  %v6430_v50 = vld [vmem:[#allocation2 + $0x14] sm:$0x1]  ;;  %v13629_v22 = vld [vmem:[#allocation10 + $0xa0] sm:$0xff]  }
 0x380   : > { %v11933_v32 = vpack.c.bf16 %v16504_v24, %v16504_v24  ;;  %v6120_v12 = vor.u32 %v6118_v38, %v6117_v37  ;;  %v6122_v10 = vrot.slane %v6117_v37, 4  ;;  %v6427_v27 = vsel %vm14376_vm13, %v6112_v16, %v6426_v8 }
 0x381   : > { %v6476_v2 = vsel %vm14376_vm13, %v6231_v63, %v6475_v49  ;;  %6428 = vst [vmem:[#allocation2 + $0xc] sm:$0xf] %v6427_v27  ;;  %v5920_v43 = vmul.f32 1.442695, %v5869_v57  ;;  %v5764_v36 = vadd.f32 %v16445_v51, %v16264_v14  ;;  %v5769_v53 = vadd.f32 %v12878_v41, %v16268_v20  ;;  %13035 = vmatpush3.bf16.msra.mxu1 %v13624_v13  ;;  %v5703_v41 = vpop.f32.mrf.mxu1 }
 0x382   : > { %6477 = vst [vmem:[#allocation2 + $0x60] sm:$0xf] %v6476_v2  ;;  %v6234_v44 = vshrl.u32 %v11933_v32, 16  ;;  %v6237_v0 = vshll.u32 %v11933_v32, 16  ;;  %v6121_v58 = vsel %vm14406_vm14, %v6113_v59, %v6120_v12  ;;  %v6431_v35 = vsel %vm14200_vm2, %v6122_v10, %v6430_v50  ;;  %13036 = vmatprep.subr.bf16.mxu1 %v13627_v56 }
 0x383   : > { %v13746_v49 = vpop.eup %13745  ;;  %6429 = vst [vmem:[#allocation2 + $0x10] sm:$0xf] %v6121_v58  ;;  %6432 = vst [vmem:[#allocation2 + $0x14] sm:$0x1] %v6431_v35  ;;  %13747 = vpow2.f32 %v5920_v43  ;;  %v16524_v14 = vadd.f32 %v16177_v40, %v5764_v36  ;;  %v16527_v20 = vadd.f32 %v16177_v40, %v5769_v53  ;;  %v5767_v51 = vadd.f32 %v5700_v33, %v16278_v6  ;;  %v12882_v10 = vpop.f32.mrf.mxu1 }
 0x384   : > { %v6236_v13 = vrot.slane %v6234_v44, 7  ;;  %v11584_v16 = vadd.f32 -1.0, %v13746_v49  ;;  %v11570_v37 = vadd.f32 -1.0, %v16407_v47  ;;  %v11571_v38 = vadd.f32 -1.0, %v16440_v1  ;;  %v13632_v47 = vld [vmem:[#allocation10 + $0x98] sm:$0xff]  }
 0x385   : > { %v6232_v63 = vrot.slane %v16494_v54, 4  ;;  %vm5836_vm0 = vcmp.gt.f32.partialorder %v16432_v31, 0.0  ;;  %v5867_v59 = vmin.f32 %v16524_v14, 0.0  ;;  %v5872_v8 = vmin.f32 %v16527_v20, 0.0  ;;  %13037 = vmatpush3.bf16.msra.mxu1 %v13627_v56  ;;  %v6479_v1 = vld [vmem:[#allocation2 + $0x68] sm:$0x1]  ;;  %v5716_v35 = vpop.f32.mrf.mxu1 }
 0x386   : > { %v6239_v57 = vor.u32 %v6237_v0, %v6236_v13  ;;  %v6241_v32 = vrot.slane %v6236_v13, 4  ;;  %v16537_v6 = vsel %vm5836_vm0, %v16432_v31, %v11584_v16  ;;  %v16540_v33 = vadd.f32 %v16177_v40, %v5767_v51  ;;  %13038 = vmatprep.subr.bf16.mxu1 %v13629_v22  ;;  %v13617_v0 = vld [vmem:[#allocation10 + $0x70] sm:$0xff]   ;;  %v13616_v16 = vld [vmem:[#allocation2 + $0x18] sm:$0xff]  }
 0x387   : > { %13749 = vpow2.f32 %v16429_v9  ;;  %v11936_v54 = vpack.c.bf16 %v16537_v6, %v16537_v6  ;;  %v5926_v12 = vmul.f32 1.442695, %v5872_v8  ;;  %v5982_v56 = vsel %vm5822_vm12, %v16271_v28, %v11570_v37  ;;  %v13634_v37 = vld [vmem:[#allocation10 + $0x90] sm:$0xff]  }
 0x388   : > { %v6240_v31 = vsel %vm14406_vm14, %v6232_v63, %v6239_v57  ;;  %v6480_v27 = vsel %vm14200_vm2, %v6241_v32, %v6479_v1  ;;  %13751 = vpow2.f32 %v16464_v34  ;;  %v5983_v9 = vsel %vm5823_vm15, %v16314_v61, %v11571_v38  ;;  %v6440_v32 = vld [vmem:[#allocation2 + $0x24] sm:$0xf] }
 0x389   : > { %6478 = vst [vmem:[#allocation2 + $0x64] sm:$0xf] %v6240_v31  ;;  %6481 = vst [vmem:[#allocation2 + $0x68] sm:$0x1] %v6480_v27  ;;  %v6260_v2 = vshrl.u32 %v11936_v54, 16  ;;  %13753 = vpow2.f32 %v16498_v23  ;;  %v6012_v28 = vpack.c.bf16 %v5983_v9, %v5982_v56  ;;  %13039 = vmatpush3.bf16.msra.mxu1 %v13629_v22  ;;  %v5870_v43 = vmin.f32 %v16540_v33, 0.0 }
 0x38a   : > { %v5916_v50 = vmul.f32 1.442695, %v5867_v59  ;;  %13755 = vpow2.f32 %v5926_v12  ;;  %v11922_v36 = vpack.c.bf16 %v5982_v56, %v5982_v56  ;;  %v11923_v53 = vpack.c.bf16 %v5983_v9, %v5983_v9  ;;  %v13615_v44 = vld [vmem:[#allocation2 + $0xc] sm:$0xff]   ;;  %13040 = vmatprep.subr.bf16.mxu1 %v13632_v47  ;;  %v6489_v22 = vld [vmem:[#allocation2 + $0x78] sm:$0xf]  ;;  %v12883_v12 = vpop.f32.mrf.mxu1 }
 0x38b   : > { %v16558_v34 = vrot.slane %v6260_v2, 7  ;;  %v6263_v58 = vshll.u32 %v11936_v54, 16  ;;  %12956 = vmatprep.mubr.bf16.mxu1 %v6012_v28  ;;  %v6013_v61 = vpack.c.bf16 %v16403_v30, %v16395_v3  ;;  %v5770_v23 = vadd.f32 %v16508_v29, %v16285_v5  ;;  %12905 = vmatmul.mubr.bf16.vlgmr.msra.gmra.mxu0 %v13615_v44  ;;  %v18867_v5 = vld [vmem:[#allocation110_spill] sm:$0xff]  ;;  %v13620_v30 = vld [vmem:[#allocation10 + $0x68] sm:$0xff]  }
 0x38c   : > { %vm5837_vm1 = vcmp.gt.f32.partialorder %v16488_v60, 0.0  ;;  %v6141_v49 = vshrl.u32 %v11922_v36, 16  ;;  %v6149_v51 = vshrl.u32 %v11923_v53, 16  ;;  %v5768_v13 = vadd.f32 %v5703_v41, %v16288_v4  ;;  %12985 = vmatpush3.bf16.msra.mxu0 %v18867_v5  ;;  %12908 = vmatprep.mubr.bf16.mxu0 %v13616_v16 }
 0x38d   : > { %v6265_v38 = vor.u32 %v6263_v58, %v16558_v34  ;;  %v6144_v63 = vshll.u32 %v11922_v36, 16  ;;  %v6152_v59 = vshll.u32 %v11923_v53, 16  ;;  %12957 = vmatmul.mubr.bf16.gmra.mxu1 %v6013_v61  ;;  %v16568_v3 = vadd.f32 %v16177_v40, %v5770_v23  ;;  %12986 = vmatprep.subr.bf16.mxu0 %v13617_v0  ;;  %v13625_v58 = vld [vmem:[#allocation10 + $0x60] sm:$0xff]   ;;  %v5719_v61 = vpop.f32.mrf.mxu1 }
 0x38e   : > { %13757 = vpow2.f32 %v5916_v50  ;;  %v6143_v29 = vrot.slane %v6141_v49, 7  ;;  %v6151_v8 = vrot.slane %v6149_v51, 7  ;;  %v5773_v57 = vadd.f32 %v12882_v10, %v16292_v11  ;;  %13041 = vmatpush3.bf16.msra.mxu1 %v13632_v47  ;;  %v13637_v11 = vld [vmem:[#allocation10 + $0x88] sm:$0xff]   ;;  %v6444_v50 = vld [vmem:[#allocation2 + $0x2c] sm:$0x1] }
 0x38f   : > { %v6490_v4 = vsel %vm14376_vm13, %v6265_v38, %v6489_v22  ;;  %v5922_v41 = vmul.f32 1.442695, %v5870_v43  ;;  %v5873_v1 = vmin.f32 %v16568_v3, 0.0  ;;  %v5771_v54 = vadd.f32 %v5716_v35, %v16296_v15  ;;  %13042 = vmatprep.subr.bf16.mxu1 %v13634_v37 }
 0x390   : > { %v13748_v56 = vpop.eup %13747  ;;  %6491 = vst [vmem:[#allocation2 + $0x78] sm:$0xf] %v6490_v4  ;;  %v6146_v31 = vor.u32 %v6144_v63, %v6143_v29  ;;  %v6147_v27 = vrot.slane %v6143_v29, 4  ;;  %v6154_v9 = vor.u32 %v6152_v59, %v6151_v8  ;;  %v6156_v2 = vrot.slane %v6151_v8, 4  ;;  %12987 = vmatpush3.bf16.msra.mxu0 %v13617_v0  ;;  %v13630_v29 = vld [vmem:[#allocation10 + $0x58] sm:$0xff]  }
 0x391   : > { %v11585_v10 = vadd.f32 -1.0, %v13748_v56  ;;  %v5928_v28 = vmul.f32 1.442695, %v5873_v1  ;;  %v16577_v43 = vadd.f32 %v16177_v40, %v5768_v13  ;;  %v16580_v36 = vadd.f32 %v16177_v40, %v5773_v57  ;;  %12988 = vmatprep.subr.bf16.mxu0 %v13620_v30 }
 0x392   : > { %v6155_v15 = vsel %vm14406_vm14, %v6147_v27, %v6154_v9  ;;  %v6441_v47 = vsel %vm14376_vm13, %v6146_v31, %v6440_v32  ;;  %v6445_v53 = vsel %vm14200_vm2, %v6156_v2, %v6444_v50  ;;  %v16589_v44 = vadd.f32 %v16177_v40, %v5771_v54  ;;  %13043 = vmatpush3.bf16.msra.mxu1 %v13634_v37  ;;  %v6493_v54 = vld [vmem:[#allocation2 + $0x80] sm:$0x1]  ;;  %v16623_v9 = vld [vmem:[#allocation10 + $0x178] sm:$0xff]  }
 0x393   : > { %vm5826_vm3 = vcmp.gt.f32.partialorder %v16333_v55, 0.0  ;;  %v16595_v0 = vsel %vm5837_vm1, %v16488_v60, %v11585_v10  ;;  %vm5840_vm4 = vcmp.gt.f32.partialorder %v16527_v20, 0.0  ;;  %6443 = vst [vmem:[#allocation2 + $0x28] sm:$0xf] %v6155_v15  ;;  %6446 = vst [vmem:[#allocation2 + $0x2c] sm:$0x1] %v6445_v53  ;;  %13759 = vpow2.f32 %v5928_v28  ;;  %13044 = vmatprep.subr.bf16.mxu1 %v13637_v11 }
 0x394   : > { %6442 = vst [vmem:[#allocation2 + $0x24] sm:$0xf] %v6441_v47  ;;  %v16598_v23 = vpop.eup %13749  ;;  %v6266_v35 = vrot.slane %v16558_v34, 4  ;;  %v11937_v22 = vpack.c.bf16 %v16595_v0, %v16595_v0  ;;  %13761 = vpow2.f32 %v5922_v41  ;;  %v5876_v49 = vmin.f32 %v16580_v36, 0.0  ;;  %v13639_v60 = vld [vmem:[#allocation10 + $0x80] sm:$0xff]   ;;  %12989 = vmatpush3.bf16.msra.mxu0 %v13620_v30  ;;  %v12886_v30 = vpop.f32.mrf.mxu1  ;;  %v13619_v47 = vld [vmem:[#allocation2 + $0x30] sm:$0xff]  }
 0x395   : > { %v16604_v51 = vpop.eup %13751  ;;  %v5871_v13 = vmin.f32 %v16577_v43, 0.0  ;;  %v5874_v16 = vmin.f32 %v16589_v44, 0.0  ;;  %v11574_v37 = vadd.f32 -1.0, %v16467_v62  ;;  %v11575_v38 = vadd.f32 -1.0, %v16482_v18  ;;  %12990 = vmatprep.subr.bf16.mxu0 %v13625_v58 }
 0x396   : > { %v16610_v34 = vpop.eup %13753  ;;  %v6268_v63 = vshrl.u32 %v11937_v22, 16  ;;  %v6271_v59 = vshll.u32 %v11937_v22, 16  ;;  %v5934_v5 = vmul.f32 1.442695, %v5876_v49  ;;  %vm5827_vm5 = vcmp.gt.f32.partialorder %v16353_v46, 0.0  ;;  %13045 = vmatpush3.bf16.msra.mxu1 %v13637_v11  ;;  %v5732_v15 = vpop.f32.mrf.mxu1 }
 0x397   : > { %v13756_v8 = vpop.eup %13755  ;;  %v5986_v57 = vsel %vm5826_vm3, %v16333_v55, %v11574_v37  ;;  %v5987_v4 = vsel %vm5827_vm5, %v16353_v46, %v11575_v38  ;;  %v6015_v18 = vpack.c.bf16 %v16450_v39, %v16427_v26  ;;  %v5774_v62 = vadd.f32 %v12883_v12, %v16300_v42  ;;  %13046 = vmatprep.subr.bf16.mxu1 %v13639_v60  ;;  %v13635_v46 = vld [vmem:[#allocation10 + $0x50] sm:$0xff]  }
 0x398   : > { %v6270_v41 = vrot.slane %v6268_v63, 7  ;;  %v11588_v32 = vadd.f32 -1.0, %v13756_v8  ;;  %13763 = vpow2.f32 %v5934_v5  ;;  %v6014_v1 = vpack.c.bf16 %v5987_v4, %v5986_v57  ;;  %12991 = vmatpush3.bf16.msra.mxu0 %v13625_v58  ;;  %v13640_v63 = vld [vmem:[#allocation10 + $0x48] sm:$0xff]  }
 0x399   : > { %v5924_v56 = vmul.f32 1.442695, %v5871_v13  ;;  %v11926_v31 = vpack.c.bf16 %v5986_v57, %v5986_v57  ;;  %v11927_v27 = vpack.c.bf16 %v5987_v4, %v5987_v4  ;;  %v16621_v55 = vadd.f32 %v16177_v40, %v5774_v62  ;;  %12992 = vmatprep.subr.bf16.mxu0 %v13630_v29 }
 0x39a   : > { %v6273_v26 = vor.u32 %v6271_v59, %v6270_v41  ;;  %v6275_v42 = vrot.slane %v6270_v41, 4  ;;  %v16628_v39 = vsel %vm5840_vm4, %v16527_v20, %v11588_v32  ;;  %vm5841_vm6 = vcmp.gt.f32.partialorder %v16568_v3, 0.0  ;;  %12960 = vmatprep.mubr.bf16.mxu1 %v6014_v1  ;;  %13047 = vmatpush3.bf16.msra.mxu1 %v13639_v60  ;;  %v6454_v1 = vld [vmem:[#allocation2 + $0x3c] sm:$0xf] }
 0x39b   : > { %v5772_v12 = vadd.f32 %v5719_v61, %v16307_v45  ;;  %v13618_v2 = vld [vmem:[#allocation2 + $0x24] sm:$0xff]   ;;  %v16632_v40 = vpop.eup %13757  ;;  %v11940_v11 = vpack.c.bf16 %v16628_v39, %v16628_v39  ;;  %v5930_v10 = vmul.f32 1.442695, %v5874_v16  ;;  %v6175_v50 = vshrl.u32 %v11926_v31, 16  ;;  %12961 = vmatmul.mubr.bf16.gmra.mxu1 %v6015_v18  ;;  %13128 = vmatprep.subr.bf16.mxu1 %v16623_v9 }
 0x39c   : > { %v6183_v28 = vshrl.u32 %v11927_v27, 16  ;;  %v6274_v20 = vsel %vm14406_vm14, %v6266_v35, %v6273_v26  ;;  %v6494_v53 = vsel %vm14200_vm2, %v6275_v42, %v6493_v54  ;;  %v6178_v45 = vshll.u32 %v11926_v31, 16  ;;  %12909 = vmatmul.mubr.bf16.gmra.mxu0 %v13618_v2  ;;  %v16645_v35 = vld [vmem:[%s18545_s4] ss:$0 sm:$0xff]  ;;  %v6458_v54 = vld [vmem:[#allocation2 + $0x44] sm:$0x1] }
 0x39d   : > { %v6186_v58 = vshll.u32 %v11927_v27, 16  ;;  %6492 = vst [vmem:[#allocation2 + $0x7c] sm:$0xf] %v6274_v20  ;;  %6495 = vst [vmem:[#allocation2 + $0x80] sm:$0x1] %v6494_v53  ;;  %v6294_v61 = vshrl.u32 %v11940_v11, 16  ;;  %12912 = vmatprep.mubr.bf16.mxu0 %v13619_v47  ;;  %12993 = vmatpush3.bf16.msra.mxu0 %v13630_v29  ;;  %v16648_v37 = vadd.f32 %v16645_v35, %v5772_v12  ;;  %13765 = vpow2.f32 %v5924_v56 }
 0x39e   : > { %v6297_v22 = vshll.u32 %v11940_v11, 16  ;;  %v6177_v49 = vrot.slane %v6175_v50, 7  ;;  %v6185_v13 = vrot.slane %v6183_v28, 7  ;;  %vm5830_vm7 = vcmp.gt.f32.partialorder %v16381_v7, 0.0  ;;  %12994 = vmatprep.subr.bf16.mxu0 %v13635_v46  ;;  %v6503_v31 = vld [vmem:[#allocation2 + $0x90] sm:$0xf] }
 0x39f   : > { %v5877_v16 = vmin.f32 %v16621_v55, 0.0  ;;  %v5777_v60 = vadd.f32 %v12886_v30, %v16311_v52  ;;  %v5775_v38 = vadd.f32 %v5732_v15, %v16317_v48  ;;  %v16653_v59 = vrot.slane %v6294_v61, 7  ;;  %v13643_v42 = vld [vmem:[#allocation10 + $0x40] sm:$0xff]   ;;  %v16687_v53 = vld [vmem:[#allocation10 + $0xf8] sm:$0xff]  }
 0x3a0   : > { %v6180_v5 = vor.u32 %v6178_v45, %v6177_v49  ;;  %v6181_v29 = vrot.slane %v6177_v49, 4  ;;  %v6188_v8 = vor.u32 %v6186_v58, %v6185_v13  ;;  %v13760_v57 = vpop.eup %13759  ;;  %v6190_v4 = vrot.slane %v6185_v13, 4  ;;  %v12887_v49 = vpop.f32.mrf.mxu1 }
 0x3a1   : > { %v5936_v18 = vmul.f32 1.442695, %v5877_v16  ;;  %v5875_v62 = vmin.f32 %v16648_v37, 0.0  ;;  %v16657_v41 = vadd.f32 %v16645_v35, %v5777_v60  ;;  %v16659_v52 = vpop.eup %13761  ;;  %v6299_v48 = vor.u32 %v6297_v22, %v16653_v59  ;;  %12995 = vmatpush3.bf16.msra.mxu0 %v13635_v46  ;;  %v18868_v22 = vld [vmem:[#allocation70_spill] sm:$0xff] }
 0x3a2   : > { %v11589_v30 = vadd.f32 -1.0, %v13760_v57  ;;  %v6189_v32 = vsel %vm14406_vm14, %v6181_v29, %v6188_v8  ;;  %vm5844_vm9 = vcmp.gt.f32.partialorder %v16580_v36, 0.0  ;;  %v6455_v27 = vsel %vm14376_vm13, %v6180_v5, %v6454_v1  ;;  %12996 = vmatprep.subr.bf16.mxu0 %v13640_v63  ;;  %v18870_v29 = vld [vmem:[#allocation64_spill] sm:$0xff] }
 0x3a3   : > { %6457 = vst [vmem:[#allocation2 + $0x40] sm:$0xf] %v6189_v32  ;;  %v6459_v26 = vsel %vm14200_vm2, %v6190_v4, %v6458_v54  ;;  %13767 = vpow2.f32 %v5936_v18  ;;  %v6504_v56 = vsel %vm14376_vm13, %v6299_v48, %v6503_v31  ;;  %6456 = vst [vmem:[#allocation2 + $0x3c] sm:$0xf] %v6455_v27  ;;  %v5880_v12 = vmin.f32 %v16657_v41, 0.0  ;;  %v5735_v18 = vpop.f32.mrf.mxu1  ;;  %v13623_v48 = vld [vmem:[#allocation2 + $0x48] sm:$0xff]  }
 0x3a4   : > { %v16674_v46 = vsel %vm5841_vm6, %v16568_v3, %v11589_v30  ;;  %13769 = vpow2.f32 %v5930_v10  ;;  %6460 = vst [vmem:[#allocation2 + $0x44] sm:$0x1] %v6459_v26  ;;  %v6300_v2 = vrot.slane %v16653_v59, 4  ;;  %6505 = vst [vmem:[#allocation2 + $0x90] sm:$0xf] %v6504_v56  ;;  %v16681_v28 = vadd.f32 %v16645_v35, %v5775_v38  ;;  %v18869_v38 = vld [vmem:[#allocation75_spill] sm:$0xff] }
 0x3a5   : > { %v11941_v11 = vpack.c.bf16 %v16674_v46, %v16674_v46  ;;  %v5932_v50 = vmul.f32 1.442695, %v5875_v62  ;;  %v13764_v15 = vpop.eup %13763  ;;  %v5942_v47 = vmul.f32 1.442695, %v5880_v12  ;;  %v11578_v3 = vadd.f32 -1.0, %v16598_v23  ;;  %12997 = vmatpush3.bf16.msra.mxu0 %v13640_v63 }
 0x3a6   : > { %v11579_v10 = vadd.f32 -1.0, %v16604_v51  ;;  %v6017_v20 = vpack.c.bf16 %v16504_v24, %v16472_v19  ;;  %v11592_v61 = vadd.f32 -1.0, %v13764_v15  ;;  %vm5831_vm10 = vcmp.gt.f32.partialorder %v18868_v22, 0.0  ;;  %12998 = vmatprep.subr.bf16.mxu0 %v13643_v42  ;;  %v6507_v63 = vld [vmem:[#allocation2 + $0x98] sm:$0x1] }
 0x3a7   : > { %v6302_v45 = vshrl.u32 %v11941_v11, 16  ;;  %v6305_v58 = vshll.u32 %v11941_v11, 16  ;;  %13771 = vpow2.f32 %v5942_v47  ;;  %v5878_v13 = vmin.f32 %v16681_v28, 0.0 }
 0x3a8   : > { %v5990_v23 = vsel %vm5830_vm7, %v16381_v7, %v11578_v3  ;;  %v5991_v51 = vsel %vm5831_vm10, %v18868_v22, %v11579_v10  ;;  %v16698_v24 = vsel %vm5844_vm9, %v16580_v36, %v11592_v61  ;;  %vm5834_vm12 = vcmp.gt.f32.partialorder %v18869_v38, 0.0 }
 0x3a9   : > { %v6304_v19 = vrot.slane %v6302_v45, 7  ;;  %v6016_v16 = vpack.c.bf16 %v5991_v51, %v5990_v23  ;;  %v11930_v60 = vpack.c.bf16 %v5990_v23, %v5990_v23  ;;  %v11944_v59 = vpack.c.bf16 %v16698_v24, %v16698_v24  ;;  %12999 = vmatpush3.bf16.msra.mxu0 %v13643_v42 }
 0x3aa   : > { %vm5845_vm15 = vcmp.gt.f32.partialorder %v16621_v55, 0.0  ;;  %v5938_v5 = vmul.f32 1.442695, %v5878_v13  ;;  %v11931_v7 = vpack.c.bf16 %v5991_v51, %v5991_v51  ;;  %v5778_v8 = vadd.f32 %v12887_v49, %v18870_v29  ;;  %v13621_v62 = vld [vmem:[#allocation2 + $0x3c] sm:$0xff]   ;;  %13080 = vmatprep.subr.bf16.mxu0 %v16687_v53  ;;  %v13766_v47 = vpop.eup %13765  ;;  %v6468_v49 = vld [vmem:[#allocation2 + $0x54] sm:$0xf] }
 0x3ab   : > { %v6307_v57 = vor.u32 %v6305_v58, %v6304_v19  ;;  %v6309_v4 = vrot.slane %v6304_v19, 4  ;;  %13773 = vpow2.f32 %v5932_v50  ;;  %v6209_v36 = vshrl.u32 %v11930_v60, 16  ;;  %12964 = vmatprep.mubr.bf16.mxu1 %v6016_v16  ;;  %12913 = vmatmul.mubr.bf16.gmra.mxu0 %v13621_v62  ;;  %v18871_v50 = vld [vmem:[#allocation71_spill] sm:$0xff]  ;;  %v6517_v58 = vld [vmem:[#allocation2 + $0xa8] sm:$0xf] }
 0x3ac   : > { %v6328_v30 = vshrl.u32 %v11944_v59, 16  ;;  %v6331_v32 = vshll.u32 %v11944_v59, 16  ;;  %v6212_v1 = vshll.u32 %v11930_v60, 16  ;;  %v6217_v54 = vshrl.u32 %v11931_v7, 16  ;;  %12965 = vmatmul.mubr.bf16.gmra.mxu1 %v6017_v20  ;;  %12916 = vmatprep.mubr.bf16.mxu0 %v13623_v48 }
 0x3ad   : > { %v6308_v31 = vsel %vm14406_vm14, %v6300_v2, %v6307_v57  ;;  %v6508_v27 = vsel %vm14200_vm2, %v6309_v4, %v6507_v63  ;;  %v6211_v26 = vrot.slane %v6209_v36, 7  ;;  %v6220_v42 = vshll.u32 %v11931_v7, 16 }
 0x3ae   : > { %6506 = vst [vmem:[#allocation2 + $0x94] sm:$0xf] %v6308_v31  ;;  %6509 = vst [vmem:[#allocation2 + $0x98] sm:$0x1] %v6508_v27  ;;  %v16710_v56 = vrot.slane %v6328_v30, 7  ;;  %v6219_v12 = vrot.slane %v6217_v54, 7  ;;  %v16713_v11 = vadd.f32 %v16645_v35, %v5778_v8  ;;  %v5776_v15 = vadd.f32 %v5735_v18, %v18871_v50 }
 0x3af   : > { %vm5848_vm0 = vcmp.gt.f32.partialorder %v16657_v41, 0.0  ;;  %13775 = vpow2.f32 %v5938_v5  ;;  %v6214_v2 = vor.u32 %v6212_v1, %v6211_v26  ;;  %v6215_v3 = vrot.slane %v6211_v26, 4 }
 0x3b0   : > { %v11582_v10 = vadd.f32 -1.0, %v16610_v34  ;;  %v13768_v20 = vpop.eup %13767  ;;  %v6333_v45 = vor.u32 %v6331_v32, %v16710_v56  ;;  %v6222_v61 = vor.u32 %v6220_v42, %v6219_v12  ;;  %v6224_v22 = vrot.slane %v6219_v12, 4  ;;  %v6472_v34 = vld [vmem:[#allocation2 + $0x5c] sm:$0x1] }
 0x3b1   : > { %vm5835_vm1 = vcmp.gt.f32.partialorder %v16524_v14, 0.0  ;;  %v16720_v13 = vpop.eup %13769  ;;  %vm5838_vm3 = vcmp.gt.f32.partialorder %v16540_v33, 0.0  ;;  %v6334_v23 = vrot.slane %v16710_v56, 4  ;;  %v11593_v51 = vadd.f32 -1.0, %v13768_v20 }
 0x3b2   : > { %v6469_v19 = vsel %vm14376_vm13, %v6214_v2, %v6468_v49  ;;  %v5881_v16 = vmin.f32 %v16713_v11, 0.0  ;;  %v6518_v60 = vsel %vm14376_vm13, %v6333_v45, %v6517_v58  ;;  %v6223_v63 = vsel %vm14406_vm14, %v6215_v3, %v6222_v61  ;;  %v6521_v3 = vld [vmem:[#allocation2 + $0xb0] sm:$0x1]  ;;  %v13628_v61 = vld [vmem:[#allocation2 + $0x60] sm:$0xff]  }
 0x3b3   : > { %v6473_v59 = vsel %vm14200_vm2, %v6224_v22, %v6472_v34  ;;  %6470 = vst [vmem:[#allocation2 + $0x54] sm:$0xf] %v6469_v19  ;;  %v16734_v5 = vadd.f32 %v16645_v35, %v5776_v15  ;;  %6519 = vst [vmem:[#allocation2 + $0xa8] sm:$0xf] %v6518_v60  ;;  %v16739_v7 = vsel %vm5845_vm15, %v16621_v55, %v11593_v51  ;;  %v11583_v8 = vadd.f32 -1.0, %v16632_v40 }
 0x3b4   : > { %6471 = vst [vmem:[#allocation2 + $0x58] sm:$0xf] %v6223_v63  ;;  %6474 = vst [vmem:[#allocation2 + $0x5c] sm:$0x1] %v6473_v59  ;;  %v5944_v29 = vmul.f32 1.442695, %v5881_v16  ;;  %v5994_v57 = vsel %vm5834_vm12, %v18869_v38, %v11582_v10  ;;  %v11945_v4 = vpack.c.bf16 %v16739_v7, %v16739_v7  ;;  %v6019_v18 = vpack.c.bf16 %v16595_v0, %v16537_v6  ;;  %v13772_v55 = vpop.eup %13771 }
 0x3b5   : > { %v5879_v35 = vmin.f32 %v16734_v5, 0.0  ;;  %v11934_v36 = vpack.c.bf16 %v5994_v57, %v5994_v57  ;;  %v5995_v62 = vsel %vm5835_vm1, %v16524_v14, %v11583_v8  ;;  %vm5839_vm4 = vcmp.gt.f32.partialorder %v16577_v43, 0.0  ;;  %v6482_v19 = vld [vmem:[#allocation2 + $0x6c] sm:$0xf] }
 0x3b6   : > { %13777 = vpow2.f32 %v5944_v29  ;;  %v11586_v40 = vadd.f32 -1.0, %v16659_v52  ;;  %v6336_v38 = vshrl.u32 %v11945_v4, 16  ;;  %v6339_v48 = vshll.u32 %v11945_v4, 16  ;;  %v6486_v4 = vld [vmem:[#allocation2 + $0x74] sm:$0x1] }
 0x3b7   : > { %v11596_v30 = vadd.f32 -1.0, %v13772_v55  ;;  %v5940_v32 = vmul.f32 1.442695, %v5879_v35  ;;  %v6018_v1 = vpack.c.bf16 %v5995_v62, %v5994_v57  ;;  %v11935_v54 = vpack.c.bf16 %v5995_v62, %v5995_v62 }
 0x3b8   : > { %v6243_v31 = vshrl.u32 %v11934_v36, 16  ;;  %v6246_v27 = vshll.u32 %v11934_v36, 16  ;;  %v13774_v26 = vpop.eup %13773  ;;  %v6338_v6 = vrot.slane %v6336_v38, 7  ;;  %v11587_v14 = vadd.f32 -1.0, %v13766_v47 }
 0x3b9   : > { %v16758_v0 = vsel %vm5848_vm0, %v16657_v41, %v11596_v30  ;;  %13779 = vpow2.f32 %v5940_v32  ;;  %v6251_v56 = vshrl.u32 %v11935_v54, 16  ;;  %v6254_v12 = vshll.u32 %v11935_v54, 16  ;;  %12968 = vmatprep.mubr.bf16.mxu1 %v6018_v1 }
 0x3ba   : > { %v11948_v52 = vpack.c.bf16 %v16758_v0, %v16758_v0  ;;  %v6245_v42 = vrot.slane %v6243_v31, 7  ;;  %vm5842_vm5 = vcmp.gt.f32.partialorder %v16589_v44, 0.0  ;;  %v6341_v50 = vor.u32 %v6339_v48, %v6338_v6  ;;  %12969 = vmatmul.mubr.bf16.gmra.mxu1 %v6019_v18  ;;  %v6531_v18 = vld [vmem:[#allocation2 + $0xc0] sm:$0xf] }
 0x3bb   : > { %v6343_v15 = vrot.slane %v6338_v6, 4  ;;  %v5998_v2 = vsel %vm5838_vm3, %v16540_v33, %v11586_v40  ;;  %v5999_v41 = vsel %vm5839_vm4, %v16577_v43, %v11587_v14  ;;  %v13626_v47 = vld [vmem:[#allocation2 + $0x54] sm:$0xff]   ;;  %vm5849_vm6 = vcmp.gt.f32.partialorder %v16713_v11, 0.0 }
 0x3bc   : > { %v6362_v10 = vshrl.u32 %v11948_v52, 16  ;;  %v6365_v20 = vshll.u32 %v11948_v52, 16  ;;  %v6248_v45 = vor.u32 %v6246_v27, %v6245_v42  ;;  %v6249_v58 = vrot.slane %v6245_v42, 4  ;;  %v13776_v22 = vpop.eup %13775  ;;  %12917 = vmatmul.mubr.bf16.gmra.mxu0 %v13626_v47 }
 0x3bd   : > { %v6342_v49 = vsel %vm14406_vm14, %v6334_v23, %v6341_v50  ;;  %v6522_v51 = vsel %vm14200_vm2, %v6343_v15, %v6521_v3  ;;  %v6253_v33 = vrot.slane %v6251_v56, 7  ;;  %v6020_v34 = vpack.c.bf16 %v5999_v41, %v5998_v2  ;;  %12920 = vmatprep.mubr.bf16.mxu0 %v13628_v61  ;;  %v6500_v15 = vld [vmem:[#allocation2 + $0x8c] sm:$0x1] }
 0x3be   : > { %6520 = vst [vmem:[#allocation2 + $0xac] sm:$0xf] %v6342_v49  ;;  %6523 = vst [vmem:[#allocation2 + $0xb0] sm:$0x1] %v6522_v51  ;;  %v16774_v43 = vrot.slane %v6362_v10, 7  ;;  %v6483_v16 = vsel %vm14376_vm13, %v6248_v45, %v6482_v19  ;;  %v11938_v60 = vpack.c.bf16 %v5998_v2, %v5998_v2  ;;  %v11939_v63 = vpack.c.bf16 %v5999_v41, %v5999_v41  ;;  %v13633_v19 = vld [vmem:[#allocation2 + $0x78] sm:$0xff]  }
 0x3bf   : > { %v6256_v23 = vor.u32 %v6254_v12, %v6253_v33  ;;  %v6258_v59 = vrot.slane %v6253_v33, 4  ;;  %6484 = vst [vmem:[#allocation2 + $0x6c] sm:$0xf] %v6483_v16  ;;  %12972 = vmatprep.mubr.bf16.mxu1 %v6020_v34  ;;  %v6021_v29 = vpack.c.bf16 %v16674_v46, %v16628_v39  ;;  %vm5843_vm7 = vcmp.gt.f32.partialorder %v16648_v37, 0.0 }
 0x3c0   : > { %v6367_v8 = vor.u32 %v6365_v20, %v16774_v43  ;;  %v6368_v57 = vrot.slane %v16774_v43, 4  ;;  %vm5846_vm9 = vcmp.gt.f32.partialorder %v16681_v28, 0.0  ;;  %v6277_v35 = vshrl.u32 %v11938_v60, 16 }
 0x3c1   : > { %v6280_v36 = vshll.u32 %v11938_v60, 16  ;;  %v6257_v55 = vsel %vm14406_vm14, %v6249_v58, %v6256_v23  ;;  %v6487_v62 = vsel %vm14200_vm2, %v6258_v59, %v6486_v4  ;;  %v6285_v40 = vshrl.u32 %v11939_v63, 16 }
 0x3c2   : > { %v6288_v39 = vshll.u32 %v11939_v63, 16  ;;  %v6532_v46 = vsel %vm14376_vm13, %v6367_v8, %v6531_v18  ;;  %6485 = vst [vmem:[#allocation2 + $0x70] sm:$0xf] %v6257_v55  ;;  %6488 = vst [vmem:[#allocation2 + $0x74] sm:$0x1] %v6487_v62  ;;  %v6279_v38 = vrot.slane %v6277_v35, 7  ;;  %12973 = vmatmul.mubr.bf16.gmra.mxu1 %v6021_v29  ;;  %v6023_v54 = vpack.c.bf16 %v16739_v7, %v16698_v24 }
 0x3c3   : > { %v11590_v48 = vadd.f32 -1.0, %v16720_v13  ;;  %v11591_v30 = vadd.f32 -1.0, %v13774_v26  ;;  %v13778_v32 = vpop.eup %13777  ;;  %6533 = vst [vmem:[#allocation2 + $0xc0] sm:$0xf] %v6532_v46  ;;  %v6287_v1 = vrot.slane %v6285_v40, 7  ;;  %vm5847_vm10 = vcmp.gt.f32.partialorder %v16734_v5, 0.0 }
 0x3c4   : > { %v11594_v31 = vadd.f32 -1.0, %v13776_v22  ;;  %v11597_v27 = vadd.f32 -1.0, %v13778_v32  ;;  %v6282_v6 = vor.u32 %v6280_v36, %v6279_v38  ;;  %v6283_v14 = vrot.slane %v6279_v38, 4  ;;  %v6496_v26 = vld [vmem:[#allocation2 + $0x84] sm:$0xf] }
 0x3c5   : > { %v6002_v52 = vsel %vm5842_vm5, %v16589_v44, %v11590_v48  ;;  %v6290_v42 = vor.u32 %v6288_v39, %v6287_v1  ;;  %v6292_v13 = vrot.slane %v6287_v1, 4  ;;  %v6003_v56 = vsel %vm5843_vm7, %v16648_v37, %v11591_v30  ;;  %v6510_v29 = vld [vmem:[#allocation2 + $0x9c] sm:$0xf]  ;;  %v6514_v8 = vld [vmem:[#allocation2 + $0xa4] sm:$0x1] }
 0x3c6   : > { %v11942_v12 = vpack.c.bf16 %v6002_v52, %v6002_v52  ;;  %v13780_v50 = vpop.eup %13779  ;;  %v16803_v24 = vsel %vm5849_vm6, %v16713_v11, %v11597_v27  ;;  %v6497_v7 = vsel %vm14376_vm13, %v6282_v6, %v6496_v26  ;;  %v6022_v2 = vpack.c.bf16 %v6003_v56, %v6002_v52  ;;  %v6535_v35 = vld [vmem:[#allocation2 + $0xc8] sm:$0x1]  ;;  %v7872_v62 = vld [vmem:[#allocation2 + $0xc] sm:$0xe]  ;;  %v7873_v40 = vld [vmem:[#allocation2 + $0x18] sm:$0xe] }
 0x3c7   : > { %v11943_v44 = vpack.c.bf16 %v6003_v56, %v6003_v56  ;;  %v11949_v41 = vpack.c.bf16 %v16803_v24, %v16803_v24  ;;  %v6291_v47 = vsel %vm14406_vm14, %v6283_v14, %v6290_v42  ;;  %v6501_v37 = vsel %vm14200_vm2, %v6292_v13, %v6500_v15  ;;  %6498 = vst [vmem:[#allocation2 + $0x84] sm:$0xf] %v6497_v7  ;;  %v16825_v48 = vld [vmem:[#allocation2 + $0x10] sm:$0xf]  ;;  %v16827_v30 = vld [vmem:[#allocation2 + $0x20] sm:$0x1] }
 0x3c8   : > { %v6311_v3 = vshrl.u32 %v11942_v12, 16  ;;  %6499 = vst [vmem:[#allocation2 + $0x88] sm:$0xf] %v6291_v47  ;;  %6502 = vst [vmem:[#allocation2 + $0x8c] sm:$0x1] %v6501_v37  ;;  %v6314_v11 = vshll.u32 %v11942_v12, 16  ;;  %12976 = vmatprep.mubr.bf16.mxu1 %v6022_v2  ;;  %v6006_v51 = vsel %vm5846_vm9, %v16681_v28, %v11594_v31  ;;  %v6025_v60 = vpack.c.bf16 %v16803_v24, %v16758_v0 }
 0x3c9   : > { %v6319_v10 = vshrl.u32 %v11943_v44, 16  ;;  %v6322_v20 = vshll.u32 %v11943_v44, 16  ;;  %v11595_v45 = vadd.f32 -1.0, %v13780_v50  ;;  %v6370_v58 = vshrl.u32 %v11949_v41, 16  ;;  %v13631_v49 = vld [vmem:[#allocation2 + $0x6c] sm:$0xff]  }
 0x3ca   : > { %v6373_v61 = vshll.u32 %v11949_v41, 16  ;;  %v6313_v22 = vrot.slane %v6311_v3, 7  ;;  %v11946_v16 = vpack.c.bf16 %v6006_v51, %v6006_v51  ;;  %12921 = vmatmul.mubr.bf16.gmra.mxu0 %v13631_v49  ;;  %12977 = vmatmul.mubr.bf16.gmra.mxu1 %v6023_v54  ;;  %v16833_v27 = vld [vmem:[#allocation2 + $0x14] sm:$0x1]  ;;  %v11687_v26 = vrot.slane %v7872_v62, 9 }
 0x3cb   : > { %v6321_v33 = vrot.slane %v6319_v10, 7  ;;  %v6007_v34 = vsel %vm5847_vm10, %v16734_v5, %v11595_v45  ;;  %v6372_v63 = vrot.slane %v6370_v58, 7  ;;  %12924 = vmatprep.mubr.bf16.mxu0 %v13633_v19  ;;  %v16821_v5 = vld [vmem:[#allocation2 + $0x1c] sm:$0xf]  ;;  %v6524_v42 = vld [vmem:[#allocation2 + $0xb4] sm:$0xf] }
 0x3cc   : > { %v6316_v23 = vor.u32 %v6314_v11, %v6313_v22  ;;  %v6317_v59 = vrot.slane %v6313_v22, 4  ;;  %v6024_v4 = vpack.c.bf16 %v6007_v34, %v6006_v51  ;;  %v11947_v18 = vpack.c.bf16 %v6007_v34, %v6007_v34  ;;  %v16841_v56 = vld [vmem:[#allocation2 + $0x28] sm:$0xf]  ;;  %v7874_v7 = vld [vmem:[#allocation2 + $0x24] sm:$0xe]  ;;  %v13638_v11 = vld [vmem:[#allocation2 + $0x90] sm:$0xff]  }
 0x3cd   : > { %v6324_v28 = vor.u32 %v6322_v20, %v6321_v33  ;;  %v6326_v36 = vrot.slane %v6321_v33, 4  ;;  %v6345_v55 = vshrl.u32 %v11946_v16, 16  ;;  %v6375_v39 = vor.u32 %v6373_v61, %v6372_v63  ;;  %v16847_v41 = vld [vmem:[#allocation2 + $0x2c] sm:$0x1]  ;;  %v16853_v45 = vld [vmem:[#allocation2 + $0x34] sm:$0xf] }
 0x3ce   : > { %v6377_v0 = vrot.slane %v6372_v63, 4  ;;  %v6511_v46 = vsel %vm14376_vm13, %v6316_v23, %v6510_v29  ;;  %v6348_v38 = vshll.u32 %v11946_v16, 16  ;;  %12980 = vmatprep.mubr.bf16.mxu1 %v6024_v4  ;;  %v6353_v31 = vshrl.u32 %v11947_v18, 16  ;;  %v7875_v58 = vld [vmem:[#allocation2 + $0x30] sm:$0xe]  ;;  %v18873_v34 = vld [vmem:[#allocation69_spill] sm:$0xff] }
 0x3cf   : > { %v6325_v32 = vsel %vm14406_vm14, %v6317_v59, %v6324_v28  ;;  %v6515_v1 = vsel %vm14200_vm2, %v6326_v36, %v6514_v8  ;;  %6512 = vst [vmem:[#allocation2 + $0x9c] sm:$0xf] %v6511_v46  ;;  %v6347_v54 = vrot.slane %v6345_v55, 7  ;;  %v6376_v6 = vsel %vm14406_vm14, %v6368_v57, %v6375_v39  ;;  %v13636_v13 = vld [vmem:[#allocation2 + $0x84] sm:$0xff]   ;;  %v6528_v61 = vld [vmem:[#allocation2 + $0xbc] sm:$0x1] }
 0x3d0   : > { %v6536_v14 = vsel %vm14200_vm2, %v6377_v0, %v6535_v35  ;;  %6513 = vst [vmem:[#allocation2 + $0xa0] sm:$0xf] %v6325_v32  ;;  %6516 = vst [vmem:[#allocation2 + $0xa4] sm:$0x1] %v6515_v1  ;;  %v6356_v52 = vshll.u32 %v11947_v18, 16  ;;  %v6355_v24 = vrot.slane %v6353_v31, 7 }
 0x3d1   : > { %6534 = vst [vmem:[#allocation2 + $0xc4] sm:$0xf] %v6376_v6  ;;  %6537 = vst [vmem:[#allocation2 + $0xc8] sm:$0x1] %v6536_v14  ;;  %v6350_v12 = vor.u32 %v6348_v38, %v6347_v54  ;;  %v6351_v50 = vrot.slane %v6347_v54, 4  ;;  %v7944_v43 = vrot.slane %v16825_v48, 5 }
 0x3d2   : > { %v7947_v57 = vrot.slane %v16833_v27, 5  ;;  %v11688_v15 = vrot.slane %v7873_v40, 9  ;;  %v7951_v2 = vrot.slane %v16821_v5, 5  ;;  %v7954_v44 = vrot.slane %v16827_v30, 5  ;;  %12925 = vmatmul.mubr.bf16.gmra.mxu0 %v13636_v13  ;;  %12981 = vmatmul.mubr.bf16.gmra.mxu1 %v6025_v60  ;;  %v18874_v16 = vld [vmem:[#allocation73_spill] sm:$0xff] }
 0x3d3   : > { %v6358_v47 = vor.u32 %v6356_v52, %v6355_v24  ;;  %v6360_v37 = vrot.slane %v6355_v24, 4  ;;  %v6525_v3 = vsel %vm14376_vm13, %v6350_v12, %v6524_v42  ;;  %v7945_v20 = vsel %vm14306_vm8, %v11687_v26, %v7944_v43  ;;  %12928 = vmatprep.mubr.bf16.mxu0 %v13638_v11  ;;  %v16866_v59 = vld [vmem:[#allocation2 + $0x38] sm:$0x1]  ;;  %v7117_v29 = vld [vmem:[#allocation2] sm:$0xf]  ;;  %v13649_v12 = vld [vmem:[#allocation10 + $0x170] sm:$0xff]  }
 0x3d4   : > { %6526 = vst [vmem:[#allocation2 + $0xb4] sm:$0xf] %v6525_v3  ;;  %v7946_v22 = vrot.slane %v7944_v43, 4  ;;  %v7952_v49 = vsel %vm14306_vm8, %v11688_v15, %v7951_v2  ;;  %v7953_v51 = vrot.slane %v7951_v2, 4  ;;  %v11689_v33 = vrot.slane %v7874_v7, 9 }
 0x3d5   : > { %v6359_v21 = vsel %vm14406_vm14, %v6351_v50, %v6358_v47  ;;  %v6529_v19 = vsel %vm14200_vm2, %v6360_v37, %v6528_v61  ;;  %v18875_v63 = vcombine.low %v18873_v34, %v18874_v16  ;;  %v7958_v23 = vrot.slane %v16841_v56, 5  ;;  %v13792_v32 = vld [vmem:[#allocation2 + $0x4] sm:$0xf]  ;;  %v7120_v31 = vld [vmem:[#allocation2 + $0xc] sm:$0xf] }
 0x3d6   : > { %v7961_v60 = vrot.slane %v16847_v41, 5  ;;  %6527 = vst [vmem:[#allocation2 + $0xb8] sm:$0xf] %v6359_v21  ;;  %6530 = vst [vmem:[#allocation2 + $0xbc] sm:$0x1] %v6529_v19  ;;  %v7948_v25 = vsel %vm14306_vm8, %v7946_v22, %v7947_v57  ;;  %v7955_v17 = vsel %vm14306_vm8, %v7953_v51, %v7954_v44  ;;  %v11690_v8 = vrot.slane %v7875_v58, 9 }
 0x3d7   : > { %13048 = vmatprep.mubr.bf16.mxu1 %v18875_v63  ;;  %v7965_v4 = vrot.slane %v16853_v45, 5  ;;  %v11703_v35 = vcombine.low %v7945_v20, %v7948_v25  ;;  %v11704_v28 = vcombine.low %v7952_v49, %v7955_v17  ;;  %v16875_v36 = vsel %vm14306_vm8, %v11689_v33, %v7958_v23  ;;  %v13641_v55 = vld [vmem:[#allocation2 + $0x9c] sm:$0xff]   ;;  %v13793_v42 = vld [vmem:[#allocation2 + $0x8] sm:$0x1]  ;;  %v7123_v15 = vld [vmem:[#allocation2 + $0x18] sm:$0xf] }
 0x3d8   : > { %v7960_v18 = vrot.slane %v7958_v23, 4  ;;  %v7968_v39 = vrot.slane %v16866_v59, 5  ;;  %v7166_v0 = vshrl.u32 %v7117_v29, 16  ;;  %v7169_v38 = vshll.u32 %v7117_v29, 16  ;;  %v7876_v26 = vld [vmem:[#allocation2 + $0x3c] sm:$0xe] }
 0x3d9   : > { %v16879_v62 = vsel %vm14306_vm8, %v11690_v8, %v7965_v4  ;;  %v7967_v40 = vrot.slane %v7965_v4, 4  ;;  %v7175_v1 = vshll.u32 %v13792_v32, 16  ;;  %v7179_v54 = vshrl.u32 %v13792_v32, 16  ;;  %v13642_v50 = vld [vmem:[#allocation2 + $0xa8] sm:$0xff]   ;;  %v16895_v3 = vld [vmem:[#allocation2 + $0x40] sm:$0xf] }
 0x3da   : > { %v16884_v46 = vsel %vm14306_vm8, %v7960_v18, %v7961_v60  ;;  %v7168_v52 = vrot.slane %v7166_v0, 4  ;;  %v7185_v13 = vshll.u32 %v13793_v42, 16  ;;  %v7171_v43 = vrot.slane %v7169_v38, 5  ;;  %12929 = vmatmul.mubr.bf16.gmra.mxu0 %v13641_v55  ;;  %13049 = vmatmul.mubr.bf16.vlgmr.msra.gmra.mxu1 %v11703_v35  ;;  %v16899_v22 = vld [vmem:[#allocation2 + $0x44] sm:$0x1]  ;;  %v13652_v32 = vld [vmem:[#allocation10 + $0x160] sm:$0xff]  }
 0x3db   : > { %v11705_v6 = vcombine.low %v16875_v36, %v16884_v46  ;;  %v16890_v14 = vsel %vm14306_vm8, %v7967_v40, %v7968_v39  ;;  %v7177_v7 = vrot.slane %v7175_v1, 5  ;;  %v7181_v57 = vrot.slane %v7179_v54, 4  ;;  %12932 = vmatprep.mubr.bf16.mxu0 %v13642_v50  ;;  %13052 = vmatprep.mubr.bf16.mxu1 %v11704_v28  ;;  %v13651_v23 = vld [vmem:[#allocation10 + $0x168] sm:$0xff]   ;;  %v7877_v40 = vld [vmem:[#allocation2 + $0x48] sm:$0xe] }
 0x3dc   : > { %v11706_v24 = vcombine.low %v16879_v62, %v16890_v14  ;;  %v7187_v2 = vrot.slane %v7185_v13, 5  ;;  %v7190_v44 = vshrl.u32 %v7120_v31, 16  ;;  %v7193_v47 = vshll.u32 %v7120_v31, 16  ;;  %13129 = vmatpush3.bf16.msra.mxu1 %v16623_v9  ;;  %v16910_v62 = vld [vmem:[#allocation2 + $0x4c] sm:$0xf] }
 0x3dd   : > { %v7199_v37 = vshll.u32 %v16825_v48, 16  ;;  %v7172_v11 = vor.u32 %v7171_v43, %v7168_v52  ;;  %v7182_v20 = vor.u32 %v7181_v57, %v7177_v7  ;;  %v7203_v58 = vshrl.u32 %v16825_v48, 16  ;;  %13130 = vmatprep.subr.bf16.mxu1 %v13649_v12  ;;  %v13644_v60 = vld [vmem:[#allocation2 + $0xb4] sm:$0xff]   ;;  %v16919_v52 = vld [vmem:[#allocation2 + $0x50] sm:$0x1] }
 0x3de   : > { %v7209_v61 = vshll.u32 %v16833_v27, 16  ;;  %v7192_v49 = vrot.slane %v7190_v44, 4  ;;  %v7195_v51 = vrot.slane %v7193_v47, 5  ;;  %v11691_v21 = vrot.slane %v7876_v26, 9  ;;  %v7126_v42 = vld [vmem:[#allocation2 + $0x24] sm:$0xf] }
 0x3df   : > { %v7201_v33 = vrot.slane %v7199_v37, 5  ;;  %v7173_v19 = vrot.slane %v7172_v11, 4  ;;  %v7183_v34 = vrot.slane %v7182_v20, 4  ;;  %v7205_v16 = vrot.slane %v7203_v58, 4  ;;  %v7878_v58 = vld [vmem:[#allocation2 + $0x54] sm:$0xe] }
 0x3e0   : > { %v7211_v63 = vrot.slane %v7209_v61, 5  ;;  %v7196_v29 = vor.u32 %v7195_v51, %v7192_v49  ;;  %v7972_v48 = vrot.slane %v16895_v3, 5  ;;  %v7975_v27 = vrot.slane %v16899_v22, 5  ;;  %13131 = vmatpush3.bf16.msra.mxu1 %v13649_v12 }
 0x3e1   : > { %v7214_v25 = vshrl.u32 %v7123_v15, 16  ;;  %v7178_v8 = vsel %vm14344_vm11, %v7173_v19, %v7177_v7  ;;  %v7188_v4 = vsel %vm14344_vm11, %v7183_v34, %v7187_v2  ;;  %v7206_v9 = vor.u32 %v7205_v16, %v7201_v33  ;;  %13132 = vmatprep.subr.bf16.mxu1 %v13651_v23  ;;  %v13646_v34 = vld [vmem:[#allocation10 + $0xf0] sm:$0xff]  }
 0x3e2   : > { %v7217_v35 = vshll.u32 %v7123_v15, 16  ;;  %v11662_v28 = vcombine.low %v7178_v8, %v7188_v4  ;;  %v7197_v36 = vrot.slane %v7196_v29, 4  ;;  %v7973_v18 = vsel %vm14306_vm8, %v11691_v21, %v7972_v48  ;;  %12933 = vmatmul.mubr.bf16.gmra.mxu0 %v13644_v60  ;;  %13053 = vmatmul.mubr.bf16.gmra.mxu1 %v11705_v6  ;;  %v13654_v15 = vld [vmem:[#allocation10 + $0x158] sm:$0xff]   ;;  %v16933_v21 = vld [vmem:[#allocation2 + $0x5c] sm:$0x1] }
 0x3e3   : > { %v7974_v55 = vrot.slane %v7972_v48, 4  ;;  %v7207_v39 = vrot.slane %v7206_v9, 4  ;;  %v7216_v0 = vrot.slane %v7214_v25, 4  ;;  %v7223_v38 = vshll.u32 %v16821_v5, 16  ;;  %13056 = vmatprep.mubr.bf16.mxu1 %v11706_v24  ;;  %v16925_v24 = vld [vmem:[#allocation2 + $0x58] sm:$0xf] }
 0x3e4   : > { %v7219_v46 = vrot.slane %v7217_v35, 5  ;;  %v7202_v1 = vsel %vm14344_vm11, %v7197_v36, %v7201_v33  ;;  %v7227_v31 = vshrl.u32 %v16821_v5, 16  ;;  %v7233_v14 = vshll.u32 %v16827_v30, 16  ;;  %13000 = vmatprep.mubr.bf16.mxu0 %v11662_v28  ;;  %13133 = vmatpush3.bf16.msra.mxu1 %v13651_v23  ;;  %v13655_v35 = vld [vmem:[#allocation10 + $0x150] sm:$0xff]  }
 0x3e5   : > { %v7976_v54 = vsel %vm14306_vm8, %v7974_v55, %v7975_v27  ;;  %v7212_v13 = vsel %vm14344_vm11, %v7207_v39, %v7211_v63  ;;  %v7225_v12 = vrot.slane %v7223_v38, 5  ;;  %v11692_v57 = vrot.slane %v7877_v40, 9  ;;  %13134 = vmatprep.subr.bf16.mxu1 %v13652_v32  ;;  %v7129_v27 = vld [vmem:[#allocation2 + $0x30] sm:$0xf]  ;;  %v13647_v55 = vld [vmem:[#allocation10 + $0xe8] sm:$0xff]  }
 0x3e6   : > { %v11707_v26 = vcombine.low %v7973_v18, %v7976_v54  ;;  %v7220_v6 = vor.u32 %v7219_v46, %v7216_v0  ;;  %v11663_v50 = vcombine.low %v7202_v1, %v7212_v13  ;;  %v7229_v43 = vrot.slane %v7227_v31, 4  ;;  %v7879_v38 = vld [vmem:[#allocation2 + $0x60] sm:$0xe]  ;;  %v16948_v31 = vld [vmem:[#allocation2 + $0x64] sm:$0xf] }
 0x3e7   : > { %v7235_v7 = vrot.slane %v7233_v14, 5  ;;  %v7979_v30 = vrot.slane %v16910_v62, 5  ;;  %v7982_v2 = vrot.slane %v16919_v52, 5  ;;  %v7238_v44 = vshrl.u32 %v7126_v42, 16 }
 0x3e8   : > { %v7221_v5 = vrot.slane %v7220_v6, 4  ;;  %v7230_v47 = vor.u32 %v7229_v43, %v7225_v12  ;;  %v7241_v37 = vshll.u32 %v7126_v42, 16  ;;  %v7247_v11 = vshll.u32 %v16841_v56, 16  ;;  %13135 = vmatpush3.bf16.msra.mxu1 %v13652_v32  ;;  %v16954_v6 = vld [vmem:[#allocation2 + $0x68] sm:$0x1] }
 0x3e9   : > { %v7251_v20 = vshrl.u32 %v16841_v56, 16  ;;  %v7980_v49 = vsel %vm14306_vm8, %v11692_v57, %v7979_v30  ;;  %v7981_v51 = vrot.slane %v7979_v30, 4  ;;  %v7240_v33 = vrot.slane %v7238_v44, 4  ;;  %13136 = vmatprep.subr.bf16.mxu1 %v13654_v15  ;;  %v13657_v57 = vld [vmem:[#allocation10 + $0x148] sm:$0xff]  }
 0x3ea   : > { %v7226_v61 = vsel %vm14344_vm11, %v7221_v5, %v7225_v12  ;;  %v7231_v19 = vrot.slane %v7230_v47, 4  ;;  %v7243_v16 = vrot.slane %v7241_v37, 5  ;;  %v7249_v63 = vrot.slane %v7247_v11, 5  ;;  %13001 = vmatmul.mubr.bf16.vlgmr.msra.gmra.mxu0 %v11663_v50  ;;  %13057 = vmatmul.mubr.bf16.gmra.mxu1 %v11707_v26  ;;  %v7132_v12 = vld [vmem:[#allocation2 + $0x3c] sm:$0xf] }
 0x3eb   : > { %v7253_v23 = vrot.slane %v7251_v20, 4  ;;  %v7983_v56 = vsel %vm14306_vm8, %v7981_v51, %v7982_v2  ;;  %v7257_v60 = vshll.u32 %v16847_v41, 16  ;;  %v11693_v29 = vrot.slane %v7878_v58, 9  ;;  %13081 = vmatpush3.bf16.msra.mxu0 %v16687_v53  ;;  %v7880_v20 = vld [vmem:[#allocation2 + $0x6c] sm:$0xe]  ;;  %v13658_v58 = vld [vmem:[#allocation10 + $0x140] sm:$0xff]  }
 0x3ec   : > { %v7986_v48 = vrot.slane %v16925_v24, 5  ;;  %v7236_v25 = vsel %vm14344_vm11, %v7231_v19, %v7235_v7  ;;  %v11708_v8 = vcombine.low %v7980_v49, %v7983_v56  ;;  %v7244_v4 = vor.u32 %v7243_v16, %v7240_v33  ;;  %13082 = vmatprep.subr.bf16.mxu0 %v13646_v34  ;;  %13137 = vmatpush3.bf16.msra.mxu1 %v13654_v15  ;;  %v13650_v7 = vld [vmem:[#allocation10 + $0xe0] sm:$0xff]   ;;  %v16962_v19 = vld [vmem:[#allocation2 + $0x70] sm:$0xf] }
 0x3ed   : > { %v7989_v9 = vrot.slane %v16933_v21, 5  ;;  %v11664_v28 = vcombine.low %v7226_v61, %v7236_v25  ;;  %v7254_v36 = vor.u32 %v7253_v23, %v7249_v63  ;;  %v7259_v41 = vrot.slane %v7257_v60, 5  ;;  %13138 = vmatprep.subr.bf16.mxu1 %v13655_v35  ;;  %v16966_v60 = vld [vmem:[#allocation2 + $0x74] sm:$0x1] }
 0x3ee   : > { %v7987_v18 = vsel %vm14306_vm8, %v11693_v29, %v7986_v48  ;;  %13060 = vmatprep.mubr.bf16.mxu1 %v11708_v8  ;;  %v7245_v40 = vrot.slane %v7244_v4, 4  ;;  %v7988_v39 = vrot.slane %v7986_v48, 4  ;;  %v7262_v0 = vshrl.u32 %v7129_v27, 16 }
 0x3ef   : > { %v7265_v46 = vshll.u32 %v7129_v27, 16  ;;  %13004 = vmatprep.mubr.bf16.mxu0 %v11664_v28  ;;  %v7255_v32 = vrot.slane %v7254_v36, 4  ;;  %v7271_v1 = vshll.u32 %v16853_v45, 16  ;;  %v7275_v53 = vshrl.u32 %v16853_v45, 16  ;;  %13083 = vmatpush3.bf16.msra.mxu0 %v13646_v34  ;;  %v7135_v34 = vld [vmem:[#allocation2 + $0x48] sm:$0xf] }
 0x3f0   : > { %v7281_v54 = vshll.u32 %v16866_v59, 16  ;;  %v7250_v14 = vsel %vm14344_vm11, %v7245_v40, %v7249_v63  ;;  %v7990_v42 = vsel %vm14306_vm8, %v7988_v39, %v7989_v9  ;;  %v7264_v13 = vrot.slane %v7262_v0, 4  ;;  %13084 = vmatprep.subr.bf16.mxu0 %v13647_v55  ;;  %13139 = vmatpush3.bf16.msra.mxu1 %v13655_v35  ;;  %v13653_v35 = vld [vmem:[#allocation10 + $0xd8] sm:$0xff]  }
 0x3f1   : > { %v7267_v26 = vrot.slane %v7265_v46, 5  ;;  %v7260_v45 = vsel %vm14344_vm11, %v7255_v32, %v7259_v41  ;;  %v11709_v50 = vcombine.low %v7987_v18, %v7990_v42  ;;  %v7273_v59 = vrot.slane %v7271_v1, 5  ;;  %13140 = vmatprep.subr.bf16.mxu1 %v13657_v57 }
 0x3f2   : > { %v7277_v43 = vrot.slane %v7275_v53, 4  ;;  %v11665_v15 = vcombine.low %v7250_v14, %v7260_v45  ;;  %v7283_v30 = vrot.slane %v7281_v54, 5  ;;  %v11694_v2 = vrot.slane %v7879_v38, 9  ;;  %v7881_v38 = vld [vmem:[#allocation2 + $0x78] sm:$0xe]  ;;  %v13656_v54 = vld [vmem:[#allocation10 + $0xd0] sm:$0xff]  }
 0x3f3   : > { %v7268_v5 = vor.u32 %v7267_v26, %v7264_v13  ;;  %v7993_v47 = vrot.slane %v16948_v31, 5  ;;  %v7996_v37 = vrot.slane %v16954_v6, 5  ;;  %v7286_v11 = vshrl.u32 %v7132_v12, 16  ;;  %13061 = vmatmul.mubr.bf16.gmra.mxu1 %v11709_v50  ;;  %13085 = vmatpush3.bf16.msra.mxu0 %v13647_v55  ;;  %v16975_v55 = vld [vmem:[#allocation10 + $0x1f8] sm:$0xff]  }
 0x3f4   : > { %v7278_v44 = vor.u32 %v7277_v43, %v7273_v59  ;;  %13005 = vmatmul.mubr.bf16.gmra.mxu0 %v11665_v15  ;;  %v7289_v49 = vshll.u32 %v7132_v12, 16  ;;  %v7295_v51 = vshll.u32 %v16895_v3, 16  ;;  %v7299_v33 = vshrl.u32 %v16895_v3, 16  ;;  %13086 = vmatprep.subr.bf16.mxu0 %v13650_v7  ;;  %v16983_v12 = vld [vmem:[#allocation2 + $0x7c] sm:$0xf] }
 0x3f5   : > { %v7269_v61 = vrot.slane %v7268_v5, 4  ;;  %v7994_v63 = vsel %vm14306_vm8, %v11694_v2, %v7993_v47  ;;  %v7995_v23 = vrot.slane %v7993_v47, 4  ;;  %v7288_v56 = vrot.slane %v7286_v11, 4  ;;  %13141 = vmatpush3.bf16.msra.mxu1 %v13657_v57  ;;  %v7138_v57 = vld [vmem:[#allocation2 + $0x54] sm:$0xf]  ;;  %v13659_v11 = vld [vmem:[#allocation10 + $0xc8] sm:$0xff]  }
 0x3f6   : > { %v7279_v16 = vrot.slane %v7278_v44, 4  ;;  %v7291_v48 = vrot.slane %v7289_v49, 5  ;;  %v7297_v27 = vrot.slane %v7295_v51, 5  ;;  %v7301_v25 = vrot.slane %v7299_v33, 4  ;;  %13142 = vmatprep.subr.bf16.mxu1 %v13658_v58 }
 0x3f7   : > { %v7274_v29 = vsel %vm14344_vm11, %v7269_v61, %v7273_v59  ;;  %v7997_v8 = vsel %vm14306_vm8, %v7995_v23, %v7996_v37  ;;  %v7305_v4 = vshll.u32 %v16899_v22, 16  ;;  %v11695_v9 = vrot.slane %v7880_v20, 9  ;;  %13087 = vmatpush3.bf16.msra.mxu0 %v13650_v7  ;;  %v16989_v7 = vld [vmem:[#allocation2 + $0x80] sm:$0x1] }
 0x3f8   : > { %v7284_v3 = vsel %vm14344_vm11, %v7279_v16, %v7283_v30  ;;  %v11710_v36 = vcombine.low %v7994_v63, %v7997_v8  ;;  %v7292_v41 = vor.u32 %v7291_v48, %v7288_v56  ;;  %v7302_v18 = vor.u32 %v7301_v25, %v7297_v27  ;;  %13088 = vmatprep.subr.bf16.mxu0 %v13653_v35  ;;  %v7141_v16 = vld [vmem:[#allocation2 + $0x60] sm:$0xf]  ;;  %v13660_v63 = vld [vmem:[#allocation10 + $0xc0] sm:$0xff]  }
 0x3f9   : > { %v11666_v28 = vcombine.low %v7274_v29, %v7284_v3  ;;  %v7307_v40 = vrot.slane %v7305_v4, 5  ;;  %v8000_v39 = vrot.slane %v16962_v19, 5  ;;  %v8003_v0 = vrot.slane %v16966_v60, 5  ;;  %13143 = vmatpush3.bf16.msra.mxu1 %v13658_v58 }
 0x3fa   : > { %v7310_v46 = vshrl.u32 %v7135_v34, 16  ;;  %13064 = vmatprep.mubr.bf16.mxu1 %v11710_v36  ;;  %v7293_v22 = vrot.slane %v7292_v41, 4  ;;  %v7303_v32 = vrot.slane %v7302_v18, 4  ;;  %v7313_v1 = vshll.u32 %v7135_v34, 16  ;;  %13224 = vmatprep.subr.bf16.mxu1 %v16975_v55 }
 0x3fb   : > { %13008 = vmatprep.mubr.bf16.mxu0 %v11666_v28  ;;  %v7319_v53 = vshll.u32 %v16910_v62, 16  ;;  %v8001_v14 = vsel %vm14306_vm8, %v11695_v9, %v8000_v39  ;;  %v8002_v42 = vrot.slane %v8000_v39, 4  ;;  %v7323_v26 = vshrl.u32 %v16910_v62, 16  ;;  %13089 = vmatpush3.bf16.msra.mxu0 %v13653_v35  ;;  %v17006_v9 = vld [vmem:[#allocation2 + $0x88] sm:$0xf] }
 0x3fc   : > { %v7312_v13 = vrot.slane %v7310_v46, 4  ;;  %v7298_v45 = vsel %vm14344_vm11, %v7293_v22, %v7297_v27  ;;  %v7308_v50 = vsel %vm14344_vm11, %v7303_v32, %v7307_v40  ;;  %v7315_v59 = vrot.slane %v7313_v1, 5  ;;  %13090 = vmatprep.subr.bf16.mxu0 %v13656_v54  ;;  %v7882_v27 = vld [vmem:[#allocation2 + $0x84] sm:$0xe]  ;;  %v17008_v35 = vld [vmem:[#allocation2 + $0x8c] sm:$0x1] }
 0x3fd   : > { %v7321_v43 = vrot.slane %v7319_v53, 5  ;;  %v11667_v15 = vcombine.low %v7298_v45, %v7308_v50  ;;  %v8004_v62 = vsel %vm14306_vm8, %v8002_v42, %v8003_v0  ;;  %v7325_v5 = vrot.slane %v7323_v26, 4  ;;  %v7883_v32 = vld [vmem:[#allocation2 + $0x90] sm:$0xe]  ;;  %v17016_v42 = vld [vmem:[#allocation2 + $0x94] sm:$0xf] }
 0x3fe   : > { %v7329_v30 = vshll.u32 %v16919_v52, 16  ;;  %v11711_v2 = vcombine.low %v8001_v14, %v8004_v62  ;;  %v7316_v44 = vor.u32 %v7315_v59, %v7312_v13  ;;  %v11696_v47 = vrot.slane %v7881_v38, 9  ;;  %v17018_v13 = vld [vmem:[#allocation2 + $0x98] sm:$0x1]  ;;  %v17020_v26 = vld [vmem:[#allocation10 + $0x1b8] sm:$0xff]  }
 0x3ff   : > { %v8007_v37 = vrot.slane %v16983_v12, 5  ;;  %13009 = vmatmul.mubr.bf16.gmra.mxu0 %v11667_v15  ;;  %v7326_v20 = vor.u32 %v7325_v5, %v7321_v43  ;;  %v8010_v61 = vrot.slane %v16989_v7, 5  ;;  %v7334_v49 = vshrl.u32 %v7138_v57, 16 }
 0x400   : > { %v7331_v58 = vrot.slane %v7329_v30, 5  ;;  %13065 = vmatmul.mubr.bf16.gmra.mxu1 %v11711_v2  ;;  %v7317_v51 = vrot.slane %v7316_v44, 4  ;;  %v7337_v34 = vshll.u32 %v7138_v57, 16  ;;  %v7343_v29 = vshll.u32 %v16925_v24, 16  ;;  %13091 = vmatpush3.bf16.msra.mxu0 %v13656_v54 }
 0x401   : > { %v8008_v33 = vsel %vm14306_vm8, %v11696_v47, %v8007_v37  ;;  %v8009_v52 = vrot.slane %v8007_v37, 4  ;;  %v7327_v23 = vrot.slane %v7326_v20, 4  ;;  %v7336_v56 = vrot.slane %v7334_v49, 4  ;;  %13092 = vmatprep.subr.bf16.mxu0 %v13659_v11 }
 0x402   : > { %v7347_v48 = vshrl.u32 %v16925_v24, 16  ;;  %v7322_v25 = vsel %vm14344_vm11, %v7317_v51, %v7321_v43  ;;  %v7339_v8 = vrot.slane %v7337_v34, 5  ;;  %v7353_v4 = vshll.u32 %v16933_v21, 16 }
 0x403   : > { %v8011_v3 = vsel %vm14306_vm8, %v8009_v52, %v8010_v61  ;;  %v7332_v28 = vsel %vm14344_vm11, %v7327_v23, %v7331_v58  ;;  %v7345_v36 = vrot.slane %v7343_v29, 5  ;;  %v11697_v0 = vrot.slane %v7882_v27, 9  ;;  %v7884_v52 = vld [vmem:[#allocation2 + $0x9c] sm:$0xe]  ;;  %v17038_v27 = vld [vmem:[#allocation2 + $0xa0] sm:$0xf] }
 0x404   : > { %v11712_v24 = vcombine.low %v8008_v33, %v8011_v3  ;;  %v7349_v41 = vrot.slane %v7347_v48, 4  ;;  %v11668_v18 = vcombine.low %v7322_v25, %v7332_v28  ;;  %v7340_v40 = vor.u32 %v7339_v8, %v7336_v56  ;;  %13093 = vmatpush3.bf16.msra.mxu0 %v13659_v11  ;;  %v17044_v28 = vld [vmem:[#allocation2 + $0xa4] sm:$0x1] }
 0x405   : > { %v7355_v39 = vrot.slane %v7353_v4, 5  ;;  %v8014_v38 = vrot.slane %v17006_v9, 5  ;;  %v8017_v21 = vrot.slane %v17008_v35, 5  ;;  %v7358_v22 = vshrl.u32 %v7141_v16, 16  ;;  %13094 = vmatprep.subr.bf16.mxu0 %v13660_v63 }
 0x406   : > { %13068 = vmatprep.mubr.bf16.mxu1 %v11712_v24  ;;  %v7350_v46 = vor.u32 %v7349_v41, %v7345_v36  ;;  %13012 = vmatprep.mubr.bf16.mxu0 %v11668_v18  ;;  %v7341_v1 = vrot.slane %v7340_v40, 4  ;;  %v7361_v53 = vshll.u32 %v7141_v16, 16  ;;  %v7367_v54 = vshll.u32 %v16948_v31, 16  ;;  %v7147_v24 = vld [vmem:[#allocation2 + $0x78] sm:$0xf] }
 0x407   : > { %v7371_v14 = vshrl.u32 %v16948_v31, 16  ;;  %v8015_v50 = vsel %vm14306_vm8, %v11697_v0, %v8014_v38  ;;  %v8016_v59 = vrot.slane %v8014_v38, 4  ;;  %v7360_v43 = vrot.slane %v7358_v22, 4  ;;  %v7144_v31 = vld [vmem:[#allocation2 + $0x6c] sm:$0xf] }
 0x408   : > { %v7351_v45 = vrot.slane %v7350_v46, 4  ;;  %v7346_v57 = vsel %vm14344_vm11, %v7341_v1, %v7345_v36  ;;  %v7363_v15 = vrot.slane %v7361_v53, 5  ;;  %v7369_v62 = vrot.slane %v7367_v54, 5  ;;  %13095 = vmatpush3.bf16.msra.mxu0 %v13660_v63  ;;  %v7885_v1 = vld [vmem:[#allocation2 + $0xa8] sm:$0xe] }
 0x409   : > { %v7373_v5 = vrot.slane %v7371_v14, 4  ;;  %v8018_v2 = vsel %vm14306_vm8, %v8016_v59, %v8017_v21  ;;  %v7377_v44 = vshll.u32 %v16954_v6, 16  ;;  %v11698_v47 = vrot.slane %v7883_v32, 9  ;;  %13176 = vmatprep.subr.bf16.mxu0 %v17020_v26 }
 0x40a   : > { %v7356_v30 = vsel %vm14344_vm11, %v7351_v45, %v7355_v39  ;;  %v11713_v11 = vcombine.low %v8015_v50, %v8018_v2  ;;  %v7364_v20 = vor.u32 %v7363_v15, %v7360_v43  ;;  %v8021_v49 = vrot.slane %v17016_v42, 5  ;;  %v7150_v2 = vld [vmem:[#allocation2 + $0x84] sm:$0xf] }
 0x40b   : > { %v11669_v37 = vcombine.low %v7346_v57, %v7356_v30  ;;  %v7374_v58 = vor.u32 %v7373_v5, %v7369_v62  ;;  %v7379_v61 = vrot.slane %v7377_v44, 5  ;;  %v8024_v51 = vrot.slane %v17018_v13, 5  ;;  %v17055_v57 = vld [vmem:[#allocation2 + $0xac] sm:$0xf]  ;;  %v17062_v30 = vld [vmem:[#allocation2 + $0xb0] sm:$0x1] }
 0x40c   : > { %v7382_v33 = vshrl.u32 %v7144_v31, 16  ;;  %13069 = vmatmul.mubr.bf16.gmra.mxu1 %v11713_v11  ;;  %v7365_v34 = vrot.slane %v7364_v20, 4  ;;  %v7385_v6 = vshll.u32 %v7144_v31, 16  ;;  %v7391_v63 = vshll.u32 %v16962_v19, 16 }
 0x40d   : > { %13013 = vmatmul.mubr.bf16.gmra.mxu0 %v11669_v37  ;;  %v7375_v16 = vrot.slane %v7374_v58, 4  ;;  %v8022_v23 = vsel %vm14306_vm8, %v11698_v47, %v8021_v49  ;;  %v8023_v56 = vrot.slane %v8021_v49, 4  ;;  %v7395_v48 = vshrl.u32 %v16962_v19, 16  ;;  %v7886_v49 = vld [vmem:[#allocation2 + $0xb4] sm:$0xe] }
 0x40e   : > { %v7384_v29 = vrot.slane %v7382_v33, 4  ;;  %v7370_v25 = vsel %vm14344_vm11, %v7365_v34, %v7369_v62  ;;  %v7387_v8 = vrot.slane %v7385_v6, 5  ;;  %v7393_v4 = vrot.slane %v7391_v63, 5 }
 0x40f   : > { %v7380_v3 = vsel %vm14344_vm11, %v7375_v16, %v7379_v61  ;;  %v8025_v41 = vsel %vm14306_vm8, %v8023_v56, %v8024_v51  ;;  %v7397_v18 = vrot.slane %v7395_v48, 4  ;;  %v7401_v19 = vshll.u32 %v16966_v60, 16 }
 0x410   : > { %v11670_v36 = vcombine.low %v7370_v25, %v7380_v3  ;;  %v11714_v40 = vcombine.low %v8022_v23, %v8025_v41  ;;  %v7388_v39 = vor.u32 %v7387_v8, %v7384_v29  ;;  %v11699_v0 = vrot.slane %v7884_v52, 9  ;;  %v7153_v23 = vld [vmem:[#allocation2 + $0x90] sm:$0xf]  ;;  %v17072_v3 = vld [vmem:[#allocation2 + $0xb8] sm:$0xf] }
 0x411   : > { %v8028_v46 = vrot.slane %v17038_v27, 5  ;;  %v7398_v38 = vor.u32 %v7397_v18, %v7393_v4  ;;  %v7403_v21 = vrot.slane %v7401_v19, 5  ;;  %v8031_v22 = vrot.slane %v17044_v28, 5  ;;  %v17076_v41 = vld [vmem:[#allocation2 + $0xbc] sm:$0x1] }
 0x412   : > { %13016 = vmatprep.mubr.bf16.mxu0 %v11670_v36  ;;  %v7406_v32 = vshrl.u32 %v7147_v24, 16  ;;  %13072 = vmatprep.mubr.bf16.mxu1 %v11714_v40  ;;  %v7389_v53 = vrot.slane %v7388_v39, 4  ;;  %v7409_v45 = vshll.u32 %v7147_v24, 16  ;;  %v7415_v59 = vshll.u32 %v16983_v12, 16 }
 0x413   : > { %v8029_v54 = vsel %vm14306_vm8, %v11699_v0, %v8028_v46  ;;  %v8030_v14 = vrot.slane %v8028_v46, 4  ;;  %v7399_v60 = vrot.slane %v7398_v38, 4  ;;  %v7419_v43 = vshrl.u32 %v16983_v12, 16 }
 0x414   : > { %v7408_v50 = vrot.slane %v7406_v32, 4  ;;  %v7394_v15 = vsel %vm14344_vm11, %v7389_v53, %v7393_v4  ;;  %v7411_v5 = vrot.slane %v7409_v45, 5  ;;  %v7425_v31 = vshll.u32 %v16989_v7, 16  ;;  %v8755_v53 = vld [vmem:[#allocation2 + $0xc] sm:$0xe] }
 0x415   : > { %v8032_v62 = vsel %vm14306_vm8, %v8030_v14, %v8031_v22  ;;  %v7404_v44 = vsel %vm14344_vm11, %v7399_v60, %v7403_v21  ;;  %v7417_v37 = vrot.slane %v7415_v59, 5  ;;  %v7421_v12 = vrot.slane %v7419_v43, 4  ;;  %v7156_v59 = vld [vmem:[#allocation2 + $0x9c] sm:$0xf] }
 0x416   : > { %v11715_v47 = vcombine.low %v8029_v54, %v8032_v62  ;;  %v11671_v11 = vcombine.low %v7394_v15, %v7404_v44  ;;  %v7412_v20 = vor.u32 %v7411_v5, %v7408_v50  ;;  %v7427_v58 = vrot.slane %v7425_v31, 5  ;;  %v8756_v54 = vld [vmem:[#allocation2 + $0x10] sm:$0xf]  ;;  %v8757_v50 = vld [vmem:[#allocation2 + $0x14] sm:$0x1] }
 0x417   : > { %v11700_v61 = vrot.slane %v7885_v1, 9  ;;  %v7422_v51 = vor.u32 %v7421_v12, %v7417_v37  ;;  %v8035_v33 = vrot.slane %v17055_v57, 5  ;;  %v8038_v7 = vrot.slane %v17062_v30, 5 }
 0x418   : > { %13073 = vmatmul.mubr.bf16.gmra.mxu1 %v11715_v47  ;;  %v7430_v52 = vshrl.u32 %v7150_v2, 16  ;;  %13017 = vmatmul.mubr.bf16.gmra.mxu0 %v11671_v11  ;;  %v7413_v34 = vrot.slane %v7412_v20, 4  ;;  %v7433_v16 = vshll.u32 %v7150_v2, 16  ;;  %v7439_v6 = vshll.u32 %v17006_v9, 16 }
 0x419   : > { %v7443_v63 = vshrl.u32 %v17006_v9, 16  ;;  %v7423_v56 = vrot.slane %v7422_v51, 4  ;;  %v8036_v29 = vsel %vm14306_vm8, %v11700_v61, %v8035_v33  ;;  %v8037_v48 = vrot.slane %v8035_v33, 4 }
 0x41a   : > { %v7432_v25 = vrot.slane %v7430_v52, 4  ;;  %v7418_v8 = vsel %vm14344_vm11, %v7413_v34, %v7417_v37  ;;  %v7435_v4 = vrot.slane %v7433_v16, 5  ;;  %v7441_v24 = vrot.slane %v7439_v6, 5 }
 0x41b   : > { %v7445_v36 = vrot.slane %v7443_v63, 4  ;;  %v7428_v9 = vsel %vm14344_vm11, %v7423_v56, %v7427_v58  ;;  %v8039_v18 = vsel %vm14306_vm8, %v8037_v48, %v8038_v7  ;;  %v7449_v19 = vshll.u32 %v17008_v35, 16 }
 0x41c   : > { %v11701_v40 = vrot.slane %v7886_v49, 9  ;;  %v11672_v39 = vcombine.low %v7418_v8, %v7428_v9  ;;  %v11716_v0 = vcombine.low %v8036_v29, %v8039_v18  ;;  %v7436_v46 = vor.u32 %v7435_v4, %v7432_v25  ;;  %v8759_v25 = vld [vmem:[#allocation2 + $0x1c] sm:$0xf]  ;;  %v8760_v9 = vld [vmem:[#allocation2 + $0x20] sm:$0x1] }
 0x41d   : > { %v7446_v38 = vor.u32 %v7445_v36, %v7441_v24  ;;  %v7451_v21 = vrot.slane %v7449_v19, 5  ;;  %v8042_v22 = vrot.slane %v17072_v3, 5  ;;  %v8045_v32 = vrot.slane %v17076_v41, 5  ;;  %v7159_v18 = vld [vmem:[#allocation2 + $0xa8] sm:$0xf] }
 0x41e   : > { %v7454_v1 = vshrl.u32 %v7153_v23, 16  ;;  %13020 = vmatprep.mubr.bf16.mxu0 %v11672_v39  ;;  %13076 = vmatprep.mubr.bf16.mxu1 %v11716_v0  ;;  %v7437_v14 = vrot.slane %v7436_v46, 4  ;;  %v7457_v60 = vshll.u32 %v7153_v23, 16  ;;  %v7463_v35 = vshll.u32 %v17016_v42, 16  ;;  %v8758_v23 = vld [vmem:[#allocation2 + $0x18] sm:$0xe] }
 0x41f   : > { %v7447_v45 = vrot.slane %v7446_v38, 4  ;;  %v8043_v43 = vsel %vm14306_vm8, %v11701_v40, %v8042_v22  ;;  %v8044_v15 = vrot.slane %v8042_v22, 4  ;;  %v7467_v5 = vshrl.u32 %v17016_v42, 16 }
 0x420   : > { %v7456_v62 = vrot.slane %v7454_v1, 4  ;;  %v7442_v31 = vsel %vm14344_vm11, %v7437_v14, %v7441_v24  ;;  %v7459_v44 = vrot.slane %v7457_v60, 5  ;;  %v7465_v47 = vrot.slane %v7463_v35, 5  ;;  %v8762_v35 = vld [vmem:[#allocation2 + $0x28] sm:$0xf] }
 0x421   : > { %v7452_v2 = vsel %vm14344_vm11, %v7447_v45, %v7451_v21  ;;  %v8046_v12 = vsel %vm14306_vm8, %v8044_v15, %v8045_v32  ;;  %v7469_v11 = vrot.slane %v7467_v5, 4  ;;  %v7473_v20 = vshll.u32 %v17018_v13, 16 }
 0x422   : > { %v11673_v37 = vcombine.low %v7442_v31, %v7452_v2  ;;  %v11717_v58 = vcombine.low %v8043_v43, %v8046_v12  ;;  %v7460_v61 = vor.u32 %v7459_v44, %v7456_v62  ;;  %v11750_v49 = vrot.slane %v8755_v53, 9  ;;  %v8763_v62 = vld [vmem:[#allocation2 + $0x2c] sm:$0x1] }
 0x423   : > { %v8853_v51 = vrot.slane %v8756_v54, 5  ;;  %v7470_v42 = vor.u32 %v7469_v11, %v7465_v47  ;;  %v7475_v33 = vrot.slane %v7473_v20, 5  ;;  %v8856_v7 = vrot.slane %v8757_v50, 5  ;;  %v8761_v54 = vld [vmem:[#allocation2 + $0x24] sm:$0xe] }
 0x424   : > { %13021 = vmatmul.mubr.bf16.gmra.mxu0 %v11673_v37  ;;  %v7478_v52 = vshrl.u32 %v7156_v59, 16  ;;  %13077 = vmatmul.mubr.bf16.gmra.mxu1 %v11717_v58  ;;  %v7461_v34 = vrot.slane %v7460_v61, 4  ;;  %v7481_v63 = vshll.u32 %v7156_v59, 16  ;;  %v7487_v13 = vshll.u32 %v17038_v27, 16 }
 0x425   : > { %v8854_v16 = vsel %vm14306_vm8, %v11750_v49, %v8853_v51  ;;  %v8855_v6 = vrot.slane %v8853_v51, 4  ;;  %v7471_v56 = vrot.slane %v7470_v42, 4  ;;  %v7491_v48 = vshrl.u32 %v17038_v27, 16  ;;  %v13672_v51 = vld [vmem:[#allocation10 + $0x1f0] sm:$0xff]  }
 0x426   : > { %v7480_v29 = vrot.slane %v7478_v52, 4  ;;  %v7466_v8 = vsel %vm14344_vm11, %v7461_v34, %v7465_v47  ;;  %v7483_v24 = vrot.slane %v7481_v63, 5  ;;  %v7497_v36 = vshll.u32 %v17044_v28, 16  ;;  %v7162_v47 = vld [vmem:[#allocation2 + $0xb4] sm:$0xf] }
 0x427   : > { %v8857_v4 = vsel %vm14306_vm8, %v8855_v6, %v8856_v7  ;;  %v7476_v19 = vsel %vm14344_vm11, %v7471_v56, %v7475_v33  ;;  %v7489_v39 = vrot.slane %v7487_v13, 5  ;;  %v7493_v0 = vrot.slane %v7491_v48, 4  ;;  %v8765_v13 = vld [vmem:[#allocation2 + $0x34] sm:$0xf] }
 0x428   : > { %v11766_v40 = vcombine.low %v8854_v16, %v8857_v4  ;;  %v11674_v46 = vcombine.low %v7466_v8, %v7476_v19  ;;  %v7484_v27 = vor.u32 %v7483_v24, %v7480_v29  ;;  %v7499_v38 = vrot.slane %v7497_v36, 5  ;;  %v8764_v24 = vld [vmem:[#allocation2 + $0x30] sm:$0xe]  ;;  %v13675_v36 = vld [vmem:[#allocation10 + $0x1e8] sm:$0xff]  }
 0x429   : > { %v11751_v21 = vrot.slane %v8758_v23, 9  ;;  %v7494_v22 = vor.u32 %v7493_v0, %v7489_v39  ;;  %v8860_v32 = vrot.slane %v8759_v25, 5  ;;  %v8863_v1 = vrot.slane %v8760_v9, 5 }
 0x42a   : > { %13144 = vmatprep.mubr.bf16.mxu1 %v11766_v40  ;;  %v7502_v53 = vshrl.u32 %v7159_v18, 16  ;;  %13024 = vmatprep.mubr.bf16.mxu0 %v11674_v46  ;;  %v7485_v28 = vrot.slane %v7484_v27, 4  ;;  %v7505_v14 = vshll.u32 %v7159_v18, 16  ;;  %v7511_v45 = vshll.u32 %v17055_v57, 16  ;;  %v8766_v40 = vld [vmem:[#allocation2 + $0x38] sm:$0x1] }
 0x42b   : > { %v7515_v60 = vshrl.u32 %v17055_v57, 16  ;;  %v7495_v50 = vrot.slane %v7494_v22, 4  ;;  %v8861_v59 = vsel %vm14306_vm8, %v11751_v21, %v8860_v32  ;;  %v8862_v43 = vrot.slane %v8860_v32, 4  ;;  %v8767_v27 = vld [vmem:[#allocation2 + $0x3c] sm:$0xe] }
 0x42c   : > { %v7504_v15 = vrot.slane %v7502_v53, 4  ;;  %v7490_v5 = vsel %vm14344_vm11, %v7485_v28, %v7489_v39  ;;  %v7507_v31 = vrot.slane %v7505_v14, 5  ;;  %v7513_v2 = vrot.slane %v7511_v45, 5  ;;  %v8769_v32 = vld [vmem:[#allocation2 + $0x44] sm:$0x1]  ;;  %v13677_v14 = vld [vmem:[#allocation10 + $0x1e0] sm:$0xff]  }
 0x42d   : > { %v7517_v44 = vrot.slane %v7515_v60, 4  ;;  %v7500_v37 = vsel %vm14344_vm11, %v7495_v50, %v7499_v38  ;;  %v8864_v57 = vsel %vm14306_vm8, %v8862_v43, %v8863_v1  ;;  %v7521_v12 = vshll.u32 %v17062_v30, 16  ;;  %v8771_v38 = vld [vmem:[#allocation2 + $0x4c] sm:$0xf] }
 0x42e   : > { %v11752_v11 = vrot.slane %v8761_v54, 9  ;;  %v11675_v20 = vcombine.low %v7490_v5, %v7500_v37  ;;  %v11767_v58 = vcombine.low %v8861_v59, %v8864_v57  ;;  %v7508_v61 = vor.u32 %v7507_v31, %v7504_v15  ;;  %v13661_v37 = vld [vmem:[#allocation2 + $0xc] sm:$0xff]  }
 0x42f   : > { %v7518_v49 = vor.u32 %v7517_v44, %v7513_v2  ;;  %v7523_v42 = vrot.slane %v7521_v12, 5  ;;  %v8867_v33 = vrot.slane %v8762_v35, 5  ;;  %v8870_v7 = vrot.slane %v8763_v62, 5  ;;  %v8774_v62 = vld [vmem:[#allocation2 + $0x58] sm:$0xf] }
 0x430   : > { %v7526_v52 = vshrl.u32 %v7162_v47, 16  ;;  %13025 = vmatmul.mubr.bf16.gmra.mxu0 %v11675_v20  ;;  %13145 = vmatmul.mubr.bf16.vlgmr.msra.gmra.mxu1 %v11767_v58  ;;  %v7509_v34 = vrot.slane %v7508_v61, 4  ;;  %v7529_v6 = vshll.u32 %v7162_v47, 16  ;;  %v7535_v63 = vshll.u32 %v17072_v3, 16  ;;  %v8772_v44 = vld [vmem:[#allocation2 + $0x50] sm:$0x1] }
 0x431   : > { %v7519_v16 = vrot.slane %v7518_v49, 4  ;;  %v8868_v30 = vsel %vm14306_vm8, %v11752_v11, %v8867_v33  ;;  %v8869_v23 = vrot.slane %v8867_v33, 4  ;;  %v7539_v29 = vshrl.u32 %v17072_v3, 16  ;;  %13225 = vmatpush3.bf16.msra.mxu1 %v16975_v55  ;;  %v8768_v55 = vld [vmem:[#allocation2 + $0x40] sm:$0xf] }
 0x432   : > { %v7528_v56 = vrot.slane %v7526_v52, 4  ;;  %v7514_v48 = vsel %vm14344_vm11, %v7509_v34, %v7513_v2  ;;  %v7531_v8 = vrot.slane %v7529_v6, 5  ;;  %v7537_v4 = vrot.slane %v7535_v63, 5  ;;  %13226 = vmatprep.subr.bf16.mxu1 %v13672_v51  ;;  %v8775_v20 = vld [vmem:[#allocation2 + $0x5c] sm:$0x1] }
 0x433   : > { %v7524_v25 = vsel %vm14344_vm11, %v7519_v16, %v7523_v42  ;;  %v8871_v18 = vsel %vm14306_vm8, %v8869_v23, %v8870_v7  ;;  %v7541_v19 = vrot.slane %v7539_v29, 4  ;;  %v7545_v3 = vshll.u32 %v17076_v41, 16  ;;  %v8770_v61 = vld [vmem:[#allocation2 + $0x48] sm:$0xe]  ;;  %v13680_v42 = vld [vmem:[#allocation10 + $0x1d8] sm:$0xff]  }
 0x434   : > { %v11676_v9 = vcombine.low %v7514_v48, %v7524_v25  ;;  %v11768_v39 = vcombine.low %v8868_v30, %v8871_v18  ;;  %v7532_v0 = vor.u32 %v7531_v8, %v7528_v56  ;;  %v8874_v46 = vrot.slane %v8765_v13, 5  ;;  %v8773_v7 = vld [vmem:[#allocation2 + $0x54] sm:$0xe]  ;;  %v17144_v52 = vld [vmem:[#allocation2 + $0x70] sm:$0xf]  ;;  %v13682_v48 = vld [vmem:[#allocation10 + $0x1d0] sm:$0xff]  }
 0x435   : > { %v7542_v21 = vor.u32 %v7541_v19, %v7537_v4  ;;  %v11753_v22 = vrot.slane %v8764_v24, 9  ;;  %13227 = vmatpush3.bf16.msra.mxu1 %v13672_v51  ;;  %v8877_v54 = vrot.slane %v8766_v40, 5  ;;  %v8881_v28 = vrot.slane %v8768_v55, 5  ;;  %v17142_v51 = vld [vmem:[#allocation2 + $0x64] sm:$0xf]  ;;  %v13663_v25 = vld [vmem:[#allocation2 + $0x18] sm:$0xff]  }
 0x436   : > { %13028 = vmatprep.mubr.bf16.mxu0 %v11676_v9  ;;  %13148 = vmatprep.mubr.bf16.mxu1 %v11768_v39  ;;  %v7533_v1 = vrot.slane %v7532_v0, 4  ;;  %v8876_v53 = vrot.slane %v8874_v46, 4  ;;  %v7547_v45 = vrot.slane %v7545_v3, 5  ;;  %v11754_v60 = vrot.slane %v8767_v27, 9  ;;  %v17146_v6 = vld [vmem:[#allocation2 + $0x7c] sm:$0xf] }
 0x437   : > { %13228 = vmatprep.subr.bf16.mxu1 %v13675_v36  ;;  %v7543_v41 = vrot.slane %v7542_v21, 4  ;;  %v8888_v35 = vrot.slane %v8771_v38, 5  ;;  %v8875_v50 = vsel %vm14306_vm8, %v11753_v22, %v8874_v46  ;;  %v8883_v43 = vrot.slane %v8881_v28, 4  ;;  %v13664_v9 = vld [vmem:[#allocation2 + $0x24] sm:$0xff]   ;;  %v8776_v19 = vld [vmem:[#allocation2 + $0x60] sm:$0xe] }
 0x438   : > { %v8878_v59 = vsel %vm14306_vm8, %v8876_v53, %v8877_v54  ;;  %v8884_v15 = vrot.slane %v8769_v32, 5  ;;  %v7538_v5 = vsel %vm14344_vm11, %v7533_v1, %v7537_v4  ;;  %v8882_v57 = vsel %vm14306_vm8, %v11754_v60, %v8881_v28  ;;  %v8778_v3 = vld [vmem:[#allocation2 + $0x68] sm:$0x1]  ;;  %v8781_v46 = vld [vmem:[#allocation2 + $0x74] sm:$0x1]  ;;  %v13685_v32 = vld [vmem:[#allocation10 + $0x1c8] sm:$0xff]  }
 0x439   : > { %v7548_v31 = vsel %vm14344_vm11, %v7543_v41, %v7547_v45  ;;  %v11769_v2 = vcombine.low %v8875_v50, %v8878_v59  ;;  %13229 = vmatpush3.bf16.msra.mxu1 %v13675_v36  ;;  %v8890_v11 = vrot.slane %v8888_v35, 4  ;;  %v8895_v49 = vrot.slane %v8774_v62, 5  ;;  %v17161_v40 = vld [vmem:[#allocation2 + $0x88] sm:$0xf]  ;;  %v17163_v27 = vld [vmem:[#allocation2 + $0x94] sm:$0xf] }
 0x43a   : > { %v11677_v47 = vcombine.low %v7538_v5, %v7548_v31  ;;  %v8885_v12 = vsel %vm14306_vm8, %v8883_v43, %v8884_v15  ;;  %13230 = vmatprep.subr.bf16.mxu1 %v13677_v14  ;;  %v8891_v33 = vrot.slane %v8772_v44, 5  ;;  %v8898_v16 = vrot.slane %v8775_v20, 5  ;;  %v13665_v39 = vld [vmem:[#allocation10 + $0x1b0] sm:$0xff]   ;;  %v8784_v22 = vld [vmem:[#allocation2 + $0x80] sm:$0x1] }
 0x43b   : > { %13149 = vmatmul.mubr.bf16.gmra.mxu1 %v11769_v2  ;;  %v11770_v58 = vcombine.low %v8882_v57, %v8885_v12  ;;  %v8897_v34 = vrot.slane %v8895_v49, 4  ;;  %v11755_v63 = vrot.slane %v8770_v61, 9  ;;  %v8902_v23 = vrot.slane %v17142_v51, 5  ;;  %v8779_v38 = vld [vmem:[#allocation2 + $0x6c] sm:$0xe]  ;;  %v13668_v60 = vld [vmem:[#allocation10 + $0x1a8] sm:$0xff]  }
 0x43c   : > { %13029 = vmatmul.mubr.bf16.gmra.mxu0 %v11677_v47  ;;  %v8892_v30 = vsel %vm14306_vm8, %v8890_v11, %v8891_v33  ;;  %v11756_v56 = vrot.slane %v8773_v7, 9  ;;  %v8909_v13 = vrot.slane %v17144_v52, 5  ;;  %v8916_v4 = vrot.slane %v17146_v6, 5  ;;  %v17157_v24 = vpop.f32.mrf.mxu1  ;;  %v8782_v53 = vld [vmem:[#allocation2 + $0x78] sm:$0xe]  ;;  %v13666_v57 = vld [vmem:[#allocation2 + $0x30] sm:$0xff]  }
 0x43d   : > { %13096 = vmatprep.mubr.bf16.mxu0 %v13661_v37  ;;  %13152 = vmatprep.mubr.bf16.mxu1 %v11770_v58  ;;  %v8899_v29 = vsel %vm14306_vm8, %v8897_v34, %v8898_v16  ;;  %v8889_v8 = vsel %vm14306_vm8, %v11755_v63, %v8888_v35  ;;  %v8904_v0 = vrot.slane %v8902_v23, 4  ;;  %v8905_v1 = vrot.slane %v8778_v3, 5  ;;  %v17172_v50 = vld [vmem:[#allocation2 + $0xa0] sm:$0xf]  ;;  %v8785_v62 = vld [vmem:[#allocation2 + $0x84] sm:$0xe] }
 0x43e   : > { %13231 = vmatpush3.bf16.msra.mxu1 %v13677_v14  ;;  %v11771_v36 = vcombine.low %v8889_v8, %v8892_v30  ;;  %v8896_v18 = vsel %vm14306_vm8, %v11756_v56, %v8895_v49  ;;  %v8911_v21 = vrot.slane %v8909_v13, 4  ;;  %v8918_v54 = vrot.slane %v8916_v4, 4  ;;  %v17168_v14 = vpop.f32.mrf.mxu1  ;;  %v17176_v5 = vld [vmem:[#allocation2 + $0xac] sm:$0xf]  ;;  %v8788_v47 = vld [vmem:[#allocation2 + $0x90] sm:$0xe] }
 0x43f   : > { %13232 = vmatprep.subr.bf16.mxu1 %v13680_v42  ;;  %v11772_v55 = vcombine.low %v8896_v18, %v8899_v29  ;;  %v8923_v28 = vrot.slane %v17161_v40, 5  ;;  %v11757_v41 = vrot.slane %v8776_v19, 9  ;;  %v8912_v45 = vrot.slane %v8781_v46, 5  ;;  %v8787_v44 = vld [vmem:[#allocation2 + $0x8c] sm:$0x1]  ;;  %v13687_v37 = vld [vmem:[#allocation10 + $0x1c0] sm:$0xff]  }
 0x440   : > { %v8930_v35 = vrot.slane %v17163_v27, 5  ;;  %v8906_v59 = vsel %vm14306_vm8, %v8904_v0, %v8905_v1  ;;  %v11758_v43 = vrot.slane %v8779_v38, 9  ;;  %v8919_v15 = vrot.slane %v8784_v22, 5  ;;  %v8790_v58 = vld [vmem:[#allocation2 + $0x98] sm:$0x1]  ;;  %v17189_v51 = vpop.f32.mrf.mxu1  ;;  %v13667_v33 = vld [vmem:[#allocation2 + $0x3c] sm:$0xff]  }
 0x441   : > { %v8913_v31 = vsel %vm14306_vm8, %v8911_v21, %v8912_v45  ;;  %v11759_v2 = vrot.slane %v8782_v53, 9  ;;  %v8925_v20 = vrot.slane %v8923_v28, 4  ;;  %v8791_v61 = vld [vmem:[#allocation2 + $0x9c] sm:$0xe]  ;;  %v8937_v49 = vrot.slane %v17172_v50, 5  ;;  %v13678_v46 = vld [vmem:[#allocation10 + $0x198] sm:$0xff]  }
 0x442   : > { %13233 = vmatpush3.bf16.msra.mxu1 %v13680_v42  ;;  %v8910_v12 = vsel %vm14306_vm8, %v11758_v43, %v8909_v13  ;;  %v17186_v11 = vsel %vm14306_vm8, %v8918_v54, %v8919_v15  ;;  %v11760_v7 = vrot.slane %v8785_v62, 9  ;;  %v13673_v52 = vld [vmem:[#allocation10 + $0x1a0] sm:$0xff]   ;;  %v8932_v34 = vrot.slane %v8930_v35, 4  ;;  %v8793_v16 = vld [vmem:[#allocation2 + $0xa4] sm:$0x1]  ;;  %v13669_v43 = vld [vmem:[#allocation2 + $0x48] sm:$0xff]  }
 0x443   : > { %13153 = vmatmul.mubr.bf16.gmra.mxu1 %v11771_v36  ;;  %13234 = vmatprep.subr.bf16.mxu1 %v13682_v48  ;;  %v8944_v63 = vrot.slane %v17176_v5, 5  ;;  %v11774_v30 = vcombine.low %v8910_v12, %v8913_v31  ;;  %v8926_v56 = vrot.slane %v8787_v44, 5  ;;  %v11761_v29 = vrot.slane %v8788_v47, 9  ;;  %v17198_v13 = vld [vmem:[#allocation2 + $0xb8] sm:$0xf] }
 0x444   : > { %13097 = vmatmul.mubr.bf16.vlgmr.msra.gmra.mxu0 %v13663_v25  ;;  %13156 = vmatprep.mubr.bf16.mxu1 %v11772_v55  ;;  %v8933_v8 = vrot.slane %v8790_v58, 5  ;;  %v11762_v36 = vrot.slane %v8791_v61, 9  ;;  %v9672_v18 = vld [vmem:[#allocation2 + $0x1c] sm:$0xf]  ;;  %v8924_v6 = vsel %vm14306_vm8, %v11760_v7, %v8923_v28  ;;  %v8939_v3 = vrot.slane %v8937_v49, 4  ;;  %v13683_v61 = vld [vmem:[#allocation10 + $0x190] sm:$0xff]  }
 0x445   : > { %13177 = vmatpush3.bf16.msra.mxu0 %v17020_v26  ;;  %13100 = vmatprep.mubr.bf16.mxu0 %v13664_v9  ;;  %v8903_v26 = vsel %vm14306_vm8, %v11757_v41, %v8902_v23  ;;  %v17196_v23 = vsel %vm14306_vm8, %v11759_v2, %v8916_v4  ;;  %v8794_v9 = vld [vmem:[#allocation2 + $0xa8] sm:$0xe]  ;;  %v8927_v4 = vsel %vm14306_vm8, %v8925_v20, %v8926_v56  ;;  %v8796_v40 = vld [vmem:[#allocation2 + $0xb0] sm:$0x1]  ;;  %v9671_v55 = vld [vmem:[#allocation2 + $0x18] sm:$0xf] }
 0x446   : > { %13178 = vmatprep.subr.bf16.mxu0 %v13665_v39  ;;  %13235 = vmatpush3.bf16.msra.mxu1 %v13682_v48  ;;  %v11773_v42 = vcombine.low %v8903_v26, %v8906_v59  ;;  %v17200_v48 = vld [vmem:[#allocation2 + $0xc4] sm:$0xf]  ;;  %v11775_v25 = vcombine.low %v17196_v23, %v17186_v11  ;;  %v17210_v19 = vsel %vm14306_vm8, %v11761_v29, %v8930_v35  ;;  %v8946_v27 = vrot.slane %v8944_v63, 4  ;;  %v8797_v38 = vld [vmem:[#allocation2 + $0xb4] sm:$0xe] }
 0x447   : > { %13236 = vmatprep.subr.bf16.mxu1 %v13685_v32  ;;  %v17216_v0 = vsel %vm14306_vm8, %v8932_v34, %v8933_v8  ;;  %v8951_v21 = vrot.slane %v17198_v13, 5  ;;  %v8958_v22 = vrot.slane %v17200_v48, 5  ;;  %v11763_v1 = vrot.slane %v8794_v9, 9  ;;  %v8799_v53 = vld [vmem:[#allocation2 + $0xbc] sm:$0x1]  ;;  %v13671_v20 = vld [vmem:[#allocation2 + $0x54] sm:$0xff]  }
 0x448   : > { %v9729_v54 = vshll.u32 %v9672_v18, 16  ;;  %v9733_v28 = vshrl.u32 %v9672_v18, 16  ;;  %v17222_v41 = vsel %vm14306_vm8, %v11762_v36, %v8937_v49  ;;  %v8947_v45 = vrot.slane %v8796_v40, 5  ;;  %v9675_v31 = vld [vmem:[#allocation2 + $0x28] sm:$0xf]  ;;  %v13688_v40 = vld [vmem:[#allocation10 + $0x188] sm:$0xff]  }
 0x449   : > { %13179 = vmatpush3.bf16.msra.mxu0 %v13665_v39  ;;  %v17212_v39 = vpop.f32.mrf.mxu1  ;;  %v9720_v35 = vshrl.u32 %v9671_v55, 16  ;;  %v9723_v50 = vshll.u32 %v9671_v55, 16  ;;  %v11776_v15 = vcombine.low %v8924_v6, %v8927_v4  ;;  %v11777_v62 = vcombine.low %v17210_v19, %v17216_v0  ;;  %v9674_v11 = vld [vmem:[#allocation2 + $0x24] sm:$0xf]  ;;  %v17252_v48 = vld [vmem:[#allocation2 + $0x20] sm:$0x1] }
 0x44a   : > { %13180 = vmatprep.subr.bf16.mxu0 %v13668_v60  ;;  %13237 = vmatpush3.bf16.msra.mxu1 %v13685_v32  ;;  %v8940_v32 = vrot.slane %v8793_v16, 5  ;;  %v11764_v26 = vrot.slane %v8797_v38, 9  ;;  %v17236_v44 = vsel %vm14306_vm8, %v11763_v1, %v8944_v63  ;;  %v17240_v47 = vsel %vm14306_vm8, %v8946_v27, %v8947_v45  ;;  %v9677_v6 = vld [vmem:[#allocation2 + $0x30] sm:$0xf]  ;;  %v9681_v27 = vld [vmem:[#allocation2 + $0x40] sm:$0xf] }
 0x44b   : > { %13157 = vmatmul.mubr.bf16.gmra.mxu1 %v11773_v42  ;;  %13238 = vmatprep.subr.bf16.mxu1 %v13687_v37  ;;  %v17224_v59 = vpop.f32.mrf.mxu0  ;;  %v8960_v12 = vrot.slane %v8958_v22, 4  ;;  %v8954_v58 = vrot.slane %v8799_v53, 5  ;;  %v17242_v42 = vrot.slane %v9729_v54, 5  ;;  %v9725_v34 = vrot.slane %v9723_v50, 5  ;;  %v9680_v54 = vld [vmem:[#allocation2 + $0x3c] sm:$0xf] }
 0x44c   : > { %13101 = vmatmul.mubr.bf16.gmra.mxu0 %v13666_v57  ;;  %13160 = vmatprep.mubr.bf16.mxu1 %v11774_v30  ;;  %v17230_v5 = vsel %vm14306_vm8, %v8939_v3, %v8940_v32  ;;  %v8800_v57 = vld [vmem:[#allocation2 + $0xc0] sm:$0xe]  ;;  %v9753_v16 = vshll.u32 %v9675_v31, 16  ;;  %v9757_v63 = vshrl.u32 %v9675_v31, 16  ;;  %v9678_v30 = vld [vmem:[#allocation2 + $0x34] sm:$0xf]  ;;  %v11779_v29 = vcombine.low %v17236_v44, %v17240_v47 }
 0x44d   : > { %13104 = vmatprep.mubr.bf16.mxu0 %v13667_v33  ;;  %13181 = vmatpush3.bf16.msra.mxu0 %v13668_v60  ;;  %v8802_v60 = vld [vmem:[#allocation2 + $0xc8] sm:$0x1]  ;;  %v17232_v2 = vpop.f32.mrf.mxu1  ;;  %v9735_v33 = vrot.slane %v9733_v28, 4  ;;  %v17246_v23 = vpop.f32.mrf.mxu0  ;;  %v11778_v56 = vcombine.low %v17222_v41, %v17230_v5  ;;  %v11765_v13 = vrot.slane %v8800_v57, 9  ;;  %v9744_v8 = vshrl.u32 %v9674_v11, 16  ;;  %v13674_v31 = vld [vmem:[#allocation2 + $0x60] sm:$0xff]  }
 0x44e   : > { %13182 = vmatprep.subr.bf16.mxu0 %v13673_v52  ;;  %13239 = vmatpush3.bf16.msra.mxu1 %v13687_v37  ;;  %v8953_v37 = vrot.slane %v8951_v21, 4  ;;  %v8961_v49 = vrot.slane %v8802_v60, 5  ;;  %v9747_v18 = vshll.u32 %v9674_v11, 16  ;;  %v9777_v55 = vshll.u32 %v9678_v30, 16  ;;  %v9676_v45 = vld [vmem:[#allocation2 + $0x2c] sm:$0x1] }
 0x44f   : > { %v17244_v7 = vpop.f32.mrf.mxu1  ;;  %v17268_v4 = vsel %vm14306_vm8, %v11765_v13, %v8958_v22  ;;  %v9736_v3 = vor.u32 %v9735_v33, %v17242_v42  ;;  %v9739_v32 = vshll.u32 %v17252_v48, 16  ;;  %v17274_v1 = vrot.slane %v9753_v16, 5  ;;  %v17276_v28 = vpop.f32.mrf.mxu0  ;;  %v13691_v11 = vld [vmem:[#allocation10 + $0x180] sm:$0xff]  }
 0x450   : > { %v17260_v36 = vsel %vm14306_vm8, %v8953_v37, %v8954_v58  ;;  %v17264_v9 = vsel %vm14306_vm8, %v8960_v12, %v8961_v49  ;;  %v9759_v53 = vrot.slane %v9757_v63, 4  ;;  %v9746_v60 = vrot.slane %v9744_v8, 4  ;;  %v9684_v8 = vld [vmem:[#allocation2 + $0x4c] sm:$0xf] }
 0x451   : > { %13183 = vmatpush3.bf16.msra.mxu0 %v13673_v52  ;;  %v9722_v52 = vrot.slane %v9720_v35, 4  ;;  %v17271_v38 = vpop.f32.mrf.mxu1  ;;  %v11781_v41 = vcombine.low %v17268_v4, %v17264_v9  ;;  %v9768_v35 = vshrl.u32 %v9677_v6, 16  ;;  %v9749_v50 = vrot.slane %v9747_v18, 5  ;;  %v17290_v63 = vpop.f32.mrf.mxu0 }
 0x452   : > { %13184 = vmatprep.subr.bf16.mxu0 %v13678_v46  ;;  %v9805_v5 = vshrl.u32 %v9681_v27, 16  ;;  %v9737_v37 = vrot.slane %v9736_v3, 4  ;;  %v17282_v57 = vrot.slane %v9777_v55, 5  ;;  %v9741_v33 = vrot.slane %v9739_v32, 5  ;;  %v17297_v32 = vld [vmem:[#allocation10 + $0x238] sm:$0xff]  }
 0x453   : > { %13161 = vmatmul.mubr.bf16.gmra.mxu1 %v11775_v25  ;;  %v17256_v25 = vsel %vm14306_vm8, %v11764_v26, %v8951_v21  ;;  %v9726_v21 = vor.u32 %v9725_v34, %v9722_v52  ;;  %v9683_v26 = vld [vmem:[#allocation2 + $0x48] sm:$0xf]  ;;  %v17284_v58 = vpop.f32.mrf.mxu1  ;;  %v9760_v52 = vor.u32 %v9759_v53, %v17274_v1  ;;  %v9679_v34 = vld [vmem:[#allocation2 + $0x38] sm:$0x1]  ;;  %v9795_v16 = vshll.u32 %v9680_v54, 16 }
 0x454   : > { %13105 = vmatmul.mubr.bf16.gmra.mxu0 %v13669_v43  ;;  %13164 = vmatprep.mubr.bf16.mxu1 %v11776_v15  ;;  %v11780_v22 = vcombine.low %v17256_v25, %v17260_v36  ;;  %v9771_v43 = vshll.u32 %v9677_v6, 16  ;;  %v9801_v15 = vshll.u32 %v9681_v27, 16  ;;  %v9807_v13 = vrot.slane %v9805_v5, 4 }
 0x455   : > { %13108 = vmatprep.mubr.bf16.mxu0 %v13671_v20  ;;  %13185 = vmatpush3.bf16.msra.mxu0 %v13678_v46  ;;  %v9781_v46 = vshrl.u32 %v9678_v30, 16  ;;  %v9792_v20 = vshrl.u32 %v9680_v54, 16  ;;  %v9727_v49 = vrot.slane %v9726_v21, 4  ;;  %v9816_v18 = vshrl.u32 %v9683_v26, 16 }
 0x456   : > { %13186 = vmatprep.subr.bf16.mxu0 %v13683_v61  ;;  %v17292_v30 = vrot.slane %v9801_v15, 5  ;;  %v9819_v6 = vshll.u32 %v9683_v26, 16  ;;  %v9750_v19 = vor.u32 %v9749_v50, %v9746_v60  ;;  %v9763_v0 = vshll.u32 %v9676_v45, 16  ;;  %v17305_v60 = vld [vmem:[#allocation2 + $0x58] sm:$0xf] }
 0x457   : > { %v9783_v12 = vrot.slane %v9781_v46, 4  ;;  %v9773_v3 = vrot.slane %v9771_v43, 5  ;;  %v9742_v55 = vsel %vm14344_vm11, %v9737_v37, %v9741_v33  ;;  %v9787_v27 = vshll.u32 %v9679_v34, 16  ;;  %v9686_v33 = vld [vmem:[#allocation2 + $0x54] sm:$0xf] }
 0x458   : > { %v9794_v21 = vrot.slane %v9792_v20, 4  ;;  %v9797_v54 = vrot.slane %v9795_v16, 5  ;;  %v9825_v15 = vshll.u32 %v9684_v8, 16  ;;  %v17303_v45 = vadd.f32 %v17157_v24, %v17224_v59  ;;  %v13679_v59 = vld [vmem:[#allocation2 + $0x78] sm:$0xff]  }
 0x459   : > { %13187 = vmatpush3.bf16.msra.mxu0 %v13683_v61  ;;  %v13676_v61 = vld [vmem:[#allocation2 + $0x6c] sm:$0xff]   ;;  %v9784_v46 = vor.u32 %v9783_v12, %v17282_v57  ;;  %v17309_v50 = vrot.slane %v9760_v52, 4  ;;  %v9808_v43 = vor.u32 %v9807_v13, %v17292_v30  ;;  %v9818_v5 = vrot.slane %v9816_v18, 4  ;;  %v9689_v18 = vld [vmem:[#allocation2 + $0x60] sm:$0xf] }
 0x45a   : > { %13188 = vmatprep.subr.bf16.mxu0 %v13688_v40  ;;  %18877 = vst [vmem:[#allocation72_spill] sm:$0xff] %v17303_v45  ;;  %v9821_v26 = vrot.slane %v9819_v6, 5  ;;  %v17315_v37 = vrot.slane %v9763_v0, 5  ;;  %v9849_v52 = vshll.u32 %v17305_v60, 16  ;;  %v9853_v34 = vshrl.u32 %v17305_v60, 16 }
 0x45b   : > { %13165 = vmatmul.mubr.bf16.gmra.mxu1 %v11777_v62  ;;  %v9770_v62 = vrot.slane %v9768_v35, 4  ;;  %v17299_v53 = vpop.f32.mrf.mxu1  ;;  %v17327_v13 = vrot.slane %v9825_v15, 5  ;;  %v9789_v47 = vrot.slane %v9787_v27, 5  ;;  %v9864_v25 = vshrl.u32 %v9689_v18, 16 }
 0x45c   : > { %13109 = vmatmul.mubr.bf16.gmra.mxu0 %v13674_v31  ;;  %13168 = vmatprep.mubr.bf16.mxu1 %v11778_v56  ;;  %v9682_v56 = vld [vmem:[#allocation2 + $0x44] sm:$0x1]  ;;  %v17307_v35 = vpop.f32.mrf.mxu0  ;;  %v9732_v31 = vsel %vm14344_vm11, %v9727_v49, %v17242_v42  ;;  %v9798_v49 = vor.u32 %v9797_v54, %v9794_v21  ;;  %v9766_v44 = vsel %vm14344_vm11, %v17309_v50, %v17315_v37  ;;  %v9855_v21 = vrot.slane %v9853_v34, 4  ;;  %v13684_v34 = vld [vmem:[#allocation2 + $0x90] sm:$0xff]  }
 0x45d   : > { %13112 = vmatprep.mubr.bf16.mxu0 %v13676_v61  ;;  %13189 = vmatpush3.bf16.msra.mxu0 %v13688_v40  ;;  %v9829_v40 = vshrl.u32 %v9684_v8, 16  ;;  %v9774_v12 = vor.u32 %v9773_v3, %v9770_v62  ;;  %v9811_v24 = vshll.u32 %v9682_v56, 16  ;;  %v11814_v20 = vcombine.low %v9732_v31, %v9742_v55  ;;  %v17322_v16 = vpop.f32.mrf.mxu1  ;;  %v13681_v42 = vld [vmem:[#allocation2 + $0x84] sm:$0xff]   ;;  %v17351_v31 = vld [vmem:[#allocation2 + $0x5c] sm:$0x1] }
 0x45e   : > { %13190 = vmatprep.subr.bf16.mxu0 %v13691_v11  ;;  %v17317_v61 = vrot.slane %v9750_v19, 4  ;;  %v17329_v6 = vpop.f32.mrf.mxu0  ;;  %v9685_v19 = vld [vmem:[#allocation2 + $0x50] sm:$0x1]  ;;  %v9822_v0 = vor.u32 %v9821_v26, %v9818_v5  ;;  %v9840_v55 = vshrl.u32 %v9686_v33, 16  ;;  %v17338_v56 = vrot.slane %v9849_v52, 5 }
 0x45f   : > { %v9831_v8 = vrot.slane %v9829_v40, 4  ;;  %v9775_v62 = vrot.slane %v9774_v12, 4  ;;  %v9813_v3 = vrot.slane %v9811_v24, 5  ;;  %v17340_v54 = vld [vmem:[#allocation2 + $0x64] sm:$0xf]  ;;  %v9867_v36 = vshll.u32 %v9689_v18, 16 }
 0x460   : > { %v9799_v15 = vrot.slane %v9798_v49, 4  ;;  %v9835_v50 = vshll.u32 %v9685_v19, 16  ;;  %v17349_v26 = vrot.slane %v9822_v0, 4  ;;  %v17355_v37 = vadd.f32 %v17168_v14, %v17246_v23  ;;  %v17384_v19 = vld [vmem:[#allocation2 + $0x70] sm:$0xf] }
 0x461   : > { %13191 = vmatpush3.bf16.msra.mxu0 %v13691_v11  ;;  %v9785_v11 = vrot.slane %v9784_v46, 4  ;;  %v9843_v46 = vshll.u32 %v9686_v33, 16  ;;  %v9832_v40 = vor.u32 %v9831_v8, %v17327_v13  ;;  %v17359_v12 = vadd.f32 %v17189_v51, %v17276_v28  ;;  %v13686_v51 = vld [vmem:[#allocation2 + $0x9c] sm:$0xff]  }
 0x462   : > { %13272 = vmatprep.subr.bf16.mxu0 %v17297_v32  ;;  %18878 = vst [vmem:[#allocation77_spill] sm:$0xff] %v17355_v37  ;;  %v9842_v24 = vrot.slane %v9840_v55, 4  ;;  %v9873_v33 = vshll.u32 %v17340_v54, 16  ;;  %v9877_v52 = vshrl.u32 %v17340_v54, 16  ;;  %v9869_v49 = vrot.slane %v9867_v36, 5 }
 0x463   : > { %13169 = vmatmul.mubr.bf16.gmra.mxu1 %v11779_v29  ;;  %v9809_v29 = vrot.slane %v9808_v43, 4  ;;  %v9790_v27 = vsel %vm14344_vm11, %v9785_v11, %v9789_v47  ;;  %v12911_v43 = vpop.f32.mrf.mxu0  ;;  %18879 = vst [vmem:[#allocation74_spill] sm:$0xff] %v17359_v12  ;;  %v9866_v11 = vrot.slane %v9864_v25, 4  ;;  %v17368_v14 = vadd.f32 %v17232_v2, %v17307_v35  ;;  %v17616_v37 = vld [vmem:[#allocation2 + $0xd0] sm:$0xf] }
 0x464   : > { %13113 = vmatmul.mubr.bf16.gmra.mxu0 %v13679_v59  ;;  %13172 = vmatprep.mubr.bf16.mxu1 %v11780_v22  ;;  %v17342_v22 = vpop.f32.mrf.mxu1  ;;  %v9845_v59 = vrot.slane %v9843_v46, 5  ;;  %v9756_v23 = vsel %vm14344_vm11, %v17317_v61, %v17274_v1  ;;  %v9780_v28 = vsel %vm14344_vm11, %v9775_v62, %v17282_v57  ;;  %v9833_v18 = vrot.slane %v9832_v40, 4  ;;  %v17390_v62 = vld [vmem:[#allocation2 + $0x7c] sm:$0xf] }
 0x465   : > { %13116 = vmatprep.mubr.bf16.mxu0 %v13681_v42  ;;  %v9814_v5 = vsel %vm14344_vm11, %v9809_v29, %v9813_v3  ;;  %v9856_v42 = vor.u32 %v9855_v21, %v17338_v56  ;;  %18880 = vst [vmem:[#allocation76_spill] sm:$0xff] %v17368_v14  ;;  %v9859_v47 = vshll.u32 %v17351_v31, 16  ;;  %v9692_v29 = vld [vmem:[#allocation2 + $0x6c] sm:$0xf]  ;;  %v6800_v2 = vpop.f32.mrf.mxu0  ;;  %v11815_v35 = vcombine.low %v9756_v23, %v9766_v44  ;;  %v17396_v3 = vld [vmem:[#allocation2 + $0x68] sm:$0x1] }
 0x466   : > { %v17364_v8 = vpop.f32.mrf.mxu1  ;;  %v11816_v9 = vcombine.low %v9780_v28, %v9790_v27  ;;  %v9804_v4 = vsel %vm14344_vm11, %v9799_v15, %v17292_v30  ;;  %v9846_v57 = vor.u32 %v9845_v59, %v9842_v24  ;;  %v17388_v61 = vrot.slane %v9873_v33, 5  ;;  %v13690_v28 = vld [vmem:[#allocation2 + $0xb4] sm:$0xff]   ;;  %v9707_v14 = vld [vmem:[#allocation2 + $0xa8] sm:$0xf] }
 0x467   : > { %v17386_v1 = vcombine.low %v9804_v4, %v9814_v5  ;;  %v9879_v0 = vrot.slane %v9877_v52, 4  ;;  %v9857_v44 = vrot.slane %v9856_v42, 4  ;;  %v9870_v30 = vor.u32 %v9869_v49, %v9866_v11  ;;  %v13689_v11 = vld [vmem:[#allocation2 + $0xa8] sm:$0xff]   ;;  %v17433_v4 = vld [vmem:[#allocation2 + $0x74] sm:$0x1] }
 0x468   : > { %v9888_v46 = vshrl.u32 %v9692_v29, 16  ;;  %v9861_v25 = vrot.slane %v9859_v47, 5  ;;  %v9891_v36 = vshll.u32 %v9692_v29, 16  ;;  %v9897_v27 = vshll.u32 %v17384_v19, 16  ;;  %v17431_v29 = vld [vmem:[#allocation2 + $0x88] sm:$0xf] }
 0x469   : > { %v9901_v40 = vshrl.u32 %v17384_v19, 16  ;;  %v9925_v5 = vshrl.u32 %v17390_v62, 16  ;;  %v9847_v59 = vrot.slane %v9846_v57, 4  ;;  %v9880_v33 = vor.u32 %v9879_v0, %v17388_v61 }
 0x46a   : > { %v9883_v52 = vshll.u32 %v17396_v3, 16  ;;  %v9862_v49 = vsel %vm14344_vm11, %v9857_v44, %v9861_v25  ;;  %v17421_v23 = vrot.slane %v9888_v46, 4  ;;  %v17426_v47 = vrot.slane %v9897_v27, 5 }
 0x46b   : > { %13173 = vmatmul.mubr.bf16.gmra.mxu1 %v11781_v41  ;;  %v9837_v41 = vrot.slane %v9835_v50, 5  ;;  %v12914_v15 = vpop.f32.mrf.mxu0  ;;  %v9695_v50 = vld [vmem:[#allocation2 + $0x78] sm:$0xf]  ;;  %v9949_v27 = vshrl.u32 %v17431_v29, 16 }
 0x46c   : > { %13117 = vmatmul.mubr.bf16.gmra.mxu0 %v13684_v34  ;;  %13240 = vmatprep.mubr.bf16.mxu1 %v11814_v20  ;;  %v9828_v20 = vsel %vm14344_vm11, %v17349_v26, %v17327_v13  ;;  %v17398_v55 = vpop.f32.mrf.mxu1  ;;  %v9921_v13 = vshll.u32 %v17390_v62, 16  ;;  %v17408_v26 = vadd.f32 %v17244_v7, %v17329_v6  ;;  %v17415_v34 = vadd.f32 %v17271_v38, %v12911_v43  ;;  %v9698_v6 = vld [vmem:[#allocation2 + $0x84] sm:$0xf] }
 0x46d   : > { %13120 = vmatprep.mubr.bf16.mxu0 %v13686_v51  ;;  %v9838_v21 = vsel %vm14344_vm11, %v9833_v18, %v9837_v41  ;;  %v6813_v42 = vpop.f32.mrf.mxu0  ;;  %v17419_v51 = vrot.slane %v9870_v30, 4  ;;  %v17424_v7 = vadd.f32 %v17284_v58, %v6800_v2  ;;  %v9893_v18 = vrot.slane %v9891_v36, 5 }
 0x46e   : > { %18881 = vst [vmem:[#allocation78_spill] sm:$0xff] %v17408_v26  ;;  %v17410_v24 = vpop.f32.mrf.mxu1  ;;  %18882 = vst [vmem:[#allocation54_spill] sm:$0xff] %v17415_v34  ;;  %v9912_v38 = vshrl.u32 %v9695_v50, 16  ;;  %v17429_v43 = vadd.f32 %v17299_v53, %v12914_v15  ;;  %v9903_v41 = vrot.slane %v9901_v40, 4  ;;  %v9915_v57 = vshll.u32 %v9695_v50, 16 }
 0x46f   : > { %18883 = vst [vmem:[#allocation55_spill] sm:$0xff] %v17424_v7  ;;  %v17435_v58 = vrot.slane %v9921_v13, 5  ;;  %v9927_v2 = vrot.slane %v9925_v5, 4  ;;  %v11818_v0 = vcombine.low %v9828_v20, %v9838_v21  ;;  %v9852_v53 = vsel %vm14344_vm11, %v9847_v59, %v17338_v56  ;;  %v12915_v46 = vpop.f32.mrf.mxu0  ;;  %v17448_v15 = vld [vmem:[#allocation2 + $0x94] sm:$0xf] }
 0x470   : > { %18884 = vst [vmem:[#allocation67_spill] sm:$0xff] %v17429_v43  ;;  %v9936_v44 = vshrl.u32 %v9698_v6, 16  ;;  %v9939_v30 = vshll.u32 %v9698_v6, 16  ;;  %v17442_v25 = vcombine.low %v9852_v53, %v9862_v49  ;;  %v9945_v36 = vshll.u32 %v17431_v29, 16  ;;  %v9701_v50 = vld [vmem:[#allocation2 + $0x90] sm:$0xf] }
 0x471   : > { %v9876_v20 = vsel %vm14344_vm11, %v17419_v51, %v17388_v61  ;;  %v9881_v21 = vrot.slane %v9880_v33, 4  ;;  %v9894_v56 = vor.u32 %v9893_v18, %v17421_v23  ;;  %v9907_v40 = vshll.u32 %v17433_v4, 16  ;;  %v17460_v49 = vld [vmem:[#allocation2 + $0x80] sm:$0x1]  ;;  %v6816_v51 = vpop.f32.mrf.mxu0 }
 0x472   : > { %v9904_v13 = vor.u32 %v9903_v41, %v17426_v47  ;;  %v9914_v5 = vrot.slane %v9912_v38, 4  ;;  %v9917_v59 = vrot.slane %v9915_v57, 5  ;;  %v9938_v6 = vrot.slane %v9936_v44, 4  ;;  %v13692_v23 = vld [vmem:[#allocation2 + $0xc0] sm:$0xff]   ;;  %v13693_v57 = vld [vmem:[#allocation2 + $0x18] sm:$0xff]  }
 0x473   : > { %13241 = vmatmul.mubr.bf16.vlgmr.msra.gmra.mxu1 %v11815_v35  ;;  %v17437_v35 = vpop.f32.mrf.mxu1  ;;  %v9969_v61 = vshll.u32 %v17448_v15, 16  ;;  %v9973_v33 = vshrl.u32 %v17448_v15, 16  ;;  %v17464_v18 = vrot.slane %v9945_v36, 5  ;;  %v9951_v53 = vrot.slane %v9949_v27, 4 }
 0x474   : > { %13121 = vmatmul.mubr.bf16.gmra.mxu0 %v13689_v11  ;;  %13244 = vmatprep.mubr.bf16.mxu1 %v11816_v9  ;;  %v17444_v9 = vrot.slane %v9883_v52, 5  ;;  %v9928_v52 = vor.u32 %v9927_v2, %v17435_v58  ;;  %v9960_v41 = vshrl.u32 %v9701_v50, 16  ;;  %v17467_v38 = vadd.f32 %v17322_v16, %v6813_v42 }
 0x475   : > { %13124 = vmatprep.mubr.bf16.mxu0 %v13690_v28  ;;  %v17458_v11 = vpop.f32.mrf.mxu1  ;;  %v9941_v28 = vrot.slane %v9939_v30, 5  ;;  %v17473_v44 = vrot.slane %v9907_v40, 5  ;;  %v17475_v30 = vld [vmem:[#allocation2 + $0x8c] sm:$0x1]  ;;  %v9963_v43 = vshll.u32 %v9701_v50, 16  ;;  %v17478_v36 = vadd.f32 %v17342_v22, %v12915_v46 }
 0x476   : > { %18885 = vst [vmem:[#allocation60_spill] sm:$0xff] %v17467_v38  ;;  %v9886_v2 = vsel %vm14344_vm11, %v9881_v21, %v17444_v9  ;;  %v9931_v16 = vshll.u32 %v17460_v49, 16  ;;  %v9975_v27 = vrot.slane %v9973_v33, 4  ;;  %v17486_v38 = vadd.f32 %v17364_v8, %v6816_v51  ;;  %v9704_v9 = vld [vmem:[#allocation2 + $0x9c] sm:$0xf] }
 0x477   : > { %18886 = vst [vmem:[#allocation56_spill] sm:$0xff] %v17478_v36  ;;  %v17488_v21 = vrot.slane %v9894_v56, 4  ;;  %v17490_v40 = vrot.slane %v9904_v13, 4  ;;  %v9918_v22 = vor.u32 %v9917_v59, %v9914_v5  ;;  %v17492_v46 = vrot.slane %v9928_v52, 4  ;;  %v17503_v59 = vld [vmem:[#allocation2 + $0x98] sm:$0x1] }
 0x478   : > { %18887 = vst [vmem:[#allocation61_spill] sm:$0xff] %v17486_v38  ;;  %v9942_v50 = vor.u32 %v9941_v28, %v9938_v6  ;;  %v9962_v33 = vrot.slane %v9960_v41, 4  ;;  %v9965_v51 = vrot.slane %v9963_v43, 5  ;;  %v9984_v13 = vshrl.u32 %v9704_v9, 16  ;;  %v13695_v38 = vld [vmem:[#allocation2 + $0x24] sm:$0xff]  }
 0x479   : > { %v9933_v5 = vrot.slane %v9931_v16, 5  ;;  %v11820_v7 = vcombine.low %v9876_v20, %v9886_v2  ;;  %v9910_v43 = vsel %vm14344_vm11, %v17490_v40, %v17473_v44  ;;  %v9919_v16 = vrot.slane %v9918_v22, 4  ;;  %v17523_v2 = vld [vmem:[#allocation2 + $0xac] sm:$0xf] }
 0x47a   : > { %v17481_v42 = vpop.f32.mrf.mxu1  ;;  %18889 = vst [vmem:[#allocation57_spill] sm:$0xff] %v17523_v2  ;;  %v9979_v44 = vshll.u32 %v17503_v59, 16  ;;  %v9986_v40 = vrot.slane %v9984_v13, 4  ;;  %v13700_v13 = vld [vmem:[#allocation10 + $0x228] sm:$0xff]  }
 0x47b   : > { %13245 = vmatmul.mubr.bf16.gmra.mxu1 %v17386_v1  ;;  %v17483_v1 = vrot.slane %v9969_v61, 5  ;;  %v9955_v61 = vshll.u32 %v17475_v30, 16 }
 0x47c   : > { %13125 = vmatmul.mubr.bf16.gmra.mxu0 %v13692_v23  ;;  %13248 = vmatprep.mubr.bf16.mxu1 %v11818_v0  ;;  %v17494_v0 = vld [vmem:[#allocation2 + $0xa0] sm:$0xf]  ;;  %v9952_v23 = vor.u32 %v9951_v53, %v17464_v18  ;;  %v17498_v36 = vpop.f32.mrf.mxu1  ;;  %v12918_v8 = vpop.f32.mrf.mxu0 }
 0x47d   : > { %13192 = vmatprep.mubr.bf16.mxu0 %v13693_v57  ;;  %v17501_v56 = vadd.f32 %v17398_v55, %v12918_v8  ;;  %v9987_v57 = vshll.u32 %v9704_v9, 16  ;;  %v9976_v52 = vor.u32 %v9975_v27, %v17483_v1  ;;  %v9993_v28 = vshll.u32 %v17494_v0, 16  ;;  %v13697_v27 = vld [vmem:[#allocation10 + $0x230] sm:$0xff]  }
 0x47e   : > { %v17506_v6 = vpop.f32.mrf.mxu1  ;;  %v9997_v53 = vshrl.u32 %v17494_v0, 16  ;;  %v6829_v41 = vpop.f32.mrf.mxu0  ;;  %v9900_v55 = vsel %vm14344_vm11, %v17488_v21, %v17426_v47  ;;  %v9934_v9 = vsel %vm14344_vm11, %v17492_v46, %v9933_v5  ;;  %v9943_v8 = vrot.slane %v9942_v50, 4  ;;  %v13696_v47 = vld [vmem:[#allocation2 + $0x30] sm:$0xff]  }
 0x47f   : > { %18888 = vst [vmem:[#allocation68_spill] sm:$0xff] %v17501_v56  ;;  %v9953_v56 = vrot.slane %v9952_v23, 4  ;;  %v9957_v34 = vrot.slane %v9955_v61, 5  ;;  %v9966_v21 = vor.u32 %v9965_v51, %v9962_v33  ;;  %v9989_v22 = vrot.slane %v9987_v57, 5  ;;  %v17529_v23 = vld [vmem:[#allocation2 + $0xa4] sm:$0x1] }
 0x480   : > { %v17521_v20 = vpop.f32.mrf.mxu1  ;;  %v12919_v26 = vpop.f32.mrf.mxu0  ;;  %v9977_v46 = vrot.slane %v9976_v52, 4  ;;  %18890 = vst [vmem:[#allocation63_spill] sm:$0xff] %v17529_v23  ;;  %v17531_v61 = vrot.slane %v9993_v28, 5  ;;  %v9999_v5 = vrot.slane %v9997_v53, 4  ;;  %v17534_v12 = vadd.f32 %v17410_v24, %v6829_v41 }
 0x481   : > { %v10017_v33 = vshll.u32 %v17523_v2, 16  ;;  %v9924_v24 = vsel %vm14344_vm11, %v9919_v16, %v17435_v58  ;;  %v10008_v57 = vshrl.u32 %v9707_v14, 16  ;;  %v10011_v52 = vshll.u32 %v9707_v14, 16  ;;  %v13698_v14 = vld [vmem:[#allocation2 + $0x3c] sm:$0xff]  }
 0x482   : > { %v17527_v50 = vpop.f32.mrf.mxu1  ;;  %18891 = vst [vmem:[#allocation58_spill] sm:$0xff] %v17534_v12  ;;  %v9967_v53 = vrot.slane %v9966_v21, 4  ;;  %v9981_v41 = vrot.slane %v9979_v44, 5  ;;  %v9948_v58 = vsel %vm14344_vm11, %v9943_v8, %v17464_v18  ;;  %v10000_v21 = vor.u32 %v9999_v5, %v17531_v61  ;;  %v13703_v18 = vld [vmem:[#allocation10 + $0x220] sm:$0xff]   ;;  %v13699_v5 = vld [vmem:[#allocation2 + $0x48] sm:$0xff]  }
 0x483   : > { %13249 = vmatmul.mubr.bf16.gmra.mxu1 %v17442_v25  ;;  %v6832_v25 = vpop.f32.mrf.mxu0  ;;  %v17565_v44 = vrot.slane %v10017_v33, 5  ;;  %v17573_v8 = vrot.slane %v10011_v52, 5 }
 0x484   : > { %13193 = vmatmul.mubr.bf16.vlgmr.msra.gmra.mxu0 %v13695_v38  ;;  %13252 = vmatprep.mubr.bf16.mxu1 %v11820_v7  ;;  %v10021_v38 = vshrl.u32 %v17523_v2, 16  ;;  %v17540_v7 = vadd.f32 %v17437_v35, %v12919_v26  ;;  %v17543_v51 = vadd.f32 %v17458_v11, %v6832_v25  ;;  %v17550_v28 = vpop.f32.mrf.mxu1  ;;  %v9990_v26 = vor.u32 %v9989_v22, %v9986_v40  ;;  %v17553_v11 = vld [vmem:[#allocation2 + $0xb0] sm:$0x1]  ;;  %v17629_v2 = vld [vmem:[#allocation2 + $0xd4] sm:$0x1] }
 0x485   : > { %13273 = vmatpush3.bf16.msra.mxu0 %v17297_v32  ;;  %13196 = vmatprep.mubr.bf16.mxu0 %v13696_v47  ;;  %v9958_v32 = vsel %vm14344_vm11, %v9953_v56, %v9957_v34  ;;  %v10003_v35 = vshll.u32 %v17529_v23, 16  ;;  %18894 = vst [vmem:[#allocation65_spill] sm:$0xff] %v17553_v11  ;;  %v11821_v47 = vcombine.low %v9900_v55, %v9910_v43  ;;  %v17560_v34 = vld [vmem:[#allocation2 + $0xb8] sm:$0xf]  ;;  %v17567_v55 = vld [vmem:[#allocation2 + $0xc4] sm:$0xf] }
 0x486   : > { %18892 = vst [vmem:[#allocation59_spill] sm:$0xff] %v17540_v7  ;;  %18893 = vst [vmem:[#allocation62_spill] sm:$0xff] %v17543_v51  ;;  %13274 = vmatprep.subr.bf16.mxu0 %v13697_v27  ;;  %v11822_v25 = vcombine.low %v9924_v24, %v9934_v9  ;;  %v17558_v16 = vpop.f32.mrf.mxu1  ;;  %v9982_v56 = vsel %vm14344_vm11, %v9977_v46, %v9981_v41  ;;  %v10023_v40 = vrot.slane %v10021_v38, 4  ;;  %v17571_v9 = vrot.slane %v10008_v57, 4  ;;  %v9710_v46 = vld [vmem:[#allocation2 + $0xb4] sm:$0xf] }
 0x487   : > { %18895 = vst [vmem:[#allocation66_spill] sm:$0xff] %v17560_v34  ;;  %18896 = vst [vmem:[#allocation79_spill] sm:$0xff] %v17567_v55  ;;  %v17569_v43 = vcombine.low %v9948_v58, %v9958_v32  ;;  %v9972_v33 = vsel %vm14344_vm11, %v9967_v53, %v17483_v1  ;;  %v17581_v38 = vrot.slane %v9990_v26, 4  ;;  %v17583_v24 = vrot.slane %v10003_v35, 5  ;;  %v9713_v57 = vld [vmem:[#allocation2 + $0xc0] sm:$0xf] }
 0x488   : > { %v17576_v22 = vpop.f32.mrf.mxu1  ;;  %v10041_v32 = vshll.u32 %v17560_v34, 16  ;;  %v11824_v52 = vcombine.low %v9972_v33, %v9982_v56  ;;  %v10065_v51 = vshll.u32 %v17567_v55, 16  ;;  %v10069_v7 = vshrl.u32 %v17567_v55, 16  ;;  %v13706_v33 = vld [vmem:[#allocation10 + $0x218] sm:$0xff]   ;;  %18900 = vst [vmem:[#allocation81_spill] sm:$0xff] %v17629_v2 }
 0x489   : > { %13275 = vmatpush3.bf16.msra.mxu0 %v13697_v27  ;;  %v10027_v27 = vshll.u32 %v17553_v11, 16  ;;  %v17591_v1 = vrot.slane %v10000_v21, 4  ;;  %v10024_v53 = vor.u32 %v10023_v40, %v17565_v44  ;;  %v10032_v35 = vshrl.u32 %v9710_v46, 16  ;;  %v13701_v11 = vld [vmem:[#allocation2 + $0x54] sm:$0xff]  }
 0x48a   : > { %13276 = vmatprep.subr.bf16.mxu0 %v13700_v13  ;;  %v12922_v41 = vpop.f32.mrf.mxu0  ;;  %v17586_v58 = vpop.f32.mrf.mxu1  ;;  %v10035_v12 = vshll.u32 %v9710_v46, 16  ;;  %v10056_v55 = vshrl.u32 %v9713_v57, 16  ;;  %v17607_v21 = vrot.slane %v10041_v32, 5  ;;  %v10059_v40 = vshll.u32 %v9713_v57, 16 }
 0x48b   : > { %13253 = vmatmul.mubr.bf16.gmra.mxu1 %v11821_v47  ;;  %v10045_v47 = vshrl.u32 %v17560_v34, 16  ;;  %v17595_v26 = vadd.f32 %v17481_v42, %v12922_v41  ;;  %v17599_v56 = vrot.slane %v10027_v27, 5  ;;  %v9996_v42 = vsel %vm14344_vm11, %v17581_v38, %v17531_v61 }
 0x48c   : > { %13197 = vmatmul.mubr.bf16.gmra.mxu0 %v13698_v14  ;;  %13256 = vmatprep.mubr.bf16.mxu1 %v11822_v25  ;;  %v9716_v25 = vld [vmem:[#allocation2 + $0xcc] sm:$0xf]  ;;  %v10014_v14 = vor.u32 %v17573_v8, %v17571_v9  ;;  %v17612_v8 = vrot.slane %v10065_v51, 5  ;;  %v10071_v27 = vrot.slane %v10069_v7, 4  ;;  %v10006_v61 = vsel %vm14344_vm11, %v17591_v1, %v17583_v24  ;;  %v17632_v24 = vld [vmem:[#allocation2 + $0xc8] sm:$0x1] }
 0x48d   : > { %13200 = vmatprep.mubr.bf16.mxu0 %v13699_v5  ;;  %13277 = vmatpush3.bf16.msra.mxu0 %v13700_v13  ;;  %18897 = vst [vmem:[#allocation80_spill] sm:$0xff] %v17595_v26  ;;  %v6845_v5 = vpop.f32.mrf.mxu0  ;;  %v17601_v13 = vpop.f32.mrf.mxu1  ;;  %v10047_v9 = vrot.slane %v10045_v47, 4  ;;  %v10080_v34 = vshrl.u32 %v9716_v25, 16  ;;  %v10025_v38 = vrot.slane %v10024_v53, 4  ;;  %v10034_v32 = vrot.slane %v10032_v35, 4  ;;  %v13709_v7 = vld [vmem:[#allocation10 + $0x210] sm:$0xff]  }
 0x48e   : > { %13278 = vmatprep.subr.bf16.mxu0 %v13703_v18  ;;  %v17610_v41 = vadd.f32 %v17498_v36, %v6845_v5  ;;  %v17622_v36 = vld [vmem:[#allocation2 + $0xbc] sm:$0x1]  ;;  %v10037_v57 = vrot.slane %v10035_v12, 5  ;;  %v10058_v47 = vrot.slane %v10056_v55, 4  ;;  %v10083_v23 = vshll.u32 %v9716_v25, 16 }
 0x48f   : > { %v12923_v46 = vpop.f32.mrf.mxu0  ;;  %v17614_v26 = vpop.f32.mrf.mxu1  ;;  %v10082_v45 = vrot.slane %v10080_v34, 4  ;;  %v10061_v1 = vrot.slane %v10059_v40, 5  ;;  %v10089_v53 = vshll.u32 %v17616_v37, 16  ;;  %v10093_v12 = vshrl.u32 %v17616_v37, 16 }
 0x490   : > { %18898 = vst [vmem:[#allocation96_spill] sm:$0xff] %v17610_v41  ;;  %v17625_v51 = vadd.f32 %v17506_v6, %v12923_v46  ;;  %v10015_v55 = vrot.slane %v10014_v14, 4  ;;  %v10048_v35 = vor.u32 %v10047_v9, %v17607_v21  ;;  %v10072_v34 = vor.u32 %v10071_v27, %v17612_v8 }
 0x491   : > { %13279 = vmatpush3.bf16.msra.mxu0 %v13703_v18  ;;  %v6848_v5 = vpop.f32.mrf.mxu0  ;;  %v17627_v41 = vpop.f32.mrf.mxu1  ;;  %v13702_v18 = vld [vmem:[#allocation2 + $0x60] sm:$0xff]   ;;  %v10085_v46 = vrot.slane %v10083_v23, 5  ;;  %v17646_v40 = vrot.slane %v10089_v53, 5  ;;  %v10051_v14 = vshll.u32 %v17622_v36, 16  ;;  %v10075_v9 = vshll.u32 %v17632_v24, 16 }
 0x492   : > { %18899 = vst [vmem:[#allocation98_spill] sm:$0xff] %v17625_v51  ;;  %13280 = vmatprep.subr.bf16.mxu0 %v13706_v33  ;;  %v17635_v6 = vadd.f32 %v17521_v20, %v6848_v5  ;;  %v10095_v5 = vrot.slane %v10093_v12, 4  ;;  %v13712_v23 = vld [vmem:[#allocation10 + $0x208] sm:$0xff]   ;;  %v10020_v12 = vsel %vm14344_vm11, %v10015_v55, %v17565_v44  ;;  %v13715_v44 = vld [vmem:[#allocation10 + $0x200] sm:$0xff]  }
 0x493   : > { %13257 = vmatmul.mubr.bf16.gmra.mxu1 %v17569_v43  ;;  %v12926_v25 = vpop.f32.mrf.mxu0  ;;  %v17641_v43 = vpop.f32.mrf.mxu1  ;;  %v13705_v55 = vld [vmem:[#allocation2 + $0x78] sm:$0xff]  }
 0x494   : > { %18901 = vst [vmem:[#allocation82_spill] sm:$0xff] %v17635_v6  ;;  %13201 = vmatmul.mubr.bf16.gmra.mxu0 %v13701_v11  ;;  %13260 = vmatprep.mubr.bf16.mxu1 %v11824_v52  ;;  %v17644_v20 = vadd.f32 %v17527_v50, %v12926_v25  ;;  %v10099_v11 = vshll.u32 %v17629_v2, 16  ;;  %v10038_v52 = vor.u32 %v10037_v57, %v10034_v32  ;;  %v10049_v25 = vrot.slane %v10048_v35, 4 }
 0x495   : > { %13204 = vmatprep.mubr.bf16.mxu0 %v13702_v18  ;;  %13281 = vmatpush3.bf16.msra.mxu0 %v13706_v33  ;;  %v6861_v27 = vpop.f32.mrf.mxu0  ;;  %v17651_v6 = vpop.f32.mrf.mxu1  ;;  %v10086_v18 = vor.u32 %v10085_v46, %v10082_v45  ;;  %v10030_v50 = vsel %vm14344_vm11, %v10025_v38, %v17599_v56  ;;  %v10062_v33 = vor.u32 %v10061_v1, %v10058_v47  ;;  %v13704_v47 = vld [vmem:[#allocation2 + $0x6c] sm:$0xff]  }
 0x496   : > { %18902 = vst [vmem:[#allocation91_spill] sm:$0xff] %v17644_v20  ;;  %13282 = vmatprep.subr.bf16.mxu0 %v13709_v7  ;;  %v17657_v53 = vadd.f32 %v17550_v28, %v6861_v27  ;;  %v10096_v32 = vor.u32 %v10095_v5, %v17646_v40  ;;  %v11825_v57 = vcombine.low %v9996_v42, %v10006_v61  ;;  %v10073_v20 = vrot.slane %v10072_v34, 4 }
 0x497   : > { %v12927_v51 = vpop.f32.mrf.mxu0  ;;  %v17663_v2 = vpop.f32.mrf.mxu1  ;;  %v10087_v56 = vrot.slane %v10086_v18, 4  ;;  %v10101_v28 = vrot.slane %v10099_v11, 5  ;;  %v11826_v1 = vcombine.low %v10020_v12, %v10030_v50  ;;  %v10039_v46 = vrot.slane %v10038_v52, 4  ;;  %v10430_v50 = vld [vmem:[#allocation2 + $0x54] sm:$0xe] }
 0x498   : > { %v17666_v45 = vadd.f32 %v17558_v16, %v12927_v51  ;;  %v10097_v38 = vrot.slane %v10096_v32, 4  ;;  %v10053_v42 = vrot.slane %v10051_v14, 5  ;;  %v10077_v61 = vrot.slane %v10075_v9, 5  ;;  %v17673_v16 = vld [vmem:[#allocation2 + $0x1c] sm:$0xf] }
 0x499   : > { %13283 = vmatpush3.bf16.msra.mxu0 %v13709_v7  ;;  %v6864_v5 = vpop.f32.mrf.mxu0  ;;  %v17668_v27 = vpop.f32.mrf.mxu1  ;;  %v10063_v35 = vrot.slane %v10062_v33, 4  ;;  %v18623_v51 = vrot.slane %v17673_v16, 5  ;;  %v17692_v33 = vadd.f32 %v17212_v39, %v17290_v63  ;;  %v11843_v17 = vrot.slane %v10430_v50, 9 }
 0x49a   : > { %13284 = vmatprep.subr.bf16.mxu0 %v13712_v23  ;;  %v17671_v7 = vadd.f32 %v17576_v22, %v6864_v5  ;;  %v10054_v34 = vsel %vm14344_vm11, %v10049_v25, %v10053_v42  ;;  %v10078_v11 = vsel %vm14344_vm11, %v10073_v20, %v10077_v61  ;;  %v10092_v22 = vsel %vm14344_vm11, %v10087_v56, %v17646_v40  ;;  %v13707_v61 = vld [vmem:[#allocation2 + $0x84] sm:$0xff]  }
 0x49b   : > { %13261 = vmatmul.mubr.bf16.gmra.mxu1 %v11825_v57  ;;  %v12930_v52 = vpop.f32.mrf.mxu0  ;;  %v17680_v14 = vpop.f32.mrf.mxu1  ;;  %v10102_v18 = vsel %vm14344_vm11, %v10097_v38, %v10101_v28  ;;  %v10044_v20 = vsel %vm14344_vm11, %v10039_v46, %v17607_v21  ;;  %v10526_v40 = vrot.slane %v17305_v60, 5  ;;  %v10068_v12 = vsel %vm14344_vm11, %v10063_v35, %v17612_v8  ;;  %v10431_v21 = vld [vmem:[#allocation2 + $0x60] sm:$0xe]  ;;  %v17715_v60 = vld [vmem:[#allocation2 + $0x28] sm:$0xf] }
 0x49c   : > { %13205 = vmatmul.mubr.bf16.gmra.mxu0 %v13704_v47  ;;  %13264 = vmatprep.mubr.bf16.mxu1 %v11826_v1  ;;  %v17683_v9 = vadd.f32 %v17586_v58, %v12930_v52  ;;  %v11827_v57 = vcombine.low %v10044_v20, %v10054_v34  ;;  %v17709_v63 = vrot.slane %v18623_v51, 4  ;;  %v11828_v25 = vcombine.low %v10068_v12, %v10078_v11  ;;  %v10432_v8 = vld [vmem:[#allocation2 + $0x6c] sm:$0xe]  ;;  %v10433_v52 = vld [vmem:[#allocation2 + $0x78] sm:$0xe] }
 0x49d   : > { %13208 = vmatprep.mubr.bf16.mxu0 %v13705_v55  ;;  %13285 = vmatpush3.bf16.msra.mxu0 %v13712_v23  ;;  %v6877_v32 = vpop.f32.mrf.mxu0  ;;  %v17697_v58 = vpop.f32.mrf.mxu1  ;;  %v17713_v28 = vcombine.low %v10092_v22, %v10102_v18  ;;  %v10528_v1 = vrot.slane %v10526_v40, 4  ;;  %v10529_v46 = vrot.slane %v17351_v31, 5  ;;  %v10533_v42 = vrot.slane %v17340_v54, 5 }
 0x49e   : > { %13286 = vmatprep.subr.bf16.mxu0 %v13715_v44  ;;  %v17705_v39 = vadd.f32 %v17601_v13, %v6877_v32  ;;  %v17727_v35 = vsel %vm14306_vm8, %v11843_v17, %v10526_v40  ;;  %v11844_v34 = vrot.slane %v10431_v21, 9  ;;  %v10536_v11 = vrot.slane %v17396_v3, 5  ;;  %v10434_v40 = vld [vmem:[#allocation2 + $0x84] sm:$0xe] }
 0x49f   : > { %v12931_v56 = vpop.f32.mrf.mxu0  ;;  %v17711_v38 = vpop.f32.mrf.mxu1  ;;  %v17736_v54 = vsel %vm14306_vm8, %v10528_v1, %v10529_v46  ;;  %v11845_v22 = vrot.slane %v10432_v8, 9  ;;  %v10543_v18 = vrot.slane %v17433_v4, 5  ;;  %v11846_v12 = vrot.slane %v10433_v52, 9  ;;  %v10435_v46 = vld [vmem:[#allocation2 + $0x90] sm:$0xe] }
 0x4a0   : > { %v17719_v13 = vadd.f32 %v17614_v26, %v12931_v56  ;;  %v10540_v26 = vrot.slane %v17384_v19, 5  ;;  %v17745_v3 = vsel %vm14306_vm8, %v11844_v34, %v10533_v42  ;;  %v10547_v21 = vrot.slane %v17390_v62, 5 }
 0x4a1   : > { %13287 = vmatpush3.bf16.msra.mxu0 %v13715_v44  ;;  %v6880_v5 = vpop.f32.mrf.mxu0  ;;  %v17723_v55 = vpop.f32.mrf.mxu1  ;;  %v13708_v44 = vld [vmem:[#allocation2 + $0x90] sm:$0xff]   ;;  %v10554_v1 = vrot.slane %v17431_v29, 5  ;;  %v10557_v52 = vrot.slane %v17475_v30, 5 }
 0x4a2   : > { %18903 = vst [vmem:[#allocation83_spill] sm:$0xff] %v17719_v13  ;;  %v17732_v31 = vadd.f32 %v17627_v41, %v6880_v5  ;;  %v10535_v41 = vrot.slane %v10533_v42, 4  ;;  %v10542_v32 = vrot.slane %v10540_v26, 4  ;;  %v17752_v4 = vsel %vm14306_vm8, %v11845_v22, %v10540_v26 }
 0x4a3   : > { %13265 = vmatmul.mubr.bf16.gmra.mxu1 %v11827_v57  ;;  %v12934_v50 = vpop.f32.mrf.mxu0  ;;  %v17739_v20 = vpop.f32.mrf.mxu1  ;;  %v11847_v5 = vrot.slane %v10434_v40, 9  ;;  %v17778_v26 = vsel %vm14306_vm8, %v11846_v12, %v10547_v21  ;;  %v10556_v29 = vrot.slane %v10554_v1, 4 }
 0x4a4   : > { %18904 = vst [vmem:[#allocation84_spill] sm:$0xff] %v17732_v31  ;;  %13209 = vmatmul.mubr.bf16.gmra.mxu0 %v13707_v61  ;;  %13268 = vmatprep.mubr.bf16.mxu1 %v11828_v25  ;;  %v17748_v57 = vadd.f32 %v17641_v43, %v12934_v50  ;;  %v17759_v17 = vsel %vm14306_vm8, %v10535_v41, %v10536_v11  ;;  %v10550_v43 = vrot.slane %v17460_v49, 5  ;;  %v10549_v49 = vrot.slane %v10547_v21, 4  ;;  %v13710_v41 = vld [vmem:[#allocation2 + $0x9c] sm:$0xff]  }
 0x4a5   : > { %13212 = vmatprep.mubr.bf16.mxu0 %v13708_v44  ;;  %v6893_v25 = vpop.f32.mrf.mxu0  ;;  %v17755_v56 = vpop.f32.mrf.mxu1  ;;  %v17763_v8 = vsel %vm14306_vm8, %v10542_v32, %v10543_v18  ;;  %v17786_v22 = vsel %vm14306_vm8, %v11847_v5, %v10554_v1  ;;  %v11848_v18 = vrot.slane %v10435_v46, 9  ;;  %v10561_v50 = vrot.slane %v17448_v15, 5  ;;  %v13711_v1 = vld [vmem:[#allocation2 + $0xa8] sm:$0xff]  }
 0x4a6   : > { %18905 = vst [vmem:[#allocation85_spill] sm:$0xff] %v17748_v57  ;;  %v17768_v42 = vadd.f32 %v17651_v6, %v6893_v25  ;;  %v10436_v6 = vld [vmem:[#allocation2 + $0x9c] sm:$0xe]  ;;  %v17793_v12 = vsel %vm14306_vm8, %v10549_v49, %v10550_v43  ;;  %v17797_v30 = vsel %vm14306_vm8, %v10556_v29, %v10557_v52  ;;  %v10568_v21 = vrot.slane %v17494_v0, 5  ;;  %v10437_v25 = vld [vmem:[#allocation2 + $0xa8] sm:$0xe] }
 0x4a7   : > { %v12935_v34 = vpop.f32.mrf.mxu0  ;;  %v17774_v11 = vpop.f32.mrf.mxu1  ;;  %v11849_v5 = vrot.slane %v10436_v6, 9  ;;  %v17813_v0 = vsel %vm14306_vm8, %v11848_v18, %v10561_v50  ;;  %v18909_v29 = vld [vmem:[#allocation63_spill] sm:$0xff]  ;;  %v10438_v52 = vld [vmem:[#allocation2 + $0xb4] sm:$0xe]  ;;  %v11850_v6 = vrot.slane %v10437_v25, 9 }
 0x4a8   : > { %18906 = vst [vmem:[#allocation86_spill] sm:$0xff] %v17768_v42  ;;  %v17782_v44 = vadd.f32 %v17663_v2, %v12935_v34  ;;  %v10564_v2 = vrot.slane %v17503_v59, 5  ;;  %v10563_v59 = vrot.slane %v10561_v50, 4  ;;  %v11851_v51 = vrot.slane %v10438_v52, 9  ;;  %v18916_v52 = vld [vmem:[#allocation79_spill] sm:$0xff] }
 0x4a9   : > { %v6896_v32 = vpop.f32.mrf.mxu0  ;;  %v17789_v40 = vpop.f32.mrf.mxu1  ;;  %v17819_v43 = vsel %vm14306_vm8, %v11849_v5, %v10568_v21  ;;  %v18914_v5 = vld [vmem:[#allocation77_spill] sm:$0xff] }
 0x4aa   : > { %18907 = vst [vmem:[#allocation94_spill] sm:$0xff] %v17782_v44  ;;  %v17803_v15 = vadd.f32 %v17668_v27, %v6896_v32  ;;  %v10571_v27 = vrot.slane %v18909_v29, 5  ;;  %v18910_v32 = vld [vmem:[#allocation72_spill] sm:$0xff]  ;;  %v17826_v18 = vsel %vm14306_vm8, %v10563_v59, %v10564_v2  ;;  %v18913_v29 = vld [vmem:[#allocation66_spill] sm:$0xff]  ;;  %v10440_v2 = vld [vmem:[#allocation2 + $0xcc] sm:$0xe] }
 0x4ab   : > { %13269 = vmatmul.mubr.bf16.gmra.mxu1 %v17713_v28  ;;  %v13002_v34 = vpop.f32.mrf.mxu0  ;;  %v17809_v49 = vpop.f32.mrf.mxu1  ;;  %v10570_v28 = vrot.slane %v10568_v21, 4  ;;  %v10439_v21 = vld [vmem:[#allocation2 + $0xc0] sm:$0xe]  ;;  %v13713_v44 = vld [vmem:[#allocation2 + $0xb4] sm:$0xff]  }
 0x4ac   : > { %18908 = vst [vmem:[#allocation87_spill] sm:$0xff] %v17803_v15  ;;  %13213 = vmatmul.mubr.bf16.gmra.mxu0 %v13710_v41  ;;  %v7841_v46 = vadd.f32 %v13002_v34, %v18910_v32  ;;  %v18911_v41 = vld [vmem:[#allocation57_spill] sm:$0xff]  ;;  %v10582_v32 = vrot.slane %v18913_v29, 5  ;;  %v10585_v29 = vrot.slane %v17622_v36, 5  ;;  %v11852_v47 = vrot.slane %v10439_v21, 9  ;;  %v18919_v21 = vld [vmem:[#allocation76_spill] sm:$0xff] }
 0x4ad   : > { %13216 = vmatprep.mubr.bf16.mxu0 %v13711_v1  ;;  %v10575_v61 = vrot.slane %v18911_v41, 5  ;;  %v7712_v62 = vpop.f32.mrf.mxu0  ;;  %v17822_v19 = vpop.f32.mrf.mxu1  ;;  %v17830_v50 = vsel %vm14306_vm8, %v10570_v28, %v10571_v27  ;;  %v18912_v1 = vld [vmem:[#allocation65_spill] sm:$0xff]  ;;  %v10589_v15 = vrot.slane %v18916_v52, 5  ;;  %v10592_v52 = vrot.slane %v17632_v24, 5 }
 0x4ae   : > { %v10578_v34 = vrot.slane %v18912_v1, 5  ;;  %v7839_v25 = vadd.f32 %v7712_v62, %v18914_v5  ;;  %v10584_v1 = vrot.slane %v10582_v32, 4  ;;  %v18915_v62 = vld [vmem:[#allocation74_spill] sm:$0xff]  ;;  %v17849_v41 = vsel %vm14306_vm8, %v11851_v51, %v10582_v32  ;;  %v13714_v51 = vld [vmem:[#allocation2 + $0xc0] sm:$0xff]  }
 0x4af   : > { %v13003_v59 = vpop.f32.mrf.mxu0  ;;  %v17839_v23 = vpop.f32.mrf.mxu1  ;;  %v17843_v28 = vsel %vm14306_vm8, %v11850_v6, %v10575_v61  ;;  %v10577_v27 = vrot.slane %v10575_v61, 4  ;;  %v11853_v61 = vrot.slane %v10440_v2, 9 }
 0x4b0   : > { %v7842_v5 = vadd.f32 %v13003_v59, %v18915_v62  ;;  %v17860_v36 = vsel %vm14306_vm8, %v10584_v1, %v10585_v29  ;;  %v10596_v59 = vrot.slane %v17616_v37, 5  ;;  %v10591_v1 = vrot.slane %v10589_v15, 4  ;;  %v18918_v29 = vld [vmem:[#allocation81_spill] sm:$0xff] }
 0x4b1   : > { %v7715_v42 = vpop.f32.mrf.mxu0  ;;  %v17852_v57 = vpop.f32.mrf.mxu1  ;;  %v17856_v6 = vsel %vm14306_vm8, %v10577_v27, %v10578_v34  ;;  %18917 = vst [vmem:[#allocation88_spill] sm:$0xff] %v17860_v36  ;;  %v17878_v62 = vadd.f32 %v17680_v14, %v7841_v46  ;;  %v17881_v24 = vadd.f32 %v17697_v58, %v7839_v25 }
 0x4b2   : > { %v7840_v32 = vadd.f32 %v7715_v42, %v17692_v33  ;;  %v17873_v2 = vsel %vm14306_vm8, %v11853_v61, %v10596_v59  ;;  %v10598_v37 = vrot.slane %v10596_v59, 4  ;;  %v10599_v33 = vrot.slane %v18918_v29, 5  ;;  %v10425_v42 = vld [vmem:[#allocation2 + $0x18] sm:$0xe] }
 0x4b3   : > { %v17869_v27 = vpop.f32.mrf.mxu1  ;;  %v17890_v61 = vsel %vm14306_vm8, %v11852_v47, %v10589_v15  ;;  %v17894_v59 = vsel %vm14306_vm8, %v10591_v1, %v10592_v52  ;;  %v18923_v1 = vld [vmem:[#allocation54_spill] sm:$0xff] }
 0x4b4   : > { %13217 = vmatmul.mubr.bf16.gmra.mxu0 %v13713_v44  ;;  %v13006_v34 = vpop.f32.mrf.mxu0  ;;  %v17884_v44 = vadd.f32 %v17711_v38, %v7842_v5  ;;  %v17898_v14 = vsel %vm14306_vm8, %v10598_v37, %v10599_v33  ;;  %v17901_v58 = vadd.f32 %v17723_v55, %v7840_v32  ;;  %v18920_v38 = vld [vmem:[#allocation78_spill] sm:$0xff] }
 0x4b5   : > { %13220 = vmatprep.mubr.bf16.mxu0 %v13714_v51  ;;  %v7845_v31 = vadd.f32 %v13006_v34, %v18919_v21  ;;  %v17886_v36 = vpop.f32.mrf.mxu1  ;;  %v13716_v5 = vld [vmem:[#allocation2 + $0xcc] sm:$0xff]   ;;  %v11838_v51 = vrot.slane %v10425_v42, 9  ;;  %v18922_v21 = vrot.slane %v17252_v48, 5  ;;  %v13796_v32 = vld [vmem:[#allocation2 + $0x34] sm:$0xf]  ;;  %v18926_v42 = vrot.slane %v17715_v60, 5 }
 0x4b6   : > { %v7728_v13 = vpop.f32.mrf.mxu0  ;;  %v10505_v52 = vrot.slane %v13796_v32, 5  ;;  %v10427_v47 = vld [vmem:[#allocation2 + $0x30] sm:$0xe] }
 0x4b7   : > { %v7843_v46 = vadd.f32 %v7728_v13, %v18920_v38  ;;  %v17909_v15 = vadd.f32 %v17739_v20, %v7845_v31  ;;  %v10495_v55 = vsel %vm14306_vm8, %v17709_v63, %v18922_v21  ;;  %v17916_v34 = vpop.f32.mrf.mxu1  ;;  %v18925_v31 = vrot.slane %v17673_v16, 5  ;;  %v18927_v38 = vld [vmem:[#allocation55_spill] sm:$0xff]  ;;  %v13797_v16 = vld [vmem:[#allocation2 + $0x2c] sm:$0x1] }
 0x4b8   : > { %v13007_v13 = vpop.f32.mrf.mxu0  ;;  %v10500_v63 = vrot.slane %v18926_v42, 4  ;;  %v11840_v42 = vrot.slane %v10427_v47, 9 }
 0x4b9   : > { %18921 = vst [vmem:[#allocation89_spill] sm:$0xff] %v17909_v15  ;;  %v7846_v37 = vadd.f32 %v13007_v13, %v18923_v1  ;;  %v17920_v29 = vadd.f32 %v17755_v56, %v7843_v46  ;;  %v10492_v20 = vsel %vm14306_vm8, %v11838_v51, %v18925_v31  ;;  %v10426_v13 = vld [vmem:[#allocation2 + $0x24] sm:$0xe]  ;;  %v10507_v1 = vrot.slane %v10505_v52, 4  ;;  %v17932_v56 = vpop.f32.mrf.mxu1 }
 0x4ba   : > { %v7731_v48 = vpop.f32.mrf.mxu0  ;;  %v11854_v33 = vcombine.low %v10492_v20, %v10495_v55  ;;  %v10501_v46 = vrot.slane %v13797_v16, 5  ;;  %v13798_v55 = vld [vmem:[#allocation2 + $0x38] sm:$0x1]  ;;  %v11839_v20 = vrot.slane %v10426_v13, 9 }
 0x4bb   : > { %18924 = vst [vmem:[#allocation90_spill] sm:$0xff] %v17920_v29  ;;  %v7844_v21 = vadd.f32 %v7731_v48, %v18927_v38  ;;  %v17930_v32 = vadd.f32 %v17774_v11, %v7846_v37  ;;  %v10508_v31 = vrot.slane %v13798_v55, 5  ;;  %v13799_v11 = vld [vmem:[#allocation2 + $0x40] sm:$0xf]  ;;  %v18930_v16 = vld [vmem:[#allocation67_spill] sm:$0xff] }
 0x4bc   : > { %13221 = vmatmul.mubr.bf16.gmra.mxu0 %v13716_v5  ;;  %v10502_v48 = vsel %vm14306_vm8, %v10500_v63, %v10501_v46  ;;  %v10512_v37 = vrot.slane %v13799_v11, 5  ;;  %v10506_v63 = vsel %vm14306_vm8, %v11840_v42, %v10505_v52  ;;  %v18932_v46 = vld [vmem:[#allocation60_spill] sm:$0xff] }
 0x4bd   : > { %18928 = vst [vmem:[#allocation99_spill] sm:$0xff] %v17930_v32  ;;  %13288 = vmatprep.mubr.bf16.mxu0 %v11854_v33  ;;  %v17935_v51 = vadd.f32 %v17789_v40, %v7844_v21  ;;  %v10509_v38 = vsel %vm14306_vm8, %v10507_v1, %v10508_v31  ;;  %v13800_v33 = vld [vmem:[#allocation2 + $0x4c] sm:$0xf]  ;;  %v18931_v40 = vrot.slane %v17715_v60, 5  ;;  %v13801_v52 = vld [vmem:[#allocation2 + $0x44] sm:$0x1] }
 0x4be   : > { %v10519_v25 = vrot.slane %v13800_v33, 5  ;;  %v11856_v31 = vcombine.low %v10506_v63, %v10509_v38  ;;  %v10514_v33 = vrot.slane %v10512_v37, 4  ;;  %v10515_v42 = vrot.slane %v13801_v52, 5 }
 0x4bf   : > { %18929 = vst [vmem:[#allocation92_spill] sm:$0xff] %v17935_v51  ;;  %v13010_v5 = vpop.f32.mrf.mxu0  ;;  %v10499_v21 = vsel %vm14306_vm8, %v11839_v20, %v18931_v40  ;;  %v18933_v51 = vld [vmem:[#allocation56_spill] sm:$0xff]  ;;  %v10429_v40 = vld [vmem:[#allocation2 + $0x48] sm:$0xe] }
 0x4c0   : > { %v7849_v32 = vadd.f32 %v13010_v5, %v18930_v16  ;;  %v13066_v29 = vpop.f32.mrf.mxu1  ;;  %v11855_v55 = vcombine.low %v10499_v21, %v10502_v48  ;;  %v10428_v16 = vld [vmem:[#allocation2 + $0x3c] sm:$0xe]  ;;  %v10521_v60 = vrot.slane %v10519_v25, 4 }
 0x4c1   : > { %v7744_v13 = vpop.f32.mrf.mxu0 }
 0x4c2   : > { %v7847_v47 = vadd.f32 %v7744_v13, %v18932_v46  ;;  %v8274_v11 = vpop.f32.mrf.mxu1  ;;  %v17950_v1 = vadd.f32 %v17809_v49, %v7849_v32  ;;  %v13802_v13 = vld [vmem:[#allocation2 + $0x50] sm:$0x1]  ;;  %v18934_v32 = vld [vmem:[#allocation61_spill] sm:$0xff]  ;;  %v11842_v46 = vrot.slane %v10429_v40, 9 }
 0x4c3   : > { %v13011_v5 = vpop.f32.mrf.mxu0  ;;  %v10522_v49 = vrot.slane %v13802_v13, 5  ;;  %v18936_v13 = vld [vmem:[#allocation58_spill] sm:$0xff] }
 0x4c4   : > { %13289 = vmatmul.mubr.bf16.vlgmr.msra.gmra.mxu0 %v11855_v55  ;;  %v7850_v15 = vadd.f32 %v13011_v5, %v18933_v51  ;;  %v13067_v20 = vpop.f32.mrf.mxu1  ;;  %v17954_v48 = vadd.f32 %v17822_v19, %v7847_v47  ;;  %v11841_v55 = vrot.slane %v10428_v16, 9  ;;  %v10516_v51 = vsel %vm14306_vm8, %v10514_v33, %v10515_v42  ;;  %v18935_v33 = vld [vmem:[#allocation68_spill] sm:$0xff] }
 0x4c5   : > { %13292 = vmatprep.mubr.bf16.mxu0 %v11856_v31  ;;  %v7747_v21 = vpop.f32.mrf.mxu0  ;;  %v10523_v19 = vsel %vm14306_vm8, %v10521_v60, %v10522_v49 }
 0x4c6   : > { %v7848_v38 = vadd.f32 %v7747_v21, %v18934_v32  ;;  %v17958_v63 = vadd.f32 %v17839_v23, %v7850_v15  ;;  %v8277_v47 = vpop.f32.mrf.mxu1  ;;  %v10513_v5 = vsel %vm14306_vm8, %v11841_v55, %v10512_v37  ;;  %v10520_v23 = vsel %vm14306_vm8, %v11842_v46, %v10519_v25 }
 0x4c7   : > { %v11857_v52 = vcombine.low %v10513_v5, %v10516_v51  ;;  %v11858_v15 = vcombine.low %v10520_v23, %v10523_v19  ;;  %v18938_v51 = vld [vmem:[#allocation62_spill] sm:$0xff] }
 0x4c8   : > { %v17965_v31 = vadd.f32 %v17852_v57, %v7848_v38  ;;  %v18937_v38 = vld [vmem:[#allocation59_spill] sm:$0xff] }
 0x4cc   : > { %13293 = vmatmul.mubr.bf16.gmra.mxu0 %v11857_v52  ;;  %v13070_v21 = vpop.f32.mrf.mxu1  ;;  %v18939_v52 = vcombine.low %v17727_v35, %v17736_v54  ;;  %v18943_v35 = vcombine.low %v17752_v4, %v17763_v8  ;;  %v18947_v8 = vcombine.low %v17786_v22, %v17797_v30 }
 0x4cd   : > { %v13014_v16 = vpop.f32.mrf.mxu0  ;;  %13296 = vmatprep.mubr.bf16.mxu0 %v11858_v15 }
 0x4ce   : > { %v7853_v42 = vadd.f32 %v13014_v16, %v18935_v33  ;;  %v8290_v60 = vpop.f32.mrf.mxu1  ;;  %v18941_v16 = vld [vmem:[#allocation80_spill] sm:$0xff] }
 0x4cf   : > { %v7760_v40 = vpop.f32.mrf.mxu0 }
 0x4d0   : > { %v7851_v49 = vadd.f32 %v7760_v40, %v18936_v13  ;;  %v17974_v57 = vadd.f32 %v17869_v27, %v7853_v42  ;;  %v13071_v37 = vpop.f32.mrf.mxu1  ;;  %v18940_v27 = vcombine.low %v17745_v3, %v17759_v17  ;;  %v18942_v13 = vld [vmem:[#allocation96_spill] sm:$0xff]  ;;  %v18944_v17 = vcombine.low %v17778_v26, %v17793_v12 }
 0x4d1   : > { %v13015_v32 = vpop.f32.mrf.mxu0 }
 0x4d2   : > { %v7854_v55 = vadd.f32 %v13015_v32, %v18937_v38  ;;  %v17978_v10 = vadd.f32 %v17886_v36, %v7851_v49  ;;  %v8293_v19 = vpop.f32.mrf.mxu1 }
 0x4d3   : > { %v7763_v25 = vpop.f32.mrf.mxu0 }
 0x4d4   : > { %v7852_v46 = vadd.f32 %v7763_v25, %v18938_v51  ;;  %v17982_v5 = vadd.f32 %v17916_v34, %v7854_v55  ;;  %13297 = vmatmul.mubr.bf16.gmra.mxu0 %v18939_v52  ;;  %v18946_v25 = vld [vmem:[#allocation82_spill] sm:$0xff] }
 0x4d5   : > { %13300 = vmatprep.mubr.bf16.mxu0 %v18940_v27  ;;  %v18948_v27 = vld [vmem:[#allocation91_spill] sm:$0xff] }
 0x4d6   : > { %v17991_v23 = vadd.f32 %v17932_v56, %v7852_v46  ;;  %v18945_v56 = vld [vmem:[#allocation98_spill] sm:$0xff] }
 0x4d8   : > { %v13074_v36 = vpop.f32.mrf.mxu1  ;;  %v13018_v15 = vpop.f32.mrf.mxu0 }
 0x4d9   : > { %v7857_v33 = vadd.f32 %v13018_v15, %v18941_v16 }
 0x4da   : > { %v8306_v42 = vpop.f32.mrf.mxu1  ;;  %v7776_v40 = vpop.f32.mrf.mxu0 }
 0x4db   : > { %v7855_v34 = vadd.f32 %v7776_v40, %v18942_v13  ;;  %v17995_v49 = vadd.f32 %v13066_v29, %v7857_v33 }
 0x4dc   : > { %13301 = vmatmul.mubr.bf16.gmra.mxu0 %v18943_v35  ;;  %v13019_v54 = vpop.f32.mrf.mxu0  ;;  %v13075_v3 = vpop.f32.mrf.mxu1 }
 0x4dd   : > { %13304 = vmatprep.mubr.bf16.mxu0 %v18944_v17  ;;  %v7858_v32 = vadd.f32 %v13019_v54, %v18945_v56  ;;  %v18004_v38 = vadd.f32 %v8274_v11, %v7855_v34  ;;  %v18949_v11 = vcombine.low %v17813_v0, %v17826_v18  ;;  %v18950_v0 = vcombine.low %v17819_v43, %v17830_v50  ;;  %v18952_v43 = vld [vmem:[#allocation88_spill] sm:$0xff] }
 0x4de   : > { %v7779_v55 = vpop.f32.mrf.mxu0  ;;  %v8309_v29 = vpop.f32.mrf.mxu1  ;;  %v18953_v50 = vcombine.low %v17849_v41, %v18952_v43 }
 0x4df   : > { %v7856_v51 = vadd.f32 %v7779_v55, %v18946_v25  ;;  %v18007_v46 = vadd.f32 %v13067_v20, %v7858_v32 }
 0x4e1   : > { %v18009_v52 = vadd.f32 %v8277_v47, %v7856_v51  ;;  %v18956_v51 = vld [vmem:[#allocation84_spill] sm:$0xff] }
 0x4e4   : > { %v13022_v4 = vpop.f32.mrf.mxu0  ;;  %13305 = vmatmul.mubr.bf16.gmra.mxu0 %v18947_v8  ;;  %v13078_v12 = vpop.f32.mrf.mxu1 }
 0x4e5   : > { %v7861_v26 = vadd.f32 %v13022_v4, %v18948_v27  ;;  %13308 = vmatprep.mubr.bf16.mxu0 %v18949_v11 }
 0x4e6   : > { %v7792_v15 = vpop.f32.mrf.mxu0  ;;  %v8322_v20 = vpop.f32.mrf.mxu1 }
 0x4e7   : > { %v7859_v16 = vadd.f32 %v7792_v15, %v17657_v53  ;;  %v18019_v33 = vadd.f32 %v13070_v21, %v7861_v26  ;;  %v18951_v21 = vcombine.low %v17843_v28, %v17856_v6  ;;  %v18954_v28 = vcombine.low %v17890_v61, %v17894_v59  ;;  %v18955_v6 = vld [vmem:[#allocation83_spill] sm:$0xff]  ;;  %v18958_v61 = vld [vmem:[#allocation85_spill] sm:$0xff] }
 0x4e8   : > { %v13023_v47 = vpop.f32.mrf.mxu0  ;;  %v13079_v13 = vpop.f32.mrf.mxu1  ;;  %v18957_v26 = vcombine.low %v17873_v2, %v17898_v14 }
 0x4e9   : > { %v7862_v40 = vadd.f32 %v13023_v47, %v17666_v45  ;;  %v18022_v34 = vadd.f32 %v8290_v60, %v7859_v16 }
 0x4ea   : > { %v7795_v22 = vpop.f32.mrf.mxu0  ;;  %v8325_v18 = vpop.f32.mrf.mxu1 }
 0x4eb   : > { %v7860_v30 = vadd.f32 %v7795_v22, %v17671_v7  ;;  %v18025_v35 = vadd.f32 %v13071_v37, %v7862_v40 }
 0x4ec   : > { %13309 = vmatmul.mubr.bf16.gmra.mxu0 %v18950_v0 }
 0x4ed   : > { %v18030_v53 = vadd.f32 %v8293_v19, %v7860_v30  ;;  %13312 = vmatprep.mubr.bf16.mxu0 %v18951_v21 }
 0x4f0   : > { %v13026_v45 = vpop.f32.mrf.mxu0  ;;  %v13146_v54 = vpop.f32.mrf.mxu1 }
 0x4f1   : > { %v7865_v60 = vadd.f32 %v13026_v45, %v17683_v9  ;;  %v18961_v45 = vld [vmem:[#allocation87_spill] sm:$0xff] }
 0x4f2   : > { %v7808_v17 = vpop.f32.mrf.mxu0  ;;  %v9126_v56 = vpop.f32.mrf.mxu1 }
 0x4f3   : > { %v7863_v7 = vadd.f32 %v7808_v17, %v17705_v39  ;;  %v18037_v37 = vadd.f32 %v13074_v36, %v7865_v60 }
 0x4f4   : > { %13313 = vmatmul.mubr.bf16.gmra.mxu0 %v18953_v50  ;;  %v13027_v19 = vpop.f32.mrf.mxu0  ;;  %v13147_v32 = vpop.f32.mrf.mxu1 }
 0x4f5   : > { %13316 = vmatprep.mubr.bf16.mxu0 %v18954_v28  ;;  %v7866_v55 = vadd.f32 %v13027_v19, %v18955_v6  ;;  %v18046_v25 = vadd.f32 %v8306_v42, %v7863_v7  ;;  %v18959_v42 = vld [vmem:[#allocation86_spill] sm:$0xff] }
 0x4f6   : > { %v7811_v9 = vpop.f32.mrf.mxu0  ;;  %v9129_v39 = vpop.f32.mrf.mxu1 }
 0x4f7   : > { %v7864_v4 = vadd.f32 %v7811_v9, %v18956_v51  ;;  %v18049_v36 = vadd.f32 %v13075_v3, %v7866_v55  ;;  %v18960_v3 = vld [vmem:[#allocation94_spill] sm:$0xff] }
 0x4f9   : > { %v18051_v8 = vadd.f32 %v8309_v29, %v7864_v4 }
 0x4fb   : > { %v13150_v41 = vpop.f32.mrf.mxu1 }
 0x4fc   : > { %v13030_v27 = vpop.f32.mrf.mxu0  ;;  %13317 = vmatmul.mubr.bf16.gmra.mxu0 %v18957_v26  ;;  %v18962_v26 = vld [vmem:[#allocation89_spill] sm:$0xff] }
 0x4fd   : > { %v7869_v59 = vadd.f32 %v13030_v27, %v18958_v61  ;;  %v9142_v11 = vpop.f32.mrf.mxu1 }
 0x4fe   : > { %v7824_v15 = vpop.f32.mrf.mxu0 }
 0x4ff   : > { %v7867_v16 = vadd.f32 %v7824_v15, %v18959_v42  ;;  %v13151_v47 = vpop.f32.mrf.mxu1  ;;  %v18058_v40 = vadd.f32 %v13078_v12, %v7869_v59  ;;  %v18963_v15 = vld [vmem:[#allocation90_spill] sm:$0xff] }
 0x500   : > { %v13031_v22 = vpop.f32.mrf.mxu0 }
 0x501   : > { %v7870_v30 = vadd.f32 %v13031_v22, %v18960_v3  ;;  %v9145_v29 = vpop.f32.mrf.mxu1  ;;  %v18061_v0 = vadd.f32 %v8322_v20, %v7867_v16  ;;  %v18964_v22 = vld [vmem:[#allocation99_spill] sm:$0xff] }
 0x502   : > { %v7827_v21 = vpop.f32.mrf.mxu0 }
 0x503   : > { %v7868_v60 = vadd.f32 %v7827_v21, %v18961_v45  ;;  %v13154_v2 = vpop.f32.mrf.mxu1  ;;  %v18064_v14 = vadd.f32 %v13079_v13, %v7870_v30  ;;  %v18965_v21 = vld [vmem:[#allocation92_spill] sm:$0xff] }
 0x504   : > { %v13098_v17 = vpop.f32.mrf.mxu0 }
 0x505   : > { %v8725_v7 = vadd.f32 %v13098_v17, %v17878_v62  ;;  %v9158_v43 = vpop.f32.mrf.mxu1  ;;  %v18067_v50 = vadd.f32 %v8325_v18, %v7868_v60 }
 0x506   : > { %v8596_v12 = vpop.f32.mrf.mxu0 }
 0x507   : > { %v8723_v19 = vadd.f32 %v8596_v12, %v17881_v24  ;;  %v13155_v28 = vpop.f32.mrf.mxu1  ;;  %v18070_v6 = vadd.f32 %v13146_v54, %v8725_v7 }
 0x508   : > { %v13099_v20 = vpop.f32.mrf.mxu0 }
 0x509   : > { %v8726_v55 = vadd.f32 %v13099_v20, %v17884_v44  ;;  %v9161_v9 = vpop.f32.mrf.mxu1  ;;  %v18073_v51 = vadd.f32 %v9126_v56, %v8723_v19 }
 0x50a   : > { %v8599_v13 = vpop.f32.mrf.mxu0 }
 0x50b   : > { %v8724_v4 = vadd.f32 %v8599_v13, %v17901_v58  ;;  %v13158_v27 = vpop.f32.mrf.mxu1  ;;  %v18076_v62 = vadd.f32 %v13147_v32, %v8726_v55 }
 0x50c   : > { %v13102_v18 = vpop.f32.mrf.mxu0 }
 0x50d   : > { %v8729_v61 = vadd.f32 %v13102_v18, %v18962_v26  ;;  %v9174_v59 = vpop.f32.mrf.mxu1  ;;  %v18079_v24 = vadd.f32 %v9129_v39, %v8724_v4 }
 0x50e   : > { %v8612_v54 = vpop.f32.mrf.mxu0 }
 0x50f   : > { %v8727_v42 = vadd.f32 %v8612_v54, %v18963_v15  ;;  %v13159_v16 = vpop.f32.mrf.mxu1  ;;  %v18082_v44 = vadd.f32 %v13150_v41, %v8729_v61 }
 0x510   : > { %v13103_v56 = vpop.f32.mrf.mxu0 }
 0x511   : > { %v8730_v3 = vadd.f32 %v13103_v56, %v18964_v22  ;;  %v9177_v30 = vpop.f32.mrf.mxu1  ;;  %v18085_v58 = vadd.f32 %v9142_v11, %v8727_v42 }
 0x512   : > { %v8615_v32 = vpop.f32.mrf.mxu0 }
 0x513   : > { %v8728_v45 = vadd.f32 %v8615_v32, %v18965_v21  ;;  %v13162_v60 = vpop.f32.mrf.mxu1  ;;  %v18088_v17 = vadd.f32 %v13151_v47, %v8730_v3 }
 0x514   : > { %v13106_v39 = vpop.f32.mrf.mxu0 }
 0x515   : > { %v8733_v7 = vadd.f32 %v13106_v39, %v17950_v1  ;;  %v18091_v12 = vpop.f32.mrf.mxu1  ;;  %v18093_v19 = vadd.f32 %v9145_v29, %v8728_v45 }
 0x516   : > { %v8628_v41 = vpop.f32.mrf.mxu0 }
 0x517   : > { %v8731_v20 = vadd.f32 %v8628_v41, %v17954_v48  ;;  %v13163_v55 = vpop.f32.mrf.mxu1  ;;  %v18096_v13 = vadd.f32 %v13154_v2, %v8733_v7 }
 0x518   : > { %v13107_v11 = vpop.f32.mrf.mxu0 }
 0x519   : > { %v8734_v4 = vadd.f32 %v13107_v11, %v17958_v63  ;;  %v18099_v18 = vpop.f32.mrf.mxu1  ;;  %v18101_v47 = vadd.f32 %v9158_v43, %v8731_v20 }
 0x51a   : > { %v8631_v26 = vpop.f32.mrf.mxu0 }
 0x51b   : > { %v8732_v1 = vadd.f32 %v8631_v26, %v17965_v31  ;;  %v13166_v61 = vpop.f32.mrf.mxu1  ;;  %v18104_v54 = vadd.f32 %v13155_v28, %v8734_v4 }
 0x51c   : > { %v13110_v29 = vpop.f32.mrf.mxu0 }
 0x51d   : > { %v8737_v15 = vadd.f32 %v13110_v29, %v17974_v57  ;;  %v9206_v48 = vpop.f32.mrf.mxu1  ;;  %v18107_v42 = vadd.f32 %v9161_v9, %v8732_v1 }
 0x51e   : > { %v8644_v2 = vpop.f32.mrf.mxu0 }
 0x51f   : > { %v8735_v56 = vadd.f32 %v8644_v2, %v17978_v10  ;;  %v13167_v63 = vpop.f32.mrf.mxu1  ;;  %v18110_v22 = vadd.f32 %v13158_v27, %v8737_v15 }
 0x520   : > { %v13111_v43 = vpop.f32.mrf.mxu0 }
 0x521   : > { %v8738_v3 = vadd.f32 %v13111_v43, %v17982_v5  ;;  %v9209_v32 = vpop.f32.mrf.mxu1  ;;  %v18113_v31 = vadd.f32 %v9174_v59, %v8735_v56 }
 0x522   : > { %v8647_v28 = vpop.f32.mrf.mxu0 }
 0x523   : > { %v8736_v21 = vadd.f32 %v8647_v28, %v17991_v23  ;;  %v13170_v45 = vpop.f32.mrf.mxu1  ;;  %v18116_v57 = vadd.f32 %v13159_v16, %v8738_v3 }
 0x524   : > { %v13114_v9 = vpop.f32.mrf.mxu0 }
 0x525   : > { %v8741_v39 = vadd.f32 %v13114_v9, %v17995_v49  ;;  %v9222_v7 = vpop.f32.mrf.mxu1  ;;  %v18119_v10 = vadd.f32 %v9177_v30, %v8736_v21 }
 0x526   : > { %v8660_v27 = vpop.f32.mrf.mxu0 }
 0x527   : > { %v18122_v41 = vadd.f32 %v8660_v27, %v18004_v38  ;;  %v13171_v5 = vpop.f32.mrf.mxu1  ;;  %v18124_v20 = vadd.f32 %v13162_v60, %v8741_v39 }
 0x528   : > { %v13115_v59 = vpop.f32.mrf.mxu0 }
 0x529   : > { %v8742_v11 = vadd.f32 %v13115_v59, %v18007_v46  ;;  %v9225_v23 = vpop.f32.mrf.mxu1 }
 0x52a   : > { %v8663_v4 = vpop.f32.mrf.mxu0 }
 0x52b   : > { %v18128_v16 = vadd.f32 %v8663_v4, %v18009_v52  ;;  %v13174_v26 = vpop.f32.mrf.mxu1  ;;  %v18130_v49 = vadd.f32 %v13163_v55, %v8742_v11 }
 0x52c   : > { %v13118_v30 = vpop.f32.mrf.mxu0 }
 0x52d   : > { %v8745_v1 = vadd.f32 %v13118_v30, %v18019_v33  ;;  %v9238_v29 = vpop.f32.mrf.mxu1 }
 0x52e   : > { %v8676_v38 = vpop.f32.mrf.mxu0 }
 0x52f   : > { %v8743_v15 = vadd.f32 %v8676_v38, %v18022_v34  ;;  %v13175_v60 = vpop.f32.mrf.mxu1  ;;  %v18134_v2 = vadd.f32 %v13166_v61, %v8745_v1 }
 0x530   : > { %v13119_v56 = vpop.f32.mrf.mxu0 }
 0x531   : > { %v8746_v46 = vadd.f32 %v13119_v56, %v18025_v35  ;;  %v9241_v43 = vpop.f32.mrf.mxu1  ;;  %v18137_v3 = vadd.f32 %v9206_v48, %v8743_v15 }
 0x532   : > { %v8679_v52 = vpop.f32.mrf.mxu0 }
 0x533   : > { %v8744_v55 = vadd.f32 %v8679_v52, %v18030_v53  ;;  %v18140_v28 = vpop.f32.mrf.mxu1  ;;  %v18142_v21 = vadd.f32 %v13167_v63, %v8746_v46 }
 0x534   : > { %v13122_v33 = vpop.f32.mrf.mxu0 }
 0x535   : > { %v8749_v9 = vadd.f32 %v13122_v33, %v18037_v37  ;;  %v18145_v34 = vpop.f32.mrf.mxu1  ;;  %v18147_v61 = vadd.f32 %v9209_v32, %v8744_v55 }
 0x536   : > { %v8692_v39 = vpop.f32.mrf.mxu0 }
 0x537   : > { %v8747_v35 = vadd.f32 %v8692_v39, %v18046_v25  ;;  %v18150_v27 = vpop.f32.mrf.mxu1  ;;  %v18152_v48 = vadd.f32 %v13170_v45, %v8749_v9 }
 0x538   : > { %v13123_v59 = vpop.f32.mrf.mxu0 }
 0x539   : > { %v8750_v53 = vadd.f32 %v13123_v59, %v18049_v36  ;;  %v18155_v11 = vpop.f32.mrf.mxu1  ;;  %v18157_v63 = vadd.f32 %v9222_v7, %v8747_v35 }
 0x53a   : > { %v8695_v4 = vpop.f32.mrf.mxu0 }
 0x53b   : > { %v8748_v37 = vadd.f32 %v8695_v4, %v18051_v8  ;;  %v18160_v30 = vpop.f32.mrf.mxu1  ;;  %v18162_v32 = vadd.f32 %v13171_v5, %v8750_v53 }
 0x53c   : > { %v13126_v1 = vpop.f32.mrf.mxu0 }
 0x53d   : > { %v8753_v25 = vadd.f32 %v13126_v1, %v18058_v40  ;;  %v18165_v38 = vadd.f32 %v9225_v23, %v8748_v37  ;;  %v18167_v15 = vpop.f32.mrf.mxu1 }
 0x53e   : > { %v8708_v45 = vpop.f32.mrf.mxu0 }
 0x53f   : > { %v8751_v36 = vadd.f32 %v8708_v45, %v18061_v0  ;;  %v18170_v56 = vadd.f32 %v13174_v26, %v8753_v25  ;;  %v18175_v52 = vpop.f32.mrf.mxu1 }
 0x540   : > { %v13127_v7 = vpop.f32.mrf.mxu0 }
 0x541   : > { %v8754_v46 = vadd.f32 %v13127_v7, %v18064_v14  ;;  %v18173_v8 = vadd.f32 %v9238_v29, %v8751_v36  ;;  %v18185_v0 = vpop.f32.mrf.mxu1 }
 0x542   : > { %v8711_v5 = vpop.f32.mrf.mxu0 }
 0x543   : > { %v8752_v55 = vadd.f32 %v8711_v5, %v18067_v50  ;;  %v18178_v40 = vadd.f32 %v13175_v60, %v8754_v46  ;;  %v18193_v35 = vpop.f32.mrf.mxu1 }
 0x544   : > { %v13194_v23 = vpop.f32.mrf.mxu0 }
 0x545   : > { %v18181_v33 = vadd.f32 %v13194_v23, %v18070_v6  ;;  %v18183_v9 = vadd.f32 %v9241_v43, %v8752_v55  ;;  %v18201_v59 = vpop.f32.mrf.mxu1 }
 0x546   : > { %v9512_v26 = vpop.f32.mrf.mxu0 }
 0x547   : > { %v18188_v14 = vadd.f32 %v9512_v26, %v18073_v51  ;;  %v18209_v37 = vpop.f32.mrf.mxu1 }
 0x548   : > { %v13195_v29 = vpop.f32.mrf.mxu0 }
 0x549   : > { %v18191_v39 = vadd.f32 %v13195_v29, %v18076_v62  ;;  %v18217_v45 = vpop.f32.mrf.mxu1 }
 0x54a   : > { %v9515_v50 = vpop.f32.mrf.mxu0 }
 0x54b   : > { %v18196_v60 = vadd.f32 %v9515_v50, %v18079_v24  ;;  %v13254_v46 = vpop.f32.mrf.mxu1 }
 0x54c   : > { %v13198_v6 = vpop.f32.mrf.mxu0 }
 0x54d   : > { %v18199_v43 = vadd.f32 %v13198_v6, %v18082_v44 }
 0x54e   : > { %v9528_v53 = vpop.f32.mrf.mxu0 }
 0x54f   : > { %v18204_v51 = vadd.f32 %v9528_v53, %v18085_v58 }
 0x550   : > { %v13199_v4 = vpop.f32.mrf.mxu0 }
 0x551   : > { %v18207_v62 = vadd.f32 %v13199_v4, %v18088_v17 }
 0x552   : > { %v9531_v1 = vpop.f32.mrf.mxu0 }
 0x553   : > { %v18212_v24 = vadd.f32 %v9531_v1, %v18093_v19 }
 0x554   : > { %v13202_v25 = vpop.f32.mrf.mxu0 }
 0x555   : > { %v18215_v44 = vadd.f32 %v13202_v25, %v18096_v13  ;;  %v18229_v13 = vpop.f32.mrf.mxu1 }
 0x556   : > { %v9544_v36 = vpop.f32.mrf.mxu0 }
 0x557   : > { %v18220_v58 = vadd.f32 %v9544_v36, %v18101_v47  ;;  %v13255_v6 = vpop.f32.mrf.mxu1 }
 0x558   : > { %v13203_v7 = vpop.f32.mrf.mxu0 }
 0x559   : > { %v18223_v17 = vadd.f32 %v13203_v7, %v18104_v54 }
 0x55a   : > { %v9547_v5 = vpop.f32.mrf.mxu0 }
 0x55b   : > { %v18226_v55 = vadd.f32 %v9547_v5, %v18107_v42 }
 0x55c   : > { %v13206_v19 = vpop.f32.mrf.mxu0 }
 0x55d   : > { %v9653_v23 = vadd.f32 %v13206_v19, %v18110_v22 }
 0x55e   : > { %v9560_v26 = vpop.f32.mrf.mxu0 }
 0x55f   : > { %v18232_v29 = vadd.f32 %v9560_v26, %v18113_v31  ;;  %v18234_v47 = vadd.f32 %v13254_v46, %v9653_v23  ;;  %v18247_v31 = vpop.f32.mrf.mxu1 }
 0x560   : > { %v13207_v50 = vpop.f32.mrf.mxu0 }
 0x561   : > { %v9654_v54 = vadd.f32 %v13207_v50, %v18116_v57  ;;  %v18254_v46 = vpop.f32.mrf.mxu1 }
 0x562   : > { %v9563_v53 = vpop.f32.mrf.mxu0 }
 0x563   : > { %v18238_v4 = vadd.f32 %v9563_v53, %v18119_v10  ;;  %v18240_v42 = vadd.f32 %v13255_v6, %v9654_v54  ;;  %v18259_v23 = vpop.f32.mrf.mxu1 }
 0x564   : > { %v13210_v1 = vpop.f32.mrf.mxu0 }
 0x565   : > { %v18243_v22 = vadd.f32 %v13210_v1, %v18124_v20  ;;  %v18267_v54 = vpop.f32.mrf.mxu1 }
 0x566   : > { %v18245_v25 = vpop.f32.mrf.mxu0 }
 0x568   : > { %v13211_v36 = vpop.f32.mrf.mxu0 }
 0x569   : > { %v18250_v7 = vadd.f32 %v13211_v36, %v18130_v49  ;;  %v18275_v36 = vpop.f32.mrf.mxu1 }
 0x56a   : > { %v18252_v57 = vpop.f32.mrf.mxu0 }
 0x56c   : > { %v13214_v10 = vpop.f32.mrf.mxu0 }
 0x56d   : > { %v18257_v5 = vadd.f32 %v13214_v10, %v18134_v2 }
 0x56e   : > { %v9592_v19 = vpop.f32.mrf.mxu0 }
 0x56f   : > { %v18262_v20 = vadd.f32 %v9592_v19, %v18137_v3 }
 0x570   : > { %v13215_v26 = vpop.f32.mrf.mxu0 }
 0x571   : > { %18966 = vst [vmem:[#allocation101_spill] sm:$0xff] %v18262_v20  ;;  %v18265_v50 = vadd.f32 %v13215_v26, %v18142_v21  ;;  %v18283_v26 = vpop.f32.mrf.mxu1  ;;  %v9269_v20 = vadd.f32 %v18091_v12, %v18122_v41  ;;  %v10397_v12 = vadd.f32 %v18167_v15, %v18204_v51  ;;  %v18358_v51 = vadd.f32 %v18217_v45, %v18226_v55 }
 0x572   : > { %v9595_v49 = vpop.f32.mrf.mxu0  ;;  %18972 = vst [vmem:[#allocation100_spill] sm:$0xff] %v18283_v26  ;;  %v9270_v26 = vadd.f32 %v18099_v18, %v18128_v16 }
 0x573   : > { %18967 = vst [vmem:[#allocation93_spill] sm:$0xff] %v18265_v50  ;;  %v18270_v6 = vadd.f32 %v9595_v49, %v18147_v61  ;;  %v9655_v18 = vadd.f32 %v18245_v25, %v9269_v20 }
 0x574   : > { %v13218_v53 = vpop.f32.mrf.mxu0 }
 0x575   : > { %18968 = vst [vmem:[#allocation95_spill] sm:$0xff] %v18270_v6  ;;  %v18273_v2 = vadd.f32 %v13218_v53, %v18152_v48  ;;  %v10409_v45 = vadd.f32 %v18259_v23, %v9655_v18 }
 0x576   : > { %v9608_v1 = vpop.f32.mrf.mxu0 }
 0x577   : > { %18969 = vst [vmem:[#allocation97_spill] sm:$0xff] %v18273_v2  ;;  %v18278_v3 = vadd.f32 %v9608_v1, %v18157_v63  ;;  %v18291_v2 = vpop.f32.mrf.mxu1 }
 0x578   : > { %v13219_v10 = vpop.f32.mrf.mxu0  ;;  %18975 = vst [vmem:[#allocation104_spill] sm:$0xff] %v18291_v2 }
 0x579   : > { %18970 = vst [vmem:[#allocation112_spill] sm:$0xff] %v18278_v3  ;;  %v18281_v21 = vadd.f32 %v13219_v10, %v18162_v32 }
 0x57a   : > { %v9611_v19 = vpop.f32.mrf.mxu0 }
 0x57b   : > { %18971 = vst [vmem:[#allocation103_spill] sm:$0xff] %v18281_v21  ;;  %v18286_v61 = vadd.f32 %v9611_v19, %v18165_v38  ;;  %v13263_v21 = vpop.f32.mrf.mxu1 }
 0x57c   : > { %v13222_v49 = vpop.f32.mrf.mxu0  ;;  %v18988_v20 = vld [vmem:[#allocation95_spill] sm:$0xff] }
 0x57d   : > { %18973 = vst [vmem:[#allocation105_spill] sm:$0xff] %v18286_v61  ;;  %v18289_v48 = vadd.f32 %v13222_v49, %v18170_v56  ;;  %v10349_v61 = vpop.f32.mrf.mxu1 }
 0x57e   : > { %v9624_v53 = vpop.f32.mrf.mxu0 }
 0x57f   : > { %18974 = vst [vmem:[#allocation102_spill] sm:$0xff] %v18289_v48  ;;  %v18294_v63 = vadd.f32 %v9624_v53, %v18173_v8  ;;  %v13266_v48 = vpop.f32.mrf.mxu1 }
 0x580   : > { %v13223_v1 = vpop.f32.mrf.mxu0 }
 0x581   : > { %18976 = vst [vmem:[#allocation107_spill] sm:$0xff] %v18294_v63  ;;  %v18297_v32 = vadd.f32 %v13223_v1, %v18178_v40  ;;  %v10362_v2 = vpop.f32.mrf.mxu1 }
 0x582   : > { %v9627_v10 = vpop.f32.mrf.mxu0 }
 0x583   : > { %18977 = vst [vmem:[#allocation106_spill] sm:$0xff] %v18297_v32  ;;  %v18300_v3 = vadd.f32 %v9627_v10, %v18183_v9  ;;  %v13267_v40 = vpop.f32.mrf.mxu1 }
 0x584   : > { %v13290_v38 = vpop.f32.mrf.mxu0 }
 0x585   : > { %18978 = vst [vmem:[#allocation108_spill] sm:$0xff] %v18300_v3  ;;  %v10365_v9 = vpop.f32.mrf.mxu1 }
 0x586   : > { %v10764_v19 = vpop.f32.mrf.mxu0 }
 0x587   : > { %v13270_v3 = vpop.f32.mrf.mxu1 }
 0x588   : > { %v13291_v56 = vpop.f32.mrf.mxu0 }
 0x589   : > { %v10378_v16 = vpop.f32.mrf.mxu1 }
 0x58a   : > { %v10767_v49 = vpop.f32.mrf.mxu0 }
 0x58c   : > { %v13294_v6 = vpop.f32.mrf.mxu0 }
 0x58e   : > { %v10780_v50 = vpop.f32.mrf.mxu0 }
 0x590   : > { %v18302_v8 = vpop.f32.mrf.mxu0 }
 0x592   : > { %v18304_v53 = vpop.f32.mrf.mxu0 }
 0x593   : > { %18979 = vst [vmem:[#allocation109_spill] sm:$0xff] %v18304_v53  ;;  %v10395_v53 = vadd.f32 %v18140_v28, %v18181_v33 }
 0x594   : > { %v18306_v1 = vpop.f32.mrf.mxu0 }
 0x595   : > { %18980 = vst [vmem:[#allocation111_spill] sm:$0xff] %v18306_v1  ;;  %v10393_v1 = vadd.f32 %v18145_v34, %v18188_v14  ;;  %v10893_v28 = vadd.f32 %v13290_v38, %v10395_v53  ;;  %v10400_v34 = vadd.f32 %v18175_v52, %v18207_v62  ;;  %v10398_v14 = vadd.f32 %v18185_v0, %v18212_v24 }
 0x596   : > { %v18308_v32 = vpop.f32.mrf.mxu0  ;;  %v10403_v52 = vadd.f32 %v18193_v35, %v18215_v44  ;;  %v18362_v0 = vadd.f32 %v18229_v13, %v18232_v29  ;;  %v18366_v35 = vadd.f32 %v18247_v31, %v18238_v4  ;;  %v13271_v44 = vpop.f32.mrf.mxu1  ;;  %v18985_v31 = vld [vmem:[#allocation101_spill] sm:$0xff] }
 0x597   : > { %18981 = vst [vmem:[#allocation113_spill] sm:$0xff] %v18308_v32  ;;  %v10396_v32 = vadd.f32 %v18150_v27, %v18191_v39  ;;  %v9656_v27 = vadd.f32 %v18252_v57, %v9270_v26  ;;  %v10895_v26 = vadd.f32 %v10780_v50, %v10397_v12  ;;  %v18995_v12 = vld [vmem:[#allocation21_spill] sm:$0xff] }
 0x598   : > { %v18310_v10 = vpop.f32.mrf.mxu0 }
 0x599   : > { %18982 = vst [vmem:[#allocation114_spill] sm:$0xff] %v18310_v10  ;;  %v10394_v10 = vadd.f32 %v18155_v11, %v18196_v60  ;;  %v18340_v11 = vld [vmem:[%s18547_s6] ss:$0 sm:$0xff]  ;;  %v10894_v15 = vadd.f32 %v13291_v56, %v10396_v32  ;;  %v18350_v60 = vadd.f32 %v18201_v59, %v18220_v58  ;;  %v10411_v59 = vadd.f32 %v18254_v46, %v18243_v22  ;;  %v18987_v46 = vld [vmem:[#allocation93_spill] sm:$0xff]  ;;  %v18991_v56 = vld [vmem:[#allocation103_spill] sm:$0xff] }
 0x59a   : > { %v18312_v63 = vpop.f32.mrf.mxu0  ;;  %v10410_v4 = vadd.f32 %v18275_v36, %v9656_v27  ;;  %v18984_v22 = vld [vmem:[#allocation100_spill] sm:$0xff]  ;;  %v18387_v23 = vadd.f32 %v13263_v21, %v18987_v46  ;;  %v18992_v21 = vld [vmem:[#allocation19_spill] sm:$0xff]  ;;  %v19002_v46 = vld [vmem:[#allocation109_spill] sm:$0xff] }
 0x59b   : > { %18983 = vst [vmem:[#allocation26_spill] sm:$0xff] %v18312_v63  ;;  %v10399_v63 = vadd.f32 %v18160_v30, %v18199_v43  ;;  %v10891_v30 = vadd.f32 %v10764_v19, %v10393_v1  ;;  %v18354_v43 = vadd.f32 %v18209_v37, %v18223_v17  ;;  %v10892_v62 = vadd.f32 %v10767_v49, %v10394_v10  ;;  %v18990_v36 = vld [vmem:[#allocation112_spill] sm:$0xff]  ;;  %v18993_v1 = vld [vmem:[#allocation105_spill] sm:$0xff]  ;;  %v18994_v10 = vld [vmem:[#allocation102_spill] sm:$0xff] }
 0x59c   : > { %v13302_v41 = vpop.f32.mrf.mxu0  ;;  %v10932_v37 = vadd.f32 %v18340_v11, %v10893_v28  ;;  %v10412_v17 = vadd.f32 %v18267_v54, %v18250_v7  ;;  %v10933_v13 = vadd.f32 %v18340_v11, %v10894_v15  ;;  %v10415_v25 = vadd.f32 %v18984_v22, %v18257_v5  ;;  %v10381_v5 = vpop.f32.mrf.mxu1  ;;  %v18997_v27 = vld [vmem:[#allocation107_spill] sm:$0xff] }
 0x59d   : > { %v18334_v33 = vadd.f32 %v13302_v41, %v18234_v47  ;;  %v10930_v55 = vadd.f32 %v18340_v11, %v10891_v30  ;;  %v10897_v29 = vadd.f32 %v13294_v6, %v10399_v63  ;;  %v18390_v7 = vadd.f32 %v10349_v61, %v18988_v20  ;;  %v18989_v63 = vld [vmem:[#allocation97_spill] sm:$0xff] }
 0x59e   : > { %v18344_v39 = vpop.f32.mrf.mxu0  ;;  %v10931_v54 = vadd.f32 %v18340_v11, %v10892_v62  ;;  %v18394_v32 = vadd.f32 %v13266_v48, %v18989_v63  ;;  %v18397_v38 = vadd.f32 %v10362_v2, %v18990_v36  ;;  %v18400_v49 = vadd.f32 %v13267_v40, %v18991_v56  ;;  %v18996_v2 = vld [vmem:[#allocation24_spill] sm:$0xff]  ;;  %v18998_v40 = vld [vmem:[#allocation106_spill] sm:$0xff] }
 0x59f   : > { %v10996_v53 = vadd.f32 %v10932_v37, %v18992_v21  ;;  %v18404_v61 = vadd.f32 %v10365_v9, %v18993_v1  ;;  %v18407_v41 = vadd.f32 %v13270_v3, %v18994_v10  ;;  %v10936_v50 = vadd.f32 %v18340_v11, %v10897_v29  ;;  %v19003_v36 = vld [vmem:[#allocation28_spill] sm:$0xff]  ;;  %v19005_v21 = vld [vmem:[#allocation111_spill] sm:$0xff] }
 0x5a0   : > { %v13303_v24 = vpop.f32.mrf.mxu0  ;;  %v10994_v18 = vadd.f32 %v10930_v55, %v18995_v12  ;;  %v10997_v28 = vadd.f32 %v10933_v13, %v18996_v2  ;;  %v18413_v30 = vadd.f32 %v10378_v16, %v18997_v27  ;;  %v18416_v15 = vadd.f32 %v13271_v44, %v18998_v40  ;;  %v19000_v55 = vld [vmem:[#allocation27_spill] sm:$0xff]  ;;  %v19008_v40 = vld [vmem:[#allocation25_spill] sm:$0xff] }
 0x5a1   : > { %v18372_v58 = vadd.f32 %v13303_v24, %v18240_v42  ;;  %v18986_v42 = vld [vmem:[#allocation104_spill] sm:$0xff]  ;;  %v10934_v3 = vadd.f32 %v18340_v11, %v10895_v26  ;;  %v10898_v37 = vadd.f32 %v18302_v8, %v10400_v34  ;;  %v10995_v22 = vadd.f32 %v10931_v54, %v19000_v55  ;;  %v19004_v8 = vld [vmem:[#allocation22_spill] sm:$0xff] }
 0x5a2   : > { %v18379_v47 = vpop.f32.mrf.mxu0  ;;  %v10413_v57 = vadd.f32 %v18986_v42, %v18985_v31  ;;  %v18999_v24 = vld [vmem:[#allocation108_spill] sm:$0xff]  ;;  %v11028_v44 = vmax.f32 %v10996_v53, 0.0  ;;  %v10896_v20 = vadd.f32 %v19002_v46, %v10398_v14  ;;  %v11029_v63 = vmax.f32 %v10997_v28, 0.0  ;;  %v19006_v53 = vld [vmem:[#allocation29_spill] sm:$0xff] }
 0x5a3   : > { %v19001_v31 = vld [vmem:[#allocation20_spill] sm:$0xff]  ;;  %v10937_v54 = vadd.f32 %v18340_v11, %v10898_v37  ;;  %v11027_v10 = vmax.f32 %v10995_v22, 0.0  ;;  %v19011_v46 = vld [vmem:[#allocation41_spill] sm:$0xff] }
 0x5a4   : > { %v13306_v6 = vpop.f32.mrf.mxu0 }
 0x5a5   : > { %v10909_v19 = vadd.f32 %v13306_v6, %v10411_v59  ;;  %v18420_v59 = vadd.f32 %v10381_v5, %v18999_v24  ;;  %v11000_v5 = vadd.f32 %v10936_v50, %v19003_v36  ;;  %v10935_v50 = vadd.f32 %v18340_v11, %v10896_v20  ;;  %v19013_v36 = vld [vmem:[#allocation26_spill] sm:$0xff] }
 0x5a6   : > { %v10828_v48 = vpop.f32.mrf.mxu0 }
 0x5a7   : > { %v10948_v62 = vadd.f32 %v18340_v11, %v10909_v19  ;;  %v10907_v9 = vadd.f32 %v10828_v48, %v10409_v45  ;;  %v11026_v45 = vmax.f32 %v10994_v18, 0.0  ;;  %v10998_v48 = vadd.f32 %v10934_v3, %v19006_v53 }
 0x5a8   : > { %v13307_v29 = vpop.f32.mrf.mxu0 }
 0x5a9   : > { %v10946_v13 = vadd.f32 %v18340_v11, %v10907_v9  ;;  %v10910_v16 = vadd.f32 %v13307_v29, %v10412_v17  ;;  %v11012_v42 = vadd.f32 %v10948_v62, %v19001_v31  ;;  %v10901_v17 = vadd.f32 %v19005_v21, %v10403_v52  ;;  %v19009_v29 = vld [vmem:[#allocation39_spill] sm:$0xff] }
 0x5aa   : > { %v10831_v6 = vpop.f32.mrf.mxu0  ;;  %v11032_v9 = vmax.f32 %v11000_v5, 0.0  ;;  %v10900_v5 = vadd.f32 %v19013_v36, %v18358_v51  ;;  %v19023_v36 = vld [vmem:[#allocation47_spill] sm:$0xff] }
 0x5ab   : > { %v10949_v26 = vadd.f32 %v18340_v11, %v10910_v16  ;;  %v10908_v19 = vadd.f32 %v10831_v6, %v10410_v4  ;;  %v11010_v34 = vadd.f32 %v10946_v13, %v19004_v8  ;;  %v11044_v56 = vmax.f32 %v11012_v42, 0.0  ;;  %v19007_v4 = vld [vmem:[#allocation113_spill] sm:$0xff]  ;;  %v19010_v16 = vld [vmem:[#allocation31_spill] sm:$0xff]  ;;  %v19012_v6 = vld [vmem:[#allocation114_spill] sm:$0xff] }
 0x5ac   : > { %v13310_v1 = vpop.f32.mrf.mxu0  ;;  %v10899_v28 = vadd.f32 %v19007_v4, %v18350_v60  ;;  %v10940_v55 = vadd.f32 %v18340_v11, %v10901_v17  ;;  %v11030_v13 = vmax.f32 %v10998_v48, 0.0  ;;  %v11001_v31 = vadd.f32 %v10937_v54, %v19010_v16  ;;  %v19015_v17 = vld [vmem:[#allocation32_spill] sm:$0xff] }
 0x5ad   : > { %v10947_v14 = vadd.f32 %v18340_v11, %v10908_v19  ;;  %v10913_v12 = vadd.f32 %v13310_v1, %v10415_v25  ;;  %v11042_v18 = vmax.f32 %v11010_v34, 0.0  ;;  %v13420_v2 = vpack.i.bf16 %v11044_v56, %v11028_v44 }
 0x5ae   : > { %v10844_v27 = vpop.f32.mrf.mxu0  ;;  %v11013_v62 = vadd.f32 %v10949_v26, %v19008_v40  ;;  %v10999_v1 = vadd.f32 %v10935_v50, %v19015_v17  ;;  %v11033_v48 = vmax.f32 %v11001_v31, 0.0  ;;  %v19018_v50 = vld [vmem:[#allocation34_spill] sm:$0xff]  ;;  %v10945_v17 = vadd.f32 %v18340_v11, %v18372_v58 }
 0x5af   : > { %v10952_v52 = vadd.f32 %v18340_v11, %v10913_v12  ;;  %v10911_v24 = vadd.f32 %v10844_v27, %v10413_v57  ;;  %v13416_v37 = vpack.i.bf16 %v11042_v18, %v11026_v45  ;;  %v11011_v3 = vadd.f32 %v10947_v14, %v19009_v29  ;;  %v19016_v14 = vld [vmem:[#allocation33_spill] sm:$0xff]  ;;  %v19017_v18 = vld [vmem:[#allocation44_spill] sm:$0xff] }
 0x5b0   : > { %v13311_v25 = vpop.f32.mrf.mxu0  ;;  %v11045_v22 = vmax.f32 %v11013_v62, 0.0  ;;  %v10938_v57 = vadd.f32 %v18340_v11, %v10899_v28  ;;  %v10902_v45 = vadd.f32 %v19012_v6, %v18354_v43  ;;  %v11004_v12 = vadd.f32 %v10940_v55, %v19016_v14 }
 0x5b1   : > { %v10950_v42 = vadd.f32 %v18340_v11, %v10911_v24  ;;  %v10914_v60 = vadd.f32 %v13311_v25, %v18387_v23  ;;  %13417 = vxpose.xlu0.b32.start [1/16] (narrow) %v13416_v37, 8  ;;  %v11043_v44 = vmax.f32 %v11011_v3, 0.0  ;;  %v11016_v20 = vadd.f32 %v10952_v52, %v19011_v46  ;;  %v19014_v23 = vld [vmem:[#allocation43_spill] sm:$0xff]  ;;  %v19019_v37 = vld [vmem:[#allocation45_spill] sm:$0xff]  ;;  %v19021_v46 = vld [vmem:[#allocation36_spill] sm:$0xff] }
 0x5b2   : > { %v10847_v26 = vpop.f32.mrf.mxu0  ;;  %v13422_v19 = vpack.i.bf16 %v11045_v22, %v11029_v63  ;;  %v11002_v40 = vadd.f32 %v10938_v57, %v19018_v50  ;;  %v10903_v29 = vadd.f32 %v18344_v39, %v18362_v0  ;;  %v11031_v55 = vmax.f32 %v10999_v1, 0.0  ;;  %v19022_v57 = vld [vmem:[#allocation35_spill] sm:$0xff]  ;;  %v19028_v50 = vld [vmem:[#allocation50_spill] sm:$0xff] }
 0x5b3   : > { %v10953_v8 = vadd.f32 %v18340_v11, %v10914_v60  ;;  %v10912_v34 = vadd.f32 %v10847_v26, %v18390_v7  ;;  %v13418_v56 = vpack.i.bf16 %v11043_v44, %v11027_v10  ;;  %v11014_v54 = vadd.f32 %v10950_v42, %v19014_v23  ;;  %v19020_v42 = vld [vmem:[#allocation46_spill] sm:$0xff] }
 0x5b4   : > { %v13314_v21 = vpop.f32.mrf.mxu0  ;;  %v11048_v53 = vmax.f32 %v11016_v20, 0.0  ;;  %v10941_v7 = vadd.f32 %v18340_v11, %v10902_v45  ;;  %v10939_v10 = vadd.f32 %v18340_v11, %v10900_v5  ;;  %v11036_v22 = vmax.f32 %v11004_v12, 0.0  ;;  %v19025_v12 = vld [vmem:[#allocation49_spill] sm:$0xff] }
 0x5b5   : > { %v10951_v43 = vadd.f32 %v18340_v11, %v10912_v34  ;;  %v10917_v51 = vadd.f32 %v13314_v21, %v18394_v32  ;;  %13419 = vxpose.xlu0.b32.cont [2/16] (narrow) %v13418_v56, 8  ;;  %v11046_v63 = vmax.f32 %v11014_v54, 0.0  ;;  %v11017_v4 = vadd.f32 %v10953_v8, %v19017_v18 }
 0x5b6   : > { %v10860_v28 = vpop.f32.mrf.mxu0  ;;  %v18461_v27 = vpack.i.bf16 %v11048_v53, %v11032_v9  ;;  %v11003_v20 = vadd.f32 %v10939_v10, %v19021_v46  ;;  %v11005_v6 = vadd.f32 %v10941_v7, %v19022_v57  ;;  %v10904_v26 = vadd.f32 %v18379_v47, %v18366_v35 }
 0x5b7   : > { %v10956_v62 = vadd.f32 %v18340_v11, %v10917_v51  ;;  %v10915_v52 = vadd.f32 %v10860_v28, %v18397_v38  ;;  %v13424_v24 = vpack.i.bf16 %v11046_v63, %v11030_v13  ;;  %v11015_v32 = vadd.f32 %v10951_v43, %v19019_v37  ;;  %v19026_v63 = vld [vmem:[#allocation38_spill] sm:$0xff] }
 0x5b8   : > { %v13315_v3 = vpop.f32.mrf.mxu0  ;;  %v11049_v25 = vmax.f32 %v11017_v4, 0.0  ;;  %v11034_v13 = vmax.f32 %v11002_v40, 0.0  ;;  %v19027_v4 = vld [vmem:[#allocation37_spill] sm:$0xff] }
 0x5b9   : > { %v10954_v16 = vadd.f32 %v18340_v11, %v10915_v52  ;;  %v10918_v9 = vadd.f32 %v13315_v3, %v18400_v49  ;;  %13421 = vxpose.xlu0.b32.cont [3/16] (narrow) %v13420_v2, 8  ;;  %v11047_v31 = vmax.f32 %v11015_v32, 0.0  ;;  %v11020_v60 = vadd.f32 %v10956_v62, %v19020_v42  ;;  %v19029_v52 = vld [vmem:[#allocation40_spill] sm:$0xff] }
 0x5ba   : > { %v10863_v44 = vpop.f32.mrf.mxu0  ;;  %v13430_v38 = vpack.i.bf16 %v11049_v25, %v11033_v48  ;;  %v10944_v49 = vadd.f32 %v18340_v11, %v18334_v33  ;;  %v10942_v2 = vadd.f32 %v18340_v11, %v10903_v29  ;;  %v11035_v33 = vmax.f32 %v11003_v20, 0.0  ;;  %v19033_v20 = vld [vmem:[#allocation53_spill] sm:$0xff] }
 0x5bb   : > { %v10957_v39 = vadd.f32 %v18340_v11, %v10918_v9  ;;  %v10916_v0 = vadd.f32 %v10863_v44, %v18404_v61  ;;  %v13426_v45 = vpack.i.bf16 %v11047_v31, %v11031_v55  ;;  %v11018_v5 = vadd.f32 %v10954_v16, %v19023_v36  ;;  %v19024_v61 = vld [vmem:[#allocation48_spill] sm:$0xff]  ;;  %v19030_v55 = vld [vmem:[#allocation51_spill] sm:$0xff]  ;;  %v19031_v31 = vld [vmem:[#allocation42_spill] sm:$0xff] }
 0x5bc   : > { %v13318_v8 = vpop.f32.mrf.mxu0  ;;  %v11052_v34 = vmax.f32 %v11020_v60, 0.0  ;;  %v11037_v48 = vmax.f32 %v11005_v6, 0.0  ;;  %v11006_v18 = vadd.f32 %v10942_v2, %v19026_v63  ;;  %v11008_v7 = vadd.f32 %v10944_v49, %v19027_v4  ;;  %v19032_v60 = vld [vmem:[#allocation52_spill] sm:$0xff] }
 0x5bd   : > { %v10955_v56 = vadd.f32 %v18340_v11, %v10916_v0  ;;  %v10921_v23 = vadd.f32 %v13318_v8, %v18407_v41  ;;  %13423 = vxpose.xlu0.b32.cont [4/16] (narrow) %v13422_v19, 8  ;;  %v11050_v54 = vmax.f32 %v11018_v5, 0.0  ;;  %v11021_v21 = vadd.f32 %v10957_v39, %v19024_v61 }
 0x5be   : > { %v10876_v1 = vpop.f32.mrf.mxu0  ;;  %v13436_v53 = vpack.i.bf16 %v11052_v34, %v11036_v22  ;;  %v10943_v41 = vadd.f32 %v18340_v11, %v10904_v26  ;;  %v11009_v37 = vadd.f32 %v10945_v17, %v19029_v52  ;;  %v11038_v22 = vmax.f32 %v11006_v18, 0.0 }
 0x5bf   : > { %v10960_v14 = vadd.f32 %v18340_v11, %v10921_v23  ;;  %v10919_v35 = vadd.f32 %v10876_v1, %v18413_v30  ;;  %v13432_v47 = vpack.i.bf16 %v11050_v54, %v11034_v13  ;;  %v11019_v43 = vadd.f32 %v10955_v56, %v19025_v12 }
 0x5c0   : > { %v13319_v19 = vpop.f32.mrf.mxu0  ;;  %v11053_v51 = vmax.f32 %v11021_v21, 0.0  ;;  %v11040_v16 = vmax.f32 %v11008_v7, 0.0  ;;  %v11007_v42 = vadd.f32 %v10943_v41, %v19031_v31  ;;  %v11041_v6 = vmax.f32 %v11009_v37, 0.0 }
 0x5c1   : > { %v10958_v58 = vadd.f32 %v18340_v11, %v10919_v35  ;;  %v10922_v10 = vadd.f32 %v13319_v19, %v18416_v15  ;;  %13425 = vxpose.xlu0.b32.cont [5/16] (narrow) %v13424_v24, 8  ;;  %v11051_v28 = vmax.f32 %v11019_v43, 0.0  ;;  %v11024_v40 = vadd.f32 %v10960_v14, %v19028_v50 }
 0x5c2   : > { %v10879_v30 = vpop.f32.mrf.mxu0  ;;  %v13438_v62 = vpack.i.bf16 %v11053_v51, %v11037_v48  ;;  %v11039_v39 = vmax.f32 %v11007_v42, 0.0 }
 0x5c3   : > { %v10961_v32 = vadd.f32 %v18340_v11, %v10922_v10  ;;  %v10920_v29 = vadd.f32 %v10879_v30, %v18420_v59  ;;  %v13434_v3 = vpack.i.bf16 %v11051_v28, %v11035_v33  ;;  %v11022_v25 = vadd.f32 %v10958_v58, %v19030_v55 }
 0x5c4   : > { %v11056_v9 = vmax.f32 %v11024_v40, 0.0 }
 0x5c5   : > { %v10959_v15 = vadd.f32 %v18340_v11, %v10920_v29  ;;  %13427 = vxpose.xlu0.b32.cont [6/16] (narrow) %v13426_v45, 8  ;;  %v11054_v24 = vmax.f32 %v11022_v25, 0.0  ;;  %v11025_v44 = vadd.f32 %v10961_v32, %v19032_v60 }
 0x5c6   : > { %v13444_v13 = vpack.i.bf16 %v11056_v9, %v11040_v16 }
 0x5c7   : > { %v13440_v46 = vpack.i.bf16 %v11054_v24, %v11038_v22  ;;  %v11023_v57 = vadd.f32 %v10959_v15, %v19033_v20  ;;  %v11057_v59 = vmax.f32 %v11025_v44, 0.0 }
 0x5c9   : > { %13429 = vxpose.xlu0.b32.cont [7/16] (narrow) %v18461_v27, 8  ;;  %v11055_v0 = vmax.f32 %v11023_v57, 0.0  ;;  %v13446_v36 = vpack.i.bf16 %v11057_v59, %v11041_v6 }
 0x5cb   : > { %v13442_v11 = vpack.i.bf16 %v11055_v0, %v11039_v39 }
 0x5cd   : > { %13431 = vxpose.xlu0.b32.cont [8/16] (narrow) %v13430_v38, 8 }
 0x5d1   : > { %13433 = vxpose.xlu0.b32.cont [9/16] (narrow) %v13432_v47, 8 }
 0x5d5   : > { %13435 = vxpose.xlu0.b32.cont [10/16] (narrow) %v13434_v3, 8 }
 0x5d9   : > { %13437 = vxpose.xlu0.b32.cont [11/16] (narrow) %v13436_v53, 8 }
 0x5dd   : > { %13439 = vxpose.xlu0.b32.cont [12/16] (narrow) %v13438_v62, 8 }
 0x5e1   : > { %13441 = vxpose.xlu0.b32.cont [13/16] (narrow) %v13440_v46, 8 }
 0x5e5   : > { %13443 = vxpose.xlu0.b32.cont [14/16] (narrow) %v13442_v11, 8 }
 0x5e9   : > { %13445 = vxpose.xlu0.b32.cont [15/16] (narrow) %v13444_v13, 8 }
 0x5ed   : > { %13447 = vxpose.xlu0.b32.end [16/16] (narrow) %v13446_v36, 8 }
 0x62d   : > { %v13448_v45 = vpop.trf.xlu0 }
 0x62e   : > { %v13452_v27 = vunpack.i.h.bf16 %v13448_v45  ;;  %v13449_v5 = vunpack.i.l.bf16 %v13448_v45 }
 0x630   : > { %v11950_v49 = vpack.c.bf16 %v13452_v27, %v13449_v5 }
 0x632   : > { %11130 = vst [vmem:[%s340_s23] sm:$0xff] %v11950_v49 }
 0x633   : > { %13922 = shalt.err (!%p13919_p10)
}
 0x634   : > { %s13923_s15 = scalar_lea.hbm %s11144_s30, 128  ;;  %s13927_s21 = scalar_lea.hbm %s18548_s7, 256 }
 0x635   : > { %p13924_p6 = scmp.ne.s32.totalorder %s11144_s30, %s13923_s15  ;;  %p13928_p3 = scmp.lt.s32.totalorder %s11144_s30, %s18548_s7 }
 0x636   : > { %p13929_p11 = scmp.lt.s32.totalorder %s13927_s21, %s13923_s15 }
 0x637   : > { %p13925_p4 = pnand %p13924_p6, %p19034_p1 }
 0x638   : > { %p13930_p5 = por %p13929_p11, %p13928_p3 }
 0x639   : > { %p13926_p8 = pneg %p13925_p4 }
 0x63b   : > { %p13931_p7 = pnand %p13930_p5, %p13926_p8 }
 0x63d   : > { %13934 = shalt.err (!%p13931_p7)
}
 0x63e   : > { %13350 = dma.vmem_to_hbm [thread:$0]  (%p19034_p1), %s11147_s1, 128, %s11144_s30, %s11132_s9  }
 0x63f PF: > { %s11158_s23 = sand.u32 1, %s13969_s24   ;;  %p19035_p12 = scmp.ne.s32.totalorder %s18627_s8, 0 }
 0x640   : > { %p19036_p9 = scmp.ge.s32.totalorder %s13981_s27, 2  ;;  %s11159_s16 = scalar_lea.sflag [#allocation6], %s11158_s23 }
 0x642   : > { %p13367_p13 = pnand %p19036_p9, %p19035_p12 }
 0x644   : > { %p13368_p0 = pneg %p13367_p13 }
 0x646   : > { %13964 = dma.done.wait (%p13368_p0), %s11159_s16, 128  }
 0x647   : > { %13966 = vsyncadd (%p13368_p0), %s11159_s16, 4294967168  ;;  %p22_p2 = scmp.ge.s32.totalorder %s14120_s14, 4   ;;  %s19037_s24 = smov %s13973_s25 }
 0x648   : > { %s19038_s25 = smov %s13977_s26  ;;  %s19039_s26 = smov %s14130_s17 }
 0x649   : > { %s19040_s27 = smov %s14120_s14  ;;  %24 = sbr.rel (!%p22_p2) target bundleno = 9 (0x9), region = 124 }
 0x64e   :  { %11164 = vsyncpa [#allocation5], 1 }
 0x64f   :  { %11166 = vsyncpa [#allocation5 + $0x1], 1 }
 0x650   :  { %11167 = vsyncpa [#allocation8], 1 }
 0x651   :  { %11168 = vsyncpa [#allocation11], 1 }
 0x652   :  { %11169 = vsyncpa [#allocation6], 1 }
 0x653   :  { %11171 = vsyncpa [#allocation6 + $0x1], 1 }

</bundles_post_ra>
